<compile_context>
chip_gen: v7x
topology: tpu7x:2x2x1
jax: 0.10.0
libtpu: 0.0.40
codegen_flags: <defaults>
</compile_context>

<pallas_src>
import math

import jax
import jax.numpy as jnp
from jax import lax
from jax.experimental import pallas as pl
from jax.experimental.pallas import tpu as pltpu

KH, KW = 100, 3          # Conv2d kernel_size=(100, 3)
BN_EPS = 1e-5
LANE = 128               # TPU lane width


def _conv_bn_silu_kernel(x_ref, b_ref, gamma_ref, beta_ref, o_ref):
    # x_ref:     (W, H_pad)        f32 VMEM -- transposed, zero-padded input (H on lanes)
    # b_ref:     (2*LANE, KW*LANE) f32 VMEM -- banded-Toeplitz conv weights
    # gamma_ref: (1,)              f32 SMEM -- BatchNorm weight
    # beta_ref:  (1,)              f32 SMEM -- BatchNorm bias
    # o_ref:     (H_out, W_out)    f32 VMEM -- final NCHW-plane output (transpose fused)
    h_out, w_out = o_ref.shape
    n_tiles = (h_out + LANE - 1) // LANE
    B = b_ref[...]                                              # (256, KW*128)

    # ---- Conv on the MXU: per output lane-tile, one (W, 256) @ (256, KW*128)
    # matmul produces the KH-reduced partials for all 3 kw taps; the kw
    # combination is a 3-term sublane-shift epilogue (XLU + 2 VPU adds).
    tiles = []
    for t in range(n_tiles):
        xs = x_ref[:, t * LANE: t * LANE + 2 * LANE]            # (W, 256), lane-aligned
        p = jnp.dot(xs, B, preferred_element_type=jnp.float32,
                    precision=lax.Precision.HIGHEST)            # (W, KW*128)
        acc = p[0:w_out, 0:LANE]                                # kw = 0 term
        for kw in range(1, KW):
            acc = acc + p[kw:kw + w_out, kw * LANE:(kw + 1) * LANE]
        tiles.append(acc)                                       # (W_out, 128)

    full = jnp.concatenate(tiles, axis=1) if n_tiles > 1 else tiles[0]   # (W_out, n_tiles*128)

    # ---- BatchNorm2d, training mode: biased batch statistics over the valid
    # (H_out * W_out) region.  Single-pass sum / sum-of-squares (overlapped
    # reduces); lanes >= h_out are padding junk and get masked out.
    if n_tiles * LANE != h_out:
        lane_id = lax.broadcasted_iota(jnp.int32, full.shape, 1)
        masked = jnp.where(lane_id < h_out, full, 0.0)
    else:
        masked = full
    n = jnp.float32(h_out * w_out)
    s1 = jnp.sum(masked, keepdims=True)                         # (1, 1)
    s2 = jnp.sum(masked * masked, keepdims=True)                # (1, 1)
    mean = s1 / n
    var = s2 / n - mean * mean
    scale = lax.rsqrt(var + BN_EPS) * gamma_ref[0]

    # ---- Normalize + sigmoid gate (exact reciprocal) + fused output transpose.
    v2 = (full - mean) * scale + beta_ref[0]
    v3 = pl.reciprocal(1.0 + jnp.exp(-v2), approx=False)        # exact sigmoid
    v4 = v2 * v3                                                # (W_out, n_tiles*128)
    o_ref[...] = v4.T[0:h_out, :]                               # (H_out, W_out)


def model_forward(x_nchw, conv_weight_2d, gamma, beta):
    """x_nchw: (1, 1, H, W) f32; conv_weight_2d: (KH, KW) f32; gamma/beta: (1,) f32."""
    assert x_nchw.shape[0] == 1 and x_nchw.shape[1] == 1
    x2d = x_nchw[0, 0].astype(jnp.float32)                      # (H, W)
    H, W = x2d.shape
    h_out, w_out = H - KH + 1, W - KW + 1
    n_tiles = (h_out + LANE - 1) // LANE
    pad_h = (n_tiles - 1) * LANE + 2 * LANE                     # lanes the last tile reads

    # Single input-layout op (transpose + zero-pad fuse in XLA): long H axis
    # lane-dense, short W axis on sublanes, padded so every output lane-tile
    # reads an aligned (W, 256) slab.
    xT = jnp.pad(x2d.T, ((0, 0), (0, pad_h - H)))               # (W, pad_h)

    # Weight-only banded-Toeplitz precompute: B[c, kw*LANE + l] = w[c - l, kw]
    # for 0 <= c - l < KH, else 0.  Shape (2*LANE, KW*LANE).
    w_f32 = conv_weight_2d.astype(jnp.float32)                  # (KH, KW)
    c = jnp.arange(2 * LANE, dtype=jnp.int32)[:, None]
    l = jnp.arange(LANE, dtype=jnp.int32)[None, :]
    d = c - l
    band = (d >= 0) & (d < KH)
    d_clip = jnp.clip(d, 0, KH - 1)
    B = jnp.concatenate(
        [jnp.where(band, w_f32[d_clip, kw], 0.0) for kw in range(KW)], axis=1)

    flops = 2 * n_tiles * W * (2 * LANE) * (KW * LANE) + 10 * h_out * w_out
    bytes_accessed = 4 * (W * pad_h + B.size + h_out * w_out)
    transcendentals = h_out * w_out

    out = pl.pallas_call(
        _conv_bn_silu_kernel,
        out_shape=jax.ShapeDtypeStruct((h_out, w_out), jnp.float32),
        in_specs=[
            pl.BlockSpec(memory_space=pltpu.MemorySpace.VMEM),   # x (transposed, padded)
            pl.BlockSpec(memory_space=pltpu.MemorySpace.VMEM),   # Toeplitz conv weights
            pl.BlockSpec(memory_space=pltpu.MemorySpace.SMEM),   # bn gamma
            pl.BlockSpec(memory_space=pltpu.MemorySpace.SMEM),   # bn beta
        ],
        out_specs=pl.BlockSpec(memory_space=pltpu.MemorySpace.VMEM),
        cost_estimate=pl.CostEstimate(flops=int(flops),
                                      transcendentals=int(transcendentals),
                                      bytes_accessed=int(bytes_accessed)),
    )(xT, B, gamma, beta)

    return out[None, None]                                       # NCHW (1, 1, H_out, W_out)


if __name__ == "__main__":
    key = jax.random.PRNGKey(0)
    kx, kw = jax.random.split(key)

    # Input matching the reference program: torch.randn(1, 1, 800, 8)
    x1 = jax.random.normal(kx, (1, 1, 800, 8), dtype=jnp.float32)

    # Deterministic parameter init (shapes from the module's __init__):
    #   conv.weight: (1, 1, 100, 3), PyTorch-style uniform(-1/sqrt(fan_in), 1/sqrt(fan_in))
    #   bn.weight = 1, bn.bias = 0 (default BatchNorm2d affine init)
    fan_in = 1 * KH * KW
    bound = 1.0 / math.sqrt(fan_in)
    w_conv = jax.random.uniform(kw, (1, 1, KH, KW), jnp.float32, -bound, bound)
    gamma = jnp.ones((1,), jnp.float32)
    beta = jnp.zeros((1,), jnp.float32)
    # TODO(synk): BatchNorm running_mean/var buffer updates (module state side
    # effect) are not modeled; they do not affect the training-mode forward output.

    out = model_forward(x1, w_conv[0, 0], gamma, beta)
    out = jax.block_until_ready(out)

    # Pure-JAX reference (training-mode BatchNorm semantics) for a sanity check.
    v1 = lax.conv_general_dilated(
        x1, w_conv, window_strides=(1, 1), padding="VALID",
        dimension_numbers=("NCHW", "OIHW", "NCHW"),
        precision=lax.Precision.HIGHEST)
    mean = jnp.mean(v1)
    var = jnp.mean((v1 - mean) ** 2)            # biased variance, as PyTorch BN uses
    v2 = (v1 - mean) / jnp.sqrt(var + BN_EPS) * gamma[0] + beta[0]
    ref = v2 * jax.nn.sigmoid(v2)

    assert out.shape == (1, 1, 701, 6), out.shape
    max_err = float(jnp.max(jnp.abs(out - ref)))
    assert max_err < 1e-4, f"max abs error {max_err}"

    print("KERNEL_OK")
</pallas_src>

<mosaic_0001>
module attributes {stable_mosaic.version = 11 : i64} {
  func.func @_conv_bn_silu_kernel(%arg0: memref<8x896xf32, #tpu.memory_space<vmem>>, %arg1: memref<256x384xf32, #tpu.memory_space<vmem>>, %arg2: memref<1xf32, #tpu.memory_space<smem>>, %arg3: memref<1xf32, #tpu.memory_space<smem>>, %arg4: memref<701x6xf32, #tpu.memory_space<vmem>>) attributes {dimension_semantics = [], scalar_prefetch = 0 : i64, scratch_operands = 0 : i64, tpu.core_type = #tpu.core_type<tc>} {
    %c0 = arith.constant 0 : index
    %c0_0 = arith.constant 0 : index
    %0 = vector.load %arg1[%c0, %c0_0] : memref<256x384xf32, #tpu.memory_space<vmem>>, vector<256x384xf32>
    %c0_1 = arith.constant 0 : index
    %c0_2 = arith.constant 0 : index
    %1 = vector.load %arg0[%c0_1, %c0_2] : memref<8x896xf32, #tpu.memory_space<vmem>>, vector<8x256xf32>
    %cst = arith.constant dense<0.000000e+00> : vector<8x384xf32>
    %2 = tpu.matmul %1, %0, %cst {dimension_numbers = #tpu.dot_dimension_numbers<[1], [0], [0], [1], [0, 0, 1, 1], [], []>, precision = #tpu.contract_precision<fp32>} : vector<8x256xf32>, vector<256x384xf32>, vector<8x384xf32> -> vector<8x384xf32>
    %3 = vector.extract_strided_slice %2 {offsets = [0, 0], sizes = [6, 128], strides = [1, 1]} : vector<8x384xf32> to vector<6x128xf32>
    %4 = vector.extract_strided_slice %2 {offsets = [1, 128], sizes = [6, 128], strides = [1, 1]} : vector<8x384xf32> to vector<6x128xf32>
    %5 = arith.addf %3, %4 : vector<6x128xf32>
    %6 = vector.extract_strided_slice %2 {offsets = [2, 256], sizes = [6, 128], strides = [1, 1]} : vector<8x384xf32> to vector<6x128xf32>
    %7 = arith.addf %5, %6 : vector<6x128xf32>
    %c0_3 = arith.constant 0 : index
    %c128 = arith.constant 128 : index
    %8 = vector.load %arg0[%c0_3, %c128] : memref<8x896xf32, #tpu.memory_space<vmem>>, vector<8x256xf32>
    %cst_4 = arith.constant dense<0.000000e+00> : vector<8x384xf32>
    %9 = tpu.matmul %8, %0, %cst_4 {dimension_numbers = #tpu.dot_dimension_numbers<[1], [0], [0], [1], [0, 0, 1, 1], [], []>, precision = #tpu.contract_precision<fp32>} : vector<8x256xf32>, vector<256x384xf32>, vector<8x384xf32> -> vector<8x384xf32>
    %10 = vector.extract_strided_slice %9 {offsets = [0, 0], sizes = [6, 128], strides = [1, 1]} : vector<8x384xf32> to vector<6x128xf32>
    %11 = vector.extract_strided_slice %9 {offsets = [1, 128], sizes = [6, 128], strides = [1, 1]} : vector<8x384xf32> to vector<6x128xf32>
    %12 = arith.addf %10, %11 : vector<6x128xf32>
    %13 = vector.extract_strided_slice %9 {offsets = [2, 256], sizes = [6, 128], strides = [1, 1]} : vector<8x384xf32> to vector<6x128xf32>
    %14 = arith.addf %12, %13 : vector<6x128xf32>
    %c0_5 = arith.constant 0 : index
    %c256 = arith.constant 256 : index
    %15 = vector.load %arg0[%c0_5, %c256] : memref<8x896xf32, #tpu.memory_space<vmem>>, vector<8x256xf32>
    %cst_6 = arith.constant dense<0.000000e+00> : vector<8x384xf32>
    %16 = tpu.matmul %15, %0, %cst_6 {dimension_numbers = #tpu.dot_dimension_numbers<[1], [0], [0], [1], [0, 0, 1, 1], [], []>, precision = #tpu.contract_precision<fp32>} : vector<8x256xf32>, vector<256x384xf32>, vector<8x384xf32> -> vector<8x384xf32>
    %17 = vector.extract_strided_slice %16 {offsets = [0, 0], sizes = [6, 128], strides = [1, 1]} : vector<8x384xf32> to vector<6x128xf32>
    %18 = vector.extract_strided_slice %16 {offsets = [1, 128], sizes = [6, 128], strides = [1, 1]} : vector<8x384xf32> to vector<6x128xf32>
    %19 = arith.addf %17, %18 : vector<6x128xf32>
    %20 = vector.extract_strided_slice %16 {offsets = [2, 256], sizes = [6, 128], strides = [1, 1]} : vector<8x384xf32> to vector<6x128xf32>
    %21 = arith.addf %19, %20 : vector<6x128xf32>
    %c0_7 = arith.constant 0 : index
    %c384 = arith.constant 384 : index
    %22 = vector.load %arg0[%c0_7, %c384] : memref<8x896xf32, #tpu.memory_space<vmem>>, vector<8x256xf32>
    %cst_8 = arith.constant dense<0.000000e+00> : vector<8x384xf32>
    %23 = tpu.matmul %22, %0, %cst_8 {dimension_numbers = #tpu.dot_dimension_numbers<[1], [0], [0], [1], [0, 0, 1, 1], [], []>, precision = #tpu.contract_precision<fp32>} : vector<8x256xf32>, vector<256x384xf32>, vector<8x384xf32> -> vector<8x384xf32>
    %24 = vector.extract_strided_slice %23 {offsets = [0, 0], sizes = [6, 128], strides = [1, 1]} : vector<8x384xf32> to vector<6x128xf32>
    %25 = vector.extract_strided_slice %23 {offsets = [1, 128], sizes = [6, 128], strides = [1, 1]} : vector<8x384xf32> to vector<6x128xf32>
    %26 = arith.addf %24, %25 : vector<6x128xf32>
    %27 = vector.extract_strided_slice %23 {offsets = [2, 256], sizes = [6, 128], strides = [1, 1]} : vector<8x384xf32> to vector<6x128xf32>
    %28 = arith.addf %26, %27 : vector<6x128xf32>
    %c0_9 = arith.constant 0 : index
    %c512 = arith.constant 512 : index
    %29 = vector.load %arg0[%c0_9, %c512] : memref<8x896xf32, #tpu.memory_space<vmem>>, vector<8x256xf32>
    %cst_10 = arith.constant dense<0.000000e+00> : vector<8x384xf32>
    %30 = tpu.matmul %29, %0, %cst_10 {dimension_numbers = #tpu.dot_dimension_numbers<[1], [0], [0], [1], [0, 0, 1, 1], [], []>, precision = #tpu.contract_precision<fp32>} : vector<8x256xf32>, vector<256x384xf32>, vector<8x384xf32> -> vector<8x384xf32>
    %31 = vector.extract_strided_slice %30 {offsets = [0, 0], sizes = [6, 128], strides = [1, 1]} : vector<8x384xf32> to vector<6x128xf32>
    %32 = vector.extract_strided_slice %30 {offsets = [1, 128], sizes = [6, 128], strides = [1, 1]} : vector<8x384xf32> to vector<6x128xf32>
    %33 = arith.addf %31, %32 : vector<6x128xf32>
    %34 = vector.extract_strided_slice %30 {offsets = [2, 256], sizes = [6, 128], strides = [1, 1]} : vector<8x384xf32> to vector<6x128xf32>
    %35 = arith.addf %33, %34 : vector<6x128xf32>
    %c0_11 = arith.constant 0 : index
    %c640 = arith.constant 640 : index
    %36 = vector.load %arg0[%c0_11, %c640] : memref<8x896xf32, #tpu.memory_space<vmem>>, vector<8x256xf32>
    %cst_12 = arith.constant dense<0.000000e+00> : vector<8x384xf32>
    %37 = tpu.matmul %36, %0, %cst_12 {dimension_numbers = #tpu.dot_dimension_numbers<[1], [0], [0], [1], [0, 0, 1, 1], [], []>, precision = #tpu.contract_precision<fp32>} : vector<8x256xf32>, vector<256x384xf32>, vector<8x384xf32> -> vector<8x384xf32>
    %38 = vector.extract_strided_slice %37 {offsets = [0, 0], sizes = [6, 128], strides = [1, 1]} : vector<8x384xf32> to vector<6x128xf32>
    %39 = vector.extract_strided_slice %37 {offsets = [1, 128], sizes = [6, 128], strides = [1, 1]} : vector<8x384xf32> to vector<6x128xf32>
    %40 = arith.addf %38, %39 : vector<6x128xf32>
    %41 = vector.extract_strided_slice %37 {offsets = [2, 256], sizes = [6, 128], strides = [1, 1]} : vector<8x384xf32> to vector<6x128xf32>
    %42 = arith.addf %40, %41 : vector<6x128xf32>
    %43 = tpu.concatenate %7, %14, %21, %28, %35, %42 in 1 : vector<6x128xf32>, vector<6x128xf32>, vector<6x128xf32>, vector<6x128xf32>, vector<6x128xf32>, vector<6x128xf32> -> vector<6x768xf32>
    %44 = tpu.iota {dimensions = array<i32: 1>} : vector<6x768xi32>
    %c701_i32 = arith.constant 701 : i32
    %45 = vector.broadcast %c701_i32 : i32 to vector<6x768xi32>
    %46 = arith.cmpi slt, %44, %45 : vector<6x768xi32>
    %cst_13 = arith.constant 0.000000e+00 : f32
    %47 = vector.broadcast %cst_13 : f32 to vector<6x768xf32>
    %48 = arith.select %46, %43, %47 : vector<6x768xi1>, vector<6x768xf32>
    %49 = vector.shape_cast %48 : vector<6x768xf32> to vector<1x6x768xf32>
    %cst_14 = arith.constant dense<0.000000e+00> : vector<1xf32>
    %50 = vector.multi_reduction <add>, %49, %cst_14 [1, 2] : vector<1x6x768xf32> to vector<1xf32>
    %51 = vector.shape_cast %50 : vector<1xf32> to vector<1x1x1xf32>
    %52 = vector.extract %51[0, 0, 0] : f32 from vector<1x1x1xf32>
    %53 = vector.broadcast %52 : f32 to vector<1x1xf32>
    %54 = arith.mulf %48, %48 : vector<6x768xf32>
    %55 = vector.shape_cast %54 : vector<6x768xf32> to vector<1x6x768xf32>
    %cst_15 = arith.constant dense<0.000000e+00> : vector<1xf32>
    %56 = vector.multi_reduction <add>, %55, %cst_15 [1, 2] : vector<1x6x768xf32> to vector<1xf32>
    %57 = vector.shape_cast %56 : vector<1xf32> to vector<1x1x1xf32>
    %58 = vector.extract %57[0, 0, 0] : f32 from vector<1x1x1xf32>
    %59 = vector.broadcast %58 : f32 to vector<1x1xf32>
    %cst_16 = arith.constant 4.206000e+03 : f32
    %60 = vector.broadcast %cst_16 : f32 to vector<1x1xf32>
    %61 = arith.divf %53, %60 : vector<1x1xf32>
    %cst_17 = arith.constant 4.206000e+03 : f32
    %62 = vector.broadcast %cst_17 : f32 to vector<1x1xf32>
    %63 = arith.divf %59, %62 : vector<1x1xf32>
    %64 = arith.mulf %61, %61 : vector<1x1xf32>
    %65 = arith.subf %63, %64 : vector<1x1xf32>
    %cst_18 = arith.constant 9.99999974E-6 : f32
    %66 = vector.broadcast %cst_18 : f32 to vector<1x1xf32>
    %67 = arith.addf %65, %66 : vector<1x1xf32>
    %68 = math.rsqrt %67 : vector<1x1xf32>
    %c0_19 = arith.constant 0 : index
    %69 = memref.load %arg2[%c0_19] : memref<1xf32, #tpu.memory_space<smem>>
    %70 = vector.broadcast %69 : f32 to vector<1x1xf32>
    %71 = arith.mulf %68, %70 : vector<1x1xf32>
    %72 = vector.broadcast %61 : vector<1x1xf32> to vector<6x768xf32>
    %73 = arith.subf %43, %72 : vector<6x768xf32>
    %74 = vector.broadcast %71 : vector<1x1xf32> to vector<6x768xf32>
    %75 = arith.mulf %73, %74 : vector<6x768xf32>
    %c0_20 = arith.constant 0 : index
    %76 = memref.load %arg3[%c0_20] : memref<1xf32, #tpu.memory_space<smem>>
    %77 = vector.broadcast %76 : f32 to vector<6x768xf32>
    %78 = arith.addf %75, %77 : vector<6x768xf32>
    %cst_21 = arith.constant 0.000000e+00 : f32
    %79 = vector.broadcast %cst_21 : f32 to vector<6x768xf32>
    %80 = arith.subf %79, %78 : vector<6x768xf32>
    %81 = math.exp %80 : vector<6x768xf32>
    %cst_22 = arith.constant 1.000000e+00 : f32
    %82 = vector.broadcast %cst_22 : f32 to vector<6x768xf32>
    %83 = arith.addf %82, %81 : vector<6x768xf32>
    %84 = tpu.reciprocal %83 : vector<6x768xf32> -> vector<6x768xf32>
    %85 = arith.mulf %78, %84 : vector<6x768xf32>
    %86 = tpu.transpose %85, [1, 0] : vector<6x768xf32> -> vector<768x6xf32>
    %87 = vector.extract_strided_slice %86 {offsets = [0, 0], sizes = [701, 6], strides = [1, 1]} : vector<768x6xf32> to vector<701x6xf32>
    %c0_23 = arith.constant 0 : index
    %c0_24 = arith.constant 0 : index
    %88 = vector.load %arg4[%c0_23, %c0_24] : memref<701x6xf32, #tpu.memory_space<vmem>>, vector<701x6xf32>
    tpu.vector_store %arg4[%c0_23, %c0_24], %87 {strides = array<i32>} : memref<701x6xf32, #tpu.memory_space<vmem>>, vector<701x6xf32>,
    return
  }
}

</mosaic_0001>

<bundles_post_ra>
// kernel: tpu_custom_call.1
= control target key start
LH: loop header
LB: loop body
LE: loop exit
PB: predicated region body
PF: predicated region fallthrough
CT: control target
= control target key end

     0   :  { %11 = vsyncpa [#allocation5], 0  ;;  %s22809_s0 = inlined_call_operand.hbm [shape: f32[8,896], index: 0, kind: input, shape index: {}]   ;;  %s22810_s1 = inlined_call_operand.hbm [shape: f32[256,384], index: 1, kind: input, shape index: {}]   ;;  %s22811_s2 = inlined_call_operand.<no memory space> [shape: f32[1], index: 2, kind: input, shape index: {}]   ;;  %s22812_s3 = inlined_call_operand.<no memory space> [shape: f32[1], index: 3, kind: input, shape index: {}]   ;;  %s22813_s4 = inlined_call_operand.vmem [shape: f32[701,6], index: 4, kind: output, shape index: {}]  }
   0x1   :  { %12 = vsyncpa [#allocation7], 0  ;;  %s18358_s15 = smov [#allocation4]   ;;  %s18359_s17 = smov [#allocation6]  }
   0x2   :  { %s19_s16 = sshll.u32 %s18358_s15, 4  ;;  %s28_s18 = sshll.u32 %s18359_s17, 4  ;;  %s20_s16 = int_to_ptr.vmem [resolvable:$true] %s19_s16  ;;  %s18387_s18 = int_to_ptr.vmem [resolvable:$true] %s28_s18 }
   0x3   :  { %s18310_s21 = scalar_lea.hbm %s22809_s0, 896 }
   0x4   :  { %p18311_p0 = scmp.ne.s32.totalorder %s22809_s0, %s18310_s21  ;;  %p18314_p1 = scmp.lt.u32.totalorder %s18310_s21, %s22809_s0 }
   0x6   :  { %p18316_p2 = pnand %p18314_p1, %p18311_p0 }
   0x8   :  { %18319 = shalt.err (!%p18316_p2)
}
   0x9   :  { %s18320_s26 = scalar_lea.vmem %s20_s16, 896  ;;  %p18325_p4 = scmp.lt.s32.totalorder %s20_s16, %s20_s16 }
   0xa   :  { %p18321_p3 = scmp.ne.s32.totalorder %s20_s16, %s18320_s26  ;;  %p18326_p5 = scmp.lt.s32.totalorder %s18320_s26, %s18320_s26 }
   0xc   :  { %p18327_p6 = por %p18326_p5, %p18325_p4 }
   0xe   :  { %p18328_p7 = pnand %p18327_p6, %p18321_p3 }
  0x10   :  { %18331 = shalt.err (!%p18328_p7)
}
  0x11   :  { %22 = dma.hbm_to_vmem [thread:$0]  %s22809_s0, 896, %s20_s16, [#allocation5]  }
  0x12   :  { %s18332_s5 = scalar_lea.hbm %s22810_s1, 12288 }
  0x13   :  { %p18333_p8 = scmp.ne.s32.totalorder %s22810_s1, %s18332_s5  ;;  %p18336_p9 = scmp.lt.u32.totalorder %s18332_s5, %s22810_s1 }
  0x15   :  { %p18338_p10 = pnand %p18336_p9, %p18333_p8 }
  0x17   :  { %18341 = shalt.err (!%p18338_p10)
}
  0x18   :  { %s18342_s10 = scalar_lea.vmem %s18387_s18, 12288  ;;  %p18347_p12 = scmp.lt.s32.totalorder %s18387_s18, %s18387_s18 }
  0x19   :  { %p18343_p11 = scmp.ne.s32.totalorder %s18387_s18, %s18342_s10  ;;  %p18348_p13 = scmp.lt.s32.totalorder %s18342_s10, %s18342_s10 }
  0x1b   :  { %p18349_p0 = por %p18348_p13, %p18347_p12 }
  0x1d   :  { %p18350_p1 = pnand %p18349_p0, %p18343_p11 }
  0x1f   :  { %18353 = shalt.err (!%p18350_p1)
}
  0x20   :  { %s18360_s0 = smov 384   ;;  %s18361_s11 = smov 24  }
  0x21   :  { %34 = dma.hbm_to_vmem [thread:$0]  %s22810_s1, 12288, %s18387_s18, [#allocation7], %s18360_s0, %s18360_s0, %s18361_s11  }
  0x22   :  { %18354 = dma.done.wait [#allocation5], 896  }
  0x23   :  { %18355 = vsyncadd [#allocation5], 4294966400 }
  0x24   :  { %18356 = dma.done.wait [#allocation7], 12288  }
  0x25   :  { %18357 = vsyncadd [#allocation7], 4294955008  ;;  %v18418_v0 = vld [vmem:[#allocation6 + $0x8] sm:$0xff]  ;;  %v18420_v1 = vld [vmem:[#allocation6 + $0x20] sm:$0xff]  ;;  %vm13096_vm0 = vcmask 1045504   ;;  %vm13403_vm2 = vcmask 48128  }
  0x26   :  { %v18422_v2 = vld [vmem:[#allocation6 + $0x190] sm:$0xff]  ;;  %v22825_v3 = vand.u32 4294901760, %v18418_v0  ;;  %v22824_v4 = vand.u32 4294901760, %v18420_v1  ;;  %v18426_v5 = vld [vmem:[#allocation6 + $0x1a8] sm:$0xff]  ;;  %v18429_v7 = vld [vmem:[#allocation6] sm:$0xff]  ;;  %vm13491_vm3 = vcmask 45056  }
  0x27   :  { %v22839_v6 = vand.u32 4294901760, %v18422_v2  ;;  %v18431_v8 = vld [vmem:[#allocation6 + $0x18] sm:$0xff]  ;;  %v22838_v9 = vand.u32 4294901760, %v18426_v5  ;;  %v22823_v10 = vand.u32 4294901760, %v18429_v7  ;;  %v18436_v12 = vld [vmem:[#allocation6 + $0x10] sm:$0xff]  ;;  %v18438_v13 = vld [vmem:[#allocation6 + $0x28] sm:$0xff] }
  0x28   :  { %v22820_v11 = vand.u32 4294901760, %v18431_v8  ;;  %v18440_v14 = vld [vmem:[#allocation6 + $0x38] sm:$0xff]  ;;  %v18446_v15 = vpack.c.bf16 %v22824_v4, %v22825_v3  ;;  %v22835_v16 = vand.u32 4294901760, %v18436_v12  ;;  %v22834_v17 = vand.u32 4294901760, %v18438_v13  ;;  %v18450_v18 = vld [vmem:[#allocation6 + $0x50] sm:$0xff]  ;;  %v18453_v20 = vld [vmem:[#allocation6 + $0x1c0] sm:$0xff] }
  0x29   :  { %v22819_v19 = vand.u32 4294901760, %v18440_v14  ;;  %v18455_v21 = vld [vmem:[#allocation6 + $0x1d8] sm:$0xff]  ;;  %v18461_v22 = vpack.c.bf16 %v22838_v9, %v22839_v6  ;;  %v22818_v24 = vand.u32 4294901760, %v18450_v18  ;;  %v22833_v25 = vand.u32 4294901760, %v18453_v20  ;;  %v18471_v26 = vld [vmem:[#allocation6 + $0x30] sm:$0xff]  ;;  %v18473_v27 = vld [vmem:[#allocation6 + $0x48] sm:$0xff] }
  0x2a   :  { %23667 = vst [vmem:[#allocation10_spill] sm:$0xff] %v18446_v15  ;;  %v18467_v23 = vpack.c.bf16 %v22820_v11, %v22823_v10  ;;  %23670 = vst [vmem:[#allocation13_spill] sm:$0xff] %v18471_v26  ;;  %v18475_v28 = vld [vmem:[#allocation6 + $0x40] sm:$0xff]  ;;  %14760 = vmatprep.subr.bf16.mxu0 %v18446_v15  ;;  %v18482_v29 = vpack.c.bf16 %v22834_v17, %v22835_v16  ;;  %v22832_v30 = vand.u32 4294901760, %v18455_v21  ;;  %v22817_v31 = vand.u32 4294901760, %v18471_v26  ;;  %v18487_v33 = vld [vmem:[#allocation6 + $0x58] sm:$0xff] }
  0x2b   :  { %23668 = vst [vmem:[#allocation11_spill] sm:$0xff] %v18461_v22  ;;  %23671 = vst [vmem:[#allocation14_spill] sm:$0xff] %v18473_v27  ;;  %v22816_v32 = vand.u32 4294901760, %v18473_v27  ;;  %v18489_v34 = vld [vmem:[#allocation6 + $0x68] sm:$0xff]  ;;  %v18491_v35 = vld [vmem:[#allocation6 + $0x80] sm:$0xff]  ;;  %15144 = vmatprep.subr.bf16.mxu1 %v18461_v22  ;;  %v18499_v36 = vpack.c.bf16 %v22818_v24, %v22819_v19  ;;  %v22831_v37 = vand.u32 4294901760, %v18475_v28 }
  0x2c   :  { %23669 = vst [vmem:[#allocation12_spill] sm:$0xff] %v18467_v23  ;;  %23672 = vst [vmem:[#allocation15_spill] sm:$0xff] %v18482_v29  ;;  %14762 = vmatpush1.bf16.msra.mxu0 %v18467_v23  ;;  %v22830_v38 = vand.u32 4294901760, %v18487_v33  ;;  %v22815_v39 = vand.u32 4294901760, %v18489_v34  ;;  %v18504_v40 = vld [vmem:[#allocation6 + $0x1f0] sm:$0xff]  ;;  %v18506_v41 = vld [vmem:[#allocation6 + $0x208] sm:$0xff]  ;;  %15146 = vmatpush3.bf16.msra.mxu1 %v18482_v29  ;;  %v18515_v43 = vpack.c.bf16 %v22832_v30, %v22833_v25 }
  0x2d   :  { %23673 = vst [vmem:[#allocation16_spill] sm:$0xff] %v18489_v34  ;;  %23674 = vst [vmem:[#allocation17_spill] sm:$0xff] %v18491_v35  ;;  %v18508_v42 = vld [vmem:[#allocation6 + $0x60] sm:$0xff]  ;;  %v18521_v44 = vpack.c.bf16 %v22816_v32, %v22817_v31  ;;  %v22814_v45 = vand.u32 4294901760, %v18491_v35  ;;  %v22827_v46 = vand.u32 4294901760, %v18504_v40  ;;  %v18525_v47 = vld [vmem:[#allocation6 + $0x78] sm:$0xff]  ;;  %14764 = vmatprep.subr.bf16.mxu0 %v18499_v36 }
  0x2e   :  { %23675 = vst [vmem:[#allocation18_spill] sm:$0xff] %v18499_v36  ;;  %23676 = vst [vmem:[#allocation19_spill] sm:$0xff] %v18508_v42  ;;  %v18527_v48 = vld [vmem:[#allocation6 + $0x70] sm:$0xff]  ;;  %v18529_v49 = vld [vmem:[#allocation6 + $0x88] sm:$0xff]  ;;  %v18536_v50 = vpack.c.bf16 %v22830_v38, %v22831_v37  ;;  %v22826_v51 = vand.u32 4294901760, %v18506_v41  ;;  %v22822_v52 = vand.u32 4294901760, %v18508_v42  ;;  %15148 = vmatprep.subr.bf16.mxu1 %v18515_v43 }
  0x2f   :  { %23677 = vst [vmem:[#allocation20_spill] sm:$0xff] %v18515_v43  ;;  %23678 = vst [vmem:[#allocation21_spill] sm:$0xff] %v18521_v44  ;;  %v22821_v53 = vand.u32 4294901760, %v18525_v47  ;;  %v18541_v54 = vld [vmem:[#allocation6 + $0x98] sm:$0xff]  ;;  %v18543_v55 = vld [vmem:[#allocation6 + $0xb0] sm:$0xff]  ;;  %v18552_v57 = vpack.c.bf16 %v22814_v45, %v22815_v39  ;;  %v22829_v58 = vand.u32 4294901760, %v18527_v48 }
  0x30   :  { %23679 = vst [vmem:[#allocation22_spill] sm:$0xff] %v18525_v47  ;;  %23680 = vst [vmem:[#allocation23_spill] sm:$0xff] %v18536_v50  ;;  %v18545_v56 = vld [vmem:[#allocation6 + $0x220] sm:$0xff]  ;;  %v22828_v59 = vand.u32 4294901760, %v18529_v49  ;;  %v22837_v60 = vand.u32 4294901760, %v18541_v54  ;;  %v18557_v61 = vld [vmem:[#allocation6 + $0x238] sm:$0xff]  ;;  %14766 = vmatpush1.bf16.msra.mxu0 %v18521_v44  ;;  %v18568_v45 = vpack.c.bf16 %v22826_v51, %v22827_v46  ;;  %15150 = vmatpush3.bf16.msra.mxu1 %v18536_v50 }
  0x31   :  { %23681 = vst [vmem:[#allocation24_spill] sm:$0xff] %v18541_v54  ;;  %23682 = vst [vmem:[#allocation25_spill] sm:$0xff] %v18543_v55  ;;  %v18559_v62 = vld [vmem:[#allocation6 + $0x90] sm:$0xff]  ;;  %v18561_v63 = vld [vmem:[#allocation6 + $0xa8] sm:$0xff]  ;;  %v18574_v39 = vpack.c.bf16 %v22821_v53, %v22822_v52  ;;  %v22836_v32 = vand.u32 4294901760, %v18543_v55  ;;  %v22841_v31 = vand.u32 4294901760, %v18545_v56  ;;  %14768 = vmatprep.subr.bf16.mxu0 %v18552_v57 }
  0x32   :  { %23683 = vst [vmem:[#allocation26_spill] sm:$0xff] %v18552_v57  ;;  %23684 = vst [vmem:[#allocation27_spill] sm:$0xff] %v18559_v62  ;;  %v18578_v24 = vld [vmem:[#allocation6 + $0xa0] sm:$0xff]  ;;  %v18580_v19 = vld [vmem:[#allocation6 + $0xb8] sm:$0xff]  ;;  %v18590_v53 = vpack.c.bf16 %v22828_v59, %v22829_v58  ;;  %v22840_v52 = vand.u32 4294901760, %v18557_v61  ;;  %v22843_v10 = vand.u32 4294901760, %v18559_v62  ;;  %15152 = vmatprep.subr.bf16.mxu1 %v18568_v45 }
  0x33   :  { %23685 = vst [vmem:[#allocation28_spill] sm:$0xff] %v18561_v63  ;;  %23686 = vst [vmem:[#allocation29_spill] sm:$0xff] %v18568_v45  ;;  %v18582_v11 = vld [vmem:[#allocation6 + $0xc8] sm:$0xff]  ;;  %v22842_v4 = vand.u32 4294901760, %v18561_v63  ;;  %v18595_v3 = vld [vmem:[#allocation6 + $0xe0] sm:$0xff]  ;;  %v18606_v59 = vpack.c.bf16 %v22836_v32, %v22837_v60  ;;  %v22850_v58 = vand.u32 4294901760, %v18578_v24 }
  0x34   :  { %23687 = vst [vmem:[#allocation30_spill] sm:$0xff] %v18574_v39  ;;  %23688 = vst [vmem:[#allocation31_spill] sm:$0xff] %v18582_v11  ;;  %v18597_v51 = vld [vmem:[#allocation6 + $0x250] sm:$0xff]  ;;  %v18599_v46 = vld [vmem:[#allocation6 + $0x268] sm:$0xff]  ;;  %v18621_v16 = vpack.c.bf16 %v22840_v52, %v22841_v31  ;;  %14770 = vmatpush1.bf16.msra.mxu0 %v18574_v39  ;;  %v23698_v52 = vand.u32 4294901760, %v18580_v19  ;;  %15154 = vmatpush3.bf16.msra.mxu1 %v18590_v53  ;;  %v23701_v39 = vand.u32 4294901760, %v18582_v11 }
  0x35   :  { %23689 = vst [vmem:[#allocation32_spill] sm:$0xff] %v18590_v53  ;;  %23690 = vst [vmem:[#allocation33_spill] sm:$0xff] %v18595_v3  ;;  %v18611_v30 = vld [vmem:[#allocation6 + $0xc0] sm:$0xff]  ;;  %v18613_v25 = vld [vmem:[#allocation6 + $0xd8] sm:$0xff]  ;;  %v18627_v32 = vpack.c.bf16 %v22842_v4, %v22843_v10  ;;  %14772 = vmatprep.subr.bf16.mxu0 %v18606_v59  ;;  %v23706_v53 = vand.u32 4294901760, %v18599_v46 }
  0x36   :  { %23691 = vst [vmem:[#allocation34_spill] sm:$0xff] %v18606_v59  ;;  %23692 = vst [vmem:[#allocation35_spill] sm:$0xff] %v18611_v30  ;;  %v18615_v17 = vld [vmem:[#allocation6 + $0xd0] sm:$0xff]  ;;  %v18631_v6 = vld [vmem:[#allocation6 + $0xe8] sm:$0xff]  ;;  %v18642_v31 = vpack.c.bf16 %v23698_v52, %v22850_v58  ;;  %v23702_v52 = vand.u32 4294901760, %v18595_v3  ;;  %15156 = vmatprep.subr.bf16.mxu1 %v18621_v16  ;;  %v23705_v59 = vand.u32 4294901760, %v18597_v51 }
  0x37   :  { %23693 = vst [vmem:[#allocation36_spill] sm:$0xff] %v18613_v25  ;;  %23694 = vst [vmem:[#allocation37_spill] sm:$0xff] %v18621_v16  ;;  %v18633_v37 = vld [vmem:[#allocation6 + $0xf8] sm:$0xff]  ;;  %v18635_v38 = vld [vmem:[#allocation6 + $0x110] sm:$0xff]  ;;  %v23709_v9 = vand.u32 4294901760, %v18613_v25  ;;  %v23713_v29 = vand.u32 4294901760, %v18615_v17 }
  0x38   :  { %23695 = vst [vmem:[#allocation38_spill] sm:$0xff] %v18627_v32  ;;  %23696 = vst [vmem:[#allocation39_spill] sm:$0xff] %v18633_v37  ;;  %v18647_v60 = vld [vmem:[#allocation6 + $0x280] sm:$0xff]  ;;  %v18649_v57 = vld [vmem:[#allocation6 + $0x298] sm:$0xff]  ;;  %v18659_v58 = vpack.c.bf16 %v23702_v52, %v23701_v39  ;;  %v18675_v39 = vpack.c.bf16 %v23706_v53, %v23705_v59  ;;  %v23708_v52 = vand.u32 4294901760, %v18611_v30  ;;  %v23714_v53 = vand.u32 4294901760, %v18631_v6  ;;  %14774 = vmatpush1.bf16.msra.mxu0 %v18627_v32 }
  0x39   :  { %23697 = vst [vmem:[#allocation40_spill] sm:$0xff] %v18635_v38  ;;  %23699 = vst [vmem:[#allocation41_spill] sm:$0xff] %v18642_v31  ;;  %v18651_v44 = vld [vmem:[#allocation6 + $0xf0] sm:$0xff]  ;;  %v18664_v36 = vld [vmem:[#allocation6 + $0x108] sm:$0xff]  ;;  %v23718_v30 = vand.u32 4294901760, %v18633_v37  ;;  %v23719_v3 = vand.u32 4294901760, %v18635_v38  ;;  %15158 = vmatpush3.bf16.msra.mxu1 %v18642_v31 }
  0x3a   :  { %23700 = vst [vmem:[#allocation42_spill] sm:$0xff] %v18651_v44  ;;  %23703 = vst [vmem:[#allocation43_spill] sm:$0xff] %v18659_v58  ;;  %v18666_v23 = vld [vmem:[#allocation6 + $0x100] sm:$0xff]  ;;  %v18668_v15 = vld [vmem:[#allocation6 + $0x118] sm:$0xff]  ;;  %v18681_v10 = vpack.c.bf16 %v23709_v9, %v23708_v52  ;;  %v18695_v59 = vpack.c.bf16 %v23714_v53, %v23713_v29  ;;  %14776 = vmatprep.subr.bf16.mxu0 %v18659_v58  ;;  %v23722_v32 = vand.u32 4294901760, %v18647_v60  ;;  %v23725_v9 = vand.u32 4294901760, %v18651_v44 }
  0x3b   :  { %23704 = vst [vmem:[#allocation44_spill] sm:$0xff] %v18664_v36  ;;  %23707 = vst [vmem:[#allocation45_spill] sm:$0xff] %v18675_v39  ;;  %v18685_v50 = vld [vmem:[#allocation6 + $0x128] sm:$0xff]  ;;  %v18687_v43 = vld [vmem:[#allocation6 + $0x140] sm:$0xff]  ;;  %v18711_v29 = vpack.c.bf16 %v23719_v3, %v23718_v30  ;;  %v23723_v3 = vand.u32 4294901760, %v18649_v57  ;;  %v23726_v52 = vand.u32 4294901760, %v18664_v36  ;;  %15160 = vmatprep.subr.bf16.mxu1 %v18675_v39 }
  0x3c   :  { %23710 = vst [vmem:[#allocation46_spill] sm:$0xff] %v18681_v10  ;;  %23711 = vst [vmem:[#allocation47_spill] sm:$0xff] %v18685_v50  ;;  %v18689_v16 = vld [vmem:[#allocation6 + $0x2b0] sm:$0xff]  ;;  %v18700_v4 = vld [vmem:[#allocation6 + $0x2c8] sm:$0xff]  ;;  %v23729_v58 = vand.u32 4294901760, %v18666_v23  ;;  %v23734_v39 = vand.u32 4294901760, %v18685_v50  ;;  %14778 = vmatpush1.bf16.msra.mxu0 %v18681_v10 }
  0x3d   :  { %23712 = vst [vmem:[#allocation48_spill] sm:$0xff] %v18687_v43  ;;  %23715 = vst [vmem:[#allocation49_spill] sm:$0xff] %v18695_v59  ;;  %v18702_v45 = vld [vmem:[#allocation6 + $0x120] sm:$0xff]  ;;  %v18704_v25 = vld [vmem:[#allocation6 + $0x138] sm:$0xff]  ;;  %v18728_v30 = vpack.c.bf16 %v23723_v3, %v23722_v32  ;;  %v18734_v53 = vpack.c.bf16 %v23726_v52, %v23725_v9  ;;  %v23730_v32 = vand.u32 4294901760, %v18668_v15  ;;  %v23735_v55 = vand.u32 4294901760, %v18687_v43  ;;  %15162 = vmatpush3.bf16.msra.mxu1 %v18695_v59 }
  0x3e   :  { %23716 = vst [vmem:[#allocation50_spill] sm:$0xff] %v18702_v45  ;;  %23717 = vst [vmem:[#allocation51_spill] sm:$0xff] %v18704_v25  ;;  %v18716_v22 = vld [vmem:[#allocation6 + $0x130] sm:$0xff]  ;;  %v18718_v11 = vld [vmem:[#allocation6 + $0x148] sm:$0xff]  ;;  %v23738_v50 = vand.u32 4294901760, %v18689_v16  ;;  %v23739_v43 = vand.u32 4294901760, %v18700_v4  ;;  %14780 = vmatprep.subr.bf16.mxu0 %v18711_v29 }
  0x3f   :  { %23720 = vst [vmem:[#allocation52_spill] sm:$0xff] %v18711_v29  ;;  %v18720_v63 = vld [vmem:[#allocation6 + $0x158] sm:$0xff]  ;;  %23724 = vst [vmem:[#allocation54_spill] sm:$0xff] %v18728_v30  ;;  %v18738_v62 = vld [vmem:[#allocation6 + $0x170] sm:$0xff]  ;;  %v18747_v3 = vpack.c.bf16 %v23730_v32, %v23729_v58  ;;  %v18762_v54 = vpack.c.bf16 %v23735_v55, %v23734_v39  ;;  %v23741_v39 = vand.u32 4294901760, %v18702_v45  ;;  %v23742_v32 = vand.u32 4294901760, %v18704_v25  ;;  %15164 = vmatprep.subr.bf16.mxu1 %v18728_v30 }
  0x40   :  { %23721 = vst [vmem:[#allocation53_spill] sm:$0xff] %v18720_v63  ;;  %23727 = vst [vmem:[#allocation55_spill] sm:$0xff] %v18734_v53  ;;  %v18740_v31 = vld [vmem:[#allocation6 + $0x2e0] sm:$0xff]  ;;  %v18752_v38 = vld [vmem:[#allocation6 + $0x2f8] sm:$0xff]  ;;  %v18778_v55 = vpack.c.bf16 %v23739_v43, %v23738_v50  ;;  %v23745_v43 = vand.u32 4294901760, %v18716_v22  ;;  %v23746_v50 = vand.u32 4294901760, %v18718_v11  ;;  %14782 = vmatpush1.bf16.msra.mxu0 %v18734_v53 }
  0x41   :  { %23728 = vst [vmem:[#allocation56_spill] sm:$0xff] %v18738_v62  ;;  %23731 = vst [vmem:[#allocation57_spill] sm:$0xff] %v18747_v3  ;;  %v18754_v37 = vld [vmem:[#allocation6 + $0x150] sm:$0xff]  ;;  %v18756_v44 = vld [vmem:[#allocation6 + $0x168] sm:$0xff]  ;;  %v18784_v58 = vpack.c.bf16 %v23742_v32, %v23741_v39  ;;  %v23749_v59 = vand.u32 4294901760, %v18720_v63  ;;  %v23750_v29 = vand.u32 4294901760, %v18738_v62  ;;  %15166 = vmatpush3.bf16.msra.mxu1 %v18747_v3  ;;  %14784 = vmatprep.subr.bf16.mxu0 %v18762_v54 }
  0x42   :  { %23732 = vst [vmem:[#allocation58_spill] sm:$0xff] %v18754_v37  ;;  %23733 = vst [vmem:[#allocation59_spill] sm:$0xff] %v18756_v44  ;;  %v18767_v36 = vld [vmem:[#allocation6 + $0x160] sm:$0xff]  ;;  %v18769_v52 = vld [vmem:[#allocation6 + $0x178] sm:$0xff]  ;;  %v18796_v10 = vpack.c.bf16 %v23746_v50, %v23745_v43  ;;  %v23753_v9 = vand.u32 4294901760, %v18740_v31  ;;  %v23754_v27 = vand.u32 4294901760, %v18752_v38  ;;  %15168 = vmatprep.subr.bf16.mxu1 %v18778_v55 }
  0x43   :  { %23736 = vst [vmem:[#allocation60_spill] sm:$0xff] %v18762_v54  ;;  %v18771_v47 = vld [vmem:[#allocation6 + $0x188] sm:$0xff]  ;;  %23740 = vst [vmem:[#allocation62_spill] sm:$0xff] %v18778_v55  ;;  %v18788_v35 = vld [vmem:[#allocation6 + $0x1a0] sm:$0xff]  ;;  %v18808_v25 = vpack.c.bf16 %v23750_v29, %v23749_v59  ;;  %v23756_v63 = vand.u32 4294901760, %v18754_v37  ;;  %v23757_v59 = vand.u32 4294901760, %v18756_v44 }
  0x44   :  { %23737 = vst [vmem:[#allocation61_spill] sm:$0xff] %v18771_v47  ;;  %23743 = vst [vmem:[#allocation63_spill] sm:$0xff] %v18784_v58  ;;  %v142_v34 = vld [vmem:[#allocation4 + $0x8] sm:$0xff]  ;;  %v18801_v42 = vld [vmem:[#allocation6 + $0x180] sm:$0xff]  ;;  %v18819_v30 = vpack.c.bf16 %v23754_v27, %v23753_v9  ;;  %v23759_v50 = vand.u32 4294901760, %v18767_v36  ;;  %v23760_v62 = vand.u32 4294901760, %v18769_v52  ;;  %14786 = vmatpush1.bf16.msra.mxu0 %v18784_v58 }
  0x45   :  { %23744 = vst [vmem:[#allocation64_spill] sm:$0xff] %v18788_v35  ;;  %23747 = vst [vmem:[#allocation65_spill] sm:$0xff] %v18796_v10  ;;  %v18813_v32 = vld [vmem:[#allocation6 + $0x198] sm:$0xff]  ;;  %v141_v39 = vld [vmem:[#allocation4] sm:$0xff]  ;;  %v18825_v29 = vpack.c.bf16 %v23757_v59, %v23756_v63  ;;  %v18828_v43 = vand.u32 4294901760, %v142_v34  ;;  %v23762_v27 = vand.u32 4294901760, %v18422_v2  ;;  %15170 = vmatpush3.bf16.msra.mxu1 %v18796_v10  ;;  %14788 = vmatprep.subr.bf16.mxu0 %v18808_v25 }
  0x46   :  { %23748 = vst [vmem:[#allocation66_spill] sm:$0xff] %v18801_v42  ;;  %23751 = vst [vmem:[#allocation67_spill] sm:$0xff] %v18808_v25  ;;  %v18835_v26 = vpack.c.bf16 %v23760_v62, %v23759_v50  ;;  %v23763_v63 = vand.u32 4294901760, %v18426_v5  ;;  %v18848_v44 = vld [vmem:[#allocation6 + $0x1b8] sm:$0xff]  ;;  %v23765_v62 = vand.u32 4294901760, %v18771_v47  ;;  %v23766_v50 = vand.u32 4294901760, %v18788_v35  ;;  %15172 = vmatprep.subr.bf16.mxu1 %v18819_v30 }
  0x47   :  { %23752 = vst [vmem:[#allocation68_spill] sm:$0xff] %v18813_v32  ;;  %23755 = vst [vmem:[#allocation69_spill] sm:$0xff] %v18819_v30  ;;  %v18840_v9 = vsub.f32 %v18422_v2, %v23762_v27  ;;  %v18859_v2 = vsub.f32 %v142_v34, %v18828_v43  ;;  %v18862_v27 = vand.u32 4294901760, %v141_v39  ;;  %v23770_v54 = vand.u32 4294901760, %v18436_v12 }
  0x48   :  { %23758 = vst [vmem:[#allocation70_spill] sm:$0xff] %v18825_v29  ;;  %23761 = vst [vmem:[#allocation71_spill] sm:$0xff] %v18835_v26  ;;  %v18845_v59 = vsub.f32 %v18426_v5, %v23763_v63  ;;  %v18856_v53 = vpack.c.bf16 %v23766_v50, %v23765_v62  ;;  %v23771_v62 = vand.u32 4294901760, %v18438_v13  ;;  %v18877_v50 = vld [vmem:[#allocation6 + $0x1d0] sm:$0xff]  ;;  %v23773_v55 = vand.u32 4294901760, %v18801_v42  ;;  %14790 = vmatpush1.bf16.msra.mxu0 %v18825_v29 }
  0x49   :  { %23764 = vst [vmem:[#allocation72_spill] sm:$0xff] %v18848_v44  ;;  %23768 = vst [vmem:[#allocation74_spill] sm:$0xff] %v18859_v2  ;;  %v18870_v3 = vsub.f32 %v18436_v12, %v23770_v54  ;;  %v18880_v5 = vand.u32 4294901760, %v18859_v2  ;;  %v23774_v63 = vand.u32 4294901760, %v18813_v32  ;;  %v18889_v35 = vsub.f32 %v141_v39, %v18862_v27  ;;  %v18921_v32 = vld [vmem:[#allocation6 + $0x1b0] sm:$0xff]  ;;  %15174 = vmatpush3.bf16.msra.mxu1 %v18835_v26 }
  0x4a   :  { %23767 = vst [vmem:[#allocation73_spill] sm:$0xff] %v18856_v53  ;;  %23769 = vst [vmem:[#allocation75_spill] sm:$0xff] %v18862_v27  ;;  %v18875_v34 = vsub.f32 %v18438_v13, %v23771_v62  ;;  %v23777_v13 = vand.u32 4294901760, %v18840_v9  ;;  %v23778_v62 = vand.u32 4294901760, %v18845_v59  ;;  %v23780_v12 = vand.u32 4294901760, %v18453_v20  ;;  %14792 = vmatprep.subr.bf16.mxu0 %v18856_v53  ;;  %v19035_v26 = vld [vmem:[#allocation6 + $0x230] sm:$0xff] }
  0x4b   :  { %23772 = vst [vmem:[#allocation76_spill] sm:$0xff] %v18880_v5  ;;  %v18886_v45 = vpack.c.bf16 %v23774_v63, %v23773_v55  ;;  %23776 = vst [vmem:[#allocation78_spill] sm:$0xff] %v18889_v35  ;;  %v274_v39 = vsub.f32 %v18859_v2, %v18880_v5  ;;  %v18906_v63 = vand.u32 4294901760, %v18889_v35  ;;  %v23781_v58 = vand.u32 4294901760, %v18870_v3 }
  0x4c   :  { %v1655_v54 = vsub.f32 %v18840_v9, %v23777_v13  ;;  %v1662_v47 = vsub.f32 %v18845_v59, %v23778_v62  ;;  %v18912_v62 = vsub.f32 %v18453_v20, %v23780_v12  ;;  %v23782_v10 = vand.u32 4294901760, %v18875_v34  ;;  %v18923_v13 = vld [vmem:[#allocation6 + $0x1c8] sm:$0xff]  ;;  %23808 = vst [vmem:[#allocation91_spill] sm:$0xff] %v19035_v26 }
  0x4d   :  { %23775 = vst [vmem:[#allocation77_spill] sm:$0xff] %v18886_v45  ;;  %23779 = vst [vmem:[#allocation79_spill] sm:$0xff] %v18906_v63  ;;  %v1543_v25 = vsub.f32 %v18870_v3, %v23781_v58  ;;  %v275_v37 = vand.u32 4294901760, %v274_v39  ;;  %v280_v20 = vsub.f32 %v18889_v35, %v18906_v63  ;;  %v23783_v12 = vand.u32 4294901760, %v18848_v44  ;;  %v18942_v63 = vld [vmem:[#allocation6 + $0x1e8] sm:$0xff]  ;;  %v18944_v44 = vld [vmem:[#allocation6 + $0x200] sm:$0xff]  ;;  %14794 = vmatpush1.bf16.msra.mxu0 %v18886_v45 }
  0x4e   :  { %v1656_v55 = vand.u32 4294901760, %v1655_v54  ;;  %v1663_v42 = vand.u32 4294901760, %v1662_v47  ;;  %v1550_v5 = vsub.f32 %v18875_v34, %v23782_v10  ;;  %v23784_v47 = vand.u32 4294901760, %v18877_v50  ;;  %23788 = vst [vmem:[#allocation82_spill] sm:$0xff] %v18942_v63  ;;  %23789 = vst [vmem:[#allocation83_spill] sm:$0xff] %v18944_v44 }
  0x4f   :  { %v22975_v58 = vand.u32 4294901760, %v18912_v62  ;;  %v1544_v10 = vand.u32 4294901760, %v1543_v25  ;;  %v23787_v27 = vand.u32 4294901760, %v18455_v21  ;;  %1528 = vmatprep.mubr.f32.mxu1 %v275_v37  ;;  %276 = vmatprep.mubr.f32.mxu0 %v275_v37 }
  0x50   :  { %v18931_v54 = vpack.c.bf16 %v23784_v47, %v23783_v12  ;;  %v18935_v30 = vpack.c.bf16 %v1663_v42, %v1656_v55  ;;  %v1551_v2 = vand.u32 4294901760, %v1550_v5  ;;  %v18948_v12 = vand.u32 4294901760, %v280_v20  ;;  %v18969_v42 = vld [vmem:[#allocation6 + $0x1e0] sm:$0xff]  ;;  %v18971_v5 = vld [vmem:[#allocation6 + $0x1f8] sm:$0xff] }
  0x51   :  { %v18940_v39 = vsub.f32 %v18455_v21, %v23787_v27  ;;  %v1669_v25 = vsub.f32 %v18912_v62, %v22975_v58  ;;  %v23791_v55 = vand.u32 4294901760, %v18475_v28  ;;  %v23792_v47 = vand.u32 4294901760, %v18487_v33  ;;  %23793 = vst [vmem:[#allocation85_spill] sm:$0xff] %v18969_v42  ;;  %23794 = vst [vmem:[#allocation86_spill] sm:$0xff] %v18971_v5 }
  0x52   :  { %23785 = vst [vmem:[#allocation80_spill] sm:$0xff] %v18931_v54  ;;  %23786 = vst [vmem:[#allocation81_spill] sm:$0xff] %v18935_v30  ;;  %15176 = vmatprep.subr.bf16.mxu1 %v18935_v30  ;;  %v18956_v21 = vpack.c.bf16 %v1551_v2, %v1544_v10  ;;  %v23795_v2 = vand.u32 4294901760, %v18921_v32  ;;  %v23796_v10 = vand.u32 4294901760, %v18923_v13  ;;  %v22989_v30 = vand.u32 4294901760, %v18942_v63  ;;  %1534 = vmatmul.mubr.f32.vlgmr.msra.gmra.mrb[0].mxu1 %v18948_v12 }
  0x53   :  { %v18962_v20 = vsub.f32 %v18475_v28, %v23791_v55  ;;  %v18967_v58 = vsub.f32 %v18487_v33, %v23792_v47  ;;  %v1670_v53 = vand.u32 4294901760, %v1669_v25  ;;  %v22988_v28 = vand.u32 4294901760, %v18944_v44  ;;  %14796 = vmatprep.subr.bf16.mxu0 %v18931_v54  ;;  %1764 = vmatprep.mubr.f32.mxu1 %v18828_v43 }
  0x54   :  { %23790 = vst [vmem:[#allocation84_spill] sm:$0xff] %v18956_v21  ;;  %v18977_v27 = vpack.c.bf16 %v23796_v10, %v23795_v2  ;;  %v23798_v33 = vand.u32 4294901760, %v18940_v39  ;;  %v23799_v2 = vand.u32 4294901760, %v18504_v40  ;;  %15178 = vmatpush3.bf16.msra.mxu1 %v18956_v21  ;;  %v22997_v47 = vand.u32 4294901760, %v18969_v42 }
  0x55   :  { %v18999_v37 = vpack.c.bf16 %v22988_v28, %v22989_v30  ;;  %v23802_v21 = vand.u32 4294901760, %v18962_v20  ;;  %v23803_v45 = vand.u32 4294901760, %v18967_v58  ;;  %v19015_v30 = vld [vmem:[#allocation6 + $0x218] sm:$0xff] }
  0x56   :  { %23797 = vst [vmem:[#allocation87_spill] sm:$0xff] %v18977_v27  ;;  %v1676_v55 = vsub.f32 %v18940_v39, %v23798_v33  ;;  %v18991_v10 = vsub.f32 %v18504_v40, %v23799_v2  ;;  %v23801_v33 = vand.u32 4294901760, %v18506_v41  ;;  %v22996_v40 = vand.u32 4294901760, %v18971_v5  ;;  %23804 = vst [vmem:[#allocation89_spill] sm:$0xff] %v19015_v30  ;;  %14798 = vmatpush1.bf16.msra.mxu0 %v18977_v27 }
  0x57   :  { %23800 = vst [vmem:[#allocation88_spill] sm:$0xff] %v18999_v37  ;;  %v1557_v54 = vsub.f32 %v18962_v20, %v23802_v21  ;;  %v1564_v29 = vsub.f32 %v18967_v58, %v23803_v45  ;;  %v23806_v21 = vand.u32 4294901760, %v18527_v48  ;;  %v23807_v45 = vand.u32 4294901760, %v18529_v49  ;;  %14800 = vmatprep.subr.bf16.mxu0 %v18999_v37 }
  0x58   :  { %v19004_v25 = vsub.f32 %v18506_v41, %v23801_v33  ;;  %v1677_v2 = vand.u32 4294901760, %v1676_v55  ;;  %v19023_v55 = vpack.c.bf16 %v22996_v40, %v22997_v47  ;;  %v23810_v40 = vand.u32 4294901760, %v18991_v10 }
  0x59   :  { %v19028_v33 = vsub.f32 %v18527_v48, %v23806_v21  ;;  %v19033_v28 = vsub.f32 %v18529_v49, %v23807_v45  ;;  %v1558_v41 = vand.u32 4294901760, %v1557_v54  ;;  %v1565_v5 = vand.u32 4294901760, %v1564_v29  ;;  %v19052_v54 = vld [vmem:[#allocation6 + $0x228] sm:$0xff] }
  0x5a   :  { %23805 = vst [vmem:[#allocation90_spill] sm:$0xff] %v19023_v55  ;;  %v19037_v44 = vpack.c.bf16 %v1677_v2, %v1670_v53  ;;  %v1683_v47 = vsub.f32 %v18991_v10, %v23810_v40  ;;  %v23811_v48 = vand.u32 4294901760, %v19004_v25  ;;  %v19050_v2 = vld [vmem:[#allocation6 + $0x210] sm:$0xff]  ;;  %23813 = vst [vmem:[#allocation94_spill] sm:$0xff] %v19052_v54  ;;  %v23012_v37 = vand.u32 4294901760, %v19035_v26  ;;  %14802 = vmatpush1.bf16.msra.mxu0 %v19023_v55 }
  0x5b   :  { %23812 = vst [vmem:[#allocation93_spill] sm:$0xff] %v19050_v2  ;;  %v19055_v29 = vpack.c.bf16 %v1565_v5, %v1558_v41  ;;  %v23815_v27 = vand.u32 4294901760, %v18545_v56  ;;  %v23816_v45 = vand.u32 4294901760, %v19028_v33  ;;  %v23817_v42 = vand.u32 4294901760, %v19033_v28 }
  0x5c   :  { %23809 = vst [vmem:[#allocation92_spill] sm:$0xff] %v19037_v44  ;;  %v1690_v21 = vsub.f32 %v19004_v25, %v23811_v48  ;;  %15180 = vmatprep.subr.bf16.mxu1 %v19037_v44  ;;  %v1684_v40 = vand.u32 4294901760, %v1683_v47  ;;  %v23818_v5 = vand.u32 4294901760, %v18557_v61  ;;  %v23825_v26 = vand.u32 4294901760, %v18578_v24 }
  0x5d   :  { %23814 = vst [vmem:[#allocation95_spill] sm:$0xff] %v19055_v29  ;;  %v19061_v48 = vsub.f32 %v18545_v56, %v23815_v27  ;;  %v1571_v53 = vsub.f32 %v19028_v33, %v23816_v45  ;;  %v1578_v63 = vsub.f32 %v19033_v28, %v23817_v42  ;;  %15182 = vmatpush3.bf16.msra.mxu1 %v19055_v29  ;;  %v23819_v56 = vand.u32 4294901760, %v19015_v30  ;;  %v19085_v45 = vld [vmem:[#allocation6 + $0x248] sm:$0xff] }
  0x5e   :  { %v1691_v49 = vand.u32 4294901760, %v1690_v21  ;;  %v19072_v47 = vsub.f32 %v18557_v61, %v23818_v5  ;;  %v23017_v21 = vand.u32 4294901760, %v19050_v2  ;;  %v23016_v42 = vand.u32 4294901760, %v19052_v54  ;;  %23821 = vst [vmem:[#allocation97_spill] sm:$0xff] %v19085_v45  ;;  %v19087_v61 = vld [vmem:[#allocation6 + $0x260] sm:$0xff] }
  0x5f   :  { %v19080_v27 = vpack.c.bf16 %v23012_v37, %v23819_v56  ;;  %v23015_v41 = vand.u32 4294901760, %v19061_v48  ;;  %23822 = vst [vmem:[#allocation98_spill] sm:$0xff] %v19087_v61  ;;  %v1572_v29 = vand.u32 4294901760, %v1571_v53  ;;  %v1579_v44 = vand.u32 4294901760, %v1578_v63  ;;  %v19223_v2 = vld [vmem:[#allocation6 + $0x2c0] sm:$0xff] }
  0x60   :  { %v19089_v5 = vpack.c.bf16 %v1691_v49, %v1684_v40  ;;  %v23020_v55 = vand.u32 4294901760, %v19072_v47  ;;  %v19100_v37 = vpack.c.bf16 %v23016_v42, %v23017_v21  ;;  %v19105_v49 = vsub.f32 %v18578_v24, %v23825_v26  ;;  %v19112_v40 = vld [vmem:[#allocation6 + $0x240] sm:$0xff]  ;;  %v19122_v26 = vld [vmem:[#allocation6 + $0x258] sm:$0xff]  ;;  %23864 = vst [vmem:[#allocation122_spill] sm:$0xff] %v19223_v2 }
  0x61   :  { %23820 = vst [vmem:[#allocation96_spill] sm:$0xff] %v19080_v27  ;;  %14804 = vmatprep.subr.bf16.mxu0 %v19080_v27  ;;  %v1697_v56 = vsub.f32 %v19061_v48, %v23015_v41  ;;  %v23827_v63 = vand.u32 4294901760, %v18580_v19  ;;  %23829 = vst [vmem:[#allocation103_spill] sm:$0xff] %v19112_v40  ;;  %v19115_v41 = vpack.c.bf16 %v1579_v44, %v1572_v29  ;;  %v23028_v21 = vand.u32 4294901760, %v19085_v45 }
  0x62   :  { %23823 = vst [vmem:[#allocation99_spill] sm:$0xff] %v19089_v5  ;;  %23824 = vst [vmem:[#allocation100_spill] sm:$0xff] %v19100_v37  ;;  %15184 = vmatprep.subr.bf16.mxu1 %v19089_v5  ;;  %v1704_v42 = vsub.f32 %v19072_v47, %v23020_v55  ;;  %v23027_v24 = vand.u32 4294901760, %v19087_v61  ;;  %14806 = vmatpush1.bf16.msra.mxu0 %v19100_v37  ;;  %v23832_v44 = vand.u32 4294901760, %v18597_v51  ;;  %v23837_v37 = vand.u32 4294901760, %v19105_v49 }
  0x63   :  { %23826 = vst [vmem:[#allocation101_spill] sm:$0xff] %v19105_v49  ;;  %v19110_v53 = vsub.f32 %v18580_v19, %v23827_v63  ;;  %23830 = vst [vmem:[#allocation104_spill] sm:$0xff] %v19115_v41  ;;  %v1698_v27 = vand.u32 4294901760, %v1697_v56  ;;  %15186 = vmatpush3.bf16.msra.mxu1 %v19115_v41  ;;  %v23835_v56 = vand.u32 4294901760, %v18599_v46  ;;  %v23843_v63 = vand.u32 4294901760, %v18631_v6  ;;  %v19169_v41 = vld [vmem:[#allocation6 + $0x290] sm:$0xff] }
  0x64   :  { %23831 = vst [vmem:[#allocation105_spill] sm:$0xff] %v19122_v26  ;;  %v19130_v29 = vsub.f32 %v18597_v51, %v23832_v44  ;;  %v1705_v55 = vand.u32 4294901760, %v1704_v42  ;;  %v19137_v5 = vpack.c.bf16 %v23027_v24, %v23028_v21  ;;  %v1585_v51 = vsub.f32 %v19105_v49, %v23837_v37  ;;  %v19153_v21 = vld [vmem:[#allocation6 + $0x278] sm:$0xff]  ;;  %23845 = vst [vmem:[#allocation113_spill] sm:$0xff] %v19169_v41 }
  0x65   :  { %23828 = vst [vmem:[#allocation102_spill] sm:$0xff] %v19110_v53  ;;  %v19142_v19 = vsub.f32 %v18599_v46, %v23835_v56  ;;  %v23838_v44 = vand.u32 4294901760, %v19110_v53  ;;  %23839 = vst [vmem:[#allocation109_spill] sm:$0xff] %v19153_v21  ;;  %v23841_v56 = vand.u32 4294901760, %v18615_v17  ;;  %v23847_v46 = vand.u32 4294901760, %v19112_v40 }
  0x66   :  { %23833 = vst [vmem:[#allocation106_spill] sm:$0xff] %v19130_v29  ;;  %23834 = vst [vmem:[#allocation107_spill] sm:$0xff] %v19137_v5  ;;  %v19155_v61 = vpack.c.bf16 %v1705_v55, %v1698_v27  ;;  %14808 = vmatprep.subr.bf16.mxu0 %v19137_v5  ;;  %v1586_v24 = vand.u32 4294901760, %v1585_v51  ;;  %v23846_v55 = vand.u32 4294901760, %v19130_v29  ;;  %v23848_v5 = vand.u32 4294901760, %v19122_v26 }
  0x67   :  { %23836 = vst [vmem:[#allocation108_spill] sm:$0xff] %v19142_v19  ;;  %v1592_v42 = vsub.f32 %v19110_v53, %v23838_v44  ;;  %v19162_v37 = vsub.f32 %v18615_v17, %v23841_v56  ;;  %v19167_v44 = vsub.f32 %v18631_v6, %v23843_v63  ;;  %v23850_v17 = vand.u32 4294901760, %v19142_v19  ;;  %v19187_v56 = vld [vmem:[#allocation6 + $0x270] sm:$0xff] }
  0x68   :  { %23840 = vst [vmem:[#allocation110_spill] sm:$0xff] %v19155_v61  ;;  %v1711_v27 = vsub.f32 %v19130_v29, %v23846_v55  ;;  %v19178_v54 = vpack.c.bf16 %v23848_v5, %v23847_v46  ;;  %15188 = vmatprep.subr.bf16.mxu1 %v19155_v61  ;;  %23851 = vst [vmem:[#allocation115_spill] sm:$0xff] %v19187_v56  ;;  %v19189_v55 = vld [vmem:[#allocation6 + $0x288] sm:$0xff]  ;;  %v23854_v61 = vand.u32 4294901760, %v18647_v60  ;;  %v23860_v46 = vand.u32 4294901760, %v19153_v21 }
  0x69   :  { %23842 = vst [vmem:[#allocation111_spill] sm:$0xff] %v19162_v37  ;;  %23844 = vst [vmem:[#allocation112_spill] sm:$0xff] %v19167_v44  ;;  %v1593_v45 = vand.u32 4294901760, %v1592_v42  ;;  %v1718_v6 = vsub.f32 %v19142_v19, %v23850_v17  ;;  %v23856_v51 = vand.u32 4294901760, %v19162_v37  ;;  %v23857_v26 = vand.u32 4294901760, %v19167_v44 }
  0x6a   :  { %23849 = vst [vmem:[#allocation114_spill] sm:$0xff] %v19178_v54  ;;  %23852 = vst [vmem:[#allocation116_spill] sm:$0xff] %v19189_v55  ;;  %v1712_v5 = vand.u32 4294901760, %v1711_v27  ;;  %14810 = vmatpush1.bf16.msra.mxu0 %v19178_v54  ;;  %v19198_v17 = vsub.f32 %v18647_v60, %v23854_v61  ;;  %v23861_v60 = vand.u32 4294901760, %v19169_v41  ;;  %v23054_v54 = vand.u32 4294901760, %v19189_v55 }
  0x6b   :  { %v19191_v40 = vpack.c.bf16 %v1593_v45, %v1586_v24  ;;  %v1719_v63 = vand.u32 4294901760, %v1718_v6  ;;  %v1599_v42 = vsub.f32 %v19162_v37, %v23856_v51  ;;  %v1606_v45 = vsub.f32 %v19167_v44, %v23857_v26  ;;  %v19221_v26 = vld [vmem:[#allocation6 + $0x2a8] sm:$0xff] }
  0x6c   :  { %23855 = vst [vmem:[#allocation118_spill] sm:$0xff] %v19198_v17  ;;  %v23858_v24 = vand.u32 4294901760, %v18649_v57  ;;  %v19216_v61 = vpack.c.bf16 %v23861_v60, %v23860_v46  ;;  %v23053_v6 = vand.u32 4294901760, %v19198_v17  ;;  %v23055_v51 = vand.u32 4294901760, %v19187_v56  ;;  %23863 = vst [vmem:[#allocation121_spill] sm:$0xff] %v19221_v26 }
  0x6d   :  { %23853 = vst [vmem:[#allocation117_spill] sm:$0xff] %v19191_v40  ;;  %15190 = vmatpush3.bf16.msra.mxu1 %v19191_v40  ;;  %v1607_v40 = vand.u32 4294901760, %v1606_v45  ;;  %v23867_v41 = vand.u32 4294901760, %v18666_v23  ;;  %v19248_v45 = vld [vmem:[#allocation6 + $0x2a0] sm:$0xff] }
  0x6e   :  { %v19209_v27 = vsub.f32 %v18649_v57, %v23858_v24  ;;  %23862 = vst [vmem:[#allocation120_spill] sm:$0xff] %v19216_v61  ;;  %v19225_v57 = vpack.c.bf16 %v1719_v63, %v1712_v5  ;;  %v1600_v24 = vand.u32 4294901760, %v1599_v42  ;;  %14812 = vmatprep.subr.bf16.mxu0 %v19216_v61  ;;  %v1725_v46 = vsub.f32 %v19198_v17, %v23053_v6 }
  0x6f   :  { %v19236_v60 = vpack.c.bf16 %v23054_v54, %v23055_v51  ;;  %v19241_v63 = vsub.f32 %v18666_v23, %v23867_v41  ;;  %v23869_v42 = vand.u32 4294901760, %v18668_v15  ;;  %23871 = vst [vmem:[#allocation127_spill] sm:$0xff] %v19248_v45  ;;  %v23066_v51 = vand.u32 4294901760, %v19221_v26  ;;  %v19258_v41 = vld [vmem:[#allocation6 + $0x2b8] sm:$0xff] }
  0x70   :  { %23859 = vst [vmem:[#allocation119_spill] sm:$0xff] %v19209_v27  ;;  %23865 = vst [vmem:[#allocation123_spill] sm:$0xff] %v19225_v57  ;;  %v23058_v21 = vand.u32 4294901760, %v19209_v27  ;;  %15192 = vmatprep.subr.bf16.mxu1 %v19225_v57  ;;  %v19251_v6 = vpack.c.bf16 %v1607_v40, %v1600_v24  ;;  %v23065_v23 = vand.u32 4294901760, %v19223_v2  ;;  %v1726_v61 = vand.u32 4294901760, %v1725_v46 }
  0x71   :  { %23866 = vst [vmem:[#allocation124_spill] sm:$0xff] %v19236_v60  ;;  %23868 = vst [vmem:[#allocation125_spill] sm:$0xff] %v19241_v63  ;;  %v19246_v5 = vsub.f32 %v18668_v15, %v23869_v42  ;;  %14814 = vmatpush1.bf16.msra.mxu0 %v19236_v60  ;;  %v23874_v40 = vand.u32 4294901760, %v18689_v16  ;;  %v23877_v46 = vand.u32 4294901760, %v18700_v4  ;;  %v23879_v60 = vand.u32 4294901760, %v19241_v63 }
  0x72   :  { %23872 = vst [vmem:[#allocation128_spill] sm:$0xff] %v19251_v6  ;;  %v1732_v54 = vsub.f32 %v19209_v27, %v23058_v21  ;;  %23873 = vst [vmem:[#allocation129_spill] sm:$0xff] %v19258_v41  ;;  %15194 = vmatpush3.bf16.msra.mxu1 %v19251_v6  ;;  %v19273_v57 = vpack.c.bf16 %v23065_v23, %v23066_v51  ;;  %v19289_v51 = vld [vmem:[#allocation6 + $0x2d8] sm:$0xff]  ;;  %v23884_v42 = vand.u32 4294901760, %v18718_v11  ;;  %v19305_v6 = vld [vmem:[#allocation6 + $0x2f0] sm:$0xff] }
  0x73   :  { %23870 = vst [vmem:[#allocation126_spill] sm:$0xff] %v19246_v5  ;;  %v19266_v24 = vsub.f32 %v18689_v16, %v23874_v40  ;;  %v19278_v15 = vsub.f32 %v18700_v4, %v23877_v46  ;;  %v1613_v16 = vsub.f32 %v19241_v63, %v23879_v60  ;;  %v23880_v40 = vand.u32 4294901760, %v19246_v5 }
  0x74   :  { %v1733_v21 = vand.u32 4294901760, %v1732_v54  ;;  %23876 = vst [vmem:[#allocation131_spill] sm:$0xff] %v19273_v57  ;;  %14816 = vmatprep.subr.bf16.mxu0 %v19273_v57  ;;  %v23882_v46 = vand.u32 4294901760, %v18716_v22  ;;  %v23887_v4 = vand.u32 4294901760, %v19248_v45  ;;  %v23888_v57 = vand.u32 4294901760, %v19258_v41 }
  0x75   :  { %23875 = vst [vmem:[#allocation130_spill] sm:$0xff] %v19266_v24  ;;  %23878 = vst [vmem:[#allocation132_spill] sm:$0xff] %v19278_v15  ;;  %v1620_v54 = vsub.f32 %v19246_v5, %v23880_v40  ;;  %v19303_v40 = vsub.f32 %v18718_v11, %v23884_v42  ;;  %v1614_v23 = vand.u32 4294901760, %v1613_v16 }
  0x76   :  { %v19291_v2 = vpack.c.bf16 %v1733_v21, %v1726_v61  ;;  %v19298_v60 = vsub.f32 %v18716_v22, %v23882_v46  ;;  %v23886_v21 = vand.u32 4294901760, %v19266_v24  ;;  %v19314_v55 = vpack.c.bf16 %v23888_v57, %v23887_v4  ;;  %v19323_v46 = vld [vmem:[#allocation6 + $0x2d0] sm:$0xff] }
  0x77   :  { %23885 = vst [vmem:[#allocation135_spill] sm:$0xff] %v19303_v40  ;;  %v1621_v26 = vand.u32 4294901760, %v1620_v54  ;;  %v23890_v22 = vand.u32 4294901760, %v19278_v15  ;;  %v23895_v41 = vand.u32 4294901760, %v19303_v40  ;;  %v23898_v4 = vand.u32 4294901760, %v19289_v51 }
  0x78   :  { %23881 = vst [vmem:[#allocation133_spill] sm:$0xff] %v19291_v2  ;;  %23883 = vst [vmem:[#allocation134_spill] sm:$0xff] %v19298_v60  ;;  %v1739_v61 = vsub.f32 %v19266_v24, %v23886_v21  ;;  %15196 = vmatprep.subr.bf16.mxu1 %v19291_v2  ;;  %v19325_v21 = vld [vmem:[#allocation6 + $0x2e8] sm:$0xff]  ;;  %14818 = vmatpush1.bf16.msra.mxu0 %v19314_v55  ;;  %v23892_v2 = vand.u32 4294901760, %v18740_v31  ;;  %v23894_v16 = vand.u32 4294901760, %v19298_v60 }
  0x79   :  { %23889 = vst [vmem:[#allocation136_spill] sm:$0xff] %v19314_v55  ;;  %v1746_v11 = vsub.f32 %v19278_v15, %v23890_v22  ;;  %v19327_v45 = vpack.c.bf16 %v1621_v26, %v1614_v23  ;;  %v1634_v26 = vsub.f32 %v19303_v40, %v23895_v41  ;;  %v23896_v23 = vand.u32 4294901760, %v18752_v38 }
  0x7a   :  { %v1740_v57 = vand.u32 4294901760, %v1739_v61  ;;  %v19334_v22 = vsub.f32 %v18740_v31, %v23892_v2  ;;  %v1627_v54 = vsub.f32 %v19298_v60, %v23894_v16  ;;  %v23899_v31 = vand.u32 4294901760, %v19305_v6 }
  0x7b   :  { %23891 = vst [vmem:[#allocation137_spill] sm:$0xff] %v19327_v45  ;;  %v1747_v42 = vand.u32 4294901760, %v1746_v11  ;;  %v19345_v61 = vsub.f32 %v18752_v38, %v23896_v23  ;;  %15198 = vmatpush3.bf16.msra.mxu1 %v19327_v45  ;;  %v23089_v16 = vand.u32 4294901760, %v19323_v46  ;;  %v23088_v55 = vand.u32 4294901760, %v19325_v21 }
  0x7c   :  { %23893 = vst [vmem:[#allocation138_spill] sm:$0xff] %v19334_v22  ;;  %v19352_v2 = vpack.c.bf16 %v23899_v31, %v23898_v4  ;;  %v23087_v11 = vand.u32 4294901760, %v19334_v22  ;;  %v1628_v56 = vand.u32 4294901760, %v1627_v54  ;;  %v1635_v30 = vand.u32 4294901760, %v1634_v26 }
  0x7d   :  { %23897 = vst [vmem:[#allocation139_spill] sm:$0xff] %v19345_v61  ;;  %v19357_v41 = vpack.c.bf16 %v1747_v42, %v1740_v57  ;;  %v23090_v38 = vand.u32 4294901760, %v19345_v61  ;;  %v19368_v4 = vpack.c.bf16 %v23088_v55, %v23089_v16  ;;  %v23903_v31 = vand.u32 4294901760, %v18767_v36 }
  0x7e   :  { %23900 = vst [vmem:[#allocation140_spill] sm:$0xff] %v19352_v2  ;;  %14820 = vmatprep.subr.bf16.mxu0 %v19352_v2  ;;  %v1753_v23 = vsub.f32 %v19334_v22, %v23087_v11  ;;  %v23905_v54 = vand.u32 4294901760, %v18769_v52  ;;  %v19381_v26 = vpack.c.bf16 %v1635_v30, %v1628_v56  ;;  %v23908_v55 = vand.u32 4294901760, %v18418_v0 }
  0x7f   :  { %23901 = vst [vmem:[#allocation141_spill] sm:$0xff] %v19357_v41  ;;  %23902 = vst [vmem:[#allocation142_spill] sm:$0xff] %v19368_v4  ;;  %v19373_v42 = vsub.f32 %v18767_v36, %v23903_v31  ;;  %15200 = vmatprep.subr.bf16.mxu1 %v19357_v41  ;;  %v1760_v11 = vsub.f32 %v19345_v61, %v23090_v38  ;;  %v23909_v36 = vand.u32 4294901760, %v18420_v1  ;;  %14822 = vmatpush1.bf16.msra.mxu0 %v19368_v4 }
  0x80   :  { %v19378_v57 = vsub.f32 %v18769_v52, %v23905_v54  ;;  %23907 = vst [vmem:[#allocation145_spill] sm:$0xff] %v19381_v26  ;;  %v19389_v16 = vsub.f32 %v18418_v0, %v23908_v55  ;;  %v1754_v52 = vand.u32 4294901760, %v1753_v23  ;;  %v19401_v54 = vpack.c.bf16 %v18845_v59, %v18840_v9  ;;  %15202 = vmatpush3.bf16.msra.mxu1 %v19381_v26 }
  0x81   :  { %23904 = vst [vmem:[#allocation143_spill] sm:$0xff] %v19373_v42  ;;  %v19394_v31 = vsub.f32 %v18420_v1, %v23909_v36  ;;  %v23095_v30 = vand.u32 4294901760, %v19373_v42  ;;  %v1761_v0 = vand.u32 4294901760, %v1760_v11  ;;  %v23912_v1 = vand.u32 4294901760, %v18429_v7 }
  0x82   :  { %23906 = vst [vmem:[#allocation144_spill] sm:$0xff] %v19378_v57  ;;  %v23098_v56 = vand.u32 4294901760, %v19378_v57  ;;  %23911 = vst [vmem:[#allocation147_spill] sm:$0xff] %v19401_v54  ;;  %v23914_v26 = vand.u32 4294901760, %v18431_v8  ;;  %v19424_v38 = vpack.c.bf16 %v18875_v34, %v18870_v3  ;;  %282 = vmatmul.mubr.f32.vlgmr.msra.gmra.mrb[0].mxu0 %v18948_v12  ;;  %v23920_v2 = vand.u32 4294901760, %v18440_v14 }
  0x83   :  { %23910 = vst [vmem:[#allocation146_spill] sm:$0xff] %v19394_v31  ;;  %v19409_v23 = vsub.f32 %v18429_v7, %v23912_v1  ;;  %v1641_v36 = vsub.f32 %v19373_v42, %v23095_v30  ;;  %v19426_v55 = vpack.c.bf16 %v1761_v0, %v1754_v52  ;;  %v23918_v7 = vand.u32 4294901760, %v19389_v16  ;;  %673 = vmatprep.mubr.f32.mxu0 %v18828_v43 }
  0x84   :  { %v1648_v41 = vsub.f32 %v19378_v57, %v23098_v56  ;;  %v19420_v11 = vsub.f32 %v18431_v8, %v23914_v26  ;;  %23916 = vst [vmem:[#allocation150_spill] sm:$0xff] %v19424_v38  ;;  %v23919_v30 = vand.u32 4294901760, %v19394_v31  ;;  %v19440_v52 = vsub.f32 %v18440_v14, %v23920_v2 }
  0x85   :  { %23913 = vst [vmem:[#allocation148_spill] sm:$0xff] %v19409_v23  ;;  %23917 = vst [vmem:[#allocation151_spill] sm:$0xff] %v19426_v55  ;;  %v291_v1 = vsub.f32 %v19389_v16, %v23918_v7  ;;  %v23103_v56 = vand.u32 4294901760, %v19409_v23  ;;  %v1642_v8 = vand.u32 4294901760, %v1641_v36  ;;  %15204 = vmatprep.subr.bf16.mxu1 %v19426_v55 }
  0x86   :  { %23915 = vst [vmem:[#allocation149_spill] sm:$0xff] %v19420_v11  ;;  %v303_v45 = vsub.f32 %v19394_v31, %v23919_v30  ;;  %v1649_v26 = vand.u32 4294901760, %v1648_v41  ;;  %v23108_v4 = vand.u32 4294901760, %v19420_v11  ;;  %23921 = vst [vmem:[#allocation152_spill] sm:$0xff] %v19440_v52  ;;  %v23922_v30 = vand.u32 4294901760, %v18450_v18 }
  0x87   :  { %v292_v0 = vand.u32 4294901760, %v291_v1  ;;  %v297_v12 = vsub.f32 %v19409_v23, %v23103_v56  ;;  %v23111_v2 = vand.u32 4294901760, %v19440_v52  ;;  %v23927_v23 = vld [vmem:[#allocation13_spill] sm:$0xff] }
  0x88   :  { %v304_v7 = vand.u32 4294901760, %v303_v45  ;;  %v19450_v41 = vsub.f32 %v18450_v18, %v23922_v30  ;;  %v19452_v36 = vpack.c.bf16 %v1649_v26, %v1642_v8  ;;  %v309_v14 = vsub.f32 %v19420_v11, %v23108_v4  ;;  %v23930_v4 = vld [vmem:[#allocation14_spill] sm:$0xff] }
  0x89   :  { %v19460_v45 = vpack.c.bf16 %v18940_v39, %v18912_v62  ;;  %v298_v56 = vand.u32 4294901760, %v297_v12  ;;  %v23928_v18 = vand.u32 4294901760, %v23927_v23  ;;  %v315_v30 = vsub.f32 %v19440_v52, %v23111_v2  ;;  %v23940_v12 = vld [vmem:[#allocation75_spill] sm:$0xff] }
  0x8a   :  { %23923 = vst [vmem:[#allocation153_spill] sm:$0xff] %v19450_v41  ;;  %23924 = vst [vmem:[#allocation154_spill] sm:$0xff] %v19452_v36  ;;  %v19462_v1 = vpack.c.bf16 %v304_v7, %v292_v0  ;;  %v23120_v55 = vand.u32 4294901760, %v19450_v41  ;;  %15206 = vmatpush3.bf16.msra.mxu1 %v19452_v36  ;;  %v310_v26 = vand.u32 4294901760, %v309_v14  ;;  %v23931_v11 = vand.u32 4294901760, %v23930_v4  ;;  %v23934_v14 = vld [vmem:[#allocation16_spill] sm:$0xff] }
  0x8b   :  { %23925 = vst [vmem:[#allocation155_spill] sm:$0xff] %v19460_v45  ;;  %v19468_v8 = vsub.f32 %v23927_v23, %v23928_v18  ;;  %v19481_v7 = vpack.c.bf16 %v18967_v58, %v18962_v20  ;;  %15208 = vmatprep.subr.bf16.mxu1 %v19401_v54  ;;  %v23935_v18 = vand.u32 4294901760, %v23934_v14 }
  0x8c   :  { %23926 = vst [vmem:[#allocation156_spill] sm:$0xff] %v19462_v1  ;;  %v19477_v0 = vsub.f32 %v23930_v4, %v23931_v11  ;;  %14824 = vmatprep.subr.bf16.mxu0 %v19462_v1  ;;  %v327_v23 = vsub.f32 %v19450_v41, %v23120_v55  ;;  %v23936_v4 = vld [vmem:[#allocation17_spill] sm:$0xff]  ;;  %v19499_v52 = vpack.c.bf16 %v310_v26, %v298_v56  ;;  %v316_v1 = vand.u32 4294901760, %v315_v30  ;;  %v23942_v26 = vld [vmem:[#allocation19_spill] sm:$0xff] }
  0x8d   :  { %23929 = vst [vmem:[#allocation13_spill] sm:$0xff] %v19468_v8  ;;  %23933 = vst [vmem:[#allocation157_spill] sm:$0xff] %v19481_v7  ;;  %v19492_v2 = vsub.f32 %v23934_v14, %v23935_v18  ;;  %v23937_v11 = vand.u32 4294901760, %v23936_v4  ;;  %v19504_v55 = vpack.c.bf16 %v19004_v25, %v18991_v10  ;;  %1766 = vmatmul.mubr.f32.vlgmr.msra.gmra.mrb[2].mxu1 %v23940_v12  ;;  %v23941_v14 = vand.u32 4294901760, %v19468_v8 }
  0x8e   :  { %23932 = vst [vmem:[#allocation14_spill] sm:$0xff] %v19477_v0  ;;  %23938 = vst [vmem:[#allocation16_spill] sm:$0xff] %v19499_v52  ;;  %v23129_v54 = vand.u32 4294901760, %v19477_v0  ;;  %v328_v41 = vand.u32 4294901760, %v327_v23  ;;  %14826 = vmatpush1.bf16.msra.mxu0 %v19499_v52  ;;  %15210 = vmatpush3.bf16.msra.mxu1 %v19424_v38  ;;  %v23943_v30 = vand.u32 4294901760, %v23942_v26 }
  0x8f   :  { %v19497_v36 = vsub.f32 %v23936_v4, %v23937_v11  ;;  %23939 = vst [vmem:[#allocation17_spill] sm:$0xff] %v19504_v55  ;;  %v321_v18 = vsub.f32 %v19468_v8, %v23941_v14  ;;  %v23945_v11 = vld [vmem:[#allocation22_spill] sm:$0xff]  ;;  %15212 = vmatprep.subr.bf16.mxu1 %v19460_v45  ;;  %v23949_v38 = vand.u32 4294901760, %v19492_v2 }
  0x90   :  { %v333_v56 = vsub.f32 %v19477_v0, %v23129_v54  ;;  %v19520_v23 = vsub.f32 %v23942_v26, %v23943_v30  ;;  %v23946_v12 = vand.u32 4294901760, %v23945_v11  ;;  %v19527_v31 = vpack.c.bf16 %v328_v41, %v316_v1  ;;  %v23951_v26 = vld [vmem:[#allocation74_spill] sm:$0xff] }
  0x91   :  { %v322_v4 = vand.u32 4294901760, %v321_v18  ;;  %v339_v52 = vsub.f32 %v19492_v2, %v23949_v38  ;;  %v23950_v54 = vand.u32 4294901760, %v19497_v36  ;;  %1901 = vmatprep.mubr.f32.mxu1 %v23951_v26  ;;  %v19541_v41 = vpack.c.bf16 %v19033_v28, %v19028_v33  ;;  %v23953_v38 = vld [vmem:[#allocation24_spill] sm:$0xff] }
  0x92   :  { %23944 = vst [vmem:[#allocation19_spill] sm:$0xff] %v19520_v23  ;;  %v19525_v14 = vsub.f32 %v23945_v11, %v23946_v12  ;;  %23948 = vst [vmem:[#allocation158_spill] sm:$0xff] %v19527_v31  ;;  %v334_v30 = vand.u32 4294901760, %v333_v56  ;;  %14828 = vmatprep.subr.bf16.mxu0 %v19527_v31  ;;  %v23954_v11 = vand.u32 4294901760, %v23953_v38  ;;  %15214 = vmatpush3.bf16.msra.mxu1 %v19481_v7  ;;  %v23958_v12 = vand.u32 4294901760, %v19520_v23 }
  0x93   :  { %v351_v0 = vsub.f32 %v19497_v36, %v23950_v54  ;;  %23952 = vst [vmem:[#allocation159_spill] sm:$0xff] %v19541_v41  ;;  %v340_v1 = vand.u32 4294901760, %v339_v52  ;;  %v23955_v54 = vld [vmem:[#allocation25_spill] sm:$0xff]  ;;  %15216 = vmatprep.subr.bf16.mxu1 %v19504_v55 }
  0x94   :  { %23947 = vst [vmem:[#allocation22_spill] sm:$0xff] %v19525_v14  ;;  %v19547_v45 = vsub.f32 %v23953_v38, %v23954_v11  ;;  %v23956_v26 = vand.u32 4294901760, %v23955_v54  ;;  %v19554_v8 = vpack.c.bf16 %v334_v30, %v322_v4  ;;  %v345_v31 = vsub.f32 %v19520_v23, %v23958_v12  ;;  %v23962_v30 = vld [vmem:[#allocation27_spill] sm:$0xff] }
  0x95   :  { %v352_v18 = vand.u32 4294901760, %v351_v0  ;;  %v23959_v52 = vand.u32 4294901760, %v19525_v14  ;;  %v19565_v38 = vpack.c.bf16 %v19072_v47, %v19061_v48 }
  0x96   :  { %v19552_v56 = vsub.f32 %v23955_v54, %v23956_v26  ;;  %23957 = vst [vmem:[#allocation24_spill] sm:$0xff] %v19554_v8  ;;  %v23151_v4 = vand.u32 4294901760, %v19547_v45  ;;  %v23963_v54 = vand.u32 4294901760, %v23962_v30  ;;  %14830 = vmatpush1.bf16.msra.mxu0 %v19554_v8  ;;  %15218 = vmatpush3.bf16.msra.mxu1 %v19541_v41  ;;  %v23970_v8 = vld [vmem:[#allocation33_spill] sm:$0xff] }
  0x97   :  { %v357_v0 = vsub.f32 %v19525_v14, %v23959_v52  ;;  %23960 = vst [vmem:[#allocation25_spill] sm:$0xff] %v19565_v38  ;;  %v19567_v11 = vpack.c.bf16 %v352_v18, %v340_v1  ;;  %v346_v52 = vand.u32 4294901760, %v345_v31  ;;  %v23964_v14 = vld [vmem:[#allocation28_spill] sm:$0xff]  ;;  %v19585_v18 = vpack.c.bf16 %v19110_v53, %v19105_v49  ;;  %15220 = vmatprep.subr.bf16.mxu1 %v19565_v38 }
  0x98   :  { %v23152_v26 = vand.u32 4294901760, %v19552_v56  ;;  %v19575_v12 = vsub.f32 %v23962_v30, %v23963_v54  ;;  %v23965_v23 = vand.u32 4294901760, %v23964_v14  ;;  %v363_v30 = vsub.f32 %v19547_v45, %v23151_v4  ;;  %v23967_v54 = vld [vmem:[#allocation31_spill] sm:$0xff] }
  0x99   :  { %23961 = vst [vmem:[#allocation160_spill] sm:$0xff] %v19567_v11  ;;  %v358_v7 = vand.u32 4294901760, %v357_v0  ;;  %23966 = vst [vmem:[#allocation27_spill] sm:$0xff] %v19585_v18  ;;  %14832 = vmatprep.subr.bf16.mxu0 %v19567_v11  ;;  %v23968_v55 = vand.u32 4294901760, %v23967_v54  ;;  %v23971_v53 = vand.u32 4294901760, %v23970_v8 }
  0x9a   :  { %v19581_v1 = vsub.f32 %v23964_v14, %v23965_v23  ;;  %v375_v31 = vsub.f32 %v19552_v56, %v23152_v26  ;;  %v19611_v26 = vpack.c.bf16 %v19142_v19, %v19130_v29  ;;  %v364_v0 = vand.u32 4294901760, %v363_v30  ;;  %15222 = vmatpush3.bf16.msra.mxu1 %v19585_v18 }
  0x9b   :  { %v19598_v23 = vsub.f32 %v23967_v54, %v23968_v55  ;;  %v19600_v14 = vpack.c.bf16 %v358_v7, %v346_v52  ;;  %v19607_v4 = vsub.f32 %v23970_v8, %v23971_v53  ;;  %v23973_v55 = vand.u32 4294901760, %v19575_v12  ;;  %v23974_v54 = vld [vmem:[#allocation35_spill] sm:$0xff] }
  0x9c   :  { %v23162_v11 = vand.u32 4294901760, %v19581_v1  ;;  %23972 = vst [vmem:[#allocation31_spill] sm:$0xff] %v19611_v26  ;;  %v376_v49 = vand.u32 4294901760, %v375_v31  ;;  %v23975_v41 = vand.u32 4294901760, %v23974_v54  ;;  %v23976_v31 = vld [vmem:[#allocation36_spill] sm:$0xff]  ;;  %15224 = vmatprep.subr.bf16.mxu1 %v19611_v26 }
  0x9d   :  { %23969 = vst [vmem:[#allocation28_spill] sm:$0xff] %v19600_v14  ;;  %v369_v7 = vsub.f32 %v19575_v12, %v23973_v55  ;;  %14834 = vmatpush1.bf16.msra.mxu0 %v19600_v14  ;;  %v23977_v38 = vand.u32 4294901760, %v23976_v31  ;;  %v23979_v14 = vand.u32 4294901760, %v19598_v23 }
  0x9e   :  { %v381_v53 = vsub.f32 %v19581_v1, %v23162_v11  ;;  %v19626_v30 = vsub.f32 %v23974_v54, %v23975_v41  ;;  %v19633_v55 = vpack.c.bf16 %v376_v49, %v364_v0  ;;  %v19640_v11 = vpack.c.bf16 %v19167_v44, %v19162_v37 }
  0x9f   :  { %v19631_v19 = vsub.f32 %v23976_v31, %v23977_v38  ;;  %v370_v52 = vand.u32 4294901760, %v369_v7  ;;  %v387_v29 = vsub.f32 %v19598_v23, %v23979_v14  ;;  %v23981_v41 = vand.u32 4294901760, %v19607_v4  ;;  %v23982_v14 = vld [vmem:[#allocation39_spill] sm:$0xff] }
  0xa0   :  { %23978 = vst [vmem:[#allocation33_spill] sm:$0xff] %v19633_v55  ;;  %23980 = vst [vmem:[#allocation35_spill] sm:$0xff] %v19640_v11  ;;  %v382_v8 = vand.u32 4294901760, %v381_v53  ;;  %14836 = vmatprep.subr.bf16.mxu0 %v19633_v55  ;;  %v23983_v7 = vand.u32 4294901760, %v23982_v14  ;;  %v23985_v53 = vld [vmem:[#allocation40_spill] sm:$0xff]  ;;  %15226 = vmatpush3.bf16.msra.mxu1 %v19640_v11 }
  0xa1   :  { %v399_v54 = vsub.f32 %v19607_v4, %v23981_v41  ;;  %v388_v0 = vand.u32 4294901760, %v387_v29  ;;  %v23986_v18 = vand.u32 4294901760, %v23985_v53  ;;  %v19662_v41 = vpack.c.bf16 %v19209_v27, %v19198_v17 }
  0xa2   :  { %v19653_v31 = vsub.f32 %v23982_v14, %v23983_v7  ;;  %v19664_v49 = vpack.c.bf16 %v382_v8, %v370_v52  ;;  %v23990_v29 = vand.u32 4294901760, %v19626_v30  ;;  %v23991_v55 = vand.u32 4294901760, %v19631_v19  ;;  %v23995_v52 = vld [vmem:[#allocation44_spill] sm:$0xff] }
  0xa3   :  { %v19658_v44 = vsub.f32 %v23985_v53, %v23986_v18  ;;  %23988 = vst [vmem:[#allocation40_spill] sm:$0xff] %v19662_v41  ;;  %v400_v38 = vand.u32 4294901760, %v399_v54  ;;  %v23992_v53 = vld [vmem:[#allocation42_spill] sm:$0xff]  ;;  %v23996_v8 = vand.u32 4294901760, %v23995_v52  ;;  %v19690_v18 = vpack.c.bf16 %v19246_v5, %v19241_v63  ;;  %15228 = vmatprep.subr.bf16.mxu1 %v19662_v41 }
  0xa4   :  { %23984 = vst [vmem:[#allocation36_spill] sm:$0xff] %v19653_v31  ;;  %23989 = vst [vmem:[#allocation161_spill] sm:$0xff] %v19664_v49  ;;  %v393_v26 = vsub.f32 %v19626_v30, %v23990_v29  ;;  %v405_v14 = vsub.f32 %v19631_v19, %v23991_v55  ;;  %v23175_v7 = vand.u32 4294901760, %v19653_v31  ;;  %v23993_v37 = vand.u32 4294901760, %v23992_v53  ;;  %14838 = vmatpush1.bf16.msra.mxu0 %v19664_v49 }
  0xa5   :  { %23987 = vst [vmem:[#allocation39_spill] sm:$0xff] %v19658_v44  ;;  %v19682_v54 = vsub.f32 %v23995_v52, %v23996_v8  ;;  %v19685_v29 = vpack.c.bf16 %v400_v38, %v388_v0  ;;  %23999 = vst [vmem:[#allocation163_spill] sm:$0xff] %v19690_v18  ;;  %15230 = vmatpush3.bf16.msra.mxu1 %v19690_v18 }
  0xa6   :  { %v19677_v27 = vsub.f32 %v23992_v53, %v23993_v37  ;;  %v394_v17 = vand.u32 4294901760, %v393_v26  ;;  %v406_v55 = vand.u32 4294901760, %v405_v14  ;;  %v411_v37 = vsub.f32 %v19653_v31, %v23175_v7  ;;  %v24002_v14 = vld [vmem:[#allocation47_spill] sm:$0xff]  ;;  %v24005_v7 = vld [vmem:[#allocation48_spill] sm:$0xff] }
  0xa7   :  { %23997 = vst [vmem:[#allocation44_spill] sm:$0xff] %v19682_v54  ;;  %23998 = vst [vmem:[#allocation162_spill] sm:$0xff] %v19685_v29  ;;  %v24000_v53 = vand.u32 4294901760, %v19658_v44  ;;  %14840 = vmatprep.subr.bf16.mxu0 %v19685_v29  ;;  %v24003_v8 = vand.u32 4294901760, %v24002_v14  ;;  %v24006_v49 = vand.u32 4294901760, %v24005_v7 }
  0xa8   :  { %23994 = vst [vmem:[#allocation42_spill] sm:$0xff] %v19677_v27  ;;  %v19702_v0 = vpack.c.bf16 %v406_v55, %v394_v17  ;;  %v412_v38 = vand.u32 4294901760, %v411_v37  ;;  %v24009_v41 = vand.u32 4294901760, %v19677_v27  ;;  %v24010_v55 = vand.u32 4294901760, %v19682_v54 }
  0xa9   :  { %v423_v52 = vsub.f32 %v19658_v44, %v24000_v53  ;;  %v19707_v11 = vsub.f32 %v24002_v14, %v24003_v8  ;;  %v19712_v5 = vsub.f32 %v24005_v7, %v24006_v49  ;;  %v19716_v53 = vpack.c.bf16 %v19278_v15, %v19266_v24  ;;  %v24011_v8 = vld [vmem:[#allocation50_spill] sm:$0xff] }
  0xaa   :  { %24001 = vst [vmem:[#allocation164_spill] sm:$0xff] %v19702_v0  ;;  %v417_v17 = vsub.f32 %v19677_v27, %v24009_v41  ;;  %v429_v14 = vsub.f32 %v19682_v54, %v24010_v55  ;;  %14842 = vmatpush1.bf16.msra.mxu0 %v19702_v0  ;;  %v24012_v29 = vand.u32 4294901760, %v24011_v8  ;;  %v19743_v49 = vpack.c.bf16 %v19303_v40, %v19298_v60 }
  0xab   :  { %24004 = vst [vmem:[#allocation47_spill] sm:$0xff] %v19707_v11  ;;  %24007 = vst [vmem:[#allocation48_spill] sm:$0xff] %v19712_v5  ;;  %v424_v26 = vand.u32 4294901760, %v423_v52  ;;  %v24014_v52 = vld [vmem:[#allocation51_spill] sm:$0xff]  ;;  %15232 = vmatprep.subr.bf16.mxu1 %v19716_v53  ;;  %v24019_v7 = vand.u32 4294901760, %v19707_v11 }
  0xac   :  { %24008 = vst [vmem:[#allocation165_spill] sm:$0xff] %v19716_v53  ;;  %v19731_v37 = vsub.f32 %v24011_v8, %v24012_v29  ;;  %v24015_v15 = vand.u32 4294901760, %v24014_v52  ;;  %v418_v55 = vand.u32 4294901760, %v417_v17  ;;  %v430_v0 = vand.u32 4294901760, %v429_v14  ;;  %24018 = vst [vmem:[#allocation167_spill] sm:$0xff] %v19743_v49  ;;  %v24022_v17 = vld [vmem:[#allocation53_spill] sm:$0xff]  ;;  %15234 = vmatpush3.bf16.msra.mxu1 %v19743_v49 }
  0xad   :  { %v19738_v24 = vpack.c.bf16 %v424_v26, %v412_v38  ;;  %v435_v29 = vsub.f32 %v19707_v11, %v24019_v7  ;;  %v24020_v8 = vand.u32 4294901760, %v19712_v5  ;;  %v24023_v14 = vand.u32 4294901760, %v24022_v17  ;;  %v24025_v53 = vld [vmem:[#allocation56_spill] sm:$0xff] }
  0xae   :  { %24013 = vst [vmem:[#allocation50_spill] sm:$0xff] %v19731_v37  ;;  %v19736_v41 = vsub.f32 %v24014_v52, %v24015_v15  ;;  %v19754_v26 = vpack.c.bf16 %v430_v0, %v418_v55  ;;  %v24026_v40 = vand.u32 4294901760, %v24025_v53 }
  0xaf   :  { %24017 = vst [vmem:[#allocation166_spill] sm:$0xff] %v19738_v24  ;;  %v447_v18 = vsub.f32 %v19712_v5, %v24020_v8  ;;  %14844 = vmatprep.subr.bf16.mxu0 %v19738_v24  ;;  %v19759_v52 = vsub.f32 %v24022_v17, %v24023_v14  ;;  %v19768_v8 = vpack.c.bf16 %v19345_v61, %v19334_v22  ;;  %v436_v15 = vand.u32 4294901760, %v435_v29  ;;  %v24031_v29 = vld [vmem:[#allocation58_spill] sm:$0xff] }
  0xb0   :  { %24016 = vst [vmem:[#allocation51_spill] sm:$0xff] %v19736_v41  ;;  %24021 = vst [vmem:[#allocation168_spill] sm:$0xff] %v19754_v26  ;;  %v19764_v7 = vsub.f32 %v24025_v53, %v24026_v40  ;;  %v24029_v24 = vand.u32 4294901760, %v19731_v37  ;;  %v24030_v55 = vand.u32 4294901760, %v19736_v41  ;;  %14846 = vmatpush1.bf16.msra.mxu0 %v19754_v26  ;;  %v19795_v40 = vpack.c.bf16 %v19378_v57, %v19373_v42 }
  0xb1   :  { %24024 = vst [vmem:[#allocation53_spill] sm:$0xff] %v19759_v52  ;;  %24028 = vst [vmem:[#allocation169_spill] sm:$0xff] %v19768_v8  ;;  %v448_v38 = vand.u32 4294901760, %v447_v18  ;;  %15236 = vmatprep.subr.bf16.mxu1 %v19768_v8  ;;  %v24032_v18 = vand.u32 4294901760, %v24031_v29  ;;  %v24039_v53 = vand.u32 4294901760, %v19759_v52 }
  0xb2   :  { %24027 = vst [vmem:[#allocation56_spill] sm:$0xff] %v19764_v7  ;;  %v441_v0 = vsub.f32 %v19731_v37, %v24029_v24  ;;  %v453_v17 = vsub.f32 %v19736_v41, %v24030_v55  ;;  %v24034_v24 = vld [vmem:[#allocation59_spill] sm:$0xff]  ;;  %24038 = vst [vmem:[#allocation171_spill] sm:$0xff] %v19795_v40  ;;  %15238 = vmatpush3.bf16.msra.mxu1 %v19795_v40 }
  0xb3   :  { %v19784_v14 = vsub.f32 %v24031_v29, %v24032_v18  ;;  %v24035_v61 = vand.u32 4294901760, %v24034_v24  ;;  %v19791_v55 = vpack.c.bf16 %v448_v38, %v436_v15  ;;  %v459_v8 = vsub.f32 %v19759_v52, %v24039_v53  ;;  %v24042_v38 = vld [vmem:[#allocation61_spill] sm:$0xff]  ;;  %v24045_v53 = vld [vmem:[#allocation64_spill] sm:$0xff]  ;;  %v24050_v40 = vld [vmem:[#allocation11_spill] sm:$0xff] }
  0xb4   :  { %v442_v49 = vand.u32 4294901760, %v441_v0  ;;  %v454_v26 = vand.u32 4294901760, %v453_v17  ;;  %v24040_v29 = vand.u32 4294901760, %v19764_v7  ;;  %v24043_v0 = vand.u32 4294901760, %v24042_v38  ;;  %15240 = vmatprep.subr.bf16.mxu1 %v24050_v40 }
  0xb5   :  { %24033 = vst [vmem:[#allocation58_spill] sm:$0xff] %v19784_v14  ;;  %v19789_v22 = vsub.f32 %v24034_v24, %v24035_v61  ;;  %24037 = vst [vmem:[#allocation170_spill] sm:$0xff] %v19791_v55  ;;  %14848 = vmatprep.subr.bf16.mxu0 %v19791_v55  ;;  %v24046_v24 = vand.u32 4294901760, %v24045_v53  ;;  %v24048_v61 = vand.u32 4294901760, %v19784_v14  ;;  %1904 = vmatmul.mubr.f32.vlgmr.msra.gmra.mrb[4].mxu1 %v18889_v35 }
  0xb6   :  { %v471_v18 = vsub.f32 %v19764_v7, %v24040_v29  ;;  %v19806_v15 = vpack.c.bf16 %v454_v26, %v442_v49  ;;  %v19812_v17 = vsub.f32 %v24042_v38, %v24043_v0  ;;  %v460_v29 = vand.u32 4294901760, %v459_v8 }
  0xb7   :  { %24036 = vst [vmem:[#allocation59_spill] sm:$0xff] %v19789_v22  ;;  %v19817_v57 = vsub.f32 %v24045_v53, %v24046_v24  ;;  %v465_v55 = vsub.f32 %v19784_v14, %v24048_v61  ;;  %v24049_v49 = vand.u32 4294901760, %v19789_v22  ;;  %v24051_v53 = vld [vmem:[#allocation66_spill] sm:$0xff] }
  0xb8   :  { %24041 = vst [vmem:[#allocation172_spill] sm:$0xff] %v19806_v15  ;;  %24044 = vst [vmem:[#allocation61_spill] sm:$0xff] %v19812_v17  ;;  %v472_v60 = vand.u32 4294901760, %v471_v18  ;;  %14850 = vmatpush1.bf16.msra.mxu0 %v19806_v15  ;;  %v24052_v24 = vand.u32 4294901760, %v24051_v53  ;;  %v24054_v18 = vld [vmem:[#allocation68_spill] sm:$0xff] }
  0xb9   :  { %24047 = vst [vmem:[#allocation64_spill] sm:$0xff] %v19817_v57  ;;  %v477_v26 = vsub.f32 %v19789_v22, %v24049_v49  ;;  %v24055_v42 = vand.u32 4294901760, %v24054_v18  ;;  %v466_v49 = vand.u32 4294901760, %v465_v55  ;;  %v24058_v15 = vld [vmem:[#allocation72_spill] sm:$0xff]  ;;  %v24061_v22 = vand.u32 4294901760, %v19812_v17 }
  0xba   :  { %v19832_v8 = vsub.f32 %v24051_v53, %v24052_v24  ;;  %v19839_v63 = vpack.c.bf16 %v472_v60, %v460_v29  ;;  %v24059_v38 = vand.u32 4294901760, %v24058_v15  ;;  %v24062_v24 = vand.u32 4294901760, %v19817_v57  ;;  %v24063_v29 = vld [vmem:[#allocation15_spill] sm:$0xff] }
  0xbb   :  { %v19837_v61 = vsub.f32 %v24054_v18, %v24055_v42  ;;  %v478_v40 = vand.u32 4294901760, %v477_v26  ;;  %v483_v53 = vsub.f32 %v19812_v17, %v24061_v22  ;;  %15242 = vmatpush3.bf16.msra.mxu1 %v24063_v29  ;;  %v24064_v26 = vld [vmem:[#allocation76_spill] sm:$0xff]  ;;  %v24066_v22 = vand.u32 4294901760, %v18877_v50 }
  0xbc   :  { %24053 = vst [vmem:[#allocation66_spill] sm:$0xff] %v19832_v8  ;;  %24057 = vst [vmem:[#allocation173_spill] sm:$0xff] %v19839_v63  ;;  %v19845_v0 = vsub.f32 %v24058_v15, %v24059_v38  ;;  %v495_v42 = vsub.f32 %v19817_v57, %v24062_v24  ;;  %2008 = vmatprep.mubr.f32.mxu1 %v24064_v26  ;;  %14852 = vmatprep.subr.bf16.mxu0 %v19839_v63  ;;  %v24068_v24 = vld [vmem:[#allocation20_spill] sm:$0xff]  ;;  %v24069_v60 = vand.u32 4294901760, %v18921_v32 }
  0xbd   :  { %24056 = vst [vmem:[#allocation68_spill] sm:$0xff] %v19837_v61  ;;  %v19858_v15 = vpack.c.bf16 %v478_v40, %v466_v49  ;;  %v19864_v18 = vsub.f32 %v18877_v50, %v24066_v22  ;;  %15244 = vmatprep.subr.bf16.mxu1 %v24068_v24  ;;  %v484_v35 = vand.u32 4294901760, %v483_v53  ;;  %v24071_v63 = vand.u32 4294901760, %v19832_v8 }
  0xbe   :  { %24060 = vst [vmem:[#allocation72_spill] sm:$0xff] %v19845_v0  ;;  %v19870_v55 = vsub.f32 %v18921_v32, %v24069_v60  ;;  %v496_v26 = vand.u32 4294901760, %v495_v42  ;;  %v24072_v49 = vand.u32 4294901760, %v19837_v61  ;;  %v24073_v50 = vand.u32 4294901760, %v19845_v0 }
  0xbf   :  { %24065 = vst [vmem:[#allocation174_spill] sm:$0xff] %v19858_v15  ;;  %24067 = vst [vmem:[#allocation175_spill] sm:$0xff] %v19864_v18  ;;  %v489_v40 = vsub.f32 %v19832_v8, %v24071_v63  ;;  %14854 = vmatpush1.bf16.msra.mxu0 %v19858_v15  ;;  %v23225_v24 = vand.u32 4294901760, %v19864_v18  ;;  %v24074_v53 = vand.u32 4294901760, %v18923_v13  ;;  %v24078_v15 = vld [vmem:[#allocation82_spill] sm:$0xff] }
  0xc0   :  { %24070 = vst [vmem:[#allocation176_spill] sm:$0xff] %v19870_v55  ;;  %v501_v38 = vsub.f32 %v19837_v61, %v24072_v49  ;;  %v507_v22 = vsub.f32 %v19845_v0, %v24073_v50  ;;  %v19889_v63 = vpack.c.bf16 %v496_v26, %v484_v35  ;;  %v24077_v49 = vld [vmem:[#allocation23_spill] sm:$0xff]  ;;  %v24079_v61 = vand.u32 4294901760, %v24078_v15  ;;  %v24082_v26 = vld [vmem:[#allocation29_spill] sm:$0xff] }
  0xc1   :  { %v19887_v42 = vsub.f32 %v18923_v13, %v24074_v53  ;;  %v490_v60 = vand.u32 4294901760, %v489_v40  ;;  %15246 = vmatpush3.bf16.msra.mxu1 %v24077_v49  ;;  %v519_v32 = vsub.f32 %v19864_v18, %v23225_v24  ;;  %v24081_v0 = vand.u32 4294901760, %v19870_v55  ;;  %v24087_v53 = vld [vmem:[#allocation85_spill] sm:$0xff] }
  0xc2   :  { %24076 = vst [vmem:[#allocation178_spill] sm:$0xff] %v19889_v63  ;;  %v502_v29 = vand.u32 4294901760, %v501_v38  ;;  %v19895_v8 = vsub.f32 %v24078_v15, %v24079_v61  ;;  %v508_v50 = vand.u32 4294901760, %v507_v22  ;;  %15248 = vmatprep.subr.bf16.mxu1 %v24082_v26  ;;  %14856 = vmatprep.subr.bf16.mxu0 %v19889_v63  ;;  %v24084_v15 = vld [vmem:[#allocation83_spill] sm:$0xff]  ;;  %v24088_v24 = vand.u32 4294901760, %v24087_v53 }
  0xc3   :  { %24075 = vst [vmem:[#allocation177_spill] sm:$0xff] %v19887_v42  ;;  %v513_v13 = vsub.f32 %v19870_v55, %v24081_v0  ;;  %v24085_v40 = vand.u32 4294901760, %v24084_v15  ;;  %v520_v0 = vand.u32 4294901760, %v519_v32  ;;  %v24090_v26 = vand.u32 4294901760, %v19887_v42 }
  0xc4   :  { %24080 = vst [vmem:[#allocation82_spill] sm:$0xff] %v19895_v8  ;;  %v19906_v38 = vpack.c.bf16 %v502_v29, %v490_v60  ;;  %v19917_v49 = vsub.f32 %v24087_v53, %v24088_v24  ;;  %v24091_v29 = vld [vmem:[#allocation86_spill] sm:$0xff]  ;;  %v24096_v53 = vld [vmem:[#allocation89_spill] sm:$0xff] }
  0xc5   :  { %v19912_v22 = vsub.f32 %v24084_v15, %v24085_v40  ;;  %v514_v35 = vand.u32 4294901760, %v513_v13  ;;  %v525_v63 = vsub.f32 %v19887_v42, %v24090_v26  ;;  %v24092_v60 = vand.u32 4294901760, %v24091_v29  ;;  %v24095_v13 = vld [vmem:[#allocation32_spill] sm:$0xff]  ;;  %v24103_v24 = vld [vmem:[#allocation37_spill] sm:$0xff] }
  0xc6   :  { %24083 = vst [vmem:[#allocation179_spill] sm:$0xff] %v19906_v38  ;;  %24089 = vst [vmem:[#allocation85_spill] sm:$0xff] %v19917_v49  ;;  %14858 = vmatpush1.bf16.msra.mxu0 %v19906_v38  ;;  %v24094_v15 = vand.u32 4294901760, %v19895_v8  ;;  %15250 = vmatpush3.bf16.msra.mxu1 %v24095_v13  ;;  %v24097_v55 = vand.u32 4294901760, %v24096_v53  ;;  %v19939_v42 = vpack.c.bf16 %v520_v0, %v508_v50  ;;  %v24100_v38 = vld [vmem:[#allocation91_spill] sm:$0xff] }
  0xc7   :  { %24086 = vst [vmem:[#allocation83_spill] sm:$0xff] %v19912_v22  ;;  %v19925_v61 = vsub.f32 %v24091_v29, %v24092_v60  ;;  %v526_v29 = vand.u32 4294901760, %v525_v63  ;;  %v24101_v18 = vand.u32 4294901760, %v24100_v38  ;;  %15252 = vmatprep.subr.bf16.mxu1 %v24103_v24  ;;  %v24104_v13 = vand.u32 4294901760, %v19912_v22 }
  0xc8   :  { %v531_v40 = vsub.f32 %v19895_v8, %v24094_v15  ;;  %v19937_v26 = vsub.f32 %v24096_v53, %v24097_v55  ;;  %24099 = vst [vmem:[#allocation180_spill] sm:$0xff] %v19939_v42  ;;  %v24105_v55 = vand.u32 4294901760, %v19917_v49  ;;  %14860 = vmatprep.subr.bf16.mxu0 %v19939_v42  ;;  %v24110_v42 = vld [vmem:[#allocation94_spill] sm:$0xff] }
  0xc9   :  { %24093 = vst [vmem:[#allocation86_spill] sm:$0xff] %v19925_v61  ;;  %v23244_v60 = vand.u32 4294901760, %v19925_v61  ;;  %v19945_v15 = vsub.f32 %v24100_v38, %v24101_v18  ;;  %v543_v8 = vsub.f32 %v19912_v22, %v24104_v13  ;;  %v19956_v0 = vpack.c.bf16 %v526_v29, %v514_v35 }
  0xca   :  { %24098 = vst [vmem:[#allocation89_spill] sm:$0xff] %v19937_v26  ;;  %v532_v32 = vand.u32 4294901760, %v531_v40  ;;  %v537_v50 = vsub.f32 %v19917_v49, %v24105_v55  ;;  %v23245_v63 = vand.u32 4294901760, %v19937_v26  ;;  %v24107_v40 = vld [vmem:[#allocation93_spill] sm:$0xff]  ;;  %v24111_v35 = vand.u32 4294901760, %v24110_v42 }
  0xcb   :  { %24102 = vst [vmem:[#allocation91_spill] sm:$0xff] %v19945_v15  ;;  %24106 = vst [vmem:[#allocation181_spill] sm:$0xff] %v19956_v0  ;;  %v549_v18 = vsub.f32 %v19925_v61, %v23244_v60  ;;  %v23252_v38 = vand.u32 4294901760, %v19945_v15  ;;  %v24108_v53 = vand.u32 4294901760, %v24107_v40  ;;  %v544_v24 = vand.u32 4294901760, %v543_v8  ;;  %v24113_v49 = vld [vmem:[#allocation41_spill] sm:$0xff]  ;;  %14862 = vmatpush1.bf16.msra.mxu0 %v19956_v0 }
  0xcc   :  { %v538_v22 = vand.u32 4294901760, %v537_v50  ;;  %v555_v55 = vsub.f32 %v19937_v26, %v23245_v63  ;;  %v19973_v29 = vsub.f32 %v24110_v42, %v24111_v35  ;;  %15254 = vmatpush3.bf16.msra.mxu1 %v24113_v49  ;;  %v24114_v50 = vld [vmem:[#allocation97_spill] sm:$0xff]  ;;  %v24119_v0 = vld [vmem:[#allocation98_spill] sm:$0xff] }
  0xcd   :  { %v19965_v13 = vsub.f32 %v24107_v40, %v24108_v53  ;;  %v550_v60 = vand.u32 4294901760, %v549_v18  ;;  %v567_v40 = vsub.f32 %v19945_v15, %v23252_v38  ;;  %v24115_v53 = vand.u32 4294901760, %v24114_v50  ;;  %v24117_v26 = vld [vmem:[#allocation45_spill] sm:$0xff] }
  0xce   :  { %24112 = vst [vmem:[#allocation94_spill] sm:$0xff] %v19973_v29  ;;  %15256 = vmatprep.subr.bf16.mxu1 %v24117_v26  ;;  %v19987_v42 = vpack.c.bf16 %v544_v24, %v532_v32  ;;  %v556_v35 = vand.u32 4294901760, %v555_v55  ;;  %v23257_v49 = vand.u32 4294901760, %v19973_v29  ;;  %v24120_v18 = vand.u32 4294901760, %v24119_v0  ;;  %v24124_v55 = vld [vmem:[#allocation103_spill] sm:$0xff]  ;;  %v24133_v26 = vld [vmem:[#allocation109_spill] sm:$0xff] }
  0xcf   :  { %24109 = vst [vmem:[#allocation93_spill] sm:$0xff] %v19965_v13  ;;  %v19984_v63 = vsub.f32 %v24114_v50, %v24115_v53  ;;  %v19995_v38 = vpack.c.bf16 %v550_v60, %v538_v22  ;;  %v568_v8 = vand.u32 4294901760, %v567_v40  ;;  %v24123_v15 = vand.u32 4294901760, %v19965_v13  ;;  %v24127_v60 = vld [vmem:[#allocation105_spill] sm:$0xff] }
  0xd0   :  { %24118 = vst [vmem:[#allocation182_spill] sm:$0xff] %v19987_v42  ;;  %v19993_v61 = vsub.f32 %v24119_v0, %v24120_v18  ;;  %14864 = vmatprep.subr.bf16.mxu0 %v19987_v42  ;;  %v573_v24 = vsub.f32 %v19973_v29, %v23257_v49  ;;  %v24125_v0 = vand.u32 4294901760, %v24124_v55  ;;  %v24128_v40 = vand.u32 4294901760, %v24127_v60 }
  0xd1   :  { %24116 = vst [vmem:[#allocation97_spill] sm:$0xff] %v19984_v63  ;;  %24122 = vst [vmem:[#allocation183_spill] sm:$0xff] %v19995_v38  ;;  %v561_v50 = vsub.f32 %v19965_v13, %v24123_v15  ;;  %v24130_v15 = vld [vmem:[#allocation49_spill] sm:$0xff]  ;;  %14866 = vmatpush1.bf16.msra.mxu0 %v19995_v38  ;;  %v20018_v53 = vpack.c.bf16 %v568_v8, %v556_v35  ;;  %v24132_v49 = vand.u32 4294901760, %v19984_v63  ;;  %v24134_v29 = vand.u32 4294901760, %v24133_v26 }
  0xd2   :  { %24121 = vst [vmem:[#allocation98_spill] sm:$0xff] %v19993_v61  ;;  %v20009_v22 = vsub.f32 %v24124_v55, %v24125_v0  ;;  %v20014_v18 = vsub.f32 %v24127_v60, %v24128_v40  ;;  %15258 = vmatpush3.bf16.msra.mxu1 %v24130_v15  ;;  %v24136_v0 = vld [vmem:[#allocation54_spill] sm:$0xff]  ;;  %v574_v60 = vand.u32 4294901760, %v573_v24  ;;  %v24137_v40 = vand.u32 4294901760, %v19993_v61  ;;  %v24138_v38 = vld [vmem:[#allocation113_spill] sm:$0xff] }
  0xd3   :  { %24131 = vst [vmem:[#allocation184_spill] sm:$0xff] %v20018_v53  ;;  %v562_v42 = vand.u32 4294901760, %v561_v50  ;;  %v579_v32 = vsub.f32 %v19984_v63, %v24132_v49  ;;  %v20026_v55 = vsub.f32 %v24133_v26, %v24134_v29  ;;  %15260 = vmatprep.subr.bf16.mxu1 %v24136_v0  ;;  %14868 = vmatprep.subr.bf16.mxu0 %v20018_v53  ;;  %v24139_v63 = vand.u32 4294901760, %v24138_v38  ;;  %v24141_v29 = vld [vmem:[#allocation115_spill] sm:$0xff] }
  0xd4   :  { %24126 = vst [vmem:[#allocation103_spill] sm:$0xff] %v20009_v22  ;;  %24129 = vst [vmem:[#allocation105_spill] sm:$0xff] %v20014_v18  ;;  %v591_v15 = vsub.f32 %v19993_v61, %v24137_v40  ;;  %v24142_v24 = vand.u32 4294901760, %v24141_v29  ;;  %v24145_v35 = vand.u32 4294901760, %v20009_v22  ;;  %v24147_v61 = vld [vmem:[#allocation57_spill] sm:$0xff] }
  0xd5   :  { %24135 = vst [vmem:[#allocation109_spill] sm:$0xff] %v20026_v55  ;;  %v580_v50 = vand.u32 4294901760, %v579_v32  ;;  %v20039_v26 = vsub.f32 %v24138_v38, %v24139_v63  ;;  %v20046_v40 = vpack.c.bf16 %v574_v60, %v562_v42  ;;  %v24146_v32 = vand.u32 4294901760, %v20014_v18  ;;  %v24149_v60 = vld [vmem:[#allocation116_spill] sm:$0xff] }
  0xd6   :  { %v20044_v0 = vsub.f32 %v24141_v29, %v24142_v24  ;;  %v592_v8 = vand.u32 4294901760, %v591_v15  ;;  %v585_v53 = vsub.f32 %v20009_v22, %v24145_v35  ;;  %15262 = vmatpush3.bf16.msra.mxu1 %v24147_v61  ;;  %v24148_v63 = vand.u32 4294901760, %v20026_v55  ;;  %v24152_v35 = vld [vmem:[#allocation62_spill] sm:$0xff]  ;;  %v24154_v22 = vld [vmem:[#allocation121_spill] sm:$0xff] }
  0xd7   :  { %24140 = vst [vmem:[#allocation113_spill] sm:$0xff] %v20039_v26  ;;  %24144 = vst [vmem:[#allocation185_spill] sm:$0xff] %v20046_v40  ;;  %v597_v49 = vsub.f32 %v20014_v18, %v24146_v32  ;;  %v24150_v15 = vand.u32 4294901760, %v24149_v60  ;;  %15264 = vmatprep.subr.bf16.mxu1 %v24152_v35  ;;  %14870 = vmatpush1.bf16.msra.mxu0 %v20046_v40  ;;  %v24155_v13 = vand.u32 4294901760, %v24154_v22  ;;  %v24157_v42 = vand.u32 4294901760, %v20039_v26  ;;  %v24166_v35 = vld [vmem:[#allocation65_spill] sm:$0xff] }
  0xd8   :  { %24143 = vst [vmem:[#allocation115_spill] sm:$0xff] %v20044_v0  ;;  %v603_v38 = vsub.f32 %v20026_v55, %v24148_v63  ;;  %v20067_v32 = vpack.c.bf16 %v592_v8, %v580_v50  ;;  %v586_v61 = vand.u32 4294901760, %v585_v53  ;;  %v24160_v50 = vld [vmem:[#allocation122_spill] sm:$0xff] }
  0xd9   :  { %v20063_v24 = vsub.f32 %v24149_v60, %v24150_v15  ;;  %v598_v18 = vand.u32 4294901760, %v597_v49  ;;  %v20072_v63 = vsub.f32 %v24154_v22, %v24155_v13  ;;  %v615_v55 = vsub.f32 %v20039_v26, %v24157_v42  ;;  %v24163_v49 = vld [vmem:[#allocation127_spill] sm:$0xff] }
  0xda   :  { %24153 = vst [vmem:[#allocation186_spill] sm:$0xff] %v20067_v32  ;;  %v604_v29 = vand.u32 4294901760, %v603_v38  ;;  %v24158_v60 = vand.u32 4294901760, %v20044_v0  ;;  %14872 = vmatprep.subr.bf16.mxu0 %v20067_v32  ;;  %v24161_v13 = vand.u32 4294901760, %v24160_v50  ;;  %v24164_v38 = vand.u32 4294901760, %v24163_v49  ;;  %15266 = vmatpush3.bf16.msra.mxu1 %v24166_v35 }
  0xdb   :  { %24151 = vst [vmem:[#allocation116_spill] sm:$0xff] %v20063_v24  ;;  %24156 = vst [vmem:[#allocation121_spill] sm:$0xff] %v20072_v63  ;;  %v20082_v53 = vpack.c.bf16 %v598_v18, %v586_v61  ;;  %v24167_v32 = vand.u32 4294901760, %v20063_v24  ;;  %v24168_v18 = vld [vmem:[#allocation129_spill] sm:$0xff] }
  0xdc   :  { %v609_v15 = vsub.f32 %v20044_v0, %v24158_v60  ;;  %v20088_v22 = vsub.f32 %v24160_v50, %v24161_v13  ;;  %v20093_v42 = vsub.f32 %v24163_v49, %v24164_v38  ;;  %v616_v60 = vand.u32 4294901760, %v615_v55  ;;  %v24171_v50 = vld [vmem:[#allocation69_spill] sm:$0xff] }
  0xdd   :  { %24159 = vst [vmem:[#allocation187_spill] sm:$0xff] %v20082_v53  ;;  %v621_v61 = vsub.f32 %v20063_v24, %v24167_v32  ;;  %v24169_v8 = vand.u32 4294901760, %v24168_v18  ;;  %15268 = vmatprep.subr.bf16.mxu1 %v24171_v50  ;;  %14874 = vmatpush1.bf16.msra.mxu0 %v20082_v53  ;;  %v24172_v13 = vand.u32 4294901760, %v20072_v63  ;;  %v24173_v38 = vand.u32 4294901760, %v19289_v51 }
  0xde   :  { %24162 = vst [vmem:[#allocation122_spill] sm:$0xff] %v20088_v22  ;;  %24165 = vst [vmem:[#allocation127_spill] sm:$0xff] %v20093_v42  ;;  %v610_v40 = vand.u32 4294901760, %v609_v15  ;;  %v23286_v55 = vand.u32 4294901760, %v20088_v22  ;;  %v20116_v35 = vpack.c.bf16 %v616_v60, %v604_v29  ;;  %v24176_v53 = vand.u32 4294901760, %v19305_v6  ;;  %v24179_v60 = vld [vmem:[#allocation71_spill] sm:$0xff] }
  0xdf   :  { %v20102_v0 = vsub.f32 %v24168_v18, %v24169_v8  ;;  %v627_v49 = vsub.f32 %v20072_v63, %v24172_v13  ;;  %v20114_v32 = vsub.f32 %v19289_v51, %v24173_v38  ;;  %v622_v8 = vand.u32 4294901760, %v621_v61  ;;  %15270 = vmatpush3.bf16.msra.mxu1 %v24179_v60 }
  0xe0   :  { %24175 = vst [vmem:[#allocation189_spill] sm:$0xff] %v20116_v35  ;;  %v20122_v50 = vsub.f32 %v19305_v6, %v24176_v53  ;;  %v639_v15 = vsub.f32 %v20088_v22, %v23286_v55  ;;  %v24178_v63 = vand.u32 4294901760, %v20093_v42  ;;  %14876 = vmatprep.subr.bf16.mxu0 %v20116_v35 }
  0xe1   :  { %24170 = vst [vmem:[#allocation129_spill] sm:$0xff] %v20102_v0  ;;  %24174 = vst [vmem:[#allocation188_spill] sm:$0xff] %v20114_v32  ;;  %v23287_v18 = vand.u32 4294901760, %v20102_v0  ;;  %v628_v13 = vand.u32 4294901760, %v627_v49  ;;  %v23290_v29 = vand.u32 4294901760, %v20114_v32  ;;  %v20133_v61 = vpack.c.bf16 %v622_v8, %v610_v40 }
  0xe2   :  { %24177 = vst [vmem:[#allocation190_spill] sm:$0xff] %v20122_v50  ;;  %v633_v51 = vsub.f32 %v20093_v42, %v24178_v63  ;;  %v23293_v53 = vand.u32 4294901760, %v20122_v50  ;;  %v24181_v49 = vand.u32 4294901760, %v19323_v46  ;;  %v640_v63 = vand.u32 4294901760, %v639_v15  ;;  %v24185_v15 = vld [vmem:[#allocation79_spill] sm:$0xff] }
  0xe3   :  { %24180 = vst [vmem:[#allocation191_spill] sm:$0xff] %v20133_v61  ;;  %v645_v6 = vsub.f32 %v20102_v0, %v23287_v18  ;;  %v651_v60 = vsub.f32 %v20114_v32, %v23290_v29  ;;  %v24183_v40 = vand.u32 4294901760, %v19325_v21  ;;  %14878 = vmatpush1.bf16.msra.mxu0 %v20133_v61  ;;  %2012 = vmatmul.mubr.f32.vlgmr.msra.gmra.mrb[6].mxu1 %v24185_v15  ;;  %v24187_v32 = vand.u32 4294901760, %v18840_v9 }
  0xe4   :  { %v20142_v38 = vsub.f32 %v19323_v46, %v24181_v49  ;;  %v634_v55 = vand.u32 4294901760, %v633_v51  ;;  %v663_v35 = vsub.f32 %v20122_v50, %v23293_v53  ;;  %v20158_v51 = vpack.c.bf16 %v640_v63, %v628_v13  ;;  %2178 = vmatprep.mubr.f32.mxu1 %v18828_v43 }
  0xe5   :  { %v20150_v8 = vsub.f32 %v19325_v21, %v24183_v40  ;;  %v646_v18 = vand.u32 4294901760, %v645_v6  ;;  %v652_v49 = vand.u32 4294901760, %v651_v60  ;;  %v24188_v21 = vand.u32 4294901760, %v18845_v59 }
  0xe6   :  { %24182 = vst [vmem:[#allocation192_spill] sm:$0xff] %v20142_v38  ;;  %v23297_v46 = vand.u32 4294901760, %v20142_v38  ;;  %24186 = vst [vmem:[#allocation79_spill] sm:$0xff] %v20158_v51  ;;  %v664_v53 = vand.u32 4294901760, %v663_v35  ;;  %14880 = vmatprep.subr.bf16.mxu0 %v20158_v51  ;;  %v24191_v9 = vand.u32 4294901760, %v18870_v3  ;;  %v24192_v59 = vand.u32 4294901760, %v18875_v34 }
  0xe7   :  { %24184 = vst [vmem:[#allocation193_spill] sm:$0xff] %v20150_v8  ;;  %v23296_v29 = vand.u32 4294901760, %v20150_v8  ;;  %v20165_v40 = vpack.c.bf16 %v24188_v21, %v24187_v32  ;;  %v20168_v6 = vpack.c.bf16 %v646_v18, %v634_v55  ;;  %v24195_v18 = vand.u32 4294901760, %v18912_v62 }
  0xe8   :  { %v657_v61 = vsub.f32 %v20142_v38, %v23297_v46  ;;  %v20182_v32 = vpack.c.bf16 %v24192_v59, %v24191_v9  ;;  %v20185_v35 = vpack.c.bf16 %v664_v53, %v652_v49  ;;  %v24196_v60 = vand.u32 4294901760, %v18940_v39  ;;  %v24201_v53 = vld [vmem:[#allocation146_spill] sm:$0xff]  ;;  %v24209_v59 = vld [vmem:[#allocation148_spill] sm:$0xff] }
  0xe9   :  { %24189 = vst [vmem:[#allocation194_spill] sm:$0xff] %v20165_v40  ;;  %24190 = vst [vmem:[#allocation195_spill] sm:$0xff] %v20168_v6  ;;  %v669_v13 = vsub.f32 %v20150_v8, %v23296_v29  ;;  %15272 = vmatprep.subr.bf16.mxu1 %v20165_v40  ;;  %14882 = vmatpush1.bf16.msra.mxu0 %v20168_v6  ;;  %v24198_v3 = vand.u32 4294901760, %v18962_v20  ;;  %v24199_v34 = vand.u32 4294901760, %v18967_v58  ;;  %v24203_v62 = vand.u32 4294901760, %v18991_v10  ;;  %v24213_v10 = vld [vmem:[#allocation153_spill] sm:$0xff] }
  0xea   :  { %24193 = vst [vmem:[#allocation196_spill] sm:$0xff] %v20182_v32  ;;  %24194 = vst [vmem:[#allocation197_spill] sm:$0xff] %v20185_v35  ;;  %v658_v55 = vand.u32 4294901760, %v657_v61  ;;  %v20191_v63 = vpack.c.bf16 %v24196_v60, %v24195_v18  ;;  %15274 = vmatpush3.bf16.msra.mxu1 %v20182_v32  ;;  %14884 = vmatprep.subr.bf16.mxu0 %v20185_v35  ;;  %v20203_v61 = vpack.c.bf16 %v24201_v53, %v19389_v16  ;;  %v24210_v18 = vld [vmem:[#allocation149_spill] sm:$0xff]  ;;  %v24223_v32 = vld [vmem:[#allocation14_spill] sm:$0xff] }
  0xeb   :  { %v670_v21 = vand.u32 4294901760, %v669_v13  ;;  %v20198_v9 = vpack.c.bf16 %v24199_v34, %v24198_v3  ;;  %v24204_v39 = vand.u32 4294901760, %v19004_v25  ;;  %v20214_v20 = vpack.c.bf16 %v19552_v56, %v19547_v45  ;;  %v24212_v3 = vld [vmem:[#allocation152_spill] sm:$0xff]  ;;  %v24232_v35 = vld [vmem:[#allocation102_spill] sm:$0xff] }
  0xec   :  { %24197 = vst [vmem:[#allocation198_spill] sm:$0xff] %v20191_v63  ;;  %24202 = vst [vmem:[#allocation146_spill] sm:$0xff] %v20203_v61  ;;  %15276 = vmatprep.subr.bf16.mxu1 %v20191_v63  ;;  %v20220_v13 = vpack.c.bf16 %v19581_v1, %v19575_v12  ;;  %v20224_v60 = vpack.c.bf16 %v24210_v18, %v24209_v59  ;;  %v20228_v34 = vpack.c.bf16 %v24213_v10, %v24212_v3  ;;  %v24222_v63 = vld [vmem:[#allocation13_spill] sm:$0xff] }
  0xed   :  { %24200 = vst [vmem:[#allocation199_spill] sm:$0xff] %v20198_v9  ;;  %v20210_v49 = vpack.c.bf16 %v24204_v39, %v24203_v62  ;;  %24206 = vst [vmem:[#allocation201_spill] sm:$0xff] %v20214_v20  ;;  %v20216_v58 = vpack.c.bf16 %v670_v21, %v658_v55  ;;  %v20232_v25 = vpack.c.bf16 %v19607_v4, %v19598_v23  ;;  %v24217_v21 = vand.u32 4294901760, %v19028_v33 }
  0xee   :  { %24208 = vst [vmem:[#allocation203_spill] sm:$0xff] %v20220_v13  ;;  %24211 = vst [vmem:[#allocation148_spill] sm:$0xff] %v20224_v60  ;;  %v20236_v55 = vpack.c.bf16 %v19631_v19, %v19626_v30  ;;  %15278 = vmatpush3.bf16.msra.mxu1 %v20198_v9  ;;  %v24218_v62 = vand.u32 4294901760, %v19033_v28  ;;  %v20248_v29 = vpack.c.bf16 %v19658_v44, %v19653_v31  ;;  %v24225_v28 = vand.u32 4294901760, %v19061_v48  ;;  %v24268_v44 = vld [vmem:[#allocation98_spill] sm:$0xff] }
  0xef   :  { %24205 = vst [vmem:[#allocation200_spill] sm:$0xff] %v20210_v49  ;;  %24207 = vst [vmem:[#allocation202_spill] sm:$0xff] %v20216_v58  ;;  %14886 = vmatpush1.bf16.msra.mxu0 %v20216_v58  ;;  %v20252_v46 = vpack.c.bf16 %v19682_v54, %v19677_v27  ;;  %v20257_v40 = vpack.c.bf16 %v24223_v32, %v24222_v63  ;;  %15280 = vmatprep.subr.bf16.mxu1 %v20210_v49  ;;  %v24226_v33 = vand.u32 4294901760, %v19072_v47  ;;  %v24265_v27 = vld [vmem:[#allocation94_spill] sm:$0xff] }
  0xf0   :  { %24214 = vst [vmem:[#allocation149_spill] sm:$0xff] %v20228_v34  ;;  %24215 = vst [vmem:[#allocation152_spill] sm:$0xff] %v20232_v25  ;;  %v20244_v39 = vpack.c.bf16 %v24218_v62, %v24217_v21  ;;  %14888 = vmatprep.subr.bf16.mxu0 %v20203_v61  ;;  %v20268_v62 = vpack.c.bf16 %v19712_v5, %v19707_v11  ;;  %v20272_v9 = vpack.c.bf16 %v19497_v36, %v19492_v2  ;;  %v24230_v61 = vld [vmem:[#allocation101_spill] sm:$0xff]  ;;  %v24240_v5 = vld [vmem:[#allocation108_spill] sm:$0xff] }
  0xf1   :  { %24216 = vst [vmem:[#allocation153_spill] sm:$0xff] %v20236_v55  ;;  %24220 = vst [vmem:[#allocation205_spill] sm:$0xff] %v20248_v29  ;;  %v20264_v21 = vpack.c.bf16 %v24226_v33, %v24225_v28  ;;  %v24231_v58 = vand.u32 4294901760, %v24230_v61  ;;  %v24233_v6 = vand.u32 4294901760, %v24232_v35  ;;  %v20282_v48 = vpack.c.bf16 %v19736_v41, %v19731_v37  ;;  %v24237_v28 = vld [vmem:[#allocation75_spill] sm:$0xff]  ;;  %v24238_v33 = vld [vmem:[#allocation106_spill] sm:$0xff] }
  0xf2   :  { %24219 = vst [vmem:[#allocation204_spill] sm:$0xff] %v20244_v39  ;;  %24221 = vst [vmem:[#allocation206_spill] sm:$0xff] %v20252_v46  ;;  %v20286_v47 = vpack.c.bf16 %v19764_v7, %v19759_v52  ;;  %675 = vmatmul.mubr.f32.vlgmr.msra.gmra.mrb[0].mxu0 %v24237_v28  ;;  %v24239_v49 = vand.u32 4294901760, %v24238_v33  ;;  %v24241_v11 = vand.u32 4294901760, %v24240_v5  ;;  %v24243_v35 = vld [vmem:[#allocation59_spill] sm:$0xff]  ;;  %v20301_v61 = vpack.c.bf16 %v19817_v57, %v19812_v17  ;;  %v24247_v41 = vld [vmem:[#allocation68_spill] sm:$0xff] }
  0xf3   :  { %24224 = vst [vmem:[#allocation13_spill] sm:$0xff] %v20257_v40  ;;  %24227 = vst [vmem:[#allocation14_spill] sm:$0xff] %v20264_v21  ;;  %v20278_v51 = vpack.c.bf16 %v24233_v6, %v24231_v58  ;;  %v20297_v6 = vpack.c.bf16 %v24243_v35, %v19784_v14  ;;  %v24246_v58 = vld [vmem:[#allocation66_spill] sm:$0xff]  ;;  %14890 = vmatpush1.bf16.msra.mxu0 %v20224_v60  ;;  %15282 = vmatpush3.bf16.msra.mxu1 %v20244_v39  ;;  %v24249_v33 = vld [vmem:[#allocation72_spill] sm:$0xff] }
  0xf4   :  { %24228 = vst [vmem:[#allocation207_spill] sm:$0xff] %v20268_v62  ;;  %24229 = vst [vmem:[#allocation208_spill] sm:$0xff] %v20272_v9  ;;  %v20293_v54 = vpack.c.bf16 %v24241_v11, %v24239_v49  ;;  %v20305_v7 = vpack.c.bf16 %v24247_v41, %v24246_v58  ;;  %v24250_v5 = vld [vmem:[#allocation175_spill] sm:$0xff]  ;;  %v24252_v49 = vld [vmem:[#allocation176_spill] sm:$0xff]  ;;  %14892 = vmatprep.subr.bf16.mxu0 %v20228_v34  ;;  %15284 = vmatprep.subr.bf16.mxu1 %v20264_v21 }
  0xf5   :  { %24234 = vst [vmem:[#allocation101_spill] sm:$0xff] %v20278_v51  ;;  %24235 = vst [vmem:[#allocation102_spill] sm:$0xff] %v20282_v48  ;;  %v20311_v11 = vpack.c.bf16 %v24250_v5, %v24249_v33  ;;  %v24253_v52 = vld [vmem:[#allocation177_spill] sm:$0xff]  ;;  %v24255_v14 = vld [vmem:[#allocation82_spill] sm:$0xff] }
  0xf6   :  { %24236 = vst [vmem:[#allocation209_spill] sm:$0xff] %v20286_v47  ;;  %24242 = vst [vmem:[#allocation75_spill] sm:$0xff] %v20293_v54  ;;  %v20315_v35 = vpack.c.bf16 %v24253_v52, %v24252_v49  ;;  %v24256_v37 = vld [vmem:[#allocation83_spill] sm:$0xff]  ;;  %v24258_v41 = vld [vmem:[#allocation85_spill] sm:$0xff] }
  0xf7   :  { %24244 = vst [vmem:[#allocation106_spill] sm:$0xff] %v20297_v6  ;;  %24245 = vst [vmem:[#allocation108_spill] sm:$0xff] %v20301_v61  ;;  %v20319_v57 = vpack.c.bf16 %v24256_v37, %v24255_v14  ;;  %v24259_v60 = vld [vmem:[#allocation86_spill] sm:$0xff]  ;;  %v24261_v39 = vld [vmem:[#allocation89_spill] sm:$0xff]  ;;  %14894 = vmatpush1.bf16.msra.mxu0 %v20257_v40  ;;  %15286 = vmatpush3.bf16.msra.mxu1 %v20278_v51 }
  0xf8   :  { %24248 = vst [vmem:[#allocation210_spill] sm:$0xff] %v20305_v7  ;;  %24251 = vst [vmem:[#allocation211_spill] sm:$0xff] %v20311_v11  ;;  %v20325_v58 = vpack.c.bf16 %v24259_v60, %v24258_v41  ;;  %v24262_v17 = vld [vmem:[#allocation91_spill] sm:$0xff]  ;;  %v24264_v33 = vld [vmem:[#allocation93_spill] sm:$0xff]  ;;  %14896 = vmatprep.subr.bf16.mxu0 %v20272_v9  ;;  %15288 = vmatprep.subr.bf16.mxu1 %v20293_v54 }
  0xf9   :  { %24254 = vst [vmem:[#allocation212_spill] sm:$0xff] %v20315_v35  ;;  %24257 = vst [vmem:[#allocation213_spill] sm:$0xff] %v20319_v57  ;;  %v20329_v5 = vpack.c.bf16 %v24262_v17, %v24261_v39  ;;  %v20333_v52 = vpack.c.bf16 %v24265_v27, %v24264_v33  ;;  %v24267_v49 = vld [vmem:[#allocation97_spill] sm:$0xff]  ;;  %v24270_v14 = vld [vmem:[#allocation103_spill] sm:$0xff] }
  0xfa   :  { %24260 = vst [vmem:[#allocation214_spill] sm:$0xff] %v20325_v58  ;;  %v20337_v37 = vpack.c.bf16 %v24268_v44, %v24267_v49  ;;  %v24271_v34 = vld [vmem:[#allocation105_spill] sm:$0xff]  ;;  %v24275_v41 = vld [vmem:[#allocation115_spill] sm:$0xff]  ;;  %v24277_v39 = vld [vmem:[#allocation74_spill] sm:$0xff]  ;;  %v20358_v44 = vpack.c.bf16 %v20102_v0, %v20093_v42 }
  0xfb   :  { %24263 = vst [vmem:[#allocation215_spill] sm:$0xff] %v20329_v5  ;;  %24266 = vst [vmem:[#allocation216_spill] sm:$0xff] %v20333_v52  ;;  %v20341_v31 = vpack.c.bf16 %v24271_v34, %v24270_v14  ;;  %v24273_v21 = vld [vmem:[#allocation109_spill] sm:$0xff]  ;;  %v20349_v17 = vpack.c.bf16 %v20063_v24, %v24275_v41  ;;  %875 = vmatprep.mubr.f32.mxu0 %v24277_v39  ;;  %v24281_v34 = vld [vmem:[#allocation188_spill] sm:$0xff] }
  0xfc   :  { %24269 = vst [vmem:[#allocation217_spill] sm:$0xff] %v20337_v37  ;;  %v20345_v60 = vpack.c.bf16 %v20039_v26, %v24273_v21  ;;  %v24278_v27 = vld [vmem:[#allocation121_spill] sm:$0xff]  ;;  %24280 = vst [vmem:[#allocation221_spill] sm:$0xff] %v20358_v44  ;;  %v20362_v14 = vpack.c.bf16 %v20122_v50, %v24281_v34  ;;  %v20366_v26 = vpack.c.bf16 %v20150_v8, %v20142_v38  ;;  %v24284_v24 = vld [vmem:[#allocation19_spill] sm:$0xff] }
  0xfd   :  { %24272 = vst [vmem:[#allocation218_spill] sm:$0xff] %v20341_v31  ;;  %24276 = vst [vmem:[#allocation220_spill] sm:$0xff] %v20349_v17  ;;  %v20354_v33 = vpack.c.bf16 %v20088_v22, %v24278_v27  ;;  %v24285_v39 = vld [vmem:[#allocation22_spill] sm:$0xff]  ;;  %v24287_v22 = vld [vmem:[#allocation111_spill] sm:$0xff] }
  0xfe   :  { %24274 = vst [vmem:[#allocation219_spill] sm:$0xff] %v20345_v60  ;;  %24282 = vst [vmem:[#allocation222_spill] sm:$0xff] %v20362_v14  ;;  %v20371_v41 = vpack.c.bf16 %v24285_v39, %v24284_v24  ;;  %v24288_v27 = vand.u32 4294901760, %v24287_v22  ;;  %v24289_v0 = vld [vmem:[#allocation112_spill] sm:$0xff]  ;;  %v24292_v8 = vld [vmem:[#allocation118_spill] sm:$0xff] }
  0xff   :  { %24279 = vst [vmem:[#allocation74_spill] sm:$0xff] %v20354_v33  ;;  %24283 = vst [vmem:[#allocation223_spill] sm:$0xff] %v20366_v26  ;;  %v24290_v42 = vand.u32 4294901760, %v24289_v0  ;;  %v24293_v38 = vand.u32 4294901760, %v24292_v8  ;;  %v24294_v50 = vld [vmem:[#allocation119_spill] sm:$0xff]  ;;  %v24297_v51 = vld [vmem:[#allocation125_spill] sm:$0xff] }
 0x100   :  { %24286 = vst [vmem:[#allocation19_spill] sm:$0xff] %v20371_v41  ;;  %v24295_v40 = vand.u32 4294901760, %v24294_v50  ;;  %14898 = vmatpush1.bf16.msra.mxu0 %v20371_v41  ;;  %v24298_v22 = vand.u32 4294901760, %v24297_v51  ;;  %v24299_v49 = vld [vmem:[#allocation126_spill] sm:$0xff]  ;;  %v24304_v54 = vld [vmem:[#allocation132_spill] sm:$0xff] }
 0x101   :  { %v20378_v21 = vpack.c.bf16 %v24290_v42, %v24288_v27  ;;  %v24300_v0 = vand.u32 4294901760, %v24299_v49  ;;  %14900 = vmatprep.subr.bf16.mxu0 %v20214_v20  ;;  %v24302_v42 = vld [vmem:[#allocation130_spill] sm:$0xff]  ;;  %v24305_v50 = vand.u32 4294901760, %v24304_v54 }
 0x102   :  { %v20386_v34 = vpack.c.bf16 %v24295_v40, %v24293_v38  ;;  %v24303_v8 = vand.u32 4294901760, %v24302_v42  ;;  %v24307_v40 = vld [vmem:[#allocation134_spill] sm:$0xff] }
 0x103   :  { %24291 = vst [vmem:[#allocation22_spill] sm:$0xff] %v20378_v21  ;;  %15290 = vmatpush3.bf16.msra.mxu1 %v20378_v21  ;;  %v20394_v27 = vpack.c.bf16 %v24300_v0, %v24298_v22  ;;  %v24308_v51 = vand.u32 4294901760, %v24307_v40  ;;  %v24309_v21 = vld [vmem:[#allocation135_spill] sm:$0xff]  ;;  %v24312_v0 = vld [vmem:[#allocation138_spill] sm:$0xff] }
 0x104   :  { %24296 = vst [vmem:[#allocation111_spill] sm:$0xff] %v20386_v34  ;;  %15292 = vmatprep.subr.bf16.mxu1 %v20386_v34  ;;  %v20402_v38 = vpack.c.bf16 %v24305_v50, %v24303_v8  ;;  %14902 = vmatpush1.bf16.msra.mxu0 %v20220_v13  ;;  %v24310_v49 = vand.u32 4294901760, %v24309_v21  ;;  %v24313_v42 = vand.u32 4294901760, %v24312_v0  ;;  %v24314_v34 = vld [vmem:[#allocation139_spill] sm:$0xff] }
 0x105   :  { %24301 = vst [vmem:[#allocation112_spill] sm:$0xff] %v20394_v27  ;;  %14904 = vmatprep.subr.bf16.mxu0 %v20232_v25  ;;  %v24315_v54 = vand.u32 4294901760, %v24314_v34  ;;  %v24317_v50 = vld [vmem:[#allocation143_spill] sm:$0xff] }
 0x106   :  { %24306 = vst [vmem:[#allocation118_spill] sm:$0xff] %v20402_v38  ;;  %v20410_v22 = vpack.c.bf16 %v24310_v49, %v24308_v51  ;;  %v24318_v40 = vand.u32 4294901760, %v24317_v50  ;;  %v24322_v34 = vld [vmem:[#allocation11_spill] sm:$0xff]  ;;  %v24328_v50 = vld [vmem:[#allocation37_spill] sm:$0xff] }
 0x107   :  { %15294 = vmatpush3.bf16.msra.mxu1 %v20394_v27  ;;  %v20418_v8 = vpack.c.bf16 %v24315_v54, %v24313_v42  ;;  %v24319_v27 = vld [vmem:[#allocation144_spill] sm:$0xff]  ;;  %v24323_v49 = vld [vmem:[#allocation15_spill] sm:$0xff]  ;;  %v24326_v42 = vld [vmem:[#allocation29_spill] sm:$0xff] }
 0x108   :  { %24311 = vst [vmem:[#allocation119_spill] sm:$0xff] %v20410_v22  ;;  %15296 = vmatprep.subr.bf16.mxu1 %v20402_v38  ;;  %14906 = vmatpush1.bf16.msra.mxu0 %v20236_v55  ;;  %v24320_v21 = vand.u32 4294901760, %v24319_v27  ;;  %v24324_v27 = vld [vmem:[#allocation20_spill] sm:$0xff]  ;;  %v24325_v0 = vld [vmem:[#allocation23_spill] sm:$0xff]  ;;  %v24332_v38 = vld [vmem:[#allocation54_spill] sm:$0xff] }
 0x109   :  { %24316 = vst [vmem:[#allocation125_spill] sm:$0xff] %v20418_v8  ;;  %14908 = vmatprep.subr.bf16.mxu0 %v20248_v29  ;;  %v24327_v54 = vld [vmem:[#allocation32_spill] sm:$0xff] }
 0x10a   :  { %v20426_v51 = vpack.c.bf16 %v24320_v21, %v24318_v40  ;;  %v2298_v40 = vld [vmem:[#allocation4 + $0x10] sm:$0xff] }
 0x10b   :  { %15298 = vmatpush3.bf16.msra.mxu1 %v20410_v22  ;;  %v24329_v21 = vld [vmem:[#allocation41_spill] sm:$0xff] }
 0x10c   :  { %24321 = vst [vmem:[#allocation126_spill] sm:$0xff] %v20426_v51  ;;  %15300 = vmatprep.subr.bf16.mxu1 %v20418_v8  ;;  %14910 = vmatpush1.bf16.msra.mxu0 %v20252_v46  ;;  %v20452_v8 = vand.u32 4294901760, %v2298_v40  ;;  %v24331_v22 = vld [vmem:[#allocation49_spill] sm:$0xff] }
 0x10d   :  { %14912 = vmatprep.subr.bf16.mxu0 %v20268_v62 }
 0x10f   :  { %15302 = vmatpush3.bf16.msra.mxu1 %v20426_v51  ;;  %v24330_v51 = vld [vmem:[#allocation45_spill] sm:$0xff] }
 0x110   :  { %15304 = vmatprep.subr.bf16.mxu1 %v24322_v34  ;;  %14914 = vmatpush1.bf16.msra.mxu0 %v20282_v48  ;;  %v24349_v34 = vld [vmem:[#allocation76_spill] sm:$0xff] }
 0x111   :  { %14916 = vmatprep.subr.bf16.mxu0 %v20286_v47 }
 0x112   :  { %2180 = vmatmul.mubr.f32.vlgmr.msra.gmra.mrb[8].mxu1 %v24237_v28 }
 0x113   :  { %15306 = vmatpush3.bf16.msra.mxu1 %v24323_v49  ;;  %2282 = vmatprep.mubr.f32.mxu1 %v18828_v43  ;;  %v24348_v49 = vld [vmem:[#allocation34_spill] sm:$0xff] }
 0x114   :  { %15308 = vmatprep.subr.bf16.mxu1 %v24324_v27  ;;  %14918 = vmatpush1.bf16.msra.mxu0 %v20297_v6  ;;  %v24347_v27 = vld [vmem:[#allocation30_spill] sm:$0xff] }
 0x115   :  { %14920 = vmatprep.subr.bf16.mxu0 %v20301_v61 }
 0x117   :  { %15310 = vmatpush3.bf16.msra.mxu1 %v24325_v0  ;;  %v24346_v0 = vld [vmem:[#allocation78_spill] sm:$0xff] }
 0x118   :  { %15312 = vmatprep.subr.bf16.mxu1 %v24326_v42  ;;  %14922 = vmatpush1.bf16.msra.mxu0 %v20305_v7  ;;  %v2297_v7 = vld [vmem:[#allocation4 + $0x8] sm:$0xff] }
 0x119   :  { %14924 = vmatprep.subr.bf16.mxu0 %v20311_v11  ;;  %v24364_v11 = vld [vmem:[#allocation90_spill] sm:$0xff] }
 0x11b   :  { %15314 = vmatpush3.bf16.msra.mxu1 %v24327_v54 }
 0x11c   :  { %15316 = vmatprep.subr.bf16.mxu1 %v24328_v50  ;;  %14926 = vmatpush1.bf16.msra.mxu0 %v20315_v35  ;;  %v20459_v50 = vsub.f32 %v2298_v40, %v20452_v8  ;;  %v24363_v35 = vld [vmem:[#allocation88_spill] sm:$0xff] }
 0x11d   :  { %14928 = vmatprep.subr.bf16.mxu0 %v20319_v57  ;;  %v24362_v57 = vld [vmem:[#allocation87_spill] sm:$0xff] }
 0x11e   :  { %24333 = vst [vmem:[#allocation130_spill] sm:$0xff] %v20459_v50  ;;  %v20466_v54 = vand.u32 4294901760, %v20459_v50 }
 0x11f   :  { %15318 = vmatpush3.bf16.msra.mxu1 %v24329_v21  ;;  %v24334_v21 = vld [vmem:[#allocation57_spill] sm:$0xff] }
 0x120   :  { %15320 = vmatprep.subr.bf16.mxu1 %v24330_v51  ;;  %14930 = vmatpush1.bf16.msra.mxu0 %v20325_v58  ;;  %v24335_v51 = vld [vmem:[#allocation62_spill] sm:$0xff]  ;;  %24336 = vst [vmem:[#allocation132_spill] sm:$0xff] %v20466_v54  ;;  %v2430_v40 = vsub.f32 %v20459_v50, %v20466_v54  ;;  %v24351_v54 = vld [vmem:[#allocation43_spill] sm:$0xff] }
 0x121   :  { %14932 = vmatprep.subr.bf16.mxu0 %v20329_v5  ;;  %v24361_v5 = vld [vmem:[#allocation80_spill] sm:$0xff] }
 0x122   :  { %v20478_v42 = vand.u32 4294901760, %v2430_v40  ;;  %v24345_v40 = vld [vmem:[#allocation26_spill] sm:$0xff] }
 0x123   :  { %15322 = vmatpush3.bf16.msra.mxu1 %v24331_v22  ;;  %v24337_v22 = vld [vmem:[#allocation65_spill] sm:$0xff] }
 0x124   :  { %15324 = vmatprep.subr.bf16.mxu1 %v24332_v38  ;;  %14934 = vmatpush1.bf16.msra.mxu0 %v20333_v52  ;;  %v24338_v38 = vld [vmem:[#allocation69_spill] sm:$0xff]  ;;  %24341 = vst [vmem:[#allocation134_spill] sm:$0xff] %v20478_v42 }
 0x125   :  { %14936 = vmatprep.subr.bf16.mxu0 %v20337_v37  ;;  %v24360_v37 = vld [vmem:[#allocation77_spill] sm:$0xff] }
 0x127   :  { %15326 = vmatpush3.bf16.msra.mxu1 %v24334_v21  ;;  %v24339_v21 = vld [vmem:[#allocation71_spill] sm:$0xff] }
 0x128   :  { %15328 = vmatprep.subr.bf16.mxu1 %v24335_v51  ;;  %14938 = vmatpush1.bf16.msra.mxu0 %v20341_v31  ;;  %v24340_v51 = vld [vmem:[#allocation10_spill] sm:$0xff]  ;;  %v13531_v31 = vpop.f32.mrb[0].mxu1 }
 0x129   :  { %14940 = vmatprep.subr.bf16.mxu0 %v20345_v60  ;;  %v24359_v60 = vld [vmem:[#allocation73_spill] sm:$0xff]  ;;  %v13532_v52 = vpop.f32.mrb[1].mxu1 }
 0x12a   :  { %v20520_v58 = vadd.f32 %v13532_v52, %v13531_v31  ;;  %v24366_v31 = vld [vmem:[#allocation100_spill] sm:$0xff]  ;;  %v24367_v52 = vld [vmem:[#allocation107_spill] sm:$0xff] }
 0x12b   :  { %15330 = vmatpush3.bf16.msra.mxu1 %v24337_v22  ;;  %v24342_v22 = vld [vmem:[#allocation12_spill] sm:$0xff] }
 0x12c   :  { %15332 = vmatprep.subr.bf16.mxu1 %v24338_v38  ;;  %14942 = vmatpush1.bf16.msra.mxu0 %v20349_v17  ;;  %v24343_v38 = vld [vmem:[#allocation18_spill] sm:$0xff] }
 0x12d   :  { %14944 = vmatprep.subr.bf16.mxu0 %v20354_v33  ;;  %v24357_v33 = vld [vmem:[#allocation67_spill] sm:$0xff]  ;;  %v24358_v17 = vld [vmem:[#allocation70_spill] sm:$0xff] }
 0x12f   :  { %15334 = vmatpush3.bf16.msra.mxu1 %v24339_v21  ;;  %v24344_v21 = vld [vmem:[#allocation21_spill] sm:$0xff] }
 0x130   :  { %15336 = vmatprep.subr.bf16.mxu1 %v24340_v51  ;;  %14946 = vmatpush1.bf16.msra.mxu0 %v20358_v44  ;;  %v24356_v44 = vld [vmem:[#allocation63_spill] sm:$0xff] }
 0x131   :  { %14948 = vmatprep.subr.bf16.mxu0 %v20362_v14  ;;  %v24354_v14 = vld [vmem:[#allocation55_spill] sm:$0xff] }
 0x132   :  { %2284 = vmatmul.mubr.f32.vlgmr.msra.gmra.mrb[10].mxu1 %v24237_v28 }
 0x133   :  { %15338 = vmatpush1.bf16.msra.mxu1 %v24342_v22  ;;  %2432 = vmatprep.mubr.f32.mxu1 %v20478_v42  ;;  %v24350_v42 = vld [vmem:[#allocation38_spill] sm:$0xff] }
 0x134   :  { %15340 = vmatprep.subr.bf16.mxu1 %v24343_v38  ;;  %14950 = vmatpush1.bf16.msra.mxu0 %v20366_v26  ;;  %v24353_v26 = vld [vmem:[#allocation52_spill] sm:$0xff] }
 0x135   :  { %14952 = vmatprep.subr.bf16.mxu0 %v24340_v51 }
 0x137   :  { %15342 = vmatpush1.bf16.msra.mxu1 %v24344_v21  ;;  %878 = vmatmul.mubr.f32.vlgmr.msra.gmra.mrb[0].mxu0 %v24346_v0  ;;  %v24352_v0 = vld [vmem:[#allocation46_spill] sm:$0xff] }
 0x138   :  { %15344 = vmatprep.subr.bf16.mxu1 %v24345_v40  ;;  %14954 = vmatpush1.bf16.msra.mxu0 %v24342_v22 }
 0x139   :  { %14956 = vmatprep.subr.bf16.mxu0 %v24343_v38  ;;  %1015 = vmatprep.mubr.f32.mxu0 %v24349_v34  ;;  %v24355_v34 = vld [vmem:[#allocation60_spill] sm:$0xff] }
 0x13b   :  { %15346 = vmatpush1.bf16.msra.mxu1 %v24347_v27 }
 0x13c   :  { %15348 = vmatprep.subr.bf16.mxu1 %v24348_v49  ;;  %14958 = vmatpush1.bf16.msra.mxu0 %v24344_v21 }
 0x13d   :  { %14960 = vmatprep.subr.bf16.mxu0 %v24345_v40 }
 0x13f   :  { %15350 = vmatpush1.bf16.msra.mxu1 %v24350_v42 }
 0x140   :  { %15352 = vmatprep.subr.bf16.mxu1 %v24351_v54  ;;  %14962 = vmatpush1.bf16.msra.mxu0 %v24347_v27 }
 0x141   :  { %14964 = vmatprep.subr.bf16.mxu0 %v24348_v49 }
 0x143   :  { %15354 = vmatpush1.bf16.msra.mxu1 %v24352_v0 }
 0x144   :  { %15356 = vmatprep.subr.bf16.mxu1 %v24353_v26  ;;  %14966 = vmatpush1.bf16.msra.mxu0 %v24350_v42 }
 0x145   :  { %14968 = vmatprep.subr.bf16.mxu0 %v24351_v54 }
 0x147   :  { %15358 = vmatpush1.bf16.msra.mxu1 %v24354_v14 }
 0x148   :  { %15360 = vmatprep.subr.bf16.mxu1 %v24355_v34  ;;  %14970 = vmatpush1.bf16.msra.mxu0 %v24352_v0 }
 0x149   :  { %14972 = vmatprep.subr.bf16.mxu0 %v24353_v26 }
 0x14b   :  { %15362 = vmatpush1.bf16.msra.mxu1 %v24356_v44 }
 0x14c   :  { %15364 = vmatprep.subr.bf16.mxu1 %v24357_v33  ;;  %14974 = vmatpush1.bf16.msra.mxu0 %v24354_v14 }
 0x14d   :  { %14976 = vmatprep.subr.bf16.mxu0 %v24355_v34 }
 0x14f   :  { %15366 = vmatpush1.bf16.msra.mxu1 %v24358_v17 }
 0x150   :  { %15368 = vmatprep.subr.bf16.mxu1 %v24359_v60  ;;  %14978 = vmatpush1.bf16.msra.mxu0 %v24356_v44  ;;  %v20530_v44 = vand.u32 4294901760, %v2297_v7 }
 0x151   :  { %14980 = vmatprep.subr.bf16.mxu0 %v24357_v33  ;;  %v24365_v33 = vld [vmem:[#allocation96_spill] sm:$0xff] }
 0x153   :  { %15370 = vmatpush1.bf16.msra.mxu1 %v24360_v37 }
 0x154   :  { %15372 = vmatprep.subr.bf16.mxu1 %v24361_v5  ;;  %14982 = vmatpush1.bf16.msra.mxu0 %v24358_v17 }
 0x155   :  { %14984 = vmatprep.subr.bf16.mxu0 %v24359_v60  ;;  %v20537_v60 = vsub.f32 %v2297_v7, %v20530_v44 }
 0x157   :  { %15374 = vmatpush1.bf16.msra.mxu1 %v24362_v57  ;;  %24368 = vst [vmem:[#allocation135_spill] sm:$0xff] %v20537_v60  ;;  %v20544_v17 = vand.u32 4294901760, %v20537_v60 }
 0x158   :  { %15376 = vmatprep.subr.bf16.mxu1 %v24363_v35  ;;  %14986 = vmatpush1.bf16.msra.mxu0 %v24360_v37  ;;  %v24369_v37 = vld [vmem:[#allocation114_spill] sm:$0xff] }
 0x159   :  { %14988 = vmatprep.subr.bf16.mxu0 %v24361_v5  ;;  %v24370_v5 = vld [vmem:[#allocation120_spill] sm:$0xff]  ;;  %24371 = vst [vmem:[#allocation138_spill] sm:$0xff] %v20544_v17  ;;  %v2436_v7 = vsub.f32 %v20537_v60, %v20544_v17  ;;  %v24380_v60 = vand.u32 4294901760, %v19389_v16  ;;  %v24388_v16 = vand.u32 4294901760, %v24212_v3  ;;  %v24396_v3 = vand.u32 4294901760, %v19492_v2 }
 0x15a   :  { %v24379_v17 = vld [vmem:[#allocation16_spill] sm:$0xff]  ;;  %v24405_v2 = vand.u32 4294901760, %v19552_v56  ;;  %v24413_v56 = vand.u32 4294901760, %v19607_v4 }
 0x15b   :  { %15378 = vmatpush1.bf16.msra.mxu1 %v24364_v11  ;;  %v20556_v61 = vand.u32 4294901760, %v2436_v7  ;;  %v24381_v7 = vand.u32 4294901760, %v24201_v53  ;;  %v24389_v53 = vand.u32 4294901760, %v24213_v10  ;;  %v24397_v10 = vand.u32 4294901760, %v19497_v36 }
 0x15c   :  { %15380 = vmatprep.subr.bf16.mxu1 %v24365_v33  ;;  %14990 = vmatpush1.bf16.msra.mxu0 %v24362_v57  ;;  %v24372_v57 = vld [vmem:[#allocation124_spill] sm:$0xff]  ;;  %v24404_v36 = vand.u32 4294901760, %v19547_v45  ;;  %v24412_v45 = vand.u32 4294901760, %v19598_v23 }
 0x15d   :  { %14992 = vmatprep.subr.bf16.mxu0 %v24363_v35  ;;  %v24373_v35 = vld [vmem:[#allocation131_spill] sm:$0xff]  ;;  %24376 = vst [vmem:[#allocation139_spill] sm:$0xff] %v20556_v61  ;;  %v24420_v23 = vld [vmem:[#allocation36_spill] sm:$0xff] }
 0x15e   :  { %v24421_v4 = vand.u32 4294901760, %v24420_v23 }
 0x15f   :  { %15382 = vmatpush1.bf16.msra.mxu1 %v24366_v31 }
 0x160   :  { %15384 = vmatprep.subr.bf16.mxu1 %v24367_v52  ;;  %14994 = vmatpush1.bf16.msra.mxu0 %v24364_v11  ;;  %v24374_v11 = vld [vmem:[#allocation136_spill] sm:$0xff] }
 0x161   :  { %14996 = vmatprep.subr.bf16.mxu0 %v24365_v33  ;;  %v24375_v33 = vld [vmem:[#allocation140_spill] sm:$0xff] }
 0x163   :  { %15386 = vmatpush1.bf16.msra.mxu1 %v24369_v37 }
 0x164   :  { %15388 = vmatprep.subr.bf16.mxu1 %v24370_v5  ;;  %14998 = vmatpush1.bf16.msra.mxu0 %v24366_v31  ;;  %v24377_v31 = vld [vmem:[#allocation142_spill] sm:$0xff] }
 0x165   :  { %15000 = vmatprep.subr.bf16.mxu0 %v24367_v52  ;;  %v24378_v52 = vld [vmem:[#allocation156_spill] sm:$0xff] }
 0x167   :  { %15390 = vmatpush1.bf16.msra.mxu1 %v24372_v57 }
 0x168   :  { %15392 = vmatprep.subr.bf16.mxu1 %v24373_v35  ;;  %15002 = vmatpush1.bf16.msra.mxu0 %v24369_v37 }
 0x169   :  { %15004 = vmatprep.subr.bf16.mxu0 %v24370_v5  ;;  %v20570_v5 = vpack.c.bf16 %v24381_v7, %v24380_v60  ;;  %v20587_v60 = vpack.c.bf16 %v24389_v53, %v24388_v16  ;;  %v24391_v7 = vld [vmem:[#allocation160_spill] sm:$0xff]  ;;  %v20604_v16 = vpack.c.bf16 %v24397_v10, %v24396_v3  ;;  %v24399_v53 = vld [vmem:[#allocation33_spill] sm:$0xff]  ;;  %v24407_v3 = vld [vmem:[#allocation162_spill] sm:$0xff]  ;;  %v13566_v10 = vpop.f32.mrb[2].mxu1 }
 0x16b   :  { %15394 = vmatpush1.bf16.msra.mxu1 %v24374_v11  ;;  %24382 = vst [vmem:[#allocation143_spill] sm:$0xff] %v20570_v5  ;;  %24390 = vst [vmem:[#allocation10_spill] sm:$0xff] %v20587_v60 }
 0x16c   :  { %15396 = vmatprep.subr.bf16.mxu1 %v24375_v33  ;;  %15006 = vmatpush1.bf16.msra.mxu0 %v24372_v57  ;;  %v24383_v57 = vld [vmem:[#allocation158_spill] sm:$0xff]  ;;  %24398 = vst [vmem:[#allocation78_spill] sm:$0xff] %v20604_v16 }
 0x16d   :  { %15008 = vmatprep.subr.bf16.mxu0 %v24373_v35 }
 0x16f   :  { %15398 = vmatpush1.bf16.msra.mxu1 %v24377_v31 }
 0x170   :  { %15400 = vmatprep.subr.bf16.mxu1 %v24378_v52  ;;  %15010 = vmatpush1.bf16.msra.mxu0 %v24374_v11  ;;  %v24384_v52 = vand.u32 4294901760, %v24209_v59  ;;  %v24392_v59 = vand.u32 4294901760, %v24222_v63 }
 0x171   :  { %15012 = vmatprep.subr.bf16.mxu0 %v24375_v33 }
 0x172   :  { %2438 = vmatmul.mubr.f32.vlgmr.msra.gmra.mrb[12].mxu1 %v20556_v61  ;;  %v24385_v61 = vand.u32 4294901760, %v24210_v18  ;;  %v24393_v18 = vand.u32 4294901760, %v24223_v32  ;;  %v24401_v32 = vand.u32 4294901760, %v24285_v39  ;;  %v24409_v39 = vand.u32 4294901760, %v19581_v1 }
 0x173   :  { %15402 = vmatpush1.bf16.msra.mxu1 %v24379_v17  ;;  %2829 = vmatprep.mubr.f32.mxu1 %v20452_v8  ;;  %v24387_v17 = vld [vmem:[#allocation24_spill] sm:$0xff]  ;;  %v24417_v1 = vand.u32 4294901760, %v19631_v19 }
 0x174   :  { %15404 = vmatprep.subr.bf16.mxu1 %v24383_v57  ;;  %15014 = vmatpush1.bf16.msra.mxu0 %v24377_v31  ;;  %v20579_v11 = vpack.c.bf16 %v24385_v61, %v24384_v52  ;;  %v20596_v61 = vpack.c.bf16 %v24393_v18, %v24392_v59  ;;  %v24395_v52 = vld [vmem:[#allocation28_spill] sm:$0xff]  ;;  %v24403_v59 = vld [vmem:[#allocation161_spill] sm:$0xff]  ;;  %v20621_v18 = vpack.c.bf16 %v24405_v2, %v24404_v36  ;;  %v24415_v2 = vld [vmem:[#allocation166_spill] sm:$0xff] }
 0x175   :  { %15016 = vmatprep.subr.bf16.mxu0 %v20570_v5  ;;  %v20637_v36 = vpack.c.bf16 %v24413_v56, %v24412_v45  ;;  %v24425_v56 = vld [vmem:[#allocation170_spill] sm:$0xff]  ;;  %v24464_v57 = vld [vmem:[#allocation68_spill] sm:$0xff] }
 0x176   :  { %24386 = vst [vmem:[#allocation144_spill] sm:$0xff] %v20579_v11  ;;  %24394 = vst [vmem:[#allocation12_spill] sm:$0xff] %v20596_v61 }
 0x177   :  { %15406 = vmatpush1.bf16.msra.mxu1 %v24387_v17  ;;  %1019 = vmatmul.mubr.f32.vlgmr.msra.gmra.mrb[0].mxu0 %v24185_v15  ;;  %v24400_v15 = vand.u32 4294901760, %v24284_v24  ;;  %24406 = vst [vmem:[#allocation55_spill] sm:$0xff] %v20621_v18  ;;  %v24408_v24 = vand.u32 4294901760, %v19575_v12  ;;  %24414 = vst [vmem:[#allocation114_spill] sm:$0xff] %v20637_v36  ;;  %v24416_v12 = vand.u32 4294901760, %v19626_v30  ;;  %v24458_v17 = vld [vmem:[#allocation64_spill] sm:$0xff] }
 0x178   :  { %15408 = vmatprep.subr.bf16.mxu1 %v24391_v7  ;;  %15018 = vmatpush1.bf16.msra.mxu0 %v20579_v11  ;;  %v24452_v7 = vld [vmem:[#allocation59_spill] sm:$0xff] }
 0x179   :  { %15020 = vmatprep.subr.bf16.mxu0 %v20587_v60  ;;  %1282 = vmatprep.mubr.f32.mxu0 %v18828_v43  ;;  %v20613_v63 = vpack.c.bf16 %v24401_v32, %v24400_v15  ;;  %v20629_v15 = vpack.c.bf16 %v24409_v39, %v24408_v24  ;;  %v24411_v32 = vld [vmem:[#allocation164_spill] sm:$0xff]  ;;  %v20646_v24 = vpack.c.bf16 %v24417_v1, %v24416_v12 }
 0x17a   :  { %v24431_v1 = vld [vmem:[#allocation172_spill] sm:$0xff] }
 0x17b   :  { %15410 = vmatpush1.bf16.msra.mxu1 %v24395_v52  ;;  %24402 = vst [vmem:[#allocation76_spill] sm:$0xff] %v20613_v63  ;;  %24410 = vst [vmem:[#allocation60_spill] sm:$0xff] %v20629_v15  ;;  %v24446_v52 = vld [vmem:[#allocation56_spill] sm:$0xff] }
 0x17c   :  { %15412 = vmatprep.subr.bf16.mxu1 %v24399_v53  ;;  %15022 = vmatpush1.bf16.msra.mxu0 %v20596_v61  ;;  %v13567_v53 = vpop.f32.mrb[3].mxu1  ;;  %24418 = vst [vmem:[#allocation224_spill] sm:$0xff] %v20646_v24 }
 0x17d   :  { %15024 = vmatprep.subr.bf16.mxu0 %v20604_v16 }
 0x17f   :  { %15414 = vmatpush1.bf16.msra.mxu1 %v24403_v59  ;;  %v13568_v59 = vadd.f32 %v13567_v53, %v13566_v10  ;;  %v24419_v53 = vld [vmem:[#allocation168_spill] sm:$0xff]  ;;  %v24422_v10 = vld [vmem:[#allocation39_spill] sm:$0xff] }
 0x180   :  { %15416 = vmatprep.subr.bf16.mxu1 %v24407_v3  ;;  %15026 = vmatpush1.bf16.msra.mxu0 %v20613_v63  ;;  %v24423_v39 = vand.u32 4294901760, %v24422_v10 }
 0x181   :  { %15028 = vmatprep.subr.bf16.mxu0 %v20621_v18  ;;  %v1768_v3 = vadd.f32 %v13568_v59, %v20520_v58  ;;  %v24426_v58 = vld [vmem:[#allocation42_spill] sm:$0xff]  ;;  %v24428_v59 = vld [vmem:[#allocation44_spill] sm:$0xff] }
 0x182   :  { %v20654_v45 = vpack.c.bf16 %v24423_v39, %v24421_v4  ;;  %v24427_v30 = vand.u32 4294901760, %v24426_v58  ;;  %v24429_v19 = vand.u32 4294901760, %v24428_v59  ;;  %v24437_v39 = vld [vmem:[#allocation173_spill] sm:$0xff] }
 0x183   :  { %15418 = vmatpush1.bf16.msra.mxu1 %v24411_v32  ;;  %v24440_v32 = vld [vmem:[#allocation51_spill] sm:$0xff] }
 0x184   :  { %15420 = vmatprep.subr.bf16.mxu1 %v24415_v2  ;;  %15030 = vmatpush1.bf16.msra.mxu0 %v20629_v15  ;;  %24424 = vst [vmem:[#allocation36_spill] sm:$0xff] %v20654_v45  ;;  %v20662_v12 = vpack.c.bf16 %v24429_v19, %v24427_v30  ;;  %v24434_v2 = vld [vmem:[#allocation48_spill] sm:$0xff]  ;;  %v24441_v59 = vand.u32 4294901760, %v24440_v32  ;;  %v24443_v19 = vld [vmem:[#allocation174_spill] sm:$0xff]  ;;  %v24453_v32 = vand.u32 4294901760, %v24452_v7  ;;  %v24465_v7 = vand.u32 4294901760, %v24464_v57 }
 0x185   :  { %15032 = vmatprep.subr.bf16.mxu0 %v20637_v36  ;;  %v24435_v10 = vand.u32 4294901760, %v24434_v2  ;;  %v24447_v2 = vand.u32 4294901760, %v24446_v52  ;;  %v24459_v52 = vand.u32 4294901760, %v24458_v17 }
 0x186   :  { %24430 = vst [vmem:[#allocation39_spill] sm:$0xff] %v20662_v12 }
 0x187   :  { %15422 = vmatpush1.bf16.msra.mxu1 %v24419_v53  ;;  %v24432_v53 = vld [vmem:[#allocation47_spill] sm:$0xff] }
 0x188   :  { %15424 = vmatprep.subr.bf16.mxu1 %v24425_v56  ;;  %15034 = vmatpush1.bf16.msra.mxu0 %v20646_v24  ;;  %v24433_v23 = vand.u32 4294901760, %v24432_v53  ;;  %v24438_v56 = vld [vmem:[#allocation50_spill] sm:$0xff] }
 0x189   :  { %15036 = vmatprep.subr.bf16.mxu0 %v20654_v45  ;;  %v24439_v58 = vand.u32 4294901760, %v24438_v56 }
 0x18a   :  { %v20670_v4 = vpack.c.bf16 %v24435_v10, %v24433_v23  ;;  %v24449_v10 = vld [vmem:[#allocation178_spill] sm:$0xff] }
 0x18b   :  { %15426 = vmatpush1.bf16.msra.mxu1 %v24431_v1  ;;  %v20678_v30 = vpack.c.bf16 %v24441_v59, %v24439_v58  ;;  %v24444_v1 = vld [vmem:[#allocation53_spill] sm:$0xff]  ;;  %v24455_v59 = vld [vmem:[#allocation179_spill] sm:$0xff] }
 0x18c   :  { %24436 = vst [vmem:[#allocation42_spill] sm:$0xff] %v20670_v4  ;;  %15428 = vmatprep.subr.bf16.mxu1 %v24437_v39  ;;  %15038 = vmatpush1.bf16.msra.mxu0 %v20662_v12  ;;  %v24445_v53 = vand.u32 4294901760, %v24444_v1  ;;  %v24450_v39 = vld [vmem:[#allocation58_spill] sm:$0xff] }
 0x18d   :  { %24442 = vst [vmem:[#allocation44_spill] sm:$0xff] %v20678_v30  ;;  %15040 = vmatprep.subr.bf16.mxu0 %v20670_v4  ;;  %v24451_v56 = vand.u32 4294901760, %v24450_v39  ;;  %v24509_v4 = vld [vmem:[#allocation189_spill] sm:$0xff] }
 0x18e   :  { %v20686_v23 = vpack.c.bf16 %v24447_v2, %v24445_v53  ;;  %v24461_v2 = vld [vmem:[#allocation180_spill] sm:$0xff] }
 0x18f   :  { %15430 = vmatpush1.bf16.msra.mxu1 %v24443_v19  ;;  %v20694_v58 = vpack.c.bf16 %v24453_v32, %v24451_v56  ;;  %v24456_v19 = vld [vmem:[#allocation61_spill] sm:$0xff] }
 0x190   :  { %24448 = vst [vmem:[#allocation47_spill] sm:$0xff] %v20686_v23  ;;  %15432 = vmatprep.subr.bf16.mxu1 %v24449_v10  ;;  %15042 = vmatpush1.bf16.msra.mxu0 %v20678_v30  ;;  %v24457_v1 = vand.u32 4294901760, %v24456_v19  ;;  %v24462_v10 = vld [vmem:[#allocation66_spill] sm:$0xff]  ;;  %v24467_v32 = vld [vmem:[#allocation181_spill] sm:$0xff] }
 0x191   :  { %24454 = vst [vmem:[#allocation48_spill] sm:$0xff] %v20694_v58  ;;  %15044 = vmatprep.subr.bf16.mxu0 %v20686_v23  ;;  %v24463_v39 = vand.u32 4294901760, %v24462_v10  ;;  %v24470_v23 = vld [vmem:[#allocation175_spill] sm:$0xff] }
 0x192   :  { %v20702_v53 = vpack.c.bf16 %v24459_v52, %v24457_v1  ;;  %v24471_v17 = vand.u32 4294901760, %v24470_v23  ;;  %v24473_v52 = vld [vmem:[#allocation182_spill] sm:$0xff] }
 0x193   :  { %15434 = vmatpush1.bf16.msra.mxu1 %v24455_v59  ;;  %v20710_v56 = vpack.c.bf16 %v24465_v7, %v24463_v39  ;;  %v24468_v59 = vld [vmem:[#allocation72_spill] sm:$0xff]  ;;  %v24479_v7 = vld [vmem:[#allocation183_spill] sm:$0xff] }
 0x194   :  { %24460 = vst [vmem:[#allocation50_spill] sm:$0xff] %v20702_v53  ;;  %15436 = vmatprep.subr.bf16.mxu1 %v24461_v2  ;;  %15046 = vmatpush1.bf16.msra.mxu0 %v20694_v58  ;;  %v24469_v19 = vand.u32 4294901760, %v24468_v59  ;;  %v24474_v2 = vld [vmem:[#allocation176_spill] sm:$0xff]  ;;  %v24476_v58 = vld [vmem:[#allocation177_spill] sm:$0xff] }
 0x195   :  { %24466 = vst [vmem:[#allocation51_spill] sm:$0xff] %v20710_v56  ;;  %15048 = vmatprep.subr.bf16.mxu0 %v20702_v53  ;;  %v24475_v10 = vand.u32 4294901760, %v24474_v2  ;;  %v24477_v57 = vand.u32 4294901760, %v24476_v58  ;;  %v24482_v53 = vld [vmem:[#allocation83_spill] sm:$0xff] }
 0x196   :  { %v20718_v1 = vpack.c.bf16 %v24471_v17, %v24469_v19  ;;  %v24483_v23 = vand.u32 4294901760, %v24482_v53  ;;  %v24485_v17 = vld [vmem:[#allocation184_spill] sm:$0xff] }
 0x197   :  { %15438 = vmatpush1.bf16.msra.mxu1 %v24467_v32  ;;  %v20726_v39 = vpack.c.bf16 %v24477_v57, %v24475_v10  ;;  %v24480_v32 = vld [vmem:[#allocation82_spill] sm:$0xff]  ;;  %v24491_v57 = vld [vmem:[#allocation185_spill] sm:$0xff] }
 0x198   :  { %24472 = vst [vmem:[#allocation53_spill] sm:$0xff] %v20718_v1  ;;  %15440 = vmatprep.subr.bf16.mxu1 %v24473_v52  ;;  %15050 = vmatpush1.bf16.msra.mxu0 %v20710_v56  ;;  %v24481_v59 = vand.u32 4294901760, %v24480_v32  ;;  %v24486_v52 = vld [vmem:[#allocation85_spill] sm:$0xff]  ;;  %v24488_v56 = vld [vmem:[#allocation86_spill] sm:$0xff] }
 0x199   :  { %24478 = vst [vmem:[#allocation56_spill] sm:$0xff] %v20726_v39  ;;  %15052 = vmatprep.subr.bf16.mxu0 %v20718_v1  ;;  %v24487_v2 = vand.u32 4294901760, %v24486_v52  ;;  %v24489_v58 = vand.u32 4294901760, %v24488_v56  ;;  %v24494_v1 = vld [vmem:[#allocation91_spill] sm:$0xff]  ;;  %v24498_v52 = vld [vmem:[#allocation93_spill] sm:$0xff] }
 0x19a   :  { %v20734_v19 = vpack.c.bf16 %v24483_v23, %v24481_v59  ;;  %v24495_v53 = vand.u32 4294901760, %v24494_v1  ;;  %v24497_v23 = vld [vmem:[#allocation186_spill] sm:$0xff]  ;;  %v24499_v56 = vand.u32 4294901760, %v24498_v52  ;;  %v24504_v1 = vld [vmem:[#allocation97_spill] sm:$0xff]  ;;  %v24510_v52 = vld [vmem:[#allocation103_spill] sm:$0xff] }
 0x19b   :  { %15442 = vmatpush1.bf16.msra.mxu1 %v24479_v7  ;;  %v20742_v10 = vpack.c.bf16 %v24489_v58, %v24487_v2  ;;  %v24492_v7 = vld [vmem:[#allocation89_spill] sm:$0xff]  ;;  %v24500_v2 = vld [vmem:[#allocation94_spill] sm:$0xff] }
 0x19c   :  { %24484 = vst [vmem:[#allocation58_spill] sm:$0xff] %v20734_v19  ;;  %15444 = vmatprep.subr.bf16.mxu1 %v24485_v17  ;;  %15054 = vmatpush1.bf16.msra.mxu0 %v20726_v39  ;;  %v24493_v32 = vand.u32 4294901760, %v24492_v7  ;;  %v13601_v17 = vpop.f32.mrb[4].mxu1  ;;  %v24501_v58 = vand.u32 4294901760, %v24500_v2  ;;  %v24505_v7 = vand.u32 4294901760, %v24504_v1  ;;  %v24511_v2 = vand.u32 4294901760, %v24510_v52 }
 0x19d   :  { %24490 = vst [vmem:[#allocation59_spill] sm:$0xff] %v20742_v10  ;;  %15056 = vmatprep.subr.bf16.mxu0 %v20734_v19  ;;  %v13602_v39 = vpop.f32.mrb[5].mxu1  ;;  %v24524_v52 = vld [vmem:[#allocation116_spill] sm:$0xff] }
 0x19e   :  { %v20750_v59 = vpack.c.bf16 %v24495_v53, %v24493_v32  ;;  %v20758_v30 = vpack.c.bf16 %v24501_v58, %v24499_v56  ;;  %v13603_v19 = vadd.f32 %v13602_v39, %v13601_v17  ;;  %v24506_v32 = vld [vmem:[#allocation98_spill] sm:$0xff]  ;;  %v24512_v56 = vld [vmem:[#allocation105_spill] sm:$0xff]  ;;  %v24515_v39 = vld [vmem:[#allocation191_spill] sm:$0xff] }
 0x19f   :  { %15446 = vmatpush1.bf16.msra.mxu1 %v24491_v57  ;;  %v24503_v57 = vld [vmem:[#allocation187_spill] sm:$0xff]  ;;  %v24507_v53 = vand.u32 4294901760, %v24506_v32  ;;  %v24513_v58 = vand.u32 4294901760, %v24512_v56  ;;  %v24516_v17 = vld [vmem:[#allocation109_spill] sm:$0xff]  ;;  %v24525_v56 = vand.u32 4294901760, %v24524_v52 }
 0x1a0   :  { %24496 = vst [vmem:[#allocation61_spill] sm:$0xff] %v20750_v59  ;;  %15448 = vmatprep.subr.bf16.mxu1 %v24497_v23  ;;  %15058 = vmatpush1.bf16.msra.mxu0 %v20742_v10  ;;  %24502 = vst [vmem:[#allocation64_spill] sm:$0xff] %v20758_v30  ;;  %v1906_v10 = vadd.f32 %v13603_v19, %v1768_v3  ;;  %v24517_v1 = vand.u32 4294901760, %v24516_v17  ;;  %v24518_v32 = vld [vmem:[#allocation113_spill] sm:$0xff]  ;;  %v24522_v3 = vld [vmem:[#allocation115_spill] sm:$0xff] }
 0x1a1   :  { %15060 = vmatprep.subr.bf16.mxu0 %v20750_v59  ;;  %v20766_v23 = vpack.c.bf16 %v24507_v53, %v24505_v7  ;;  %v20774_v12 = vpack.c.bf16 %v24513_v58, %v24511_v2  ;;  %v24519_v7 = vand.u32 4294901760, %v24518_v32  ;;  %v24523_v19 = vand.u32 4294901760, %v24522_v3  ;;  %v24527_v58 = vld [vmem:[#allocation195_spill] sm:$0xff] }
 0x1a3   :  { %15450 = vmatpush1.bf16.msra.mxu1 %v24503_v57  ;;  %24508 = vst [vmem:[#allocation66_spill] sm:$0xff] %v20766_v23  ;;  %24514 = vst [vmem:[#allocation68_spill] sm:$0xff] %v20774_v12  ;;  %v20782_v53 = vpack.c.bf16 %v24519_v7, %v24517_v1  ;;  %v20790_v2 = vpack.c.bf16 %v24525_v56, %v24523_v19  ;;  %v24530_v57 = vld [vmem:[#allocation122_spill] sm:$0xff]  ;;  %v24533_v7 = vld [vmem:[#allocation197_spill] sm:$0xff] }
 0x1a4   :  { %15452 = vmatprep.subr.bf16.mxu1 %v24509_v4  ;;  %15062 = vmatpush1.bf16.msra.mxu0 %v20758_v30  ;;  %v24521_v4 = vld [vmem:[#allocation79_spill] sm:$0xff]  ;;  %v24531_v32 = vand.u32 4294901760, %v24530_v57  ;;  %v24539_v56 = vld [vmem:[#allocation202_spill] sm:$0xff] }
 0x1a5   :  { %15064 = vmatprep.subr.bf16.mxu0 %v20766_v23  ;;  %24520 = vst [vmem:[#allocation72_spill] sm:$0xff] %v20782_v53  ;;  %24526 = vst [vmem:[#allocation175_spill] sm:$0xff] %v20790_v2 }
 0x1a7   :  { %15454 = vmatpush1.bf16.msra.mxu1 %v24515_v39  ;;  %v24528_v39 = vld [vmem:[#allocation121_spill] sm:$0xff] }
 0x1a8   :  { %15456 = vmatprep.subr.bf16.mxu1 %v24521_v4  ;;  %15066 = vmatpush1.bf16.msra.mxu0 %v20774_v12  ;;  %v24529_v17 = vand.u32 4294901760, %v24528_v39  ;;  %v24534_v4 = vld [vmem:[#allocation127_spill] sm:$0xff]  ;;  %v24536_v12 = vld [vmem:[#allocation129_spill] sm:$0xff] }
 0x1a9   :  { %15068 = vmatprep.subr.bf16.mxu0 %v20782_v53  ;;  %v24535_v3 = vand.u32 4294901760, %v24534_v4  ;;  %v24537_v52 = vand.u32 4294901760, %v24536_v12  ;;  %v24542_v53 = vld [vmem:[#allocation190_spill] sm:$0xff]  ;;  %v24546_v4 = vld [vmem:[#allocation192_spill] sm:$0xff] }
 0x1aa   :  { %v20798_v1 = vpack.c.bf16 %v24531_v32, %v24529_v17  ;;  %v24543_v57 = vand.u32 4294901760, %v24542_v53  ;;  %v24545_v32 = vld [vmem:[#allocation146_spill] sm:$0xff]  ;;  %v24547_v12 = vand.u32 4294901760, %v24546_v4  ;;  %v24553_v53 = vld [vmem:[#allocation13_spill] sm:$0xff] }
 0x1ab   :  { %15458 = vmatpush1.bf16.msra.mxu1 %v24527_v58  ;;  %v20806_v19 = vpack.c.bf16 %v24537_v52, %v24535_v3  ;;  %v24540_v58 = vld [vmem:[#allocation188_spill] sm:$0xff]  ;;  %v24548_v3 = vld [vmem:[#allocation193_spill] sm:$0xff] }
 0x1ac   :  { %24532 = vst [vmem:[#allocation176_spill] sm:$0xff] %v20798_v1  ;;  %15460 = vmatprep.subr.bf16.mxu1 %v24533_v7  ;;  %15070 = vmatpush1.bf16.msra.mxu0 %v20790_v2  ;;  %v24541_v39 = vand.u32 4294901760, %v24540_v58  ;;  %v24549_v52 = vand.u32 4294901760, %v24548_v3  ;;  %v24552_v58 = vld [vmem:[#allocation149_spill] sm:$0xff]  ;;  %v24556_v3 = vld [vmem:[#allocation210_spill] sm:$0xff] }
 0x1ad   :  { %24538 = vst [vmem:[#allocation177_spill] sm:$0xff] %v20806_v19  ;;  %15072 = vmatprep.subr.bf16.mxu0 %v20798_v1 }
 0x1ae   :  { %v20814_v17 = vpack.c.bf16 %v24543_v57, %v24541_v39  ;;  %v20823_v7 = vpack.c.bf16 %v24549_v52, %v24547_v12  ;;  %v24555_v12 = vld [vmem:[#allocation63_spill] sm:$0xff] }
 0x1af   :  { %15462 = vmatpush1.bf16.msra.mxu1 %v24539_v56  ;;  %v24551_v56 = vld [vmem:[#allocation148_spill] sm:$0xff]  ;;  %v24557_v52 = vld [vmem:[#allocation67_spill] sm:$0xff] }
 0x1b0   :  { %24544 = vst [vmem:[#allocation82_spill] sm:$0xff] %v20814_v17  ;;  %15464 = vmatprep.subr.bf16.mxu1 %v24545_v32  ;;  %15074 = vmatpush1.bf16.msra.mxu0 %v20806_v19  ;;  %24550 = vst [vmem:[#allocation83_spill] sm:$0xff] %v20823_v7  ;;  %v24583_v32 = vld [vmem:[#allocation223_spill] sm:$0xff] }
 0x1b1   :  { %15076 = vmatprep.subr.bf16.mxu0 %v20814_v17 }
 0x1b2   :  { %2831 = vmatmul.mubr.f32.vlgmr.msra.gmra.mrb[12].mxu1 %v20530_v44 }
 0x1b3   :  { %15466 = vmatpush1.bf16.msra.mxu1 %v24551_v56  ;;  %3031 = vmatprep.mubr.f32.mxu1 %v20459_v50  ;;  %v24581_v56 = vld [vmem:[#allocation222_spill] sm:$0xff] }
 0x1b4   :  { %15468 = vmatprep.subr.bf16.mxu1 %v24552_v58  ;;  %15078 = vmatpush1.bf16.msra.mxu0 %v20823_v7  ;;  %v24579_v58 = vld [vmem:[#allocation221_spill] sm:$0xff] }
 0x1b5   :  { %15080 = vmatprep.subr.bf16.mxu0 %v24340_v51 }
 0x1b6   :  { %v13636_v39 = vpop.f32.mrb[6].mxu1 }
 0x1b7   :  { %15470 = vmatpush1.bf16.msra.mxu1 %v24553_v53  ;;  %1284 = vmatmul.mubr.f32.vlgmr.msra.gmra.mrb[0].mxu0 %v24237_v28  ;;  %v13637_v57 = vpop.f32.mrb[7].mxu1  ;;  %v24578_v53 = vld [vmem:[#allocation74_spill] sm:$0xff] }
 0x1b8   :  { %15472 = vmatprep.subr.bf16.mxu1 %v20272_v9  ;;  %15082 = vmatpush1.bf16.msra.mxu0 %v24342_v22  ;;  %v13638_v4 = vadd.f32 %v13637_v57, %v13636_v39  ;;  %v24558_v39 = vld [vmem:[#allocation211_spill] sm:$0xff]  ;;  %v24559_v57 = vld [vmem:[#allocation70_spill] sm:$0xff]  ;;  %v24576_v9 = vld [vmem:[#allocation220_spill] sm:$0xff] }
 0x1b9   :  { %15084 = vmatprep.subr.bf16.mxu0 %v24343_v38  ;;  %1419 = vmatprep.mubr.f32.mxu0 %v18828_v43 }
 0x1ba   :  { %v2014_v43 = vadd.f32 %v13638_v4, %v1906_v10  ;;  %v24554_v10 = vld [vmem:[#allocation108_spill] sm:$0xff] }
 0x1bb   :  { %15474 = vmatpush1.bf16.msra.mxu1 %v20371_v41  ;;  %v24560_v4 = vld [vmem:[#allocation212_spill] sm:$0xff] }
 0x1bc   :  { %15476 = vmatprep.subr.bf16.mxu1 %v20214_v20  ;;  %15086 = vmatpush1.bf16.msra.mxu0 %v24344_v21  ;;  %v24575_v41 = vld [vmem:[#allocation100_spill] sm:$0xff] }
 0x1bd   :  { %15088 = vmatprep.subr.bf16.mxu0 %v24345_v40 }
 0x1bf   :  { %15478 = vmatpush1.bf16.msra.mxu1 %v20220_v13  ;;  %v24574_v13 = vld [vmem:[#allocation219_spill] sm:$0xff] }
 0x1c0   :  { %15480 = vmatprep.subr.bf16.mxu1 %v20232_v25  ;;  %15090 = vmatpush1.bf16.msra.mxu0 %v24347_v27  ;;  %v24572_v25 = vld [vmem:[#allocation218_spill] sm:$0xff] }
 0x1c1   :  { %15092 = vmatprep.subr.bf16.mxu0 %v24348_v49 }
 0x1c3   :  { %15482 = vmatpush1.bf16.msra.mxu1 %v20236_v55  ;;  %v24570_v55 = vld [vmem:[#allocation217_spill] sm:$0xff] }
 0x1c4   :  { %15484 = vmatprep.subr.bf16.mxu1 %v20248_v29  ;;  %15094 = vmatpush1.bf16.msra.mxu0 %v24350_v42  ;;  %v24568_v29 = vld [vmem:[#allocation216_spill] sm:$0xff] }
 0x1c5   :  { %15096 = vmatprep.subr.bf16.mxu0 %v24351_v54 }
 0x1c7   :  { %15486 = vmatpush1.bf16.msra.mxu1 %v20252_v46  ;;  %v24566_v46 = vld [vmem:[#allocation215_spill] sm:$0xff] }
 0x1c8   :  { %15488 = vmatprep.subr.bf16.mxu1 %v20268_v62  ;;  %15098 = vmatpush1.bf16.msra.mxu0 %v24352_v0  ;;  %v24564_v62 = vld [vmem:[#allocation214_spill] sm:$0xff] }
 0x1c9   :  { %15100 = vmatprep.subr.bf16.mxu0 %v24353_v26 }
 0x1cb   :  { %15490 = vmatpush1.bf16.msra.mxu1 %v20282_v48  ;;  %v24562_v48 = vld [vmem:[#allocation213_spill] sm:$0xff] }
 0x1cc   :  { %15492 = vmatprep.subr.bf16.mxu1 %v20286_v47  ;;  %15102 = vmatpush1.bf16.msra.mxu0 %v24354_v14  ;;  %v24561_v47 = vld [vmem:[#allocation73_spill] sm:$0xff] }
 0x1cd   :  { %15104 = vmatprep.subr.bf16.mxu0 %v24355_v34 }
 0x1cf   :  { %15494 = vmatpush1.bf16.msra.mxu1 %v20297_v6  ;;  %v24563_v6 = vld [vmem:[#allocation77_spill] sm:$0xff] }
 0x1d0   :  { %15496 = vmatprep.subr.bf16.mxu1 %v24554_v10  ;;  %15106 = vmatpush1.bf16.msra.mxu0 %v24555_v12  ;;  %v24565_v10 = vld [vmem:[#allocation80_spill] sm:$0xff] }
 0x1d1   :  { %15108 = vmatprep.subr.bf16.mxu0 %v24557_v52 }
 0x1d3   :  { %15498 = vmatpush1.bf16.msra.mxu1 %v24556_v3  ;;  %v24567_v3 = vld [vmem:[#allocation87_spill] sm:$0xff] }
 0x1d4   :  { %15500 = vmatprep.subr.bf16.mxu1 %v24558_v39  ;;  %15110 = vmatpush1.bf16.msra.mxu0 %v24559_v57  ;;  %v24569_v39 = vld [vmem:[#allocation88_spill] sm:$0xff] }
 0x1d5   :  { %15112 = vmatprep.subr.bf16.mxu0 %v24561_v47 }
 0x1d7   :  { %15502 = vmatpush1.bf16.msra.mxu1 %v24560_v4  ;;  %v24571_v4 = vld [vmem:[#allocation90_spill] sm:$0xff] }
 0x1d8   :  { %15504 = vmatprep.subr.bf16.mxu1 %v24562_v48  ;;  %15114 = vmatpush1.bf16.msra.mxu0 %v24563_v6  ;;  %v24573_v48 = vld [vmem:[#allocation96_spill] sm:$0xff] }
 0x1d9   :  { %15116 = vmatprep.subr.bf16.mxu0 %v24565_v10 }
 0x1db   :  { %15506 = vmatpush1.bf16.msra.mxu1 %v24564_v62 }
 0x1dc   :  { %15508 = vmatprep.subr.bf16.mxu1 %v24566_v46  ;;  %15118 = vmatpush1.bf16.msra.mxu0 %v24567_v3 }
 0x1dd   :  { %15120 = vmatprep.subr.bf16.mxu0 %v24569_v39 }
 0x1df   :  { %15510 = vmatpush1.bf16.msra.mxu1 %v24568_v29  ;;  %v24577_v29 = vld [vmem:[#allocation107_spill] sm:$0xff] }
 0x1e0   :  { %15512 = vmatprep.subr.bf16.mxu1 %v24570_v55  ;;  %15122 = vmatpush1.bf16.msra.mxu0 %v24571_v4 }
 0x1e1   :  { %15124 = vmatprep.subr.bf16.mxu0 %v24573_v48 }
 0x1e3   :  { %15514 = vmatpush1.bf16.msra.mxu1 %v24572_v25  ;;  %v24580_v25 = vld [vmem:[#allocation120_spill] sm:$0xff] }
 0x1e4   :  { %15516 = vmatprep.subr.bf16.mxu1 %v24574_v13  ;;  %15126 = vmatpush1.bf16.msra.mxu0 %v24575_v41  ;;  %v24582_v13 = vld [vmem:[#allocation124_spill] sm:$0xff] }
 0x1e5   :  { %v13671_v62 = vpop.f32.mrb[8].mxu1  ;;  %15128 = vmatprep.subr.bf16.mxu0 %v24577_v29 }
 0x1e6   :  { %v13672_v20 = vpop.f32.mrb[9].mxu1 }
 0x1e7   :  { %v13673_v46 = vadd.f32 %v13672_v20, %v13671_v62  ;;  %15518 = vmatpush1.bf16.msra.mxu1 %v24576_v9  ;;  %v24584_v20 = vld [vmem:[#allocation135_spill] sm:$0xff]  ;;  %v24585_v62 = vld [vmem:[#allocation136_spill] sm:$0xff]  ;;  %v24592_v9 = vld [vmem:[#allocation29_spill] sm:$0xff] }
 0x1e8   :  { %15520 = vmatprep.subr.bf16.mxu1 %v24578_v53  ;;  %15130 = vmatpush1.bf16.msra.mxu0 %v24369_v37  ;;  %v24591_v53 = vld [vmem:[#allocation23_spill] sm:$0xff] }
 0x1e9   :  { %v2182_v55 = vadd.f32 %v13673_v46, %v2014_v43  ;;  %15132 = vmatprep.subr.bf16.mxu0 %v24580_v25  ;;  %v24586_v46 = vld [vmem:[#allocation132_spill] sm:$0xff]  ;;  %v24587_v43 = vld [vmem:[#allocation11_spill] sm:$0xff] }
 0x1eb   :  { %15522 = vmatpush1.bf16.msra.mxu1 %v24579_v58  ;;  %v24590_v58 = vld [vmem:[#allocation134_spill] sm:$0xff] }
 0x1ec   :  { %15524 = vmatprep.subr.bf16.mxu1 %v24581_v56  ;;  %15134 = vmatpush1.bf16.msra.mxu0 %v24582_v13  ;;  %v24589_v56 = vld [vmem:[#allocation20_spill] sm:$0xff] }
 0x1ed   :  { %15136 = vmatprep.subr.bf16.mxu0 %v24373_v35 }
 0x1ef   :  { %15526 = vmatpush1.bf16.msra.mxu1 %v24583_v32  ;;  %v24588_v32 = vld [vmem:[#allocation15_spill] sm:$0xff] }
 0x1f0   :  { %15528 = vmatprep.subr.bf16.mxu1 %v24340_v51  ;;  %15138 = vmatpush1.bf16.msra.mxu0 %v24585_v62 }
 0x1f1   :  { %15140 = vmatprep.subr.bf16.mxu0 %v24375_v33 }
 0x1f2   :  { %3034 = vmatmul.mubr.f32.vlgmr.msra.gmra.mrb[12].mxu1 %v24584_v20 }
 0x1f3   :  { %15530 = vmatpush1.bf16.msra.mxu1 %v24342_v22  ;;  %3171 = vmatprep.mubr.f32.mxu1 %v24586_v46 }
 0x1f4   :  { %15532 = vmatprep.subr.bf16.mxu1 %v24343_v38  ;;  %15142 = vmatpush1.bf16.msra.mxu0 %v24377_v31  ;;  %v24598_v38 = vld [vmem:[#allocation49_spill] sm:$0xff] }
 0x1f5   :  { %15720 = vmatprep.subr.bf16.mxu0 %v24587_v43 }
 0x1f7   :  { %15534 = vmatpush1.bf16.msra.mxu1 %v24344_v21  ;;  %1421 = vmatmul.mubr.f32.vlgmr.msra.gmra.mrb[0].mxu0 %v24237_v28  ;;  %v24594_v28 = vld [vmem:[#allocation37_spill] sm:$0xff] }
 0x1f8   :  { %15536 = vmatprep.subr.bf16.mxu1 %v24345_v40  ;;  %15722 = vmatpush3.bf16.msra.mxu0 %v24588_v32  ;;  %v24593_v40 = vld [vmem:[#allocation32_spill] sm:$0xff]  ;;  %v24595_v21 = vld [vmem:[#allocation41_spill] sm:$0xff] }
 0x1f9   :  { %15724 = vmatprep.subr.bf16.mxu0 %v24589_v56  ;;  %3684 = vmatprep.mubr.f32.mxu0 %v24590_v58 }
 0x1fb   :  { %15538 = vmatpush1.bf16.msra.mxu1 %v24347_v27 }
 0x1fc   :  { %15540 = vmatprep.subr.bf16.mxu1 %v24348_v49  ;;  %15726 = vmatpush3.bf16.msra.mxu0 %v24591_v53 }
 0x1fd   :  { %15728 = vmatprep.subr.bf16.mxu0 %v24592_v9 }
 0x1ff   :  { %15542 = vmatpush1.bf16.msra.mxu1 %v24350_v42  ;;  %v24596_v42 = vld [vmem:[#allocation45_spill] sm:$0xff] }
 0x200   :  { %15544 = vmatprep.subr.bf16.mxu1 %v24351_v54  ;;  %15730 = vmatpush3.bf16.msra.mxu0 %v24593_v40 }
 0x201   :  { %15732 = vmatprep.subr.bf16.mxu0 %v24594_v28 }
 0x203   :  { %15546 = vmatpush1.bf16.msra.mxu1 %v24352_v0  ;;  %v24599_v0 = vld [vmem:[#allocation54_spill] sm:$0xff] }
 0x204   :  { %15548 = vmatprep.subr.bf16.mxu1 %v24353_v26  ;;  %15734 = vmatpush3.bf16.msra.mxu0 %v24595_v21  ;;  %v24600_v26 = vld [vmem:[#allocation57_spill] sm:$0xff] }
 0x205   :  { %v13706_v27 = vpop.f32.mrb[10].mxu1  ;;  %15736 = vmatprep.subr.bf16.mxu0 %v24596_v42 }
 0x206   :  { %v13707_v49 = vpop.f32.mrb[11].mxu1 }
 0x207   :  { %v13708_v58 = vadd.f32 %v13707_v49, %v13706_v27  ;;  %15550 = vmatpush1.bf16.msra.mxu1 %v24354_v14  ;;  %v24601_v49 = vld [vmem:[#allocation62_spill] sm:$0xff]  ;;  %v24602_v27 = vld [vmem:[#allocation65_spill] sm:$0xff] }
 0x208   :  { %15552 = vmatprep.subr.bf16.mxu1 %v24355_v34  ;;  %15738 = vmatpush3.bf16.msra.mxu0 %v24598_v38 }
 0x209   :  { %v20919_v54 = vadd.f32 %v13708_v58, %v2182_v55  ;;  %15740 = vmatprep.subr.bf16.mxu0 %v24599_v0  ;;  %v24603_v55 = vld [vmem:[#allocation69_spill] sm:$0xff]  ;;  %v24604_v58 = vld [vmem:[#allocation71_spill] sm:$0xff] }
 0x20b   :  { %24597 = vst [vmem:[#allocation85_spill] sm:$0xff] %v20919_v54  ;;  %15554 = vmatpush1.bf16.msra.mxu1 %v24555_v12  ;;  %v24605_v54 = vld [vmem:[#allocation81_spill] sm:$0xff] }
 0x20c   :  { %15556 = vmatprep.subr.bf16.mxu1 %v24557_v52  ;;  %15742 = vmatpush3.bf16.msra.mxu0 %v24600_v26  ;;  %v24607_v52 = vld [vmem:[#allocation84_spill] sm:$0xff] }
 0x20d   :  { %15744 = vmatprep.subr.bf16.mxu0 %v24601_v49 }
 0x20f   :  { %15558 = vmatpush1.bf16.msra.mxu1 %v24559_v57  ;;  %v24606_v57 = vld [vmem:[#allocation139_spill] sm:$0xff] }
 0x210   :  { %15560 = vmatprep.subr.bf16.mxu1 %v24561_v47  ;;  %15746 = vmatpush3.bf16.msra.mxu0 %v24602_v27  ;;  %v24608_v47 = vld [vmem:[#allocation92_spill] sm:$0xff] }
 0x211   :  { %15748 = vmatprep.subr.bf16.mxu0 %v24603_v55 }
 0x213   :  { %15562 = vmatpush1.bf16.msra.mxu1 %v24563_v6 }
 0x214   :  { %15564 = vmatprep.subr.bf16.mxu1 %v24565_v10  ;;  %15750 = vmatpush3.bf16.msra.mxu0 %v24604_v58  ;;  %v24609_v10 = vld [vmem:[#allocation95_spill] sm:$0xff] }
 0x215   :  { %15752 = vmatprep.subr.bf16.mxu0 %v24605_v54  ;;  %v24611_v54 = vld [vmem:[#allocation104_spill] sm:$0xff] }
 0x217   :  { %15566 = vmatpush1.bf16.msra.mxu1 %v24567_v3  ;;  %3690 = vmatmul.mubr.f32.vlgmr.msra.gmra.mrb[2].mxu0 %v24606_v57  ;;  %v24610_v3 = vld [vmem:[#allocation99_spill] sm:$0xff]  ;;  %v24612_v57 = vld [vmem:[#allocation110_spill] sm:$0xff] }
 0x218   :  { %15568 = vmatprep.subr.bf16.mxu1 %v24569_v39  ;;  %15754 = vmatpush3.bf16.msra.mxu0 %v24607_v52  ;;  %v24614_v52 = vld [vmem:[#allocation123_spill] sm:$0xff] }
 0x219   :  { %15756 = vmatprep.subr.bf16.mxu0 %v24608_v47  ;;  %3920 = vmatprep.mubr.f32.mxu0 %v20452_v8  ;;  %v24613_v47 = vld [vmem:[#allocation117_spill] sm:$0xff] }
 0x21b   :  { %15570 = vmatpush1.bf16.msra.mxu1 %v24571_v4 }
 0x21c   :  { %15572 = vmatprep.subr.bf16.mxu1 %v24573_v48  ;;  %15758 = vmatpush3.bf16.msra.mxu0 %v24609_v10  ;;  %v24615_v10 = vld [vmem:[#allocation128_spill] sm:$0xff] }
 0x21d   :  { %15760 = vmatprep.subr.bf16.mxu0 %v24610_v3  ;;  %v24616_v3 = vld [vmem:[#allocation133_spill] sm:$0xff] }
 0x21f   :  { %15574 = vmatpush1.bf16.msra.mxu1 %v24575_v41 }
 0x220   :  { %15576 = vmatprep.subr.bf16.mxu1 %v24577_v29  ;;  %15762 = vmatpush3.bf16.msra.mxu0 %v24611_v54  ;;  %v24617_v54 = vld [vmem:[#allocation137_spill] sm:$0xff] }
 0x221   :  { %15764 = vmatprep.subr.bf16.mxu0 %v24612_v57  ;;  %v24618_v57 = vld [vmem:[#allocation141_spill] sm:$0xff] }
 0x223   :  { %15578 = vmatpush1.bf16.msra.mxu1 %v24369_v37 }
 0x224   :  { %15580 = vmatprep.subr.bf16.mxu1 %v24580_v25  ;;  %15766 = vmatpush3.bf16.msra.mxu0 %v24613_v47  ;;  %v24619_v47 = vld [vmem:[#allocation138_spill] sm:$0xff] }
 0x225   :  { %15768 = vmatprep.subr.bf16.mxu0 %v24614_v52  ;;  %v24620_v52 = vld [vmem:[#allocation145_spill] sm:$0xff] }
 0x227   :  { %15582 = vmatpush1.bf16.msra.mxu1 %v24582_v13 }
 0x228   :  { %15584 = vmatprep.subr.bf16.mxu1 %v24373_v35  ;;  %15770 = vmatpush3.bf16.msra.mxu0 %v24615_v10  ;;  %v24621_v10 = vld [vmem:[#allocation151_spill] sm:$0xff] }
 0x229   :  { %15772 = vmatprep.subr.bf16.mxu0 %v24616_v3  ;;  %v24622_v3 = vld [vmem:[#allocation154_spill] sm:$0xff] }
 0x22b   :  { %15586 = vmatpush1.bf16.msra.mxu1 %v24585_v62 }
 0x22c   :  { %15588 = vmatprep.subr.bf16.mxu1 %v24375_v33  ;;  %15774 = vmatpush3.bf16.msra.mxu0 %v24617_v54  ;;  %v24623_v54 = vld [vmem:[#allocation147_spill] sm:$0xff] }
 0x22d   :  { %15776 = vmatprep.subr.bf16.mxu0 %v24618_v57 }
 0x22f   :  { %15590 = vmatpush1.bf16.msra.mxu1 %v24377_v31 }
 0x230   :  { %15592 = vmatprep.subr.bf16.mxu1 %v20570_v5  ;;  %15778 = vmatpush3.bf16.msra.mxu0 %v24620_v52  ;;  %v24624_v5 = vld [vmem:[#allocation150_spill] sm:$0xff] }
 0x231   :  { %15780 = vmatprep.subr.bf16.mxu0 %v24621_v10 }
 0x232   :  { %3175 = vmatmul.mubr.f32.vlgmr.msra.gmra.mrb[12].mxu1 %v24619_v47 }
 0x233   :  { %15594 = vmatpush1.bf16.msra.mxu1 %v20579_v11  ;;  %3438 = vmatprep.mubr.f32.mxu1 %v20452_v8  ;;  %v24625_v11 = vld [vmem:[#allocation155_spill] sm:$0xff] }
 0x234   :  { %15596 = vmatprep.subr.bf16.mxu1 %v20587_v60  ;;  %15782 = vmatpush3.bf16.msra.mxu0 %v24622_v3  ;;  %v24626_v60 = vld [vmem:[#allocation157_spill] sm:$0xff] }
 0x235   :  { %15784 = vmatprep.subr.bf16.mxu0 %v24623_v54 }
 0x237   :  { %15598 = vmatpush1.bf16.msra.mxu1 %v20596_v61  ;;  %3922 = vmatmul.mubr.f32.vlgmr.msra.gmra.mrb[4].mxu0 %v20530_v44  ;;  %v24627_v61 = vld [vmem:[#allocation17_spill] sm:$0xff] }
 0x238   :  { %15600 = vmatprep.subr.bf16.mxu1 %v20604_v16  ;;  %15786 = vmatpush3.bf16.msra.mxu0 %v24624_v5  ;;  %v24628_v16 = vld [vmem:[#allocation159_spill] sm:$0xff]  ;;  %v24629_v5 = vld [vmem:[#allocation25_spill] sm:$0xff] }
 0x239   :  { %15788 = vmatprep.subr.bf16.mxu0 %v24625_v11  ;;  %4057 = vmatprep.mubr.f32.mxu0 %v20459_v50  ;;  %v24632_v50 = vld [vmem:[#allocation31_spill] sm:$0xff] }
 0x23b   :  { %15602 = vmatpush1.bf16.msra.mxu1 %v20613_v63  ;;  %v24630_v63 = vld [vmem:[#allocation27_spill] sm:$0xff] }
 0x23c   :  { %15604 = vmatprep.subr.bf16.mxu1 %v20621_v18  ;;  %15790 = vmatpush3.bf16.msra.mxu0 %v24626_v60  ;;  %v24631_v18 = vld [vmem:[#allocation39_spill] sm:$0xff]  ;;  %v24633_v60 = vld [vmem:[#allocation42_spill] sm:$0xff] }
 0x23d   :  { %15792 = vmatprep.subr.bf16.mxu0 %v24627_v61  ;;  %v24635_v61 = vld [vmem:[#allocation44_spill] sm:$0xff] }
 0x23f   :  { %15606 = vmatpush1.bf16.msra.mxu1 %v20629_v15  ;;  %v24634_v15 = vld [vmem:[#allocation35_spill] sm:$0xff] }
 0x240   :  { %15608 = vmatprep.subr.bf16.mxu1 %v20637_v36  ;;  %15794 = vmatpush3.bf16.msra.mxu0 %v24628_v16  ;;  %v24636_v36 = vld [vmem:[#allocation40_spill] sm:$0xff]  ;;  %v24637_v16 = vld [vmem:[#allocation47_spill] sm:$0xff] }
 0x241   :  { %15796 = vmatprep.subr.bf16.mxu0 %v24629_v5  ;;  %v24639_v5 = vld [vmem:[#allocation48_spill] sm:$0xff] }
 0x243   :  { %15610 = vmatpush1.bf16.msra.mxu1 %v20646_v24  ;;  %v24638_v24 = vld [vmem:[#allocation163_spill] sm:$0xff] }
 0x244   :  { %15612 = vmatprep.subr.bf16.mxu1 %v20654_v45  ;;  %15798 = vmatpush3.bf16.msra.mxu0 %v24630_v63  ;;  %v24640_v45 = vld [vmem:[#allocation165_spill] sm:$0xff]  ;;  %v24641_v63 = vld [vmem:[#allocation50_spill] sm:$0xff] }
 0x245   :  { %15800 = vmatprep.subr.bf16.mxu0 %v24632_v50  ;;  %v24643_v50 = vld [vmem:[#allocation51_spill] sm:$0xff] }
 0x247   :  { %15614 = vmatpush1.bf16.msra.mxu1 %v24631_v18  ;;  %v24642_v18 = vld [vmem:[#allocation167_spill] sm:$0xff] }
 0x248   :  { %15616 = vmatprep.subr.bf16.mxu1 %v24633_v60  ;;  %15802 = vmatpush3.bf16.msra.mxu0 %v24634_v15  ;;  %v24644_v60 = vld [vmem:[#allocation169_spill] sm:$0xff] }
 0x249   :  { %15804 = vmatprep.subr.bf16.mxu0 %v24636_v36  ;;  %v24645_v15 = vld [vmem:[#allocation53_spill] sm:$0xff]  ;;  %v24647_v36 = vld [vmem:[#allocation56_spill] sm:$0xff] }
 0x24b   :  { %15618 = vmatpush1.bf16.msra.mxu1 %v24635_v61  ;;  %v24646_v61 = vld [vmem:[#allocation171_spill] sm:$0xff] }
 0x24c   :  { %15620 = vmatprep.subr.bf16.mxu1 %v24637_v16  ;;  %15806 = vmatpush3.bf16.msra.mxu0 %v24638_v24  ;;  %v24648_v16 = vld [vmem:[#allocation58_spill] sm:$0xff] }
 0x24d   :  { %15808 = vmatprep.subr.bf16.mxu0 %v24640_v45 }
 0x24f   :  { %15622 = vmatpush1.bf16.msra.mxu1 %v24639_v5  ;;  %v24667_v5 = vld [vmem:[#allocation52_spill] sm:$0xff] }
 0x250   :  { %15624 = vmatprep.subr.bf16.mxu1 %v24641_v63  ;;  %15810 = vmatpush3.bf16.msra.mxu0 %v24642_v18  ;;  %v24649_v63 = vld [vmem:[#allocation59_spill] sm:$0xff] }
 0x251   :  { %15812 = vmatprep.subr.bf16.mxu0 %v24644_v60  ;;  %v24680_v60 = vld [vmem:[#allocation126_spill] sm:$0xff] }
 0x253   :  { %15626 = vmatpush1.bf16.msra.mxu1 %v24643_v50  ;;  %v24666_v50 = vld [vmem:[#allocation14_spill] sm:$0xff] }
 0x254   :  { %15628 = vmatprep.subr.bf16.mxu1 %v24645_v15  ;;  %15814 = vmatpush3.bf16.msra.mxu0 %v24646_v61  ;;  %v24664_v15 = vld [vmem:[#allocation204_spill] sm:$0xff]  ;;  %v24677_v61 = vld [vmem:[#allocation119_spill] sm:$0xff] }
 0x255   :  { %15816 = vmatprep.subr.bf16.mxu0 %v24587_v43 }
 0x257   :  { %15630 = vmatpush1.bf16.msra.mxu1 %v24647_v36  ;;  %4060 = vmatmul.mubr.f32.vlgmr.msra.gmra.mrb[6].mxu0 %v24584_v20  ;;  %v24650_v20 = vld [vmem:[#allocation68_spill] sm:$0xff]  ;;  %v24663_v36 = vld [vmem:[#allocation43_spill] sm:$0xff] }
 0x258   :  { %15632 = vmatprep.subr.bf16.mxu1 %v24648_v16  ;;  %15818 = vmatpush3.bf16.msra.mxu0 %v24588_v32  ;;  %v24662_v16 = vld [vmem:[#allocation200_spill] sm:$0xff] }
 0x259   :  { %15820 = vmatprep.subr.bf16.mxu0 %v24589_v56  ;;  %4164 = vmatprep.mubr.f32.mxu0 %v24586_v46  ;;  %v24673_v46 = vld [vmem:[#allocation112_spill] sm:$0xff] }
 0x25b   :  { %15634 = vmatpush1.bf16.msra.mxu1 %v24649_v63  ;;  %v24651_v63 = vld [vmem:[#allocation72_spill] sm:$0xff] }
 0x25c   :  { %15636 = vmatprep.subr.bf16.mxu1 %v20750_v59  ;;  %15822 = vmatpush3.bf16.msra.mxu0 %v24591_v53  ;;  %v24661_v59 = vld [vmem:[#allocation38_spill] sm:$0xff] }
 0x25d   :  { %15824 = vmatprep.subr.bf16.mxu0 %v24592_v9 }
 0x25f   :  { %15638 = vmatpush1.bf16.msra.mxu1 %v20758_v30  ;;  %v24660_v30 = vld [vmem:[#allocation199_spill] sm:$0xff] }
 0x260   :  { %15640 = vmatprep.subr.bf16.mxu1 %v20766_v23  ;;  %15826 = vmatpush3.bf16.msra.mxu0 %v24593_v40  ;;  %v24659_v23 = vld [vmem:[#allocation34_spill] sm:$0xff] }
 0x261   :  { %15828 = vmatprep.subr.bf16.mxu0 %v24594_v28 }
 0x263   :  { %15642 = vmatpush1.bf16.msra.mxu1 %v24650_v20  ;;  %v24658_v20 = vld [vmem:[#allocation198_spill] sm:$0xff] }
 0x264   :  { %15644 = vmatprep.subr.bf16.mxu1 %v24651_v63  ;;  %15830 = vmatpush3.bf16.msra.mxu0 %v24595_v21  ;;  %v24657_v63 = vld [vmem:[#allocation30_spill] sm:$0xff] }
 0x265   :  { %15832 = vmatprep.subr.bf16.mxu0 %v24596_v42 }
 0x267   :  { %15646 = vmatpush1.bf16.msra.mxu1 %v20790_v2  ;;  %v24656_v2 = vld [vmem:[#allocation196_spill] sm:$0xff] }
 0x268   :  { %15648 = vmatprep.subr.bf16.mxu1 %v20798_v1  ;;  %15834 = vmatpush3.bf16.msra.mxu0 %v24598_v38  ;;  %v24655_v1 = vld [vmem:[#allocation26_spill] sm:$0xff] }
 0x269   :  { %15836 = vmatprep.subr.bf16.mxu0 %v24599_v0 }
 0x26b   :  { %15650 = vmatpush1.bf16.msra.mxu1 %v20806_v19  ;;  %v24652_v19 = vld [vmem:[#allocation18_spill] sm:$0xff] }
 0x26c   :  { %15652 = vmatprep.subr.bf16.mxu1 %v20814_v17  ;;  %15838 = vmatpush3.bf16.msra.mxu0 %v24600_v26  ;;  %v24653_v17 = vld [vmem:[#allocation21_spill] sm:$0xff] }
 0x26d   :  { %15840 = vmatprep.subr.bf16.mxu0 %v24601_v49 }
 0x26f   :  { %15654 = vmatpush1.bf16.msra.mxu1 %v20823_v7  ;;  %v24654_v7 = vld [vmem:[#allocation194_spill] sm:$0xff] }
 0x270   :  { %15656 = vmatprep.subr.bf16.mxu1 %v24340_v51  ;;  %15842 = vmatpush3.bf16.msra.mxu0 %v24602_v27 }
 0x271   :  { %15844 = vmatprep.subr.bf16.mxu0 %v24603_v55 }
 0x272   :  { %3440 = vmatmul.mubr.f32.vlgmr.msra.gmra.mrb[12].mxu1 %v20530_v44 }
 0x273   :  { %15658 = vmatpush1.bf16.msra.mxu1 %v24342_v22  ;;  %3575 = vmatprep.mubr.f32.mxu1 %v20452_v8 }
 0x274   :  { %15660 = vmatprep.subr.bf16.mxu1 %v24652_v19  ;;  %15846 = vmatpush3.bf16.msra.mxu0 %v24604_v58 }
 0x275   :  { %15848 = vmatprep.subr.bf16.mxu0 %v24654_v7  ;;  %v24675_v7 = vld [vmem:[#allocation118_spill] sm:$0xff] }
 0x277   :  { %15662 = vmatpush1.bf16.msra.mxu1 %v24653_v17  ;;  %4168 = vmatmul.mubr.f32.vlgmr.msra.gmra.mrb[8].mxu0 %v24619_v47  ;;  %v24665_v47 = vld [vmem:[#allocation46_spill] sm:$0xff] }
 0x278   :  { %15664 = vmatprep.subr.bf16.mxu1 %v24655_v1  ;;  %15850 = vmatpush3.bf16.msra.mxu0 %v24656_v2  ;;  %v24669_v2 = vld [vmem:[#allocation75_spill] sm:$0xff] }
 0x279   :  { %15852 = vmatprep.subr.bf16.mxu0 %v24658_v20  ;;  %4334 = vmatprep.mubr.f32.mxu0 %v20452_v8  ;;  %v24668_v20 = vld [vmem:[#allocation101_spill] sm:$0xff] }
 0x27b   :  { %15666 = vmatpush1.bf16.msra.mxu1 %v24657_v63 }
 0x27c   :  { %15668 = vmatprep.subr.bf16.mxu1 %v24659_v23  ;;  %15854 = vmatpush3.bf16.msra.mxu0 %v24660_v30  ;;  %v24670_v30 = vld [vmem:[#allocation22_spill] sm:$0xff] }
 0x27d   :  { %15856 = vmatprep.subr.bf16.mxu0 %v24662_v16  ;;  %v24671_v16 = vld [vmem:[#allocation111_spill] sm:$0xff] }
 0x27f   :  { %15670 = vmatpush1.bf16.msra.mxu1 %v24661_v59 }
 0x280   :  { %15672 = vmatprep.subr.bf16.mxu1 %v24663_v36  ;;  %15858 = vmatpush3.bf16.msra.mxu0 %v24664_v15  ;;  %v24672_v15 = vld [vmem:[#allocation67_spill] sm:$0xff] }
 0x281   :  { %15860 = vmatprep.subr.bf16.mxu0 %v24666_v50  ;;  %v24674_v50 = vld [vmem:[#allocation70_spill] sm:$0xff] }
 0x283   :  { %15674 = vmatpush1.bf16.msra.mxu1 %v24665_v47 }
 0x284   :  { %15676 = vmatprep.subr.bf16.mxu1 %v24667_v5  ;;  %15862 = vmatpush3.bf16.msra.mxu0 %v24668_v20  ;;  %v24676_v20 = vld [vmem:[#allocation73_spill] sm:$0xff] }
 0x285   :  { %15864 = vmatprep.subr.bf16.mxu0 %v24669_v2  ;;  %v24678_v2 = vld [vmem:[#allocation125_spill] sm:$0xff] }
 0x287   :  { %15678 = vmatpush1.bf16.msra.mxu1 %v24354_v14 }
 0x288   :  { %15680 = vmatprep.subr.bf16.mxu1 %v24355_v34  ;;  %15866 = vmatpush3.bf16.msra.mxu0 %v24670_v30  ;;  %v24679_v30 = vld [vmem:[#allocation80_spill] sm:$0xff] }
 0x289   :  { %15868 = vmatprep.subr.bf16.mxu0 %v24671_v16  ;;  %v24681_v16 = vld [vmem:[#allocation87_spill] sm:$0xff] }
 0x28b   :  { %15682 = vmatpush1.bf16.msra.mxu1 %v24555_v12 }
 0x28c   :  { %15684 = vmatprep.subr.bf16.mxu1 %v24672_v15  ;;  %15870 = vmatpush3.bf16.msra.mxu0 %v24673_v46 }
 0x28d   :  { %15872 = vmatprep.subr.bf16.mxu0 %v24675_v7 }
 0x28f   :  { %15686 = vmatpush1.bf16.msra.mxu1 %v24674_v50 }
 0x290   :  { %15688 = vmatprep.subr.bf16.mxu1 %v24676_v20  ;;  %15874 = vmatpush3.bf16.msra.mxu0 %v24677_v61 }
 0x291   :  { %15876 = vmatprep.subr.bf16.mxu0 %v24678_v2  ;;  %v4454_v2 = vld [vmem:[#allocation4 + $0x18] sm:$0xff] }
 0x293   :  { %15690 = vmatpush1.bf16.msra.mxu1 %v24563_v6 }
 0x294   :  { %15692 = vmatprep.subr.bf16.mxu1 %v24679_v30  ;;  %15878 = vmatpush3.bf16.msra.mxu0 %v24680_v60  ;;  %v21087_v60 = vand.u32 4294901760, %v4454_v2 }
 0x295   :  { %15880 = vmatprep.subr.bf16.mxu0 %v24587_v43 }
 0x296   :  { %v21094_v61 = vsub.f32 %v4454_v2, %v21087_v60 }
 0x297   :  { %15694 = vmatpush1.bf16.msra.mxu1 %v24681_v16  ;;  %4336 = vmatmul.mubr.f32.vlgmr.msra.gmra.mrb[10].mxu0 %v20530_v44 }
 0x298   :  { %15696 = vmatprep.subr.bf16.mxu1 %v24569_v39  ;;  %15882 = vmatpush3.bf16.msra.mxu0 %v24588_v32  ;;  %24682 = vst [vmem:[#allocation86_spill] sm:$0xff] %v21094_v61  ;;  %v21101_v7 = vand.u32 4294901760, %v21094_v61 }
 0x299   :  { %15884 = vmatprep.subr.bf16.mxu0 %v24589_v56  ;;  %4438 = vmatprep.mubr.f32.mxu0 %v20452_v8 }
 0x29a   :  { %24683 = vst [vmem:[#allocation89_spill] sm:$0xff] %v21101_v7  ;;  %v4586_v2 = vsub.f32 %v21094_v61, %v21101_v7 }
 0x29b   :  { %15698 = vmatpush1.bf16.msra.mxu1 %v24571_v4 }
 0x29c   :  { %15700 = vmatprep.subr.bf16.mxu1 %v24573_v48  ;;  %15886 = vmatpush3.bf16.msra.mxu0 %v24591_v53  ;;  %v21113_v46 = vand.u32 4294901760, %v4586_v2 }
 0x29d   :  { %15888 = vmatprep.subr.bf16.mxu0 %v24592_v9 }
 0x29e   :  { %24684 = vst [vmem:[#allocation91_spill] sm:$0xff] %v21113_v46 }
 0x29f   :  { %15702 = vmatpush1.bf16.msra.mxu1 %v24575_v41 }
 0x2a0   :  { %15704 = vmatprep.subr.bf16.mxu1 %v24577_v29  ;;  %15890 = vmatpush3.bf16.msra.mxu0 %v24593_v40 }
 0x2a1   :  { %15892 = vmatprep.subr.bf16.mxu0 %v24594_v28 }
 0x2a3   :  { %15706 = vmatpush1.bf16.msra.mxu1 %v24369_v37 }
 0x2a4   :  { %15708 = vmatprep.subr.bf16.mxu1 %v24580_v25  ;;  %15894 = vmatpush3.bf16.msra.mxu0 %v24595_v21 }
 0x2a5   :  { %15896 = vmatprep.subr.bf16.mxu0 %v24596_v42 }
 0x2a7   :  { %15710 = vmatpush1.bf16.msra.mxu1 %v24582_v13 }
 0x2a8   :  { %15712 = vmatprep.subr.bf16.mxu1 %v24373_v35  ;;  %15898 = vmatpush3.bf16.msra.mxu0 %v24598_v38 }
 0x2a9   :  { %15900 = vmatprep.subr.bf16.mxu0 %v24599_v0 }
 0x2ab   :  { %15714 = vmatpush1.bf16.msra.mxu1 %v24585_v62 }
 0x2ac   :  { %15716 = vmatprep.subr.bf16.mxu1 %v24375_v33  ;;  %15902 = vmatpush3.bf16.msra.mxu0 %v24600_v26 }
 0x2ad   :  { %15904 = vmatprep.subr.bf16.mxu0 %v24601_v49 }
 0x2af   :  { %15718 = vmatpush1.bf16.msra.mxu1 %v24377_v31 }
 0x2b0   :  { %16296 = vmatprep.subr.bf16.mxu1 %v24587_v43  ;;  %15906 = vmatpush3.bf16.msra.mxu0 %v24602_v27 }
 0x2b1   :  { %15908 = vmatprep.subr.bf16.mxu0 %v24603_v55 }
 0x2b2   :  { %3577 = vmatmul.mubr.f32.vlgmr.msra.gmra.mrb[12].mxu1 %v20530_v44 }
 0x2b3   :  { %16298 = vmatpush3.bf16.msra.mxu1 %v24588_v32  ;;  %5840 = vmatprep.mubr.f32.mxu1 %v21113_v46 }
 0x2b4   :  { %16300 = vmatprep.subr.bf16.mxu1 %v24589_v56  ;;  %15910 = vmatpush3.bf16.msra.mxu0 %v24604_v58 }
 0x2b5   :  { %15912 = vmatprep.subr.bf16.mxu0 %v24340_v51 }
 0x2b7   :  { %16302 = vmatpush3.bf16.msra.mxu1 %v24591_v53  ;;  %4440 = vmatmul.mubr.f32.vlgmr.msra.gmra.mrb[12].mxu0 %v20530_v44 }
 0x2b8   :  { %16304 = vmatprep.subr.bf16.mxu1 %v24592_v9  ;;  %15914 = vmatpush1.bf16.msra.mxu0 %v24342_v22 }
 0x2b9   :  { %15916 = vmatprep.subr.bf16.mxu0 %v24652_v19  ;;  %4588 = vmatprep.mubr.f32.mxu0 %v21113_v46 }
 0x2bb   :  { %16306 = vmatpush3.bf16.msra.mxu1 %v24593_v40 }
 0x2bc   :  { %16308 = vmatprep.subr.bf16.mxu1 %v24594_v28  ;;  %15918 = vmatpush1.bf16.msra.mxu0 %v24653_v17 }
 0x2bd   :  { %15920 = vmatprep.subr.bf16.mxu0 %v24655_v1 }
 0x2bf   :  { %16310 = vmatpush3.bf16.msra.mxu1 %v24595_v21 }
 0x2c0   :  { %16312 = vmatprep.subr.bf16.mxu1 %v24596_v42  ;;  %15922 = vmatpush1.bf16.msra.mxu0 %v24657_v63  ;;  %v24687_v63 = vld [vmem:[#allocation134_spill] sm:$0xff] }
 0x2c1   :  { %15924 = vmatprep.subr.bf16.mxu0 %v24659_v23 }
 0x2c3   :  { %16314 = vmatpush3.bf16.msra.mxu1 %v24598_v38 }
 0x2c4   :  { %16316 = vmatprep.subr.bf16.mxu1 %v24599_v0  ;;  %15926 = vmatpush1.bf16.msra.mxu0 %v24661_v59  ;;  %v24686_v59 = vld [vmem:[#allocation85_spill] sm:$0xff] }
 0x2c5   :  { %15928 = vmatprep.subr.bf16.mxu0 %v24663_v36  ;;  %v24685_v36 = vld [vmem:[#allocation81_spill] sm:$0xff]  ;;  %v2294_v23 = vrot.slane %v24686_v59, 2  ;;  %v24692_v59 = vld [vmem:[#allocation99_spill] sm:$0xff] }
 0x2c7   :  { %16318 = vmatpush3.bf16.msra.mxu1 %v24600_v26 }
 0x2c8   :  { %16320 = vmatprep.subr.bf16.mxu1 %v24601_v49  ;;  %15930 = vmatpush1.bf16.msra.mxu0 %v24665_v47 }
 0x2c9   :  { %15932 = vmatprep.subr.bf16.mxu0 %v24667_v5  ;;  %v24689_v5 = vld [vmem:[#allocation84_spill] sm:$0xff] }
 0x2ca   :  { %v1422_v44 = vpop.f32.mrb[0].mxu0 }
 0x2cb   :  { %16322 = vmatpush3.bf16.msra.mxu1 %v24602_v27  ;;  %v1424_v2 = vpop.f32.mrb[1].mxu0 }
 0x2cc   :  { %16324 = vmatprep.subr.bf16.mxu1 %v24603_v55  ;;  %v2290_v46 = vrot.slane %v1424_v2, 1  ;;  %15934 = vmatpush1.bf16.msra.mxu0 %v24354_v14  ;;  %v24690_v2 = vld [vmem:[#allocation92_spill] sm:$0xff] }
 0x2cd   :  { %15936 = vmatprep.subr.bf16.mxu0 %v24355_v34 }
 0x2ce   :  { %v2292_v47 = vadd.f32 %v2290_v46, %v1422_v44  ;;  %v24694_v46 = vld [vmem:[#allocation110_spill] sm:$0xff]  ;;  %v24696_v44 = vld [vmem:[#allocation123_spill] sm:$0xff] }
 0x2cf   :  { %16326 = vmatpush3.bf16.msra.mxu1 %v24604_v58 }
 0x2d0   :  { %16328 = vmatprep.subr.bf16.mxu1 %v24685_v36  ;;  %v21153_v1 = vadd.f32 %v2294_v23, %v2292_v47  ;;  %15938 = vmatpush1.bf16.msra.mxu0 %v24555_v12  ;;  %v24691_v36 = vld [vmem:[#allocation95_spill] sm:$0xff]  ;;  %v24693_v23 = vld [vmem:[#allocation104_spill] sm:$0xff]  ;;  %v24695_v47 = vld [vmem:[#allocation117_spill] sm:$0xff] }
 0x2d1   :  { %15940 = vmatprep.subr.bf16.mxu0 %v24672_v15 }
 0x2d2   :  { %5846 = vmatmul.mubr.f32.vlgmr.msra.gmra.mrb[14].mxu1 %v24687_v63  ;;  %24688 = vst [vmem:[#allocation93_spill] sm:$0xff] %v21153_v1  ;;  %v24697_v1 = vld [vmem:[#allocation128_spill] sm:$0xff] }
 0x2d3   :  { %16330 = vmatpush3.bf16.msra.mxu1 %v24689_v5  ;;  %6076 = vmatprep.mubr.f32.mxu1 %v21087_v60 }
 0x2d4   :  { %16332 = vmatprep.subr.bf16.mxu1 %v24690_v2  ;;  %15942 = vmatpush1.bf16.msra.mxu0 %v24674_v50  ;;  %v24720_v2 = vld [vmem:[#allocation169_spill] sm:$0xff] }
 0x2d5   :  { %15944 = vmatprep.subr.bf16.mxu0 %v24676_v20 }
 0x2d7   :  { %16334 = vmatpush3.bf16.msra.mxu1 %v24691_v36  ;;  %v24716_v36 = vld [vmem:[#allocation161_spill] sm:$0xff] }
 0x2d8   :  { %16336 = vmatprep.subr.bf16.mxu1 %v24692_v59  ;;  %15946 = vmatpush1.bf16.msra.mxu0 %v24563_v6  ;;  %v24698_v59 = vld [vmem:[#allocation133_spill] sm:$0xff] }
 0x2d9   :  { %15948 = vmatprep.subr.bf16.mxu0 %v24679_v30 }
 0x2db   :  { %16338 = vmatpush3.bf16.msra.mxu1 %v24693_v23  ;;  %v24699_v23 = vld [vmem:[#allocation137_spill] sm:$0xff] }
 0x2dc   :  { %16340 = vmatprep.subr.bf16.mxu1 %v24694_v46  ;;  %15950 = vmatpush1.bf16.msra.mxu0 %v24681_v16  ;;  %v24714_v46 = vld [vmem:[#allocation33_spill] sm:$0xff] }
 0x2dd   :  { %15952 = vmatprep.subr.bf16.mxu0 %v24569_v39 }
 0x2df   :  { %16342 = vmatpush3.bf16.msra.mxu1 %v24695_v47 }
 0x2e0   :  { %16344 = vmatprep.subr.bf16.mxu1 %v24696_v44  ;;  %15954 = vmatpush1.bf16.msra.mxu0 %v24571_v4 }
 0x2e1   :  { %15956 = vmatprep.subr.bf16.mxu0 %v24573_v48 }
 0x2e3   :  { %16346 = vmatpush3.bf16.msra.mxu1 %v24697_v1 }
 0x2e4   :  { %16348 = vmatprep.subr.bf16.mxu1 %v24698_v59  ;;  %15958 = vmatpush1.bf16.msra.mxu0 %v24575_v41  ;;  %v24711_v59 = vld [vmem:[#allocation31_spill] sm:$0xff] }
 0x2e5   :  { %15960 = vmatprep.subr.bf16.mxu0 %v24577_v29 }
 0x2e7   :  { %16350 = vmatpush3.bf16.msra.mxu1 %v24699_v23  ;;  %v24709_v23 = vld [vmem:[#allocation27_spill] sm:$0xff] }
 0x2e8   :  { %16352 = vmatprep.subr.bf16.mxu1 %v24618_v57  ;;  %15962 = vmatpush1.bf16.msra.mxu0 %v24369_v37  ;;  %v24707_v57 = vld [vmem:[#allocation25_spill] sm:$0xff] }
 0x2e9   :  { %15964 = vmatprep.subr.bf16.mxu0 %v24580_v25 }
 0x2ea   :  { %v13741_v1 = vpop.f32.mrb[2].mxu0 }
 0x2eb   :  { %16354 = vmatpush3.bf16.msra.mxu1 %v24620_v52  ;;  %v13742_v44 = vpop.f32.mrb[3].mxu0  ;;  %v24700_v52 = vld [vmem:[#allocation150_spill] sm:$0xff] }
 0x2ec   :  { %16356 = vmatprep.subr.bf16.mxu1 %v24621_v10  ;;  %v13743_v47 = vadd.f32 %v13742_v44, %v13741_v1  ;;  %15966 = vmatpush1.bf16.msra.mxu0 %v24582_v13  ;;  %v24701_v1 = vld [vmem:[#allocation157_spill] sm:$0xff]  ;;  %v24702_v44 = vld [vmem:[#allocation156_spill] sm:$0xff]  ;;  %v24705_v10 = vld [vmem:[#allocation159_spill] sm:$0xff] }
 0x2ed   :  { %15968 = vmatprep.subr.bf16.mxu0 %v24373_v35 }
 0x2ef   :  { %16358 = vmatpush3.bf16.msra.mxu1 %v24622_v3  ;;  %v24703_v3 = vld [vmem:[#allocation17_spill] sm:$0xff] }
 0x2f0   :  { %16360 = vmatprep.subr.bf16.mxu1 %v24623_v54  ;;  %15970 = vmatpush1.bf16.msra.mxu0 %v24585_v62  ;;  %v24704_v54 = vld [vmem:[#allocation16_spill] sm:$0xff] }
 0x2f1   :  { %15972 = vmatprep.subr.bf16.mxu0 %v24375_v33 }
 0x2f2   :  { %6078 = vmatmul.mubr.f32.vlgmr.msra.gmra.mrb[16].mxu1 %v20452_v8 }
 0x2f3   :  { %16362 = vmatpush3.bf16.msra.mxu1 %v24700_v52  ;;  %6213 = vmatprep.mubr.f32.mxu1 %v21094_v61  ;;  %v24706_v52 = vld [vmem:[#allocation158_spill] sm:$0xff] }
 0x2f4   :  { %16364 = vmatprep.subr.bf16.mxu1 %v24625_v11  ;;  %15974 = vmatpush1.bf16.msra.mxu0 %v24377_v31  ;;  %v24708_v11 = vld [vmem:[#allocation24_spill] sm:$0xff] }
 0x2f5   :  { %15976 = vmatprep.subr.bf16.mxu0 %v24702_v44 }
 0x2f7   :  { %16366 = vmatpush3.bf16.msra.mxu1 %v24701_v1  ;;  %4594 = vmatmul.mubr.f32.vlgmr.msra.gmra.mrb[14].mxu0 %v24687_v63  ;;  %v24710_v1 = vld [vmem:[#allocation160_spill] sm:$0xff]  ;;  %v24713_v63 = vld [vmem:[#allocation35_spill] sm:$0xff] }
 0x2f8   :  { %16368 = vmatprep.subr.bf16.mxu1 %v24703_v3  ;;  %15978 = vmatpush1.bf16.msra.mxu0 %v24704_v54  ;;  %v24712_v3 = vld [vmem:[#allocation28_spill] sm:$0xff] }
 0x2f9   :  { %15980 = vmatprep.subr.bf16.mxu0 %v24706_v52  ;;  %4985 = vmatprep.mubr.f32.mxu0 %v21087_v60 }
 0x2fb   :  { %16370 = vmatpush3.bf16.msra.mxu1 %v24705_v10  ;;  %v24715_v10 = vld [vmem:[#allocation40_spill] sm:$0xff] }
 0x2fc   :  { %16372 = vmatprep.subr.bf16.mxu1 %v24707_v57  ;;  %15982 = vmatpush1.bf16.msra.mxu0 %v24708_v11  ;;  %v24717_v57 = vld [vmem:[#allocation162_spill] sm:$0xff] }
 0x2fd   :  { %15984 = vmatprep.subr.bf16.mxu0 %v24710_v1 }
 0x2ff   :  { %16374 = vmatpush3.bf16.msra.mxu1 %v24709_v23  ;;  %v24718_v23 = vld [vmem:[#allocation164_spill] sm:$0xff] }
 0x300   :  { %16376 = vmatprep.subr.bf16.mxu1 %v24711_v59  ;;  %15986 = vmatpush1.bf16.msra.mxu0 %v24712_v3  ;;  %v24719_v59 = vld [vmem:[#allocation166_spill] sm:$0xff] }
 0x301   :  { %15988 = vmatprep.subr.bf16.mxu0 %v24714_v46  ;;  %v24746_v3 = vld [vmem:[#allocation198_spill] sm:$0xff] }
 0x303   :  { %16378 = vmatpush3.bf16.msra.mxu1 %v24713_v63 }
 0x304   :  { %16380 = vmatprep.subr.bf16.mxu1 %v24715_v10  ;;  %15990 = vmatpush1.bf16.msra.mxu0 %v24716_v36  ;;  %v24721_v10 = vld [vmem:[#allocation168_spill] sm:$0xff]  ;;  %v24722_v36 = vld [vmem:[#allocation171_spill] sm:$0xff] }
 0x305   :  { %15992 = vmatprep.subr.bf16.mxu0 %v24717_v57  ;;  %v24724_v57 = vld [vmem:[#allocation130_spill] sm:$0xff] }
 0x307   :  { %16382 = vmatpush3.bf16.msra.mxu1 %v24638_v24  ;;  %v24723_v24 = vld [vmem:[#allocation170_spill] sm:$0xff] }
 0x308   :  { %16384 = vmatprep.subr.bf16.mxu1 %v24640_v45  ;;  %15994 = vmatpush1.bf16.msra.mxu0 %v24718_v23  ;;  %v24725_v23 = vld [vmem:[#allocation172_spill] sm:$0xff] }
 0x309   :  { %15996 = vmatprep.subr.bf16.mxu0 %v24719_v59  ;;  %v24744_v59 = vld [vmem:[#allocation196_spill] sm:$0xff] }
 0x30a   :  { %v13776_v63 = vpop.f32.mrb[4].mxu0 }
 0x30b   :  { %16386 = vmatpush3.bf16.msra.mxu1 %v24642_v18  ;;  %v13777_v5 = vpop.f32.mrb[5].mxu0  ;;  %v24726_v18 = vld [vmem:[#allocation173_spill] sm:$0xff] }
 0x30c   :  { %16388 = vmatprep.subr.bf16.mxu1 %v24720_v2  ;;  %v13778_v46 = vadd.f32 %v13777_v5, %v13776_v63  ;;  %15998 = vmatpush1.bf16.msra.mxu0 %v24721_v10  ;;  %v24727_v5 = vld [vmem:[#allocation174_spill] sm:$0xff]  ;;  %v24742_v10 = vld [vmem:[#allocation132_spill] sm:$0xff] }
 0x30d   :  { %16000 = vmatprep.subr.bf16.mxu0 %v24723_v24  ;;  %v24728_v63 = vld [vmem:[#allocation178_spill] sm:$0xff] }
 0x30e   :  { %v3924_v45 = vadd.f32 %v13778_v46, %v13743_v47  ;;  %v24729_v46 = vld [vmem:[#allocation179_spill] sm:$0xff]  ;;  %v24730_v47 = vld [vmem:[#allocation180_spill] sm:$0xff]  ;;  %v24732_v2 = vld [vmem:[#allocation182_spill] sm:$0xff] }
 0x30f   :  { %16390 = vmatpush3.bf16.msra.mxu1 %v24722_v36  ;;  %v24731_v36 = vld [vmem:[#allocation181_spill] sm:$0xff] }
 0x310   :  { %16392 = vmatprep.subr.bf16.mxu1 %v24587_v43  ;;  %16002 = vmatpush1.bf16.msra.mxu0 %v24725_v23  ;;  %v24739_v23 = vld [vmem:[#allocation191_spill] sm:$0xff] }
 0x311   :  { %16004 = vmatprep.subr.bf16.mxu0 %v24726_v18 }
 0x312   :  { %6216 = vmatmul.mubr.f32.vlgmr.msra.gmra.mrb[18].mxu1 %v24724_v57 }
 0x313   :  { %16394 = vmatpush3.bf16.msra.mxu1 %v24588_v32  ;;  %6320 = vmatprep.mubr.f32.mxu1 %v21101_v7 }
 0x314   :  { %16396 = vmatprep.subr.bf16.mxu1 %v24589_v56  ;;  %16006 = vmatpush1.bf16.msra.mxu0 %v24727_v5  ;;  %v24733_v5 = vld [vmem:[#allocation183_spill] sm:$0xff] }
 0x315   :  { %16008 = vmatprep.subr.bf16.mxu0 %v24728_v63  ;;  %v24734_v63 = vld [vmem:[#allocation184_spill] sm:$0xff] }
 0x317   :  { %16398 = vmatpush3.bf16.msra.mxu1 %v24591_v53 }
 0x318   :  { %16400 = vmatprep.subr.bf16.mxu1 %v24592_v9  ;;  %16010 = vmatpush1.bf16.msra.mxu0 %v24729_v46  ;;  %v24735_v46 = vld [vmem:[#allocation185_spill] sm:$0xff] }
 0x319   :  { %16012 = vmatprep.subr.bf16.mxu0 %v24730_v47  ;;  %v24736_v47 = vld [vmem:[#allocation186_spill] sm:$0xff] }
 0x31b   :  { %16402 = vmatpush3.bf16.msra.mxu1 %v24593_v40 }
 0x31c   :  { %16404 = vmatprep.subr.bf16.mxu1 %v24594_v28  ;;  %16014 = vmatpush1.bf16.msra.mxu0 %v24731_v36  ;;  %v24737_v36 = vld [vmem:[#allocation187_spill] sm:$0xff] }
 0x31d   :  { %16016 = vmatprep.subr.bf16.mxu0 %v24732_v2  ;;  %v24738_v2 = vld [vmem:[#allocation189_spill] sm:$0xff] }
 0x31f   :  { %16406 = vmatpush3.bf16.msra.mxu1 %v24595_v21 }
 0x320   :  { %16408 = vmatprep.subr.bf16.mxu1 %v24596_v42  ;;  %16018 = vmatpush1.bf16.msra.mxu0 %v24733_v5 }
 0x321   :  { %16020 = vmatprep.subr.bf16.mxu0 %v24734_v63 }
 0x323   :  { %16410 = vmatpush3.bf16.msra.mxu1 %v24598_v38 }
 0x324   :  { %16412 = vmatprep.subr.bf16.mxu1 %v24599_v0  ;;  %16022 = vmatpush1.bf16.msra.mxu0 %v24735_v46  ;;  %v24740_v46 = vld [vmem:[#allocation79_spill] sm:$0xff] }
 0x325   :  { %16024 = vmatprep.subr.bf16.mxu0 %v24736_v47  ;;  %v24741_v47 = vld [vmem:[#allocation194_spill] sm:$0xff] }
 0x327   :  { %16414 = vmatpush3.bf16.msra.mxu1 %v24600_v26 }
 0x328   :  { %16416 = vmatprep.subr.bf16.mxu1 %v24601_v49  ;;  %16026 = vmatpush1.bf16.msra.mxu0 %v24737_v36  ;;  %v24743_v36 = vld [vmem:[#allocation195_spill] sm:$0xff] }
 0x329   :  { %16028 = vmatprep.subr.bf16.mxu0 %v24738_v2  ;;  %v24745_v2 = vld [vmem:[#allocation197_spill] sm:$0xff] }
 0x32a   :  { %v13811_v5 = vpop.f32.mrb[6].mxu0 }
 0x32b   :  { %16418 = vmatpush3.bf16.msra.mxu1 %v24602_v27  ;;  %v13812_v63 = vpop.f32.mrb[7].mxu0 }
 0x32c   :  { %16420 = vmatprep.subr.bf16.mxu1 %v24603_v55  ;;  %v13813_v18 = vadd.f32 %v13812_v63, %v13811_v5  ;;  %16030 = vmatpush1.bf16.msra.mxu0 %v24739_v23  ;;  %v24747_v5 = vld [vmem:[#allocation202_spill] sm:$0xff]  ;;  %v24748_v63 = vld [vmem:[#allocation199_spill] sm:$0xff] }
 0x32d   :  { %16032 = vmatprep.subr.bf16.mxu0 %v24740_v46  ;;  %v24749_v46 = vld [vmem:[#allocation146_spill] sm:$0xff] }
 0x32e   :  { %v4062_v24 = vadd.f32 %v13813_v18, %v3924_v45  ;;  %v24751_v18 = vld [vmem:[#allocation148_spill] sm:$0xff] }
 0x32f   :  { %16422 = vmatpush3.bf16.msra.mxu1 %v24604_v58  ;;  %v24752_v45 = vld [vmem:[#allocation204_spill] sm:$0xff] }
 0x330   :  { %16424 = vmatprep.subr.bf16.mxu1 %v24741_v47  ;;  %16034 = vmatpush1.bf16.msra.mxu0 %v24743_v36  ;;  %v24750_v47 = vld [vmem:[#allocation200_spill] sm:$0xff]  ;;  %v24760_v36 = vld [vmem:[#allocation22_spill] sm:$0xff] }
 0x331   :  { %16036 = vmatprep.subr.bf16.mxu0 %v24745_v2  ;;  %v24754_v2 = vld [vmem:[#allocation14_spill] sm:$0xff] }
 0x332   :  { %6324 = vmatmul.mubr.f32.vlgmr.msra.gmra.mrb[20].mxu1 %v24742_v10 }
 0x333   :  { %16426 = vmatpush3.bf16.msra.mxu1 %v24744_v59  ;;  %6490 = vmatprep.mubr.f32.mxu1 %v21087_v60  ;;  %v24753_v59 = vld [vmem:[#allocation149_spill] sm:$0xff] }
 0x334   :  { %16428 = vmatprep.subr.bf16.mxu1 %v24746_v3  ;;  %16038 = vmatpush1.bf16.msra.mxu0 %v24747_v5  ;;  %v24755_v3 = vld [vmem:[#allocation13_spill] sm:$0xff] }
 0x335   :  { %16040 = vmatprep.subr.bf16.mxu0 %v24749_v46  ;;  %v24756_v5 = vld [vmem:[#allocation101_spill] sm:$0xff]  ;;  %v24758_v46 = vld [vmem:[#allocation75_spill] sm:$0xff] }
 0x337   :  { %16430 = vmatpush3.bf16.msra.mxu1 %v24748_v63  ;;  %4987 = vmatmul.mubr.f32.vlgmr.msra.gmra.mrb[14].mxu0 %v20452_v8  ;;  %v24757_v63 = vld [vmem:[#allocation208_spill] sm:$0xff] }
 0x338   :  { %16432 = vmatprep.subr.bf16.mxu1 %v24750_v47  ;;  %16042 = vmatpush1.bf16.msra.mxu0 %v24751_v18  ;;  %v24759_v47 = vld [vmem:[#allocation19_spill] sm:$0xff]  ;;  %v24761_v18 = vld [vmem:[#allocation201_spill] sm:$0xff] }
 0x339   :  { %16044 = vmatprep.subr.bf16.mxu0 %v24753_v59  ;;  %5187 = vmatprep.mubr.f32.mxu0 %v21094_v61  ;;  %v24763_v59 = vld [vmem:[#allocation203_spill] sm:$0xff]  ;;  %v24765_v61 = vld [vmem:[#allocation152_spill] sm:$0xff] }
 0x33b   :  { %16434 = vmatpush3.bf16.msra.mxu1 %v24752_v45  ;;  %v24762_v45 = vld [vmem:[#allocation111_spill] sm:$0xff] }
 0x33c   :  { %16436 = vmatprep.subr.bf16.mxu1 %v24754_v2  ;;  %16046 = vmatpush1.bf16.msra.mxu0 %v24755_v3  ;;  %v24764_v2 = vld [vmem:[#allocation112_spill] sm:$0xff]  ;;  %v24766_v3 = vld [vmem:[#allocation118_spill] sm:$0xff] }
 0x33d   :  { %16048 = vmatprep.subr.bf16.mxu0 %v24757_v63  ;;  %v24768_v63 = vld [vmem:[#allocation119_spill] sm:$0xff] }
 0x33f   :  { %16438 = vmatpush3.bf16.msra.mxu1 %v24756_v5  ;;  %v24767_v5 = vld [vmem:[#allocation153_spill] sm:$0xff] }
 0x340   :  { %16440 = vmatprep.subr.bf16.mxu1 %v24758_v46  ;;  %16050 = vmatpush1.bf16.msra.mxu0 %v24759_v47  ;;  %v24769_v46 = vld [vmem:[#allocation205_spill] sm:$0xff] }
 0x341   :  { %16052 = vmatprep.subr.bf16.mxu0 %v24761_v18  ;;  %v24770_v47 = vld [vmem:[#allocation125_spill] sm:$0xff] }
 0x343   :  { %16442 = vmatpush3.bf16.msra.mxu1 %v24760_v36 }
 0x344   :  { %16444 = vmatprep.subr.bf16.mxu1 %v24762_v45  ;;  %16054 = vmatpush1.bf16.msra.mxu0 %v24763_v59  ;;  %v24771_v45 = vld [vmem:[#allocation206_spill] sm:$0xff] }
 0x345   :  { %16056 = vmatprep.subr.bf16.mxu0 %v24765_v61  ;;  %v24772_v59 = vld [vmem:[#allocation126_spill] sm:$0xff] }
 0x347   :  { %16446 = vmatpush3.bf16.msra.mxu1 %v24764_v2  ;;  %v24773_v2 = vld [vmem:[#allocation207_spill] sm:$0xff] }
 0x348   :  { %16448 = vmatprep.subr.bf16.mxu1 %v24766_v3  ;;  %16058 = vmatpush1.bf16.msra.mxu0 %v24767_v5  ;;  %v24774_v5 = vld [vmem:[#allocation102_spill] sm:$0xff] }
 0x349   :  { %16060 = vmatprep.subr.bf16.mxu0 %v24769_v46 }
 0x34a   :  { %v13846_v36 = vpop.f32.mrb[8].mxu0 }
 0x34b   :  { %16450 = vmatpush3.bf16.msra.mxu1 %v24768_v63  ;;  %v13847_v18 = vpop.f32.mrb[9].mxu0  ;;  %v24775_v63 = vld [vmem:[#allocation209_spill] sm:$0xff] }
 0x34c   :  { %16452 = vmatprep.subr.bf16.mxu1 %v24770_v47  ;;  %v13848_v23 = vadd.f32 %v13847_v18, %v13846_v36  ;;  %16062 = vmatpush1.bf16.msra.mxu0 %v24771_v45  ;;  %v24776_v36 = vld [vmem:[#allocation106_spill] sm:$0xff]  ;;  %v24777_v18 = vld [vmem:[#allocation108_spill] sm:$0xff] }
 0x34d   :  { %16064 = vmatprep.subr.bf16.mxu0 %v24773_v2  ;;  %v24780_v47 = vld [vmem:[#allocation212_spill] sm:$0xff] }
 0x34e   :  { %v4170_v3 = vadd.f32 %v13848_v23, %v4062_v24  ;;  %v24778_v24 = vld [vmem:[#allocation210_spill] sm:$0xff]  ;;  %v24779_v23 = vld [vmem:[#allocation211_spill] sm:$0xff] }
 0x34f   :  { %16454 = vmatpush3.bf16.msra.mxu1 %v24772_v59  ;;  %v6610_v59 = vld [vmem:[#allocation4 + $0x20] sm:$0xff] }
 0x350   :  { %16456 = vmatprep.subr.bf16.mxu1 %v24587_v43  ;;  %16066 = vmatpush1.bf16.msra.mxu0 %v24774_v5  ;;  %v24789_v43 = vld [vmem:[#allocation218_spill] sm:$0xff] }
 0x351   :  { %16068 = vmatprep.subr.bf16.mxu0 %v24775_v63 }
 0x352   :  { %6492 = vmatmul.mubr.f32.vlgmr.msra.gmra.mrb[22].mxu1 %v20452_v8 }
 0x353   :  { %16458 = vmatpush3.bf16.msra.mxu1 %v24588_v32  ;;  %6594 = vmatprep.mubr.f32.mxu1 %v21087_v60  ;;  %v24786_v32 = vld [vmem:[#allocation216_spill] sm:$0xff] }
 0x354   :  { %16460 = vmatprep.subr.bf16.mxu1 %v24589_v56  ;;  %16070 = vmatpush1.bf16.msra.mxu0 %v24776_v36  ;;  %v24781_v56 = vld [vmem:[#allocation213_spill] sm:$0xff] }
 0x355   :  { %16072 = vmatprep.subr.bf16.mxu0 %v24777_v18 }
 0x357   :  { %16462 = vmatpush3.bf16.msra.mxu1 %v24591_v53  ;;  %v21312_v53 = vand.u32 4294901760, %v6610_v59 }
 0x358   :  { %16464 = vmatprep.subr.bf16.mxu1 %v24592_v9  ;;  %16074 = vmatpush1.bf16.msra.mxu0 %v24778_v24  ;;  %v24783_v9 = vld [vmem:[#allocation214_spill] sm:$0xff] }
 0x359   :  { %16076 = vmatprep.subr.bf16.mxu0 %v24779_v23  ;;  %24782 = vst [vmem:[#allocation94_spill] sm:$0xff] %v21312_v53 }
 0x35b   :  { %16466 = vmatpush3.bf16.msra.mxu1 %v24593_v40  ;;  %v24784_v40 = vld [vmem:[#allocation215_spill] sm:$0xff] }
 0x35c   :  { %16468 = vmatprep.subr.bf16.mxu1 %v24594_v28  ;;  %16078 = vmatpush1.bf16.msra.mxu0 %v24780_v47  ;;  %v21319_v28 = vsub.f32 %v6610_v59, %v21312_v53 }
 0x35d   :  { %16080 = vmatprep.subr.bf16.mxu0 %v24781_v56 }
 0x35e   :  { %24785 = vst [vmem:[#allocation97_spill] sm:$0xff] %v21319_v28 }
 0x35f   :  { %16470 = vmatpush3.bf16.msra.mxu1 %v24595_v21  ;;  %v24787_v21 = vld [vmem:[#allocation217_spill] sm:$0xff] }
 0x360   :  { %16472 = vmatprep.subr.bf16.mxu1 %v24596_v42  ;;  %16082 = vmatpush1.bf16.msra.mxu0 %v24783_v9  ;;  %v21326_v42 = vand.u32 4294901760, %v21319_v28 }
 0x361   :  { %16084 = vmatprep.subr.bf16.mxu0 %v24784_v40 }
 0x362   :  { %24788 = vst [vmem:[#allocation98_spill] sm:$0xff] %v21326_v42 }
 0x363   :  { %16474 = vmatpush3.bf16.msra.mxu1 %v24598_v38  ;;  %v24790_v38 = vld [vmem:[#allocation219_spill] sm:$0xff] }
 0x364   :  { %16476 = vmatprep.subr.bf16.mxu1 %v24599_v0  ;;  %16086 = vmatpush1.bf16.msra.mxu0 %v24786_v32  ;;  %v6742_v0 = vsub.f32 %v21319_v28, %v21326_v42  ;;  %v24795_v42 = vld [vmem:[#allocation222_spill] sm:$0xff] }
 0x365   :  { %16088 = vmatprep.subr.bf16.mxu0 %v24787_v21  ;;  %v24791_v21 = vld [vmem:[#allocation220_spill] sm:$0xff] }
 0x367   :  { %16478 = vmatpush3.bf16.msra.mxu1 %v24600_v26 }
 0x368   :  { %16480 = vmatprep.subr.bf16.mxu1 %v24601_v49  ;;  %16090 = vmatpush1.bf16.msra.mxu0 %v24789_v43  ;;  %v24792_v49 = vld [vmem:[#allocation74_spill] sm:$0xff] }
 0x369   :  { %16092 = vmatprep.subr.bf16.mxu0 %v24790_v38 }
 0x36a   :  { %v13881_v59 = vpop.f32.mrb[10].mxu0 }
 0x36b   :  { %16482 = vmatpush3.bf16.msra.mxu1 %v24602_v27  ;;  %v13882_v26 = vpop.f32.mrb[11].mxu0  ;;  %v21338_v27 = vand.u32 4294901760, %v6742_v0  ;;  %v24797_v0 = vld [vmem:[#allocation26_spill] sm:$0xff] }
 0x36c   :  { %16484 = vmatprep.subr.bf16.mxu1 %v24603_v55  ;;  %v13883_v32 = vadd.f32 %v13882_v26, %v13881_v59  ;;  %16094 = vmatpush1.bf16.msra.mxu0 %v24791_v21  ;;  %v24794_v55 = vld [vmem:[#allocation221_spill] sm:$0xff]  ;;  %v24796_v26 = vld [vmem:[#allocation223_spill] sm:$0xff]  ;;  %v24800_v59 = vld [vmem:[#allocation38_spill] sm:$0xff] }
 0x36d   :  { %16096 = vmatprep.subr.bf16.mxu0 %v24792_v49  ;;  %24793 = vst [vmem:[#allocation103_spill] sm:$0xff] %v21338_v27 }
 0x36e   :  { %v4338_v43 = vadd.f32 %v13883_v32, %v4170_v3  ;;  %v24798_v32 = vld [vmem:[#allocation30_spill] sm:$0xff] }
 0x36f   :  { %16486 = vmatpush3.bf16.msra.mxu1 %v24604_v58  ;;  %v24799_v3 = vld [vmem:[#allocation34_spill] sm:$0xff]  ;;  %v24801_v58 = vld [vmem:[#allocation43_spill] sm:$0xff] }
 0x370   :  { %16488 = vmatprep.subr.bf16.mxu1 %v24340_v51  ;;  %16098 = vmatpush1.bf16.msra.mxu0 %v24794_v55 }
 0x371   :  { %16100 = vmatprep.subr.bf16.mxu0 %v24795_v42 }
 0x372   :  { %6596 = vmatmul.mubr.f32.vlgmr.msra.gmra.mrb[24].mxu1 %v20452_v8 }
 0x373   :  { %16490 = vmatpush1.bf16.msra.mxu1 %v24342_v22  ;;  %6744 = vmatprep.mubr.f32.mxu1 %v21338_v27  ;;  %v24803_v27 = vld [vmem:[#allocation52_spill] sm:$0xff] }
 0x374   :  { %16492 = vmatprep.subr.bf16.mxu1 %v24652_v19  ;;  %16102 = vmatpush1.bf16.msra.mxu0 %v24796_v26 }
 0x375   :  { %16104 = vmatprep.subr.bf16.mxu0 %v24340_v51 }
 0x377   :  { %16494 = vmatpush1.bf16.msra.mxu1 %v24653_v17  ;;  %5190 = vmatmul.mubr.f32.vlgmr.msra.gmra.mrb[14].mxu0 %v24724_v57  ;;  %v24802_v57 = vld [vmem:[#allocation46_spill] sm:$0xff] }
 0x378   :  { %16496 = vmatprep.subr.bf16.mxu1 %v24797_v0  ;;  %16106 = vmatpush1.bf16.msra.mxu0 %v24342_v22 }
 0x379   :  { %16108 = vmatprep.subr.bf16.mxu0 %v24652_v19  ;;  %5327 = vmatprep.mubr.f32.mxu0 %v21101_v7 }
 0x37b   :  { %16498 = vmatpush1.bf16.msra.mxu1 %v24798_v32 }
 0x37c   :  { %16500 = vmatprep.subr.bf16.mxu1 %v24799_v3  ;;  %16110 = vmatpush1.bf16.msra.mxu0 %v24653_v17 }
 0x37d   :  { %16112 = vmatprep.subr.bf16.mxu0 %v24797_v0 }
 0x37f   :  { %16502 = vmatpush1.bf16.msra.mxu1 %v24800_v59 }
 0x380   :  { %16504 = vmatprep.subr.bf16.mxu1 %v24801_v58  ;;  %16114 = vmatpush1.bf16.msra.mxu0 %v24798_v32 }
 0x381   :  { %16116 = vmatprep.subr.bf16.mxu0 %v24799_v3 }
 0x383   :  { %16506 = vmatpush1.bf16.msra.mxu1 %v24802_v57 }
 0x384   :  { %16508 = vmatprep.subr.bf16.mxu1 %v24803_v27  ;;  %16118 = vmatpush1.bf16.msra.mxu0 %v24800_v59 }
 0x385   :  { %v3578_v26 = vpop.f32.mrb[12].mxu1  ;;  %16120 = vmatprep.subr.bf16.mxu0 %v24801_v58 }
 0x386   :  { %v3580_v42 = vpop.f32.mrb[13].mxu1 }
 0x387   :  { %v4446_v7 = vrot.slane %v3580_v42, 1  ;;  %16510 = vmatpush1.bf16.msra.mxu1 %v24354_v14 }
 0x388   :  { %16512 = vmatprep.subr.bf16.mxu1 %v24355_v34  ;;  %16122 = vmatpush1.bf16.msra.mxu0 %v24802_v57 }
 0x389   :  { %v4448_v55 = vadd.f32 %v4446_v7, %v3578_v26  ;;  %16124 = vmatprep.subr.bf16.mxu0 %v24803_v27 }
 0x38a   :  { %v13916_v49 = vpop.f32.mrb[12].mxu0 }
 0x38b   :  { %16514 = vmatpush1.bf16.msra.mxu1 %v24555_v12  ;;  %v13917_v21 = vpop.f32.mrb[13].mxu0 }
 0x38c   :  { %16516 = vmatprep.subr.bf16.mxu1 %v24672_v15  ;;  %v13918_v38 = vadd.f32 %v13917_v21, %v13916_v49  ;;  %16126 = vmatpush1.bf16.msra.mxu0 %v24354_v14  ;;  %v24805_v49 = vld [vmem:[#allocation91_spill] sm:$0xff] }
 0x38d   :  { %16128 = vmatprep.subr.bf16.mxu0 %v24355_v34 }
 0x38e   :  { %v4442_v42 = vadd.f32 %v13918_v38, %v4338_v43 }
 0x38f   :  { %16518 = vmatpush1.bf16.msra.mxu1 %v24674_v50 }
 0x390   :  { %16520 = vmatprep.subr.bf16.mxu1 %v24676_v20  ;;  %v4450_v7 = vrot.slane %v4442_v42, 2  ;;  %16130 = vmatpush1.bf16.msra.mxu0 %v24555_v12  ;;  %v24807_v42 = vld [vmem:[#allocation144_spill] sm:$0xff] }
 0x391   :  { %16132 = vmatprep.subr.bf16.mxu0 %v24672_v15 }
 0x392   :  { %v21380_v26 = vadd.f32 %v4450_v7, %v4448_v55  ;;  %v24806_v55 = vld [vmem:[#allocation143_spill] sm:$0xff]  ;;  %v24808_v7 = vld [vmem:[#allocation28_spill] sm:$0xff] }
 0x393   :  { %16522 = vmatpush1.bf16.msra.mxu1 %v24563_v6 }
 0x394   :  { %16524 = vmatprep.subr.bf16.mxu1 %v24679_v30  ;;  %24804 = vst [vmem:[#allocation105_spill] sm:$0xff] %v21380_v26  ;;  %16134 = vmatpush1.bf16.msra.mxu0 %v24674_v50  ;;  %v24811_v26 = vld [vmem:[#allocation12_spill] sm:$0xff] }
 0x395   :  { %16136 = vmatprep.subr.bf16.mxu0 %v24676_v20 }
 0x397   :  { %16526 = vmatpush1.bf16.msra.mxu1 %v24681_v16 }
 0x398   :  { %16528 = vmatprep.subr.bf16.mxu1 %v24569_v39  ;;  %16138 = vmatpush1.bf16.msra.mxu0 %v24563_v6 }
 0x399   :  { %16140 = vmatprep.subr.bf16.mxu0 %v24679_v30 }
 0x39b   :  { %16530 = vmatpush1.bf16.msra.mxu1 %v24571_v4 }
 0x39c   :  { %16532 = vmatprep.subr.bf16.mxu1 %v24573_v48  ;;  %16142 = vmatpush1.bf16.msra.mxu0 %v24681_v16 }
 0x39d   :  { %16144 = vmatprep.subr.bf16.mxu0 %v24569_v39 }
 0x39f   :  { %16534 = vmatpush1.bf16.msra.mxu1 %v24575_v41 }
 0x3a0   :  { %16536 = vmatprep.subr.bf16.mxu1 %v24577_v29  ;;  %16146 = vmatpush1.bf16.msra.mxu0 %v24571_v4 }
 0x3a1   :  { %16148 = vmatprep.subr.bf16.mxu0 %v24573_v48 }
 0x3a3   :  { %16538 = vmatpush1.bf16.msra.mxu1 %v24369_v37 }
 0x3a4   :  { %16540 = vmatprep.subr.bf16.mxu1 %v24580_v25  ;;  %16150 = vmatpush1.bf16.msra.mxu0 %v24575_v41 }
 0x3a5   :  { %v13951_v38 = vpop.f32.mrb[14].mxu1  ;;  %16152 = vmatprep.subr.bf16.mxu0 %v24577_v29 }
 0x3a6   :  { %v13952_v21 = vpop.f32.mrb[15].mxu1 }
 0x3a7   :  { %16542 = vmatpush1.bf16.msra.mxu1 %v24582_v13  ;;  %v13953_v43 = vadd.f32 %v13952_v21, %v13951_v38  ;;  %v24809_v38 = vld [vmem:[#allocation10_spill] sm:$0xff]  ;;  %v24810_v21 = vld [vmem:[#allocation33_spill] sm:$0xff] }
 0x3a8   :  { %16544 = vmatprep.subr.bf16.mxu1 %v24373_v35  ;;  %16154 = vmatpush1.bf16.msra.mxu0 %v24369_v37 }
 0x3a9   :  { %16156 = vmatprep.subr.bf16.mxu0 %v24580_v25 }
 0x3ab   :  { %16546 = vmatpush1.bf16.msra.mxu1 %v24585_v62 }
 0x3ac   :  { %16548 = vmatprep.subr.bf16.mxu1 %v24375_v33  ;;  %16158 = vmatpush1.bf16.msra.mxu0 %v24582_v13 }
 0x3ad   :  { %16160 = vmatprep.subr.bf16.mxu0 %v24373_v35 }
 0x3af   :  { %16550 = vmatpush1.bf16.msra.mxu1 %v24377_v31 }
 0x3b0   :  { %16552 = vmatprep.subr.bf16.mxu1 %v24702_v44  ;;  %16162 = vmatpush1.bf16.msra.mxu0 %v24585_v62  ;;  %v24817_v44 = vld [vmem:[#allocation55_spill] sm:$0xff] }
 0x3b1   :  { %16164 = vmatprep.subr.bf16.mxu0 %v24375_v33 }
 0x3b2   :  { %6750 = vmatmul.mubr.f32.vlgmr.msra.gmra.mrb[26].mxu1 %v24805_v49  ;;  %v24828_v49 = vld [vmem:[#allocation174_spill] sm:$0xff] }
 0x3b3   :  { %16554 = vmatpush1.bf16.msra.mxu1 %v24704_v54  ;;  %7141 = vmatprep.mubr.f32.mxu1 %v21312_v53  ;;  %v24814_v54 = vld [vmem:[#allocation162_spill] sm:$0xff]  ;;  %v24823_v53 = vld [vmem:[#allocation224_spill] sm:$0xff] }
 0x3b4   :  { %16556 = vmatprep.subr.bf16.mxu1 %v24706_v52  ;;  %16166 = vmatpush1.bf16.msra.mxu0 %v24377_v31  ;;  %v24812_v52 = vld [vmem:[#allocation161_spill] sm:$0xff] }
 0x3b5   :  { %16168 = vmatprep.subr.bf16.mxu0 %v24806_v55 }
 0x3b7   :  { %16558 = vmatpush1.bf16.msra.mxu1 %v24708_v11  ;;  %5331 = vmatmul.mubr.f32.vlgmr.msra.gmra.mrb[14].mxu0 %v24742_v10  ;;  %v24813_v11 = vld [vmem:[#allocation78_spill] sm:$0xff]  ;;  %v24816_v10 = vld [vmem:[#allocation164_spill] sm:$0xff] }
 0x3b8   :  { %16560 = vmatprep.subr.bf16.mxu1 %v24710_v1  ;;  %16170 = vmatpush1.bf16.msra.mxu0 %v24807_v42  ;;  %v24815_v1 = vld [vmem:[#allocation76_spill] sm:$0xff] }
 0x3b9   :  { %16172 = vmatprep.subr.bf16.mxu0 %v24809_v38  ;;  %5594 = vmatprep.mubr.f32.mxu0 %v21087_v60  ;;  %v24819_v42 = vld [vmem:[#allocation60_spill] sm:$0xff] }
 0x3bb   :  { %16562 = vmatpush1.bf16.msra.mxu1 %v24808_v7  ;;  %v24818_v7 = vld [vmem:[#allocation166_spill] sm:$0xff] }
 0x3bc   :  { %16564 = vmatprep.subr.bf16.mxu1 %v24810_v21  ;;  %16174 = vmatpush1.bf16.msra.mxu0 %v24811_v26  ;;  %v24820_v26 = vld [vmem:[#allocation168_spill] sm:$0xff] }
 0x3bd   :  { %16176 = vmatprep.subr.bf16.mxu0 %v24813_v11  ;;  %v24822_v11 = vld [vmem:[#allocation170_spill] sm:$0xff] }
 0x3bf   :  { %16566 = vmatpush1.bf16.msra.mxu1 %v24812_v52  ;;  %v24821_v52 = vld [vmem:[#allocation114_spill] sm:$0xff] }
 0x3c0   :  { %16568 = vmatprep.subr.bf16.mxu1 %v24814_v54  ;;  %16178 = vmatpush1.bf16.msra.mxu0 %v24815_v1  ;;  %v24824_v1 = vld [vmem:[#allocation172_spill] sm:$0xff] }
 0x3c1   :  { %16180 = vmatprep.subr.bf16.mxu0 %v24817_v44  ;;  %v24826_v44 = vld [vmem:[#allocation173_spill] sm:$0xff] }
 0x3c3   :  { %16570 = vmatpush1.bf16.msra.mxu1 %v24816_v10  ;;  %v24825_v10 = vld [vmem:[#allocation36_spill] sm:$0xff] }
 0x3c4   :  { %16572 = vmatprep.subr.bf16.mxu1 %v24818_v7  ;;  %16182 = vmatpush1.bf16.msra.mxu0 %v24819_v42  ;;  %v24827_v7 = vld [vmem:[#allocation39_spill] sm:$0xff]  ;;  %v24860_v42 = vld [vmem:[#allocation202_spill] sm:$0xff] }
 0x3c5   :  { %v13986_v38 = vpop.f32.mrb[16].mxu1  ;;  %16184 = vmatprep.subr.bf16.mxu0 %v24821_v52  ;;  %v24855_v52 = vld [vmem:[#allocation68_spill] sm:$0xff] }
 0x3c6   :  { %v13987_v21 = vpop.f32.mrb[17].mxu1 }
 0x3c7   :  { %v13988_v55 = vadd.f32 %v13987_v21, %v13986_v38  ;;  %16574 = vmatpush1.bf16.msra.mxu1 %v24820_v26  ;;  %v24829_v38 = vld [vmem:[#allocation42_spill] sm:$0xff]  ;;  %v24831_v26 = vld [vmem:[#allocation44_spill] sm:$0xff] }
 0x3c8   :  { %16576 = vmatprep.subr.bf16.mxu1 %v24822_v11  ;;  %16186 = vmatpush1.bf16.msra.mxu0 %v24823_v53  ;;  %v24830_v21 = vld [vmem:[#allocation178_spill] sm:$0xff]  ;;  %v24832_v11 = vld [vmem:[#allocation179_spill] sm:$0xff]  ;;  %v24851_v53 = vld [vmem:[#allocation64_spill] sm:$0xff] }
 0x3c9   :  { %v6080_v54 = vadd.f32 %v13988_v55, %v13953_v43  ;;  %16188 = vmatprep.subr.bf16.mxu0 %v24825_v10  ;;  %v24833_v43 = vld [vmem:[#allocation47_spill] sm:$0xff]  ;;  %v24834_v55 = vld [vmem:[#allocation180_spill] sm:$0xff]  ;;  %v24836_v10 = vld [vmem:[#allocation181_spill] sm:$0xff] }
 0x3cb   :  { %16578 = vmatpush1.bf16.msra.mxu1 %v24824_v1  ;;  %v24835_v1 = vld [vmem:[#allocation48_spill] sm:$0xff] }
 0x3cc   :  { %16580 = vmatprep.subr.bf16.mxu1 %v24826_v44  ;;  %16190 = vmatpush1.bf16.msra.mxu0 %v24827_v7  ;;  %v24837_v44 = vld [vmem:[#allocation50_spill] sm:$0xff] }
 0x3cd   :  { %16192 = vmatprep.subr.bf16.mxu0 %v24829_v38  ;;  %v24838_v7 = vld [vmem:[#allocation182_spill] sm:$0xff]  ;;  %v24840_v38 = vld [vmem:[#allocation183_spill] sm:$0xff] }
 0x3cf   :  { %16582 = vmatpush1.bf16.msra.mxu1 %v24828_v49  ;;  %v24839_v49 = vld [vmem:[#allocation51_spill] sm:$0xff] }
 0x3d0   :  { %16584 = vmatprep.subr.bf16.mxu1 %v24830_v21  ;;  %16194 = vmatpush1.bf16.msra.mxu0 %v24831_v26  ;;  %v24841_v21 = vld [vmem:[#allocation53_spill] sm:$0xff]  ;;  %v24842_v26 = vld [vmem:[#allocation184_spill] sm:$0xff] }
 0x3d1   :  { %16196 = vmatprep.subr.bf16.mxu0 %v24833_v43  ;;  %v24844_v43 = vld [vmem:[#allocation185_spill] sm:$0xff] }
 0x3d3   :  { %16586 = vmatpush1.bf16.msra.mxu1 %v24832_v11  ;;  %v24843_v11 = vld [vmem:[#allocation56_spill] sm:$0xff] }
 0x3d4   :  { %16588 = vmatprep.subr.bf16.mxu1 %v24834_v55  ;;  %16198 = vmatpush1.bf16.msra.mxu0 %v24835_v1  ;;  %v24845_v55 = vld [vmem:[#allocation58_spill] sm:$0xff] }
 0x3d5   :  { %16200 = vmatprep.subr.bf16.mxu0 %v24837_v44  ;;  %v24846_v1 = vld [vmem:[#allocation186_spill] sm:$0xff]  ;;  %v24848_v44 = vld [vmem:[#allocation187_spill] sm:$0xff] }
 0x3d7   :  { %16590 = vmatpush1.bf16.msra.mxu1 %v24836_v10  ;;  %v24847_v10 = vld [vmem:[#allocation59_spill] sm:$0xff] }
 0x3d8   :  { %16592 = vmatprep.subr.bf16.mxu1 %v24838_v7  ;;  %16202 = vmatpush1.bf16.msra.mxu0 %v24839_v49  ;;  %v24849_v7 = vld [vmem:[#allocation61_spill] sm:$0xff] }
 0x3d9   :  { %16204 = vmatprep.subr.bf16.mxu0 %v24841_v21  ;;  %v24850_v49 = vld [vmem:[#allocation189_spill] sm:$0xff] }
 0x3db   :  { %16594 = vmatpush1.bf16.msra.mxu1 %v24840_v38 }
 0x3dc   :  { %16596 = vmatprep.subr.bf16.mxu1 %v24842_v26  ;;  %16206 = vmatpush1.bf16.msra.mxu0 %v24843_v11  ;;  %v24852_v11 = vld [vmem:[#allocation191_spill] sm:$0xff] }
 0x3dd   :  { %16208 = vmatprep.subr.bf16.mxu0 %v24845_v55  ;;  %v24854_v55 = vld [vmem:[#allocation79_spill] sm:$0xff] }
 0x3df   :  { %16598 = vmatpush1.bf16.msra.mxu1 %v24844_v43  ;;  %v24853_v43 = vld [vmem:[#allocation66_spill] sm:$0xff] }
 0x3e0   :  { %16600 = vmatprep.subr.bf16.mxu1 %v24846_v1  ;;  %16210 = vmatpush1.bf16.msra.mxu0 %v24847_v10  ;;  %v24856_v10 = vld [vmem:[#allocation195_spill] sm:$0xff] }
 0x3e1   :  { %16212 = vmatprep.subr.bf16.mxu0 %v24849_v7  ;;  %v24858_v7 = vld [vmem:[#allocation197_spill] sm:$0xff] }
 0x3e3   :  { %16602 = vmatpush1.bf16.msra.mxu1 %v24848_v44  ;;  %v24857_v44 = vld [vmem:[#allocation72_spill] sm:$0xff] }
 0x3e4   :  { %16604 = vmatprep.subr.bf16.mxu1 %v24850_v49  ;;  %16214 = vmatpush1.bf16.msra.mxu0 %v24851_v53  ;;  %v24859_v49 = vld [vmem:[#allocation175_spill] sm:$0xff] }
 0x3e5   :  { %v14021_v38 = vpop.f32.mrb[18].mxu1  ;;  %16216 = vmatprep.subr.bf16.mxu0 %v24853_v43 }
 0x3e6   :  { %v14022_v21 = vpop.f32.mrb[19].mxu1 }
 0x3e7   :  { %v14023_v26 = vadd.f32 %v14022_v21, %v14021_v38  ;;  %16606 = vmatpush1.bf16.msra.mxu1 %v24852_v11  ;;  %v24861_v38 = vld [vmem:[#allocation176_spill] sm:$0xff]  ;;  %v24862_v21 = vld [vmem:[#allocation146_spill] sm:$0xff]  ;;  %v24868_v11 = vld [vmem:[#allocation13_spill] sm:$0xff] }
 0x3e8   :  { %16608 = vmatprep.subr.bf16.mxu1 %v24854_v55  ;;  %16218 = vmatpush1.bf16.msra.mxu0 %v24855_v52  ;;  %v24863_v55 = vld [vmem:[#allocation177_spill] sm:$0xff] }
 0x3e9   :  { %v6218_v1 = vadd.f32 %v14023_v26, %v6080_v54  ;;  %16220 = vmatprep.subr.bf16.mxu0 %v24857_v44  ;;  %v24864_v54 = vld [vmem:[#allocation148_spill] sm:$0xff]  ;;  %v24865_v26 = vld [vmem:[#allocation82_spill] sm:$0xff] }
 0x3eb   :  { %16610 = vmatpush1.bf16.msra.mxu1 %v24856_v10  ;;  %v24866_v10 = vld [vmem:[#allocation149_spill] sm:$0xff] }
 0x3ec   :  { %16612 = vmatprep.subr.bf16.mxu1 %v24858_v7  ;;  %16222 = vmatpush1.bf16.msra.mxu0 %v24859_v49  ;;  %v24867_v7 = vld [vmem:[#allocation83_spill] sm:$0xff] }
 0x3ed   :  { %16224 = vmatprep.subr.bf16.mxu0 %v24861_v38 }
 0x3ef   :  { %16614 = vmatpush1.bf16.msra.mxu1 %v24860_v42  ;;  %v24869_v42 = vld [vmem:[#allocation208_spill] sm:$0xff] }
 0x3f0   :  { %16616 = vmatprep.subr.bf16.mxu1 %v24862_v21  ;;  %16226 = vmatpush1.bf16.msra.mxu0 %v24863_v55  ;;  %v24870_v21 = vld [vmem:[#allocation19_spill] sm:$0xff] }
 0x3f1   :  { %16228 = vmatprep.subr.bf16.mxu0 %v24865_v26 }
 0x3f2   :  { %7143 = vmatmul.mubr.f32.vlgmr.msra.gmra.mrb[26].mxu1 %v21087_v60 }
 0x3f3   :  { %16618 = vmatpush1.bf16.msra.mxu1 %v24864_v54  ;;  %7343 = vmatprep.mubr.f32.mxu1 %v21319_v28  ;;  %v24871_v54 = vld [vmem:[#allocation201_spill] sm:$0xff] }
 0x3f4   :  { %16620 = vmatprep.subr.bf16.mxu1 %v24866_v10  ;;  %16230 = vmatpush1.bf16.msra.mxu0 %v24867_v7  ;;  %v24872_v10 = vld [vmem:[#allocation203_spill] sm:$0xff] }
 0x3f5   :  { %16232 = vmatprep.subr.bf16.mxu0 %v24340_v51 }
 0x3f7   :  { %16622 = vmatpush1.bf16.msra.mxu1 %v24868_v11  ;;  %5596 = vmatmul.mubr.f32.vlgmr.msra.gmra.mrb[14].mxu0 %v20452_v8 }
 0x3f8   :  { %16624 = vmatprep.subr.bf16.mxu1 %v24869_v42  ;;  %16234 = vmatpush1.bf16.msra.mxu0 %v24342_v22  ;;  %v24873_v42 = vld [vmem:[#allocation153_spill] sm:$0xff] }
 0x3f9   :  { %16236 = vmatprep.subr.bf16.mxu0 %v24652_v19  ;;  %5731 = vmatprep.mubr.f32.mxu0 %v21087_v60 }
 0x3fb   :  { %16626 = vmatpush1.bf16.msra.mxu1 %v24870_v21 }
 0x3fc   :  { %16628 = vmatprep.subr.bf16.mxu1 %v24871_v54  ;;  %16238 = vmatpush1.bf16.msra.mxu0 %v24653_v17 }
 0x3fd   :  { %16240 = vmatprep.subr.bf16.mxu0 %v24797_v0 }
 0x3ff   :  { %16630 = vmatpush1.bf16.msra.mxu1 %v24872_v10  ;;  %v24903_v10 = vld [vmem:[#allocation81_spill] sm:$0xff] }
 0x400   :  { %16632 = vmatprep.subr.bf16.mxu1 %v24765_v61  ;;  %16242 = vmatpush1.bf16.msra.mxu0 %v24798_v32 }
 0x401   :  { %16244 = vmatprep.subr.bf16.mxu0 %v24799_v3 }
 0x403   :  { %16634 = vmatpush1.bf16.msra.mxu1 %v24873_v42  ;;  %v24898_v42 = vld [vmem:[#allocation57_spill] sm:$0xff] }
 0x404   :  { %16636 = vmatprep.subr.bf16.mxu1 %v24769_v46  ;;  %16246 = vmatpush1.bf16.msra.mxu0 %v24800_v59  ;;  %v24897_v46 = vld [vmem:[#allocation54_spill] sm:$0xff] }
 0x405   :  { %v14056_v21 = vpop.f32.mrb[20].mxu1  ;;  %16248 = vmatprep.subr.bf16.mxu0 %v24801_v58 }
 0x406   :  { %v14057_v54 = vpop.f32.mrb[21].mxu1 }
 0x407   :  { %v14058_v11 = vadd.f32 %v14057_v54, %v14056_v21  ;;  %16638 = vmatpush1.bf16.msra.mxu1 %v24771_v45  ;;  %v24876_v21 = vld [vmem:[#allocation218_spill] sm:$0xff]  ;;  %v24877_v54 = vld [vmem:[#allocation219_spill] sm:$0xff]  ;;  %v24896_v45 = vld [vmem:[#allocation49_spill] sm:$0xff] }
 0x408   :  { %16640 = vmatprep.subr.bf16.mxu1 %v24773_v2  ;;  %16250 = vmatpush1.bf16.msra.mxu0 %v24802_v57 }
 0x409   :  { %v6326_v61 = vadd.f32 %v14058_v11, %v6218_v1  ;;  %16252 = vmatprep.subr.bf16.mxu0 %v24803_v27  ;;  %v24874_v11 = vld [vmem:[#allocation216_spill] sm:$0xff]  ;;  %v24875_v1 = vld [vmem:[#allocation217_spill] sm:$0xff] }
 0x40b   :  { %16642 = vmatpush1.bf16.msra.mxu1 %v24774_v5  ;;  %v24894_v5 = vld [vmem:[#allocation45_spill] sm:$0xff] }
 0x40c   :  { %16644 = vmatprep.subr.bf16.mxu1 %v24775_v63  ;;  %16254 = vmatpush1.bf16.msra.mxu0 %v24354_v14 }
 0x40d   :  { %16256 = vmatprep.subr.bf16.mxu0 %v24355_v34 }
 0x40f   :  { %16646 = vmatpush1.bf16.msra.mxu1 %v24776_v36  ;;  %v24893_v36 = vld [vmem:[#allocation41_spill] sm:$0xff] }
 0x410   :  { %16648 = vmatprep.subr.bf16.mxu1 %v24777_v18  ;;  %16258 = vmatpush1.bf16.msra.mxu0 %v24555_v12 }
 0x411   :  { %16260 = vmatprep.subr.bf16.mxu0 %v24672_v15 }
 0x413   :  { %16650 = vmatpush1.bf16.msra.mxu1 %v24778_v24 }
 0x414   :  { %16652 = vmatprep.subr.bf16.mxu1 %v24779_v23  ;;  %16262 = vmatpush1.bf16.msra.mxu0 %v24674_v50  ;;  %v24880_v23 = vld [vmem:[#allocation221_spill] sm:$0xff] }
 0x415   :  { %16264 = vmatprep.subr.bf16.mxu0 %v24676_v20 }
 0x417   :  { %16654 = vmatpush1.bf16.msra.mxu1 %v24780_v47  ;;  %v24878_v47 = vld [vmem:[#allocation220_spill] sm:$0xff] }
 0x418   :  { %16656 = vmatprep.subr.bf16.mxu1 %v24781_v56  ;;  %16266 = vmatpush1.bf16.msra.mxu0 %v24563_v6 }
 0x419   :  { %16268 = vmatprep.subr.bf16.mxu0 %v24679_v30 }
 0x41b   :  { %16658 = vmatpush1.bf16.msra.mxu1 %v24783_v9 }
 0x41c   :  { %16660 = vmatprep.subr.bf16.mxu1 %v24784_v40  ;;  %16270 = vmatpush1.bf16.msra.mxu0 %v24681_v16 }
 0x41d   :  { %16272 = vmatprep.subr.bf16.mxu0 %v24569_v39 }
 0x41f   :  { %16662 = vmatpush1.bf16.msra.mxu1 %v24874_v11  ;;  %v24879_v11 = vld [vmem:[#allocation74_spill] sm:$0xff] }
 0x420   :  { %16664 = vmatprep.subr.bf16.mxu1 %v24875_v1  ;;  %16274 = vmatpush1.bf16.msra.mxu0 %v24571_v4 }
 0x421   :  { %16276 = vmatprep.subr.bf16.mxu0 %v24573_v48 }
 0x423   :  { %16666 = vmatpush1.bf16.msra.mxu1 %v24876_v21  ;;  %v24881_v21 = vld [vmem:[#allocation222_spill] sm:$0xff] }
 0x424   :  { %16668 = vmatprep.subr.bf16.mxu1 %v24877_v54  ;;  %16278 = vmatpush1.bf16.msra.mxu0 %v24575_v41  ;;  %v24882_v54 = vld [vmem:[#allocation223_spill] sm:$0xff] }
 0x425   :  { %v14091_v9 = vpop.f32.mrb[22].mxu1  ;;  %16280 = vmatprep.subr.bf16.mxu0 %v24577_v29 }
 0x426   :  { %v14092_v56 = vpop.f32.mrb[23].mxu1 }
 0x427   :  { %v14093_v40 = vadd.f32 %v14092_v56, %v14091_v9  ;;  %16670 = vmatpush1.bf16.msra.mxu1 %v24878_v47  ;;  %v24883_v9 = vld [vmem:[#allocation86_spill] sm:$0xff]  ;;  %v24886_v56 = vld [vmem:[#allocation15_spill] sm:$0xff]  ;;  %v24891_v47 = vld [vmem:[#allocation32_spill] sm:$0xff] }
 0x428   :  { %16672 = vmatprep.subr.bf16.mxu1 %v24879_v11  ;;  %16282 = vmatpush1.bf16.msra.mxu0 %v24369_v37  ;;  %v24890_v11 = vld [vmem:[#allocation29_spill] sm:$0xff] }
 0x429   :  { %v6494_v1 = vadd.f32 %v14093_v40, %v6326_v61  ;;  %16284 = vmatprep.subr.bf16.mxu0 %v24580_v25  ;;  %v24884_v40 = vld [vmem:[#allocation98_spill] sm:$0xff]  ;;  %v24885_v61 = vld [vmem:[#allocation11_spill] sm:$0xff] }
 0x42b   :  { %16674 = vmatpush1.bf16.msra.mxu1 %v24880_v23  ;;  %v24889_v23 = vld [vmem:[#allocation23_spill] sm:$0xff] }
 0x42c   :  { %16676 = vmatprep.subr.bf16.mxu1 %v24881_v21  ;;  %16286 = vmatpush1.bf16.msra.mxu0 %v24582_v13  ;;  %v24888_v21 = vld [vmem:[#allocation103_spill] sm:$0xff] }
 0x42d   :  { %16288 = vmatprep.subr.bf16.mxu0 %v24373_v35 }
 0x42f   :  { %16678 = vmatpush1.bf16.msra.mxu1 %v24882_v54  ;;  %v24887_v54 = vld [vmem:[#allocation20_spill] sm:$0xff] }
 0x430   :  { %16680 = vmatprep.subr.bf16.mxu1 %v24340_v51  ;;  %16290 = vmatpush1.bf16.msra.mxu0 %v24585_v62 }
 0x431   :  { %16292 = vmatprep.subr.bf16.mxu0 %v24375_v33 }
 0x432   :  { %7346 = vmatmul.mubr.f32.vlgmr.msra.gmra.mrb[26].mxu1 %v24883_v9 }
 0x433   :  { %16682 = vmatpush1.bf16.msra.mxu1 %v24342_v22  ;;  %7483 = vmatprep.mubr.f32.mxu1 %v24884_v40 }
 0x434   :  { %16684 = vmatprep.subr.bf16.mxu1 %v24652_v19  ;;  %16294 = vmatpush1.bf16.msra.mxu0 %v24377_v31 }
 0x435   :  { %16872 = vmatprep.subr.bf16.mxu0 %v24885_v61 }
 0x437   :  { %16686 = vmatpush1.bf16.msra.mxu1 %v24653_v17  ;;  %5733 = vmatmul.mubr.f32.vlgmr.msra.gmra.mrb[14].mxu0 %v20452_v8  ;;  %v24892_v8 = vld [vmem:[#allocation37_spill] sm:$0xff] }
 0x438   :  { %16688 = vmatprep.subr.bf16.mxu1 %v24797_v0  ;;  %16874 = vmatpush3.bf16.msra.mxu0 %v24886_v56 }
 0x439   :  { %16876 = vmatprep.subr.bf16.mxu0 %v24887_v54  ;;  %7996 = vmatprep.mubr.f32.mxu0 %v24888_v21  ;;  %v24904_v21 = vld [vmem:[#allocation91_spill] sm:$0xff] }
 0x43b   :  { %16690 = vmatpush1.bf16.msra.mxu1 %v24798_v32 }
 0x43c   :  { %16692 = vmatprep.subr.bf16.mxu1 %v24799_v3  ;;  %16878 = vmatpush3.bf16.msra.mxu0 %v24889_v23 }
 0x43d   :  { %16880 = vmatprep.subr.bf16.mxu0 %v24890_v11 }
 0x43f   :  { %16694 = vmatpush1.bf16.msra.mxu1 %v24800_v59 }
 0x440   :  { %16696 = vmatprep.subr.bf16.mxu1 %v24801_v58  ;;  %16882 = vmatpush3.bf16.msra.mxu0 %v24891_v47 }
 0x441   :  { %16884 = vmatprep.subr.bf16.mxu0 %v24892_v8 }
 0x443   :  { %16698 = vmatpush1.bf16.msra.mxu1 %v24802_v57 }
 0x444   :  { %16700 = vmatprep.subr.bf16.mxu1 %v24803_v27  ;;  %16886 = vmatpush3.bf16.msra.mxu0 %v24893_v36 }
 0x445   :  { %v14126_v24 = vpop.f32.mrb[24].mxu1  ;;  %16888 = vmatprep.subr.bf16.mxu0 %v24894_v5 }
 0x446   :  { %v14127_v18 = vpop.f32.mrb[25].mxu1 }
 0x447   :  { %v14128_v63 = vadd.f32 %v14127_v18, %v14126_v24  ;;  %16702 = vmatpush1.bf16.msra.mxu1 %v24354_v14  ;;  %v24899_v18 = vld [vmem:[#allocation62_spill] sm:$0xff]  ;;  %v24900_v24 = vld [vmem:[#allocation65_spill] sm:$0xff] }
 0x448   :  { %16704 = vmatprep.subr.bf16.mxu1 %v24355_v34  ;;  %16890 = vmatpush3.bf16.msra.mxu0 %v24896_v45 }
 0x449   :  { %v21574_v2 = vadd.f32 %v14128_v63, %v6494_v1  ;;  %16892 = vmatprep.subr.bf16.mxu0 %v24897_v46  ;;  %v24901_v63 = vld [vmem:[#allocation69_spill] sm:$0xff]  ;;  %v24902_v1 = vld [vmem:[#allocation71_spill] sm:$0xff] }
 0x44b   :  { %24895 = vst [vmem:[#allocation109_spill] sm:$0xff] %v21574_v2  ;;  %16706 = vmatpush1.bf16.msra.mxu1 %v24555_v12  ;;  %v24905_v2 = vld [vmem:[#allocation84_spill] sm:$0xff] }
 0x44c   :  { %16708 = vmatprep.subr.bf16.mxu1 %v24672_v15  ;;  %16894 = vmatpush3.bf16.msra.mxu0 %v24898_v42 }
 0x44d   :  { %16896 = vmatprep.subr.bf16.mxu0 %v24899_v18 }
 0x44f   :  { %16710 = vmatpush1.bf16.msra.mxu1 %v24674_v50 }
 0x450   :  { %16712 = vmatprep.subr.bf16.mxu1 %v24676_v20  ;;  %16898 = vmatpush3.bf16.msra.mxu0 %v24900_v24  ;;  %v24906_v20 = vld [vmem:[#allocation92_spill] sm:$0xff] }
 0x451   :  { %16900 = vmatprep.subr.bf16.mxu0 %v24901_v63 }
 0x453   :  { %16714 = vmatpush1.bf16.msra.mxu1 %v24563_v6  ;;  %v24907_v6 = vld [vmem:[#allocation94_spill] sm:$0xff] }
 0x454   :  { %16716 = vmatprep.subr.bf16.mxu1 %v24679_v30  ;;  %16902 = vmatpush3.bf16.msra.mxu0 %v24902_v1  ;;  %v24908_v30 = vld [vmem:[#allocation95_spill] sm:$0xff] }
 0x455   :  { %16904 = vmatprep.subr.bf16.mxu0 %v24903_v10  ;;  %v24910_v10 = vld [vmem:[#allocation104_spill] sm:$0xff] }
 0x457   :  { %16718 = vmatpush1.bf16.msra.mxu1 %v24681_v16  ;;  %8002 = vmatmul.mubr.f32.vlgmr.msra.gmra.mrb[16].mxu0 %v24904_v21  ;;  %v24909_v16 = vld [vmem:[#allocation99_spill] sm:$0xff]  ;;  %v24911_v21 = vld [vmem:[#allocation110_spill] sm:$0xff] }
 0x458   :  { %16720 = vmatprep.subr.bf16.mxu1 %v24569_v39  ;;  %16906 = vmatpush3.bf16.msra.mxu0 %v24905_v2  ;;  %v24913_v2 = vld [vmem:[#allocation123_spill] sm:$0xff] }
 0x459   :  { %16908 = vmatprep.subr.bf16.mxu0 %v24906_v20  ;;  %8232 = vmatprep.mubr.f32.mxu0 %v24907_v6  ;;  %v24912_v20 = vld [vmem:[#allocation117_spill] sm:$0xff] }
 0x45b   :  { %16722 = vmatpush1.bf16.msra.mxu1 %v24571_v4 }
 0x45c   :  { %16724 = vmatprep.subr.bf16.mxu1 %v24573_v48  ;;  %16910 = vmatpush3.bf16.msra.mxu0 %v24908_v30  ;;  %v24914_v30 = vld [vmem:[#allocation128_spill] sm:$0xff] }
 0x45d   :  { %16912 = vmatprep.subr.bf16.mxu0 %v24909_v16  ;;  %v24915_v16 = vld [vmem:[#allocation133_spill] sm:$0xff] }
 0x45f   :  { %16726 = vmatpush1.bf16.msra.mxu1 %v24575_v41 }
 0x460   :  { %16728 = vmatprep.subr.bf16.mxu1 %v24577_v29  ;;  %16914 = vmatpush3.bf16.msra.mxu0 %v24910_v10  ;;  %v24916_v10 = vld [vmem:[#allocation137_spill] sm:$0xff] }
 0x461   :  { %16916 = vmatprep.subr.bf16.mxu0 %v24911_v21  ;;  %v24917_v21 = vld [vmem:[#allocation141_spill] sm:$0xff] }
 0x463   :  { %16730 = vmatpush1.bf16.msra.mxu1 %v24369_v37 }
 0x464   :  { %16732 = vmatprep.subr.bf16.mxu1 %v24580_v25  ;;  %16918 = vmatpush3.bf16.msra.mxu0 %v24912_v20  ;;  %v24918_v20 = vld [vmem:[#allocation143_spill] sm:$0xff] }
 0x465   :  { %16920 = vmatprep.subr.bf16.mxu0 %v24913_v2  ;;  %v24920_v2 = vld [vmem:[#allocation145_spill] sm:$0xff] }
 0x467   :  { %16734 = vmatpush1.bf16.msra.mxu1 %v24582_v13  ;;  %v24919_v13 = vld [vmem:[#allocation89_spill] sm:$0xff] }
 0x468   :  { %16736 = vmatprep.subr.bf16.mxu1 %v24373_v35  ;;  %16922 = vmatpush3.bf16.msra.mxu0 %v24914_v30  ;;  %v24921_v35 = vld [vmem:[#allocation144_spill] sm:$0xff]  ;;  %v24922_v30 = vld [vmem:[#allocation151_spill] sm:$0xff] }
 0x469   :  { %16924 = vmatprep.subr.bf16.mxu0 %v24915_v16  ;;  %v24924_v16 = vld [vmem:[#allocation154_spill] sm:$0xff] }
 0x46b   :  { %16738 = vmatpush1.bf16.msra.mxu1 %v24585_v62  ;;  %v24923_v62 = vld [vmem:[#allocation10_spill] sm:$0xff] }
 0x46c   :  { %16740 = vmatprep.subr.bf16.mxu1 %v24375_v33  ;;  %16926 = vmatpush3.bf16.msra.mxu0 %v24916_v10  ;;  %v24925_v10 = vld [vmem:[#allocation12_spill] sm:$0xff] }
 0x46d   :  { %16928 = vmatprep.subr.bf16.mxu0 %v24917_v21  ;;  %v24927_v21 = vld [vmem:[#allocation78_spill] sm:$0xff]  ;;  %v24937_v33 = vld [vmem:[#allocation224_spill] sm:$0xff] }
 0x46f   :  { %16742 = vmatpush1.bf16.msra.mxu1 %v24377_v31  ;;  %v24926_v31 = vld [vmem:[#allocation147_spill] sm:$0xff] }
 0x470   :  { %16744 = vmatprep.subr.bf16.mxu1 %v24918_v20  ;;  %16930 = vmatpush3.bf16.msra.mxu0 %v24920_v2  ;;  %v24928_v20 = vld [vmem:[#allocation150_spill] sm:$0xff]  ;;  %v24929_v2 = vld [vmem:[#allocation76_spill] sm:$0xff] }
 0x471   :  { %16932 = vmatprep.subr.bf16.mxu0 %v24922_v30  ;;  %v24931_v30 = vld [vmem:[#allocation55_spill] sm:$0xff] }
 0x472   :  { %7487 = vmatmul.mubr.f32.vlgmr.msra.gmra.mrb[26].mxu1 %v24919_v13 }
 0x473   :  { %16746 = vmatpush1.bf16.msra.mxu1 %v24921_v35  ;;  %7750 = vmatprep.mubr.f32.mxu1 %v24907_v6  ;;  %v24930_v35 = vld [vmem:[#allocation155_spill] sm:$0xff] }
 0x474   :  { %16748 = vmatprep.subr.bf16.mxu1 %v24923_v62  ;;  %16934 = vmatpush3.bf16.msra.mxu0 %v24924_v16  ;;  %v24932_v62 = vld [vmem:[#allocation157_spill] sm:$0xff]  ;;  %v24933_v16 = vld [vmem:[#allocation60_spill] sm:$0xff] }
 0x475   :  { %16936 = vmatprep.subr.bf16.mxu0 %v24926_v31  ;;  %v24935_v31 = vld [vmem:[#allocation114_spill] sm:$0xff] }
 0x477   :  { %16750 = vmatpush1.bf16.msra.mxu1 %v24925_v10  ;;  %8234 = vmatmul.mubr.f32.vlgmr.msra.gmra.mrb[18].mxu0 %v21087_v60  ;;  %v24934_v10 = vld [vmem:[#allocation17_spill] sm:$0xff] }
 0x478   :  { %16752 = vmatprep.subr.bf16.mxu1 %v24927_v21  ;;  %16938 = vmatpush3.bf16.msra.mxu0 %v24928_v20  ;;  %v24936_v21 = vld [vmem:[#allocation159_spill] sm:$0xff]  ;;  %v24938_v20 = vld [vmem:[#allocation25_spill] sm:$0xff] }
 0x479   :  { %16940 = vmatprep.subr.bf16.mxu0 %v24930_v35  ;;  %8369 = vmatprep.mubr.f32.mxu0 %v21319_v28  ;;  %v24940_v35 = vld [vmem:[#allocation27_spill] sm:$0xff] }
 0x47a   :  { %v24942_v28 = vld [vmem:[#allocation31_spill] sm:$0xff] }
 0x47b   :  { %16754 = vmatpush1.bf16.msra.mxu1 %v24929_v2  ;;  %v24939_v2 = vld [vmem:[#allocation36_spill] sm:$0xff] }
 0x47c   :  { %16756 = vmatprep.subr.bf16.mxu1 %v24931_v30  ;;  %16942 = vmatpush3.bf16.msra.mxu0 %v24932_v62  ;;  %v24941_v30 = vld [vmem:[#allocation39_spill] sm:$0xff]  ;;  %v24943_v62 = vld [vmem:[#allocation42_spill] sm:$0xff] }
 0x47d   :  { %16944 = vmatprep.subr.bf16.mxu0 %v24934_v10  ;;  %v24945_v10 = vld [vmem:[#allocation44_spill] sm:$0xff] }
 0x47f   :  { %16758 = vmatpush1.bf16.msra.mxu1 %v24933_v16  ;;  %v24944_v16 = vld [vmem:[#allocation35_spill] sm:$0xff] }
 0x480   :  { %16760 = vmatprep.subr.bf16.mxu1 %v24935_v31  ;;  %16946 = vmatpush3.bf16.msra.mxu0 %v24936_v21  ;;  %v24946_v31 = vld [vmem:[#allocation40_spill] sm:$0xff]  ;;  %v24947_v21 = vld [vmem:[#allocation47_spill] sm:$0xff] }
 0x481   :  { %16948 = vmatprep.subr.bf16.mxu0 %v24938_v20  ;;  %v24949_v20 = vld [vmem:[#allocation48_spill] sm:$0xff] }
 0x483   :  { %16762 = vmatpush1.bf16.msra.mxu1 %v24937_v33  ;;  %v24948_v33 = vld [vmem:[#allocation163_spill] sm:$0xff] }
 0x484   :  { %16764 = vmatprep.subr.bf16.mxu1 %v24939_v2  ;;  %16950 = vmatpush3.bf16.msra.mxu0 %v24940_v35  ;;  %v24950_v2 = vld [vmem:[#allocation165_spill] sm:$0xff]  ;;  %v24951_v35 = vld [vmem:[#allocation50_spill] sm:$0xff] }
 0x485   :  { %16952 = vmatprep.subr.bf16.mxu0 %v24942_v28  ;;  %v24953_v28 = vld [vmem:[#allocation51_spill] sm:$0xff] }
 0x487   :  { %16766 = vmatpush1.bf16.msra.mxu1 %v24941_v30  ;;  %v24952_v30 = vld [vmem:[#allocation167_spill] sm:$0xff] }
 0x488   :  { %16768 = vmatprep.subr.bf16.mxu1 %v24943_v62  ;;  %16954 = vmatpush3.bf16.msra.mxu0 %v24944_v16  ;;  %v24954_v62 = vld [vmem:[#allocation169_spill] sm:$0xff] }
 0x489   :  { %16956 = vmatprep.subr.bf16.mxu0 %v24946_v31  ;;  %v24955_v16 = vld [vmem:[#allocation53_spill] sm:$0xff]  ;;  %v24957_v31 = vld [vmem:[#allocation56_spill] sm:$0xff] }
 0x48b   :  { %16770 = vmatpush1.bf16.msra.mxu1 %v24945_v10  ;;  %v24956_v10 = vld [vmem:[#allocation171_spill] sm:$0xff] }
 0x48c   :  { %16772 = vmatprep.subr.bf16.mxu1 %v24947_v21  ;;  %16958 = vmatpush3.bf16.msra.mxu0 %v24948_v33  ;;  %v24958_v21 = vld [vmem:[#allocation58_spill] sm:$0xff] }
 0x48d   :  { %16960 = vmatprep.subr.bf16.mxu0 %v24950_v2 }
 0x48f   :  { %16774 = vmatpush1.bf16.msra.mxu1 %v24949_v20  ;;  %v24977_v20 = vld [vmem:[#allocation125_spill] sm:$0xff] }
 0x490   :  { %16776 = vmatprep.subr.bf16.mxu1 %v24951_v35  ;;  %16962 = vmatpush3.bf16.msra.mxu0 %v24952_v30  ;;  %v24959_v35 = vld [vmem:[#allocation59_spill] sm:$0xff] }
 0x491   :  { %16964 = vmatprep.subr.bf16.mxu0 %v24954_v62 }
 0x493   :  { %16778 = vmatpush1.bf16.msra.mxu1 %v24953_v28  ;;  %v24960_v28 = vld [vmem:[#allocation61_spill] sm:$0xff] }
 0x494   :  { %16780 = vmatprep.subr.bf16.mxu1 %v24955_v16  ;;  %16966 = vmatpush3.bf16.msra.mxu0 %v24956_v10  ;;  %v24976_v16 = vld [vmem:[#allocation77_spill] sm:$0xff] }
 0x495   :  { %16968 = vmatprep.subr.bf16.mxu0 %v24885_v61 }
 0x497   :  { %16782 = vmatpush1.bf16.msra.mxu1 %v24957_v31  ;;  %8372 = vmatmul.mubr.f32.vlgmr.msra.gmra.mrb[20].mxu0 %v24883_v9  ;;  %v24961_v9 = vld [vmem:[#allocation194_spill] sm:$0xff]  ;;  %v24975_v31 = vld [vmem:[#allocation119_spill] sm:$0xff] }
 0x498   :  { %16784 = vmatprep.subr.bf16.mxu1 %v24958_v21  ;;  %16970 = vmatpush3.bf16.msra.mxu0 %v24886_v56  ;;  %v24974_v21 = vld [vmem:[#allocation73_spill] sm:$0xff] }
 0x499   :  { %16972 = vmatprep.subr.bf16.mxu0 %v24887_v54  ;;  %8476 = vmatprep.mubr.f32.mxu0 %v24884_v40 }
 0x49b   :  { %16786 = vmatpush1.bf16.msra.mxu1 %v24959_v35  ;;  %v24973_v35 = vld [vmem:[#allocation118_spill] sm:$0xff] }
 0x49c   :  { %16788 = vmatprep.subr.bf16.mxu1 %v24960_v28  ;;  %16974 = vmatpush3.bf16.msra.mxu0 %v24889_v23  ;;  %v24972_v28 = vld [vmem:[#allocation112_spill] sm:$0xff] }
 0x49d   :  { %16976 = vmatprep.subr.bf16.mxu0 %v24890_v11 }
 0x49f   :  { %16790 = vmatpush1.bf16.msra.mxu1 %v24851_v53  ;;  %v24971_v53 = vld [vmem:[#allocation111_spill] sm:$0xff] }
 0x4a0   :  { %16792 = vmatprep.subr.bf16.mxu1 %v24853_v43  ;;  %16978 = vmatpush3.bf16.msra.mxu0 %v24891_v47  ;;  %v24970_v43 = vld [vmem:[#allocation22_spill] sm:$0xff] }
 0x4a1   :  { %16980 = vmatprep.subr.bf16.mxu0 %v24892_v8 }
 0x4a3   :  { %16794 = vmatpush1.bf16.msra.mxu1 %v24855_v52  ;;  %v24969_v52 = vld [vmem:[#allocation75_spill] sm:$0xff] }
 0x4a4   :  { %16796 = vmatprep.subr.bf16.mxu1 %v24857_v44  ;;  %16982 = vmatpush3.bf16.msra.mxu0 %v24893_v36  ;;  %v24968_v44 = vld [vmem:[#allocation101_spill] sm:$0xff] }
 0x4a5   :  { %16984 = vmatprep.subr.bf16.mxu0 %v24894_v5 }
 0x4a7   :  { %16798 = vmatpush1.bf16.msra.mxu1 %v24859_v49  ;;  %v24966_v49 = vld [vmem:[#allocation204_spill] sm:$0xff] }
 0x4a8   :  { %16800 = vmatprep.subr.bf16.mxu1 %v24861_v38  ;;  %16986 = vmatpush3.bf16.msra.mxu0 %v24896_v45  ;;  %v24965_v38 = vld [vmem:[#allocation200_spill] sm:$0xff] }
 0x4a9   :  { %16988 = vmatprep.subr.bf16.mxu0 %v24897_v46 }
 0x4ab   :  { %16802 = vmatpush1.bf16.msra.mxu1 %v24863_v55  ;;  %v24964_v55 = vld [vmem:[#allocation199_spill] sm:$0xff] }
 0x4ac   :  { %16804 = vmatprep.subr.bf16.mxu1 %v24865_v26  ;;  %16990 = vmatpush3.bf16.msra.mxu0 %v24898_v42  ;;  %v24963_v26 = vld [vmem:[#allocation198_spill] sm:$0xff] }
 0x4ad   :  { %16992 = vmatprep.subr.bf16.mxu0 %v24899_v18 }
 0x4af   :  { %16806 = vmatpush1.bf16.msra.mxu1 %v24867_v7  ;;  %v24962_v7 = vld [vmem:[#allocation196_spill] sm:$0xff] }
 0x4b0   :  { %16808 = vmatprep.subr.bf16.mxu1 %v24340_v51  ;;  %16994 = vmatpush3.bf16.msra.mxu0 %v24900_v24 }
 0x4b1   :  { %16996 = vmatprep.subr.bf16.mxu0 %v24901_v63 }
 0x4b2   :  { %7752 = vmatmul.mubr.f32.vlgmr.msra.gmra.mrb[26].mxu1 %v21087_v60 }
 0x4b3   :  { %16810 = vmatpush1.bf16.msra.mxu1 %v24342_v22  ;;  %7887 = vmatprep.mubr.f32.mxu1 %v24907_v6 }
 0x4b4   :  { %16812 = vmatprep.subr.bf16.mxu1 %v24652_v19  ;;  %16998 = vmatpush3.bf16.msra.mxu0 %v24902_v1 }
 0x4b5   :  { %17000 = vmatprep.subr.bf16.mxu0 %v24961_v9 }
 0x4b7   :  { %16814 = vmatpush1.bf16.msra.mxu1 %v24653_v17  ;;  %8480 = vmatmul.mubr.f32.vlgmr.msra.gmra.mrb[22].mxu0 %v24919_v13  ;;  %v24967_v13 = vld [vmem:[#allocation14_spill] sm:$0xff] }
 0x4b8   :  { %16816 = vmatprep.subr.bf16.mxu1 %v24797_v0  ;;  %17002 = vmatpush3.bf16.msra.mxu0 %v24962_v7 }
 0x4b9   :  { %17004 = vmatprep.subr.bf16.mxu0 %v24963_v26  ;;  %8646 = vmatprep.mubr.f32.mxu0 %v24907_v6 }
 0x4bb   :  { %16818 = vmatpush1.bf16.msra.mxu1 %v24798_v32 }
 0x4bc   :  { %16820 = vmatprep.subr.bf16.mxu1 %v24799_v3  ;;  %17006 = vmatpush3.bf16.msra.mxu0 %v24964_v55 }
 0x4bd   :  { %17008 = vmatprep.subr.bf16.mxu0 %v24965_v38  ;;  %v24987_v38 = vld [vmem:[#allocation142_spill] sm:$0xff] }
 0x4bf   :  { %16822 = vmatpush1.bf16.msra.mxu1 %v24800_v59 }
 0x4c0   :  { %16824 = vmatprep.subr.bf16.mxu1 %v24801_v58  ;;  %17010 = vmatpush3.bf16.msra.mxu0 %v24966_v49  ;;  %v24986_v49 = vld [vmem:[#allocation140_spill] sm:$0xff] }
 0x4c1   :  { %17012 = vmatprep.subr.bf16.mxu0 %v24967_v13  ;;  %v24985_v13 = vld [vmem:[#allocation136_spill] sm:$0xff] }
 0x4c3   :  { %16826 = vmatpush1.bf16.msra.mxu1 %v24802_v57 }
 0x4c4   :  { %16828 = vmatprep.subr.bf16.mxu1 %v24803_v27  ;;  %17014 = vmatpush3.bf16.msra.mxu0 %v24968_v44 }
 0x4c5   :  { %17016 = vmatprep.subr.bf16.mxu0 %v24969_v52  ;;  %v24979_v52 = vld [vmem:[#allocation126_spill] sm:$0xff] }
 0x4c7   :  { %16830 = vmatpush1.bf16.msra.mxu1 %v24354_v14 }
 0x4c8   :  { %16832 = vmatprep.subr.bf16.mxu1 %v24355_v34  ;;  %17018 = vmatpush3.bf16.msra.mxu0 %v24970_v43  ;;  %v24978_v43 = vld [vmem:[#allocation80_spill] sm:$0xff] }
 0x4c9   :  { %17020 = vmatprep.subr.bf16.mxu0 %v24971_v53  ;;  %v24980_v53 = vld [vmem:[#allocation87_spill] sm:$0xff] }
 0x4cb   :  { %16834 = vmatpush1.bf16.msra.mxu1 %v24555_v12 }
 0x4cc   :  { %16836 = vmatprep.subr.bf16.mxu1 %v24672_v15  ;;  %17022 = vmatpush3.bf16.msra.mxu0 %v24972_v28  ;;  %v24983_v28 = vld [vmem:[#allocation131_spill] sm:$0xff] }
 0x4cd   :  { %17024 = vmatprep.subr.bf16.mxu0 %v24973_v35  ;;  %v24982_v35 = vld [vmem:[#allocation124_spill] sm:$0xff] }
 0x4cf   :  { %16838 = vmatpush1.bf16.msra.mxu1 %v24674_v50 }
 0x4d0   :  { %16840 = vmatprep.subr.bf16.mxu1 %v24974_v21  ;;  %17026 = vmatpush3.bf16.msra.mxu0 %v24975_v31 }
 0x4d1   :  { %17028 = vmatprep.subr.bf16.mxu0 %v24977_v20  ;;  %v8766_v20 = vld [vmem:[#allocation4 + $0x28] sm:$0xff] }
 0x4d3   :  { %16842 = vmatpush1.bf16.msra.mxu1 %v24976_v16 }
 0x4d4   :  { %16844 = vmatprep.subr.bf16.mxu1 %v24978_v43  ;;  %17030 = vmatpush3.bf16.msra.mxu0 %v24979_v52  ;;  %v21742_v52 = vand.u32 4294901760, %v8766_v20 }
 0x4d5   :  { %17032 = vmatprep.subr.bf16.mxu0 %v24885_v61 }
 0x4d6   :  { %v21749_v31 = vsub.f32 %v8766_v20, %v21742_v52 }
 0x4d7   :  { %16846 = vmatpush1.bf16.msra.mxu1 %v24980_v53  ;;  %8648 = vmatmul.mubr.f32.vlgmr.msra.gmra.mrb[24].mxu0 %v21087_v60 }
 0x4d8   :  { %16848 = vmatprep.subr.bf16.mxu1 %v24569_v39  ;;  %17034 = vmatpush3.bf16.msra.mxu0 %v24886_v56  ;;  %24981 = vst [vmem:[#allocation113_spill] sm:$0xff] %v21749_v31  ;;  %v21756_v44 = vand.u32 4294901760, %v21749_v31 }
 0x4d9   :  { %17036 = vmatprep.subr.bf16.mxu0 %v24887_v54  ;;  %8750 = vmatprep.mubr.f32.mxu0 %v24907_v6 }
 0x4da   :  { %24984 = vst [vmem:[#allocation115_spill] sm:$0xff] %v21756_v44  ;;  %v8898_v20 = vsub.f32 %v21749_v31, %v21756_v44 }
 0x4db   :  { %16850 = vmatpush1.bf16.msra.mxu1 %v24571_v4 }
 0x4dc   :  { %16852 = vmatprep.subr.bf16.mxu1 %v24573_v48  ;;  %17038 = vmatpush3.bf16.msra.mxu0 %v24889_v23  ;;  %v21768_v55 = vand.u32 4294901760, %v8898_v20 }
 0x4dd   :  { %17040 = vmatprep.subr.bf16.mxu0 %v24890_v11 }
 0x4de   :  { %24988 = vst [vmem:[#allocation116_spill] sm:$0xff] %v21768_v55 }
 0x4df   :  { %16854 = vmatpush1.bf16.msra.mxu1 %v24575_v41 }
 0x4e0   :  { %16856 = vmatprep.subr.bf16.mxu1 %v24577_v29  ;;  %17042 = vmatpush3.bf16.msra.mxu0 %v24891_v47 }
 0x4e1   :  { %17044 = vmatprep.subr.bf16.mxu0 %v24892_v8 }
 0x4e3   :  { %16858 = vmatpush1.bf16.msra.mxu1 %v24369_v37 }
 0x4e4   :  { %16860 = vmatprep.subr.bf16.mxu1 %v24580_v25  ;;  %17046 = vmatpush3.bf16.msra.mxu0 %v24893_v36 }
 0x4e5   :  { %17048 = vmatprep.subr.bf16.mxu0 %v24894_v5 }
 0x4e7   :  { %16862 = vmatpush1.bf16.msra.mxu1 %v24982_v35 }
 0x4e8   :  { %16864 = vmatprep.subr.bf16.mxu1 %v24983_v28  ;;  %17050 = vmatpush3.bf16.msra.mxu0 %v24896_v45 }
 0x4e9   :  { %17052 = vmatprep.subr.bf16.mxu0 %v24897_v46 }
 0x4eb   :  { %16866 = vmatpush1.bf16.msra.mxu1 %v24985_v13 }
 0x4ec   :  { %16868 = vmatprep.subr.bf16.mxu1 %v24986_v49  ;;  %17054 = vmatpush3.bf16.msra.mxu0 %v24898_v42 }
 0x4ed   :  { %17056 = vmatprep.subr.bf16.mxu0 %v24899_v18 }
 0x4ef   :  { %16870 = vmatpush1.bf16.msra.mxu1 %v24987_v38 }
 0x4f0   :  { %17448 = vmatprep.subr.bf16.mxu1 %v24885_v61  ;;  %17058 = vmatpush3.bf16.msra.mxu0 %v24900_v24 }
 0x4f1   :  { %17060 = vmatprep.subr.bf16.mxu0 %v24901_v63 }
 0x4f2   :  { %7889 = vmatmul.mubr.f32.vlgmr.msra.gmra.mrb[26].mxu1 %v21087_v60 }
 0x4f3   :  { %17450 = vmatpush3.bf16.msra.mxu1 %v24886_v56  ;;  %10152 = vmatprep.mubr.f32.mxu1 %v21768_v55 }
 0x4f4   :  { %17452 = vmatprep.subr.bf16.mxu1 %v24887_v54  ;;  %17062 = vmatpush3.bf16.msra.mxu0 %v24902_v1 }
 0x4f5   :  { %17064 = vmatprep.subr.bf16.mxu0 %v24340_v51 }
 0x4f7   :  { %17454 = vmatpush3.bf16.msra.mxu1 %v24889_v23  ;;  %8752 = vmatmul.mubr.f32.vlgmr.msra.gmra.mrb[26].mxu0 %v21087_v60 }
 0x4f8   :  { %17456 = vmatprep.subr.bf16.mxu1 %v24890_v11  ;;  %17066 = vmatpush1.bf16.msra.mxu0 %v24342_v22 }
 0x4f9   :  { %17068 = vmatprep.subr.bf16.mxu0 %v24652_v19  ;;  %8900 = vmatprep.mubr.f32.mxu0 %v21768_v55 }
 0x4fb   :  { %17458 = vmatpush3.bf16.msra.mxu1 %v24891_v47 }
 0x4fc   :  { %17460 = vmatprep.subr.bf16.mxu1 %v24892_v8  ;;  %17070 = vmatpush1.bf16.msra.mxu0 %v24653_v17 }
 0x4fd   :  { %17072 = vmatprep.subr.bf16.mxu0 %v24797_v0 }
 0x4ff   :  { %17462 = vmatpush3.bf16.msra.mxu1 %v24893_v36 }
 0x500   :  { %17464 = vmatprep.subr.bf16.mxu1 %v24894_v5  ;;  %17074 = vmatpush1.bf16.msra.mxu0 %v24798_v32  ;;  %v24991_v32 = vld [vmem:[#allocation103_spill] sm:$0xff] }
 0x501   :  { %17076 = vmatprep.subr.bf16.mxu0 %v24799_v3 }
 0x503   :  { %17466 = vmatpush3.bf16.msra.mxu1 %v24896_v45 }
 0x504   :  { %17468 = vmatprep.subr.bf16.mxu1 %v24897_v46  ;;  %17078 = vmatpush1.bf16.msra.mxu0 %v24800_v59  ;;  %v24990_v59 = vld [vmem:[#allocation109_spill] sm:$0xff] }
 0x505   :  { %17080 = vmatprep.subr.bf16.mxu0 %v24801_v58  ;;  %v24989_v58 = vld [vmem:[#allocation81_spill] sm:$0xff]  ;;  %v6606_v3 = vrot.slane %v24990_v59, 2  ;;  %v24996_v59 = vld [vmem:[#allocation99_spill] sm:$0xff] }
 0x507   :  { %17470 = vmatpush3.bf16.msra.mxu1 %v24898_v42 }
 0x508   :  { %17472 = vmatprep.subr.bf16.mxu1 %v24899_v18  ;;  %17082 = vmatpush1.bf16.msra.mxu0 %v24802_v57 }
 0x509   :  { %17084 = vmatprep.subr.bf16.mxu0 %v24803_v27  ;;  %v24993_v27 = vld [vmem:[#allocation84_spill] sm:$0xff] }
 0x50a   :  { %v5734_v60 = vpop.f32.mrb[14].mxu0 }
 0x50b   :  { %17474 = vmatpush3.bf16.msra.mxu1 %v24900_v24  ;;  %v5736_v20 = vpop.f32.mrb[15].mxu0 }
 0x50c   :  { %17476 = vmatprep.subr.bf16.mxu1 %v24901_v63  ;;  %v6602_v55 = vrot.slane %v5736_v20, 1  ;;  %17086 = vmatpush1.bf16.msra.mxu0 %v24354_v14  ;;  %v24994_v20 = vld [vmem:[#allocation92_spill] sm:$0xff] }
 0x50d   :  { %17088 = vmatprep.subr.bf16.mxu0 %v24355_v34 }
 0x50e   :  { %v6604_v57 = vadd.f32 %v6602_v55, %v5734_v60  ;;  %v24999_v55 = vld [vmem:[#allocation117_spill] sm:$0xff]  ;;  %v25000_v60 = vld [vmem:[#allocation123_spill] sm:$0xff] }
 0x50f   :  { %17478 = vmatpush3.bf16.msra.mxu1 %v24902_v1 }
 0x510   :  { %17480 = vmatprep.subr.bf16.mxu1 %v24989_v58  ;;  %v21808_v0 = vadd.f32 %v6606_v3, %v6604_v57  ;;  %17090 = vmatpush1.bf16.msra.mxu0 %v24555_v12  ;;  %v24995_v58 = vld [vmem:[#allocation95_spill] sm:$0xff]  ;;  %v24997_v3 = vld [vmem:[#allocation104_spill] sm:$0xff]  ;;  %v24998_v57 = vld [vmem:[#allocation110_spill] sm:$0xff] }
 0x511   :  { %17092 = vmatprep.subr.bf16.mxu0 %v24672_v15 }
 0x512   :  { %10158 = vmatmul.mubr.f32.vlgmr.msra.gmra.mrb[28].mxu1 %v24991_v32  ;;  %24992 = vst [vmem:[#allocation121_spill] sm:$0xff] %v21808_v0  ;;  %v25001_v0 = vld [vmem:[#allocation128_spill] sm:$0xff] }
 0x513   :  { %17482 = vmatpush3.bf16.msra.mxu1 %v24993_v27  ;;  %10388 = vmatprep.mubr.f32.mxu1 %v21742_v52  ;;  %v25017_v27 = vld [vmem:[#allocation25_spill] sm:$0xff] }
 0x514   :  { %17484 = vmatprep.subr.bf16.mxu1 %v24994_v20  ;;  %17094 = vmatpush1.bf16.msra.mxu0 %v24674_v50 }
 0x515   :  { %17096 = vmatprep.subr.bf16.mxu0 %v24974_v21 }
 0x517   :  { %17486 = vmatpush3.bf16.msra.mxu1 %v24995_v58 }
 0x518   :  { %17488 = vmatprep.subr.bf16.mxu1 %v24996_v59  ;;  %17098 = vmatpush1.bf16.msra.mxu0 %v24976_v16  ;;  %v25002_v59 = vld [vmem:[#allocation133_spill] sm:$0xff] }
 0x519   :  { %17100 = vmatprep.subr.bf16.mxu0 %v24978_v43 }
 0x51b   :  { %17490 = vmatpush3.bf16.msra.mxu1 %v24997_v3  ;;  %v25003_v3 = vld [vmem:[#allocation137_spill] sm:$0xff] }
 0x51c   :  { %17492 = vmatprep.subr.bf16.mxu1 %v24998_v57  ;;  %17102 = vmatpush1.bf16.msra.mxu0 %v24980_v53  ;;  %v25004_v57 = vld [vmem:[#allocation141_spill] sm:$0xff] }
 0x51d   :  { %17104 = vmatprep.subr.bf16.mxu0 %v24569_v39 }
 0x51f   :  { %17494 = vmatpush3.bf16.msra.mxu1 %v24999_v55  ;;  %v25005_v55 = vld [vmem:[#allocation145_spill] sm:$0xff] }
 0x520   :  { %17496 = vmatprep.subr.bf16.mxu1 %v25000_v60  ;;  %17106 = vmatpush1.bf16.msra.mxu0 %v24571_v4  ;;  %v25006_v60 = vld [vmem:[#allocation151_spill] sm:$0xff] }
 0x521   :  { %17108 = vmatprep.subr.bf16.mxu0 %v24573_v48 }
 0x523   :  { %17498 = vmatpush3.bf16.msra.mxu1 %v25001_v0 }
 0x524   :  { %17500 = vmatprep.subr.bf16.mxu1 %v25002_v59  ;;  %17110 = vmatpush1.bf16.msra.mxu0 %v24575_v41  ;;  %v25007_v59 = vld [vmem:[#allocation154_spill] sm:$0xff] }
 0x525   :  { %17112 = vmatprep.subr.bf16.mxu0 %v24577_v29 }
 0x527   :  { %17502 = vmatpush3.bf16.msra.mxu1 %v25003_v3  ;;  %v25008_v3 = vld [vmem:[#allocation147_spill] sm:$0xff] }
 0x528   :  { %17504 = vmatprep.subr.bf16.mxu1 %v25004_v57  ;;  %17114 = vmatpush1.bf16.msra.mxu0 %v24369_v37  ;;  %v25015_v57 = vld [vmem:[#allocation159_spill] sm:$0xff] }
 0x529   :  { %17116 = vmatprep.subr.bf16.mxu0 %v24580_v25 }
 0x52a   :  { %v14161_v0 = vpop.f32.mrb[16].mxu0 }
 0x52b   :  { %17506 = vmatpush3.bf16.msra.mxu1 %v25005_v55  ;;  %v14162_v58 = vpop.f32.mrb[17].mxu0  ;;  %v25009_v55 = vld [vmem:[#allocation150_spill] sm:$0xff] }
 0x52c   :  { %17508 = vmatprep.subr.bf16.mxu1 %v25006_v60  ;;  %v14163_v20 = vadd.f32 %v14162_v58, %v14161_v0  ;;  %17118 = vmatpush1.bf16.msra.mxu0 %v24982_v35  ;;  %v25010_v60 = vld [vmem:[#allocation155_spill] sm:$0xff]  ;;  %v25011_v58 = vld [vmem:[#allocation157_spill] sm:$0xff]  ;;  %v25012_v0 = vld [vmem:[#allocation156_spill] sm:$0xff] }
 0x52d   :  { %17120 = vmatprep.subr.bf16.mxu0 %v24983_v28 }
 0x52f   :  { %17510 = vmatpush3.bf16.msra.mxu1 %v25007_v59  ;;  %v25013_v59 = vld [vmem:[#allocation17_spill] sm:$0xff] }
 0x530   :  { %17512 = vmatprep.subr.bf16.mxu1 %v25008_v3  ;;  %17122 = vmatpush1.bf16.msra.mxu0 %v24985_v13  ;;  %v25014_v3 = vld [vmem:[#allocation16_spill] sm:$0xff] }
 0x531   :  { %17124 = vmatprep.subr.bf16.mxu0 %v24986_v49 }
 0x532   :  { %10390 = vmatmul.mubr.f32.vlgmr.msra.gmra.mrb[30].mxu1 %v24907_v6 }
 0x533   :  { %17514 = vmatpush3.bf16.msra.mxu1 %v25009_v55  ;;  %10525 = vmatprep.mubr.f32.mxu1 %v21749_v31  ;;  %v25016_v55 = vld [vmem:[#allocation158_spill] sm:$0xff] }
 0x534   :  { %17516 = vmatprep.subr.bf16.mxu1 %v25010_v60  ;;  %17126 = vmatpush1.bf16.msra.mxu0 %v24987_v38  ;;  %v25018_v60 = vld [vmem:[#allocation24_spill] sm:$0xff]  ;;  %v25019_v38 = vld [vmem:[#allocation27_spill] sm:$0xff] }
 0x535   :  { %17128 = vmatprep.subr.bf16.mxu0 %v25012_v0  ;;  %v25021_v0 = vld [vmem:[#allocation31_spill] sm:$0xff] }
 0x537   :  { %17518 = vmatpush3.bf16.msra.mxu1 %v25011_v58  ;;  %8906 = vmatmul.mubr.f32.vlgmr.msra.gmra.mrb[28].mxu0 %v24991_v32  ;;  %v25020_v58 = vld [vmem:[#allocation160_spill] sm:$0xff]  ;;  %v25023_v32 = vld [vmem:[#allocation35_spill] sm:$0xff] }
 0x538   :  { %17520 = vmatprep.subr.bf16.mxu1 %v25013_v59  ;;  %17130 = vmatpush1.bf16.msra.mxu0 %v25014_v3  ;;  %v25022_v59 = vld [vmem:[#allocation28_spill] sm:$0xff]  ;;  %v25024_v3 = vld [vmem:[#allocation33_spill] sm:$0xff] }
 0x539   :  { %17132 = vmatprep.subr.bf16.mxu0 %v25016_v55  ;;  %9297 = vmatprep.mubr.f32.mxu0 %v21742_v52  ;;  %v25026_v55 = vld [vmem:[#allocation161_spill] sm:$0xff] }
 0x53b   :  { %17522 = vmatpush3.bf16.msra.mxu1 %v25015_v57  ;;  %v25025_v57 = vld [vmem:[#allocation40_spill] sm:$0xff] }
 0x53c   :  { %17524 = vmatprep.subr.bf16.mxu1 %v25017_v27  ;;  %17134 = vmatpush1.bf16.msra.mxu0 %v25018_v60  ;;  %v25027_v27 = vld [vmem:[#allocation162_spill] sm:$0xff] }
 0x53d   :  { %17136 = vmatprep.subr.bf16.mxu0 %v25020_v58 }
 0x53f   :  { %17526 = vmatpush3.bf16.msra.mxu1 %v25019_v38  ;;  %v25028_v38 = vld [vmem:[#allocation164_spill] sm:$0xff] }
 0x540   :  { %17528 = vmatprep.subr.bf16.mxu1 %v25021_v0  ;;  %17138 = vmatpush1.bf16.msra.mxu0 %v25022_v59  ;;  %v25029_v0 = vld [vmem:[#allocation166_spill] sm:$0xff] }
 0x541   :  { %17140 = vmatprep.subr.bf16.mxu0 %v25024_v3 }
 0x543   :  { %17530 = vmatpush3.bf16.msra.mxu1 %v25023_v32 }
 0x544   :  { %17532 = vmatprep.subr.bf16.mxu1 %v25025_v57  ;;  %17142 = vmatpush1.bf16.msra.mxu0 %v25026_v55  ;;  %v25030_v57 = vld [vmem:[#allocation168_spill] sm:$0xff] }
 0x545   :  { %17144 = vmatprep.subr.bf16.mxu0 %v25027_v27  ;;  %v25032_v27 = vld [vmem:[#allocation97_spill] sm:$0xff] }
 0x547   :  { %17534 = vmatpush3.bf16.msra.mxu1 %v24948_v33  ;;  %v25031_v33 = vld [vmem:[#allocation170_spill] sm:$0xff] }
 0x548   :  { %17536 = vmatprep.subr.bf16.mxu1 %v24950_v2  ;;  %17146 = vmatpush1.bf16.msra.mxu0 %v25028_v38  ;;  %v25033_v38 = vld [vmem:[#allocation172_spill] sm:$0xff] }
 0x549   :  { %17148 = vmatprep.subr.bf16.mxu0 %v25029_v0 }
 0x54a   :  { %v14196_v32 = vpop.f32.mrb[18].mxu0 }
 0x54b   :  { %17538 = vmatpush3.bf16.msra.mxu1 %v24952_v30  ;;  %v14197_v3 = vpop.f32.mrb[19].mxu0  ;;  %v25034_v30 = vld [vmem:[#allocation173_spill] sm:$0xff] }
 0x54c   :  { %17540 = vmatprep.subr.bf16.mxu1 %v24954_v62  ;;  %v14198_v59 = vadd.f32 %v14197_v3, %v14196_v32  ;;  %17150 = vmatpush1.bf16.msra.mxu0 %v25030_v57  ;;  %v25035_v3 = vld [vmem:[#allocation174_spill] sm:$0xff] }
 0x54d   :  { %17152 = vmatprep.subr.bf16.mxu0 %v25031_v33  ;;  %v25036_v32 = vld [vmem:[#allocation178_spill] sm:$0xff] }
 0x54e   :  { %v8236_v2 = vadd.f32 %v14198_v59, %v14163_v20  ;;  %v25037_v20 = vld [vmem:[#allocation179_spill] sm:$0xff]  ;;  %v25038_v59 = vld [vmem:[#allocation180_spill] sm:$0xff]  ;;  %v25040_v62 = vld [vmem:[#allocation182_spill] sm:$0xff] }
 0x54f   :  { %17542 = vmatpush3.bf16.msra.mxu1 %v24956_v10  ;;  %v25039_v10 = vld [vmem:[#allocation181_spill] sm:$0xff] }
 0x550   :  { %17544 = vmatprep.subr.bf16.mxu1 %v24885_v61  ;;  %17154 = vmatpush1.bf16.msra.mxu0 %v25033_v38  ;;  %v25047_v38 = vld [vmem:[#allocation191_spill] sm:$0xff] }
 0x551   :  { %17156 = vmatprep.subr.bf16.mxu0 %v25034_v30 }
 0x552   :  { %10528 = vmatmul.mubr.f32.vlgmr.msra.gmra.mrb[32].mxu1 %v25032_v27 }
 0x553   :  { %17546 = vmatpush3.bf16.msra.mxu1 %v24886_v56  ;;  %10632 = vmatprep.mubr.f32.mxu1 %v21756_v44 }
 0x554   :  { %17548 = vmatprep.subr.bf16.mxu1 %v24887_v54  ;;  %17158 = vmatpush1.bf16.msra.mxu0 %v25035_v3  ;;  %v25041_v3 = vld [vmem:[#allocation183_spill] sm:$0xff] }
 0x555   :  { %17160 = vmatprep.subr.bf16.mxu0 %v25036_v32  ;;  %v25042_v32 = vld [vmem:[#allocation184_spill] sm:$0xff] }
 0x557   :  { %17550 = vmatpush3.bf16.msra.mxu1 %v24889_v23 }
 0x558   :  { %17552 = vmatprep.subr.bf16.mxu1 %v24890_v11  ;;  %17162 = vmatpush1.bf16.msra.mxu0 %v25037_v20  ;;  %v25043_v20 = vld [vmem:[#allocation185_spill] sm:$0xff] }
 0x559   :  { %17164 = vmatprep.subr.bf16.mxu0 %v25038_v59  ;;  %v25044_v59 = vld [vmem:[#allocation186_spill] sm:$0xff] }
 0x55b   :  { %17554 = vmatpush3.bf16.msra.mxu1 %v24891_v47 }
 0x55c   :  { %17556 = vmatprep.subr.bf16.mxu1 %v24892_v8  ;;  %17166 = vmatpush1.bf16.msra.mxu0 %v25039_v10  ;;  %v25045_v10 = vld [vmem:[#allocation187_spill] sm:$0xff] }
 0x55d   :  { %17168 = vmatprep.subr.bf16.mxu0 %v25040_v62  ;;  %v25046_v62 = vld [vmem:[#allocation189_spill] sm:$0xff] }
 0x55f   :  { %17558 = vmatpush3.bf16.msra.mxu1 %v24893_v36 }
 0x560   :  { %17560 = vmatprep.subr.bf16.mxu1 %v24894_v5  ;;  %17170 = vmatpush1.bf16.msra.mxu0 %v25041_v3 }
 0x561   :  { %17172 = vmatprep.subr.bf16.mxu0 %v25042_v32 }
 0x563   :  { %17562 = vmatpush3.bf16.msra.mxu1 %v24896_v45 }
 0x564   :  { %17564 = vmatprep.subr.bf16.mxu1 %v24897_v46  ;;  %17174 = vmatpush1.bf16.msra.mxu0 %v25043_v20  ;;  %v25048_v20 = vld [vmem:[#allocation79_spill] sm:$0xff] }
 0x565   :  { %17176 = vmatprep.subr.bf16.mxu0 %v25044_v59 }
 0x567   :  { %17566 = vmatpush3.bf16.msra.mxu1 %v24898_v42 }
 0x568   :  { %17568 = vmatprep.subr.bf16.mxu1 %v24899_v18  ;;  %17178 = vmatpush1.bf16.msra.mxu0 %v25045_v10  ;;  %v25049_v10 = vld [vmem:[#allocation195_spill] sm:$0xff] }
 0x569   :  { %17180 = vmatprep.subr.bf16.mxu0 %v25046_v62  ;;  %v25050_v62 = vld [vmem:[#allocation197_spill] sm:$0xff] }
 0x56a   :  { %v14231_v3 = vpop.f32.mrb[20].mxu0 }
 0x56b   :  { %17570 = vmatpush3.bf16.msra.mxu1 %v24900_v24  ;;  %v14232_v32 = vpop.f32.mrb[21].mxu0 }
 0x56c   :  { %17572 = vmatprep.subr.bf16.mxu1 %v24901_v63  ;;  %v14233_v30 = vadd.f32 %v14232_v32, %v14231_v3  ;;  %17182 = vmatpush1.bf16.msra.mxu0 %v25047_v38  ;;  %v25051_v3 = vld [vmem:[#allocation202_spill] sm:$0xff]  ;;  %v25052_v32 = vld [vmem:[#allocation199_spill] sm:$0xff] }
 0x56d   :  { %17184 = vmatprep.subr.bf16.mxu0 %v25048_v20  ;;  %v25053_v20 = vld [vmem:[#allocation146_spill] sm:$0xff] }
 0x56e   :  { %v8374_v59 = vadd.f32 %v14233_v30, %v8236_v2  ;;  %v25055_v30 = vld [vmem:[#allocation148_spill] sm:$0xff] }
 0x56f   :  { %17574 = vmatpush3.bf16.msra.mxu1 %v24902_v1  ;;  %v25056_v2 = vld [vmem:[#allocation204_spill] sm:$0xff] }
 0x570   :  { %17576 = vmatprep.subr.bf16.mxu1 %v24961_v9  ;;  %17186 = vmatpush1.bf16.msra.mxu0 %v25049_v10  ;;  %v25054_v9 = vld [vmem:[#allocation200_spill] sm:$0xff]  ;;  %v25064_v10 = vld [vmem:[#allocation22_spill] sm:$0xff] }
 0x571   :  { %17188 = vmatprep.subr.bf16.mxu0 %v25050_v62  ;;  %v25058_v62 = vld [vmem:[#allocation14_spill] sm:$0xff] }
 0x572   :  { %10636 = vmatmul.mubr.f32.vlgmr.msra.gmra.mrb[34].mxu1 %v24884_v40 }
 0x573   :  { %17578 = vmatpush3.bf16.msra.mxu1 %v24962_v7  ;;  %10802 = vmatprep.mubr.f32.mxu1 %v21742_v52  ;;  %v25057_v7 = vld [vmem:[#allocation149_spill] sm:$0xff] }
 0x574   :  { %17580 = vmatprep.subr.bf16.mxu1 %v24963_v26  ;;  %17190 = vmatpush1.bf16.msra.mxu0 %v25051_v3  ;;  %v25059_v26 = vld [vmem:[#allocation13_spill] sm:$0xff] }
 0x575   :  { %17192 = vmatprep.subr.bf16.mxu0 %v25053_v20  ;;  %v25060_v3 = vld [vmem:[#allocation101_spill] sm:$0xff]  ;;  %v25062_v20 = vld [vmem:[#allocation75_spill] sm:$0xff] }
 0x577   :  { %17582 = vmatpush3.bf16.msra.mxu1 %v25052_v32  ;;  %9299 = vmatmul.mubr.f32.vlgmr.msra.gmra.mrb[28].mxu0 %v24907_v6  ;;  %v25061_v32 = vld [vmem:[#allocation208_spill] sm:$0xff] }
 0x578   :  { %17584 = vmatprep.subr.bf16.mxu1 %v25054_v9  ;;  %17194 = vmatpush1.bf16.msra.mxu0 %v25055_v30  ;;  %v25063_v9 = vld [vmem:[#allocation19_spill] sm:$0xff]  ;;  %v25065_v30 = vld [vmem:[#allocation201_spill] sm:$0xff] }
 0x579   :  { %17196 = vmatprep.subr.bf16.mxu0 %v25057_v7  ;;  %9499 = vmatprep.mubr.f32.mxu0 %v21749_v31  ;;  %v25067_v7 = vld [vmem:[#allocation203_spill] sm:$0xff]  ;;  %v25069_v31 = vld [vmem:[#allocation152_spill] sm:$0xff] }
 0x57b   :  { %17586 = vmatpush3.bf16.msra.mxu1 %v25056_v2  ;;  %v25066_v2 = vld [vmem:[#allocation111_spill] sm:$0xff] }
 0x57c   :  { %17588 = vmatprep.subr.bf16.mxu1 %v25058_v62  ;;  %17198 = vmatpush1.bf16.msra.mxu0 %v25059_v26  ;;  %v25068_v62 = vld [vmem:[#allocation112_spill] sm:$0xff]  ;;  %v25070_v26 = vld [vmem:[#allocation118_spill] sm:$0xff] }
 0x57d   :  { %17200 = vmatprep.subr.bf16.mxu0 %v25061_v32  ;;  %v25072_v32 = vld [vmem:[#allocation119_spill] sm:$0xff] }
 0x57f   :  { %17590 = vmatpush3.bf16.msra.mxu1 %v25060_v3  ;;  %v25071_v3 = vld [vmem:[#allocation153_spill] sm:$0xff] }
 0x580   :  { %17592 = vmatprep.subr.bf16.mxu1 %v25062_v20  ;;  %17202 = vmatpush1.bf16.msra.mxu0 %v25063_v9  ;;  %v25073_v20 = vld [vmem:[#allocation205_spill] sm:$0xff] }
 0x581   :  { %17204 = vmatprep.subr.bf16.mxu0 %v25065_v30  ;;  %v25074_v9 = vld [vmem:[#allocation125_spill] sm:$0xff] }
 0x583   :  { %17594 = vmatpush3.bf16.msra.mxu1 %v25064_v10 }
 0x584   :  { %17596 = vmatprep.subr.bf16.mxu1 %v25066_v2  ;;  %17206 = vmatpush1.bf16.msra.mxu0 %v25067_v7  ;;  %v25075_v2 = vld [vmem:[#allocation206_spill] sm:$0xff] }
 0x585   :  { %17208 = vmatprep.subr.bf16.mxu0 %v25069_v31  ;;  %v25076_v7 = vld [vmem:[#allocation126_spill] sm:$0xff] }
 0x587   :  { %17598 = vmatpush3.bf16.msra.mxu1 %v25068_v62  ;;  %v25077_v62 = vld [vmem:[#allocation207_spill] sm:$0xff] }
 0x588   :  { %17600 = vmatprep.subr.bf16.mxu1 %v25070_v26  ;;  %17210 = vmatpush1.bf16.msra.mxu0 %v25071_v3  ;;  %v25078_v3 = vld [vmem:[#allocation102_spill] sm:$0xff] }
 0x589   :  { %17212 = vmatprep.subr.bf16.mxu0 %v25073_v20 }
 0x58a   :  { %v14266_v10 = vpop.f32.mrb[22].mxu0 }
 0x58b   :  { %17602 = vmatpush3.bf16.msra.mxu1 %v25072_v32  ;;  %v14267_v30 = vpop.f32.mrb[23].mxu0  ;;  %v25079_v32 = vld [vmem:[#allocation209_spill] sm:$0xff] }
 0x58c   :  { %17604 = vmatprep.subr.bf16.mxu1 %v25074_v9  ;;  %v14268_v38 = vadd.f32 %v14267_v30, %v14266_v10  ;;  %17214 = vmatpush1.bf16.msra.mxu0 %v25075_v2  ;;  %v25080_v10 = vld [vmem:[#allocation106_spill] sm:$0xff]  ;;  %v25081_v30 = vld [vmem:[#allocation108_spill] sm:$0xff] }
 0x58d   :  { %17216 = vmatprep.subr.bf16.mxu0 %v25077_v62  ;;  %v25084_v9 = vld [vmem:[#allocation212_spill] sm:$0xff] }
 0x58e   :  { %v8482_v26 = vadd.f32 %v14268_v38, %v8374_v59  ;;  %v25082_v38 = vld [vmem:[#allocation210_spill] sm:$0xff]  ;;  %v25083_v59 = vld [vmem:[#allocation211_spill] sm:$0xff] }
 0x58f   :  { %17606 = vmatpush3.bf16.msra.mxu1 %v25076_v7  ;;  %v10922_v7 = vld [vmem:[#allocation4 + $0x30] sm:$0xff] }
 0x590   :  { %17608 = vmatprep.subr.bf16.mxu1 %v24885_v61  ;;  %17218 = vmatpush1.bf16.msra.mxu0 %v25078_v3  ;;  %v25092_v61 = vld [vmem:[#allocation218_spill] sm:$0xff] }
 0x591   :  { %17220 = vmatprep.subr.bf16.mxu0 %v25079_v32 }
 0x592   :  { %10804 = vmatmul.mubr.f32.vlgmr.msra.gmra.mrb[36].mxu1 %v24907_v6 }
 0x593   :  { %17610 = vmatpush3.bf16.msra.mxu1 %v24886_v56  ;;  %10906 = vmatprep.mubr.f32.mxu1 %v21742_v52  ;;  %v25089_v56 = vld [vmem:[#allocation216_spill] sm:$0xff] }
 0x594   :  { %17612 = vmatprep.subr.bf16.mxu1 %v24887_v54  ;;  %17222 = vmatpush1.bf16.msra.mxu0 %v25080_v10  ;;  %v25085_v54 = vld [vmem:[#allocation213_spill] sm:$0xff] }
 0x595   :  { %17224 = vmatprep.subr.bf16.mxu0 %v25081_v30 }
 0x597   :  { %17614 = vmatpush3.bf16.msra.mxu1 %v24889_v23  ;;  %v21967_v23 = vand.u32 4294901760, %v10922_v7 }
 0x598   :  { %17616 = vmatprep.subr.bf16.mxu1 %v24890_v11  ;;  %17226 = vmatpush1.bf16.msra.mxu0 %v25082_v38  ;;  %v25087_v11 = vld [vmem:[#allocation214_spill] sm:$0xff] }
 0x599   :  { %17228 = vmatprep.subr.bf16.mxu0 %v25083_v59  ;;  %25086 = vst [vmem:[#allocation122_spill] sm:$0xff] %v21967_v23 }
 0x59b   :  { %17618 = vmatpush3.bf16.msra.mxu1 %v24891_v47  ;;  %v25088_v47 = vld [vmem:[#allocation215_spill] sm:$0xff] }
 0x59c   :  { %17620 = vmatprep.subr.bf16.mxu1 %v24892_v8  ;;  %17230 = vmatpush1.bf16.msra.mxu0 %v25084_v9  ;;  %v21974_v8 = vsub.f32 %v10922_v7, %v21967_v23 }
 0x59d   :  { %17232 = vmatprep.subr.bf16.mxu0 %v25085_v54 }
 0x59f   :  { %17622 = vmatpush3.bf16.msra.mxu1 %v24893_v36  ;;  %v25090_v36 = vld [vmem:[#allocation217_spill] sm:$0xff] }
 0x5a0   :  { %17624 = vmatprep.subr.bf16.mxu1 %v24894_v5  ;;  %17234 = vmatpush1.bf16.msra.mxu0 %v25087_v11  ;;  %v21981_v5 = vand.u32 4294901760, %v21974_v8 }
 0x5a1   :  { %17236 = vmatprep.subr.bf16.mxu0 %v25088_v47 }
 0x5a2   :  { %25091 = vst [vmem:[#allocation127_spill] sm:$0xff] %v21981_v5 }
 0x5a3   :  { %17626 = vmatpush3.bf16.msra.mxu1 %v24896_v45  ;;  %v25093_v45 = vld [vmem:[#allocation219_spill] sm:$0xff] }
 0x5a4   :  { %17628 = vmatprep.subr.bf16.mxu1 %v24897_v46  ;;  %17238 = vmatpush1.bf16.msra.mxu0 %v25089_v56  ;;  %v11054_v46 = vsub.f32 %v21974_v8, %v21981_v5  ;;  %v25098_v5 = vld [vmem:[#allocation222_spill] sm:$0xff] }
 0x5a5   :  { %17240 = vmatprep.subr.bf16.mxu0 %v25090_v36  ;;  %v25094_v36 = vld [vmem:[#allocation220_spill] sm:$0xff] }
 0x5a7   :  { %17630 = vmatpush3.bf16.msra.mxu1 %v24898_v42 }
 0x5a8   :  { %17632 = vmatprep.subr.bf16.mxu1 %v24899_v18  ;;  %17242 = vmatpush1.bf16.msra.mxu0 %v25092_v61  ;;  %v25095_v18 = vld [vmem:[#allocation74_spill] sm:$0xff] }
 0x5a9   :  { %17244 = vmatprep.subr.bf16.mxu0 %v25093_v45 }
 0x5aa   :  { %v14301_v7 = vpop.f32.mrb[24].mxu0 }
 0x5ab   :  { %17634 = vmatpush3.bf16.msra.mxu1 %v24900_v24  ;;  %v14302_v42 = vpop.f32.mrb[25].mxu0  ;;  %v21993_v24 = vand.u32 4294901760, %v11054_v46  ;;  %v25100_v46 = vld [vmem:[#allocation26_spill] sm:$0xff] }
 0x5ac   :  { %17636 = vmatprep.subr.bf16.mxu1 %v24901_v63  ;;  %v14303_v56 = vadd.f32 %v14302_v42, %v14301_v7  ;;  %17246 = vmatpush1.bf16.msra.mxu0 %v25094_v36  ;;  %v25097_v63 = vld [vmem:[#allocation221_spill] sm:$0xff]  ;;  %v25099_v42 = vld [vmem:[#allocation223_spill] sm:$0xff]  ;;  %v25103_v7 = vld [vmem:[#allocation38_spill] sm:$0xff] }
 0x5ad   :  { %17248 = vmatprep.subr.bf16.mxu0 %v25095_v18  ;;  %25096 = vst [vmem:[#allocation129_spill] sm:$0xff] %v21993_v24 }
 0x5ae   :  { %v8650_v61 = vadd.f32 %v14303_v56, %v8482_v26  ;;  %v25101_v26 = vld [vmem:[#allocation30_spill] sm:$0xff] }
 0x5af   :  { %17638 = vmatpush3.bf16.msra.mxu1 %v24902_v1  ;;  %v25102_v56 = vld [vmem:[#allocation34_spill] sm:$0xff]  ;;  %v25104_v1 = vld [vmem:[#allocation43_spill] sm:$0xff] }
 0x5b0   :  { %17640 = vmatprep.subr.bf16.mxu1 %v24340_v51  ;;  %17250 = vmatpush1.bf16.msra.mxu0 %v25097_v63 }
 0x5b1   :  { %17252 = vmatprep.subr.bf16.mxu0 %v25098_v5 }
 0x5b2   :  { %10908 = vmatmul.mubr.f32.vlgmr.msra.gmra.mrb[38].mxu1 %v24907_v6 }
 0x5b3   :  { %17642 = vmatpush1.bf16.msra.mxu1 %v24342_v22  ;;  %11056 = vmatprep.mubr.f32.mxu1 %v21993_v24  ;;  %v25106_v24 = vld [vmem:[#allocation52_spill] sm:$0xff] }
 0x5b4   :  { %17644 = vmatprep.subr.bf16.mxu1 %v24652_v19  ;;  %17254 = vmatpush1.bf16.msra.mxu0 %v25099_v42 }
 0x5b5   :  { %17256 = vmatprep.subr.bf16.mxu0 %v24340_v51 }
 0x5b7   :  { %17646 = vmatpush1.bf16.msra.mxu1 %v24653_v17  ;;  %9502 = vmatmul.mubr.f32.vlgmr.msra.gmra.mrb[28].mxu0 %v25032_v27  ;;  %v25105_v27 = vld [vmem:[#allocation46_spill] sm:$0xff] }
 0x5b8   :  { %17648 = vmatprep.subr.bf16.mxu1 %v25100_v46  ;;  %17258 = vmatpush1.bf16.msra.mxu0 %v24342_v22 }
 0x5b9   :  { %17260 = vmatprep.subr.bf16.mxu0 %v24652_v19  ;;  %9639 = vmatprep.mubr.f32.mxu0 %v21756_v44 }
 0x5bb   :  { %17650 = vmatpush1.bf16.msra.mxu1 %v25101_v26 }
 0x5bc   :  { %17652 = vmatprep.subr.bf16.mxu1 %v25102_v56  ;;  %17262 = vmatpush1.bf16.msra.mxu0 %v24653_v17 }
 0x5bd   :  { %17264 = vmatprep.subr.bf16.mxu0 %v25100_v46 }
 0x5bf   :  { %17654 = vmatpush1.bf16.msra.mxu1 %v25103_v7 }
 0x5c0   :  { %17656 = vmatprep.subr.bf16.mxu1 %v25104_v1  ;;  %17266 = vmatpush1.bf16.msra.mxu0 %v25101_v26 }
 0x5c1   :  { %17268 = vmatprep.subr.bf16.mxu0 %v25102_v56 }
 0x5c3   :  { %17658 = vmatpush1.bf16.msra.mxu1 %v25105_v27 }
 0x5c4   :  { %17660 = vmatprep.subr.bf16.mxu1 %v25106_v24  ;;  %17270 = vmatpush1.bf16.msra.mxu0 %v25103_v7 }
 0x5c5   :  { %v7890_v42 = vpop.f32.mrb[26].mxu1  ;;  %17272 = vmatprep.subr.bf16.mxu0 %v25104_v1 }
 0x5c6   :  { %v7892_v5 = vpop.f32.mrb[27].mxu1 }
 0x5c7   :  { %v8758_v44 = vrot.slane %v7892_v5, 1  ;;  %17662 = vmatpush1.bf16.msra.mxu1 %v24354_v14 }
 0x5c8   :  { %17664 = vmatprep.subr.bf16.mxu1 %v24355_v34  ;;  %17274 = vmatpush1.bf16.msra.mxu0 %v25105_v27 }
 0x5c9   :  { %v8760_v63 = vadd.f32 %v8758_v44, %v7890_v42  ;;  %17276 = vmatprep.subr.bf16.mxu0 %v25106_v24 }
 0x5ca   :  { %v14336_v18 = vpop.f32.mrb[26].mxu0 }
 0x5cb   :  { %17666 = vmatpush1.bf16.msra.mxu1 %v24555_v12  ;;  %v14337_v36 = vpop.f32.mrb[27].mxu0 }
 0x5cc   :  { %17668 = vmatprep.subr.bf16.mxu1 %v24672_v15  ;;  %v14338_v45 = vadd.f32 %v14337_v36, %v14336_v18  ;;  %17278 = vmatpush1.bf16.msra.mxu0 %v24354_v14  ;;  %v25108_v18 = vld [vmem:[#allocation142_spill] sm:$0xff] }
 0x5cd   :  { %17280 = vmatprep.subr.bf16.mxu0 %v24355_v34 }
 0x5ce   :  { %v8754_v44 = vadd.f32 %v14338_v45, %v8650_v61 }
 0x5cf   :  { %17670 = vmatpush1.bf16.msra.mxu1 %v24674_v50 }
 0x5d0   :  { %17672 = vmatprep.subr.bf16.mxu1 %v24974_v21  ;;  %v8762_v5 = vrot.slane %v8754_v44, 2  ;;  %17282 = vmatpush1.bf16.msra.mxu0 %v24555_v12  ;;  %v25110_v44 = vld [vmem:[#allocation116_spill] sm:$0xff] }
 0x5d1   :  { %17284 = vmatprep.subr.bf16.mxu0 %v24672_v15 }
 0x5d2   :  { %v22035_v42 = vadd.f32 %v8762_v5, %v8760_v63  ;;  %v25109_v63 = vld [vmem:[#allocation156_spill] sm:$0xff] }
 0x5d3   :  { %17674 = vmatpush1.bf16.msra.mxu1 %v24976_v16  ;;  %v25111_v5 = vld [vmem:[#allocation16_spill] sm:$0xff] }
 0x5d4   :  { %17676 = vmatprep.subr.bf16.mxu1 %v24978_v43  ;;  %25107 = vst [vmem:[#allocation188_spill] sm:$0xff] %v22035_v42  ;;  %17286 = vmatpush1.bf16.msra.mxu0 %v24674_v50  ;;  %v25115_v42 = vld [vmem:[#allocation28_spill] sm:$0xff] }
 0x5d5   :  { %17288 = vmatprep.subr.bf16.mxu0 %v24974_v21 }
 0x5d7   :  { %17678 = vmatpush1.bf16.msra.mxu1 %v24980_v53 }
 0x5d8   :  { %17680 = vmatprep.subr.bf16.mxu1 %v24569_v39  ;;  %17290 = vmatpush1.bf16.msra.mxu0 %v24976_v16 }
 0x5d9   :  { %17292 = vmatprep.subr.bf16.mxu0 %v24978_v43 }
 0x5db   :  { %17682 = vmatpush1.bf16.msra.mxu1 %v24571_v4 }
 0x5dc   :  { %17684 = vmatprep.subr.bf16.mxu1 %v24573_v48  ;;  %17294 = vmatpush1.bf16.msra.mxu0 %v24980_v53 }
 0x5dd   :  { %17296 = vmatprep.subr.bf16.mxu0 %v24569_v39 }
 0x5df   :  { %17686 = vmatpush1.bf16.msra.mxu1 %v24575_v41 }
 0x5e0   :  { %17688 = vmatprep.subr.bf16.mxu1 %v24577_v29  ;;  %17298 = vmatpush1.bf16.msra.mxu0 %v24571_v4 }
 0x5e1   :  { %17300 = vmatprep.subr.bf16.mxu0 %v24573_v48 }
 0x5e3   :  { %17690 = vmatpush1.bf16.msra.mxu1 %v24369_v37 }
 0x5e4   :  { %17692 = vmatprep.subr.bf16.mxu1 %v24580_v25  ;;  %17302 = vmatpush1.bf16.msra.mxu0 %v24575_v41 }
 0x5e5   :  { %v14371_v45 = vpop.f32.mrb[28].mxu1  ;;  %17304 = vmatprep.subr.bf16.mxu0 %v24577_v29 }
 0x5e6   :  { %v14372_v36 = vpop.f32.mrb[29].mxu1 }
 0x5e7   :  { %17694 = vmatpush1.bf16.msra.mxu1 %v24982_v35  ;;  %v14373_v61 = vadd.f32 %v14372_v36, %v14371_v45  ;;  %v25112_v45 = vld [vmem:[#allocation158_spill] sm:$0xff]  ;;  %v25113_v36 = vld [vmem:[#allocation143_spill] sm:$0xff] }
 0x5e8   :  { %17696 = vmatprep.subr.bf16.mxu1 %v24983_v28  ;;  %17306 = vmatpush1.bf16.msra.mxu0 %v24369_v37 }
 0x5e9   :  { %17308 = vmatprep.subr.bf16.mxu0 %v24580_v25 }
 0x5eb   :  { %17698 = vmatpush1.bf16.msra.mxu1 %v24985_v13 }
 0x5ec   :  { %17700 = vmatprep.subr.bf16.mxu1 %v24986_v49  ;;  %17310 = vmatpush1.bf16.msra.mxu0 %v24982_v35 }
 0x5ed   :  { %17312 = vmatprep.subr.bf16.mxu0 %v24983_v28 }
 0x5ef   :  { %17702 = vmatpush1.bf16.msra.mxu1 %v25108_v18 }
 0x5f0   :  { %17704 = vmatprep.subr.bf16.mxu1 %v25109_v63  ;;  %17314 = vmatpush1.bf16.msra.mxu0 %v24985_v13  ;;  %v25114_v63 = vld [vmem:[#allocation144_spill] sm:$0xff] }
 0x5f1   :  { %17316 = vmatprep.subr.bf16.mxu0 %v24986_v49 }
 0x5f2   :  { %11062 = vmatmul.mubr.f32.vlgmr.msra.gmra.mrb[40].mxu1 %v25110_v44  ;;  %v25117_v44 = vld [vmem:[#allocation33_spill] sm:$0xff] }
 0x5f3   :  { %17706 = vmatpush1.bf16.msra.mxu1 %v25111_v5  ;;  %11453 = vmatprep.mubr.f32.mxu1 %v21967_v23  ;;  %v25116_v5 = vld [vmem:[#allocation10_spill] sm:$0xff] }
 0x5f4   :  { %17708 = vmatprep.subr.bf16.mxu1 %v25112_v45  ;;  %17318 = vmatpush1.bf16.msra.mxu0 %v25108_v18  ;;  %v25118_v45 = vld [vmem:[#allocation12_spill] sm:$0xff] }
 0x5f5   :  { %17320 = vmatprep.subr.bf16.mxu0 %v25113_v36  ;;  %v25120_v36 = vld [vmem:[#allocation162_spill] sm:$0xff] }
 0x5f7   :  { %17710 = vmatpush1.bf16.msra.mxu1 %v25018_v60  ;;  %9643 = vmatmul.mubr.f32.vlgmr.msra.gmra.mrb[28].mxu0 %v24884_v40  ;;  %v25119_v60 = vld [vmem:[#allocation78_spill] sm:$0xff]  ;;  %v25122_v40 = vld [vmem:[#allocation164_spill] sm:$0xff] }
 0x5f8   :  { %17712 = vmatprep.subr.bf16.mxu1 %v25020_v58  ;;  %17322 = vmatpush1.bf16.msra.mxu0 %v25114_v63  ;;  %v25121_v58 = vld [vmem:[#allocation76_spill] sm:$0xff]  ;;  %v25123_v63 = vld [vmem:[#allocation55_spill] sm:$0xff] }
 0x5f9   :  { %17324 = vmatprep.subr.bf16.mxu0 %v25116_v5  ;;  %9906 = vmatprep.mubr.f32.mxu0 %v21742_v52  ;;  %v25124_v5 = vld [vmem:[#allocation60_spill] sm:$0xff] }
 0x5fb   :  { %17714 = vmatpush1.bf16.msra.mxu1 %v25115_v42 }
 0x5fc   :  { %17716 = vmatprep.subr.bf16.mxu1 %v25117_v44  ;;  %17326 = vmatpush1.bf16.msra.mxu0 %v25118_v45  ;;  %v25131_v45 = vld [vmem:[#allocation174_spill] sm:$0xff] }
 0x5fd   :  { %17328 = vmatprep.subr.bf16.mxu0 %v25119_v60  ;;  %v25126_v60 = vld [vmem:[#allocation224_spill] sm:$0xff] }
 0x5ff   :  { %17718 = vmatpush1.bf16.msra.mxu1 %v25026_v55  ;;  %v25125_v55 = vld [vmem:[#allocation114_spill] sm:$0xff] }
 0x600   :  { %17720 = vmatprep.subr.bf16.mxu1 %v25120_v36  ;;  %17330 = vmatpush1.bf16.msra.mxu0 %v25121_v58  ;;  %v25127_v58 = vld [vmem:[#allocation172_spill] sm:$0xff] }
 0x601   :  { %17332 = vmatprep.subr.bf16.mxu0 %v25123_v63  ;;  %v25129_v63 = vld [vmem:[#allocation173_spill] sm:$0xff] }
 0x603   :  { %17722 = vmatpush1.bf16.msra.mxu1 %v25122_v40  ;;  %v25128_v40 = vld [vmem:[#allocation36_spill] sm:$0xff] }
 0x604   :  { %17724 = vmatprep.subr.bf16.mxu1 %v25029_v0  ;;  %17334 = vmatpush1.bf16.msra.mxu0 %v25124_v5  ;;  %v25130_v0 = vld [vmem:[#allocation39_spill] sm:$0xff]  ;;  %v25163_v5 = vld [vmem:[#allocation202_spill] sm:$0xff] }
 0x605   :  { %v14406_v42 = vpop.f32.mrb[30].mxu1  ;;  %17336 = vmatprep.subr.bf16.mxu0 %v25125_v55  ;;  %v25158_v55 = vld [vmem:[#allocation68_spill] sm:$0xff] }
 0x606   :  { %v14407_v44 = vpop.f32.mrb[31].mxu1 }
 0x607   :  { %v14408_v23 = vadd.f32 %v14407_v44, %v14406_v42  ;;  %17726 = vmatpush1.bf16.msra.mxu1 %v25030_v57  ;;  %v25132_v42 = vld [vmem:[#allocation42_spill] sm:$0xff]  ;;  %v25134_v44 = vld [vmem:[#allocation44_spill] sm:$0xff] }
 0x608   :  { %17728 = vmatprep.subr.bf16.mxu1 %v25031_v33  ;;  %17338 = vmatpush1.bf16.msra.mxu0 %v25126_v60  ;;  %v25133_v57 = vld [vmem:[#allocation178_spill] sm:$0xff]  ;;  %v25135_v33 = vld [vmem:[#allocation179_spill] sm:$0xff]  ;;  %v25154_v60 = vld [vmem:[#allocation64_spill] sm:$0xff] }
 0x609   :  { %v10392_v36 = vadd.f32 %v14408_v23, %v14373_v61  ;;  %17340 = vmatprep.subr.bf16.mxu0 %v25128_v40  ;;  %v25136_v23 = vld [vmem:[#allocation47_spill] sm:$0xff]  ;;  %v25137_v61 = vld [vmem:[#allocation180_spill] sm:$0xff]  ;;  %v25139_v40 = vld [vmem:[#allocation181_spill] sm:$0xff] }
 0x60b   :  { %17730 = vmatpush1.bf16.msra.mxu1 %v25127_v58  ;;  %v25138_v58 = vld [vmem:[#allocation48_spill] sm:$0xff] }
 0x60c   :  { %17732 = vmatprep.subr.bf16.mxu1 %v25129_v63  ;;  %17342 = vmatpush1.bf16.msra.mxu0 %v25130_v0  ;;  %v25140_v63 = vld [vmem:[#allocation50_spill] sm:$0xff] }
 0x60d   :  { %17344 = vmatprep.subr.bf16.mxu0 %v25132_v42  ;;  %v25141_v0 = vld [vmem:[#allocation182_spill] sm:$0xff]  ;;  %v25143_v42 = vld [vmem:[#allocation183_spill] sm:$0xff] }
 0x60f   :  { %17734 = vmatpush1.bf16.msra.mxu1 %v25131_v45  ;;  %v25142_v45 = vld [vmem:[#allocation51_spill] sm:$0xff] }
 0x610   :  { %17736 = vmatprep.subr.bf16.mxu1 %v25133_v57  ;;  %17346 = vmatpush1.bf16.msra.mxu0 %v25134_v44  ;;  %v25144_v57 = vld [vmem:[#allocation53_spill] sm:$0xff]  ;;  %v25145_v44 = vld [vmem:[#allocation184_spill] sm:$0xff] }
 0x611   :  { %17348 = vmatprep.subr.bf16.mxu0 %v25136_v23  ;;  %v25147_v23 = vld [vmem:[#allocation185_spill] sm:$0xff] }
 0x613   :  { %17738 = vmatpush1.bf16.msra.mxu1 %v25135_v33  ;;  %v25146_v33 = vld [vmem:[#allocation56_spill] sm:$0xff] }
 0x614   :  { %17740 = vmatprep.subr.bf16.mxu1 %v25137_v61  ;;  %17350 = vmatpush1.bf16.msra.mxu0 %v25138_v58  ;;  %v25148_v61 = vld [vmem:[#allocation58_spill] sm:$0xff] }
 0x615   :  { %17352 = vmatprep.subr.bf16.mxu0 %v25140_v63  ;;  %v25149_v58 = vld [vmem:[#allocation186_spill] sm:$0xff]  ;;  %v25151_v63 = vld [vmem:[#allocation187_spill] sm:$0xff] }
 0x617   :  { %17742 = vmatpush1.bf16.msra.mxu1 %v25139_v40  ;;  %v25150_v40 = vld [vmem:[#allocation59_spill] sm:$0xff] }
 0x618   :  { %17744 = vmatprep.subr.bf16.mxu1 %v25141_v0  ;;  %17354 = vmatpush1.bf16.msra.mxu0 %v25142_v45  ;;  %v25152_v0 = vld [vmem:[#allocation61_spill] sm:$0xff] }
 0x619   :  { %17356 = vmatprep.subr.bf16.mxu0 %v25144_v57  ;;  %v25153_v45 = vld [vmem:[#allocation189_spill] sm:$0xff] }
 0x61b   :  { %17746 = vmatpush1.bf16.msra.mxu1 %v25143_v42 }
 0x61c   :  { %17748 = vmatprep.subr.bf16.mxu1 %v25145_v44  ;;  %17358 = vmatpush1.bf16.msra.mxu0 %v25146_v33  ;;  %v25155_v33 = vld [vmem:[#allocation191_spill] sm:$0xff] }
 0x61d   :  { %17360 = vmatprep.subr.bf16.mxu0 %v25148_v61  ;;  %v25157_v61 = vld [vmem:[#allocation79_spill] sm:$0xff] }
 0x61f   :  { %17750 = vmatpush1.bf16.msra.mxu1 %v25147_v23  ;;  %v25156_v23 = vld [vmem:[#allocation66_spill] sm:$0xff] }
 0x620   :  { %17752 = vmatprep.subr.bf16.mxu1 %v25149_v58  ;;  %17362 = vmatpush1.bf16.msra.mxu0 %v25150_v40  ;;  %v25159_v40 = vld [vmem:[#allocation195_spill] sm:$0xff] }
 0x621   :  { %17364 = vmatprep.subr.bf16.mxu0 %v25152_v0  ;;  %v25161_v0 = vld [vmem:[#allocation197_spill] sm:$0xff] }
 0x623   :  { %17754 = vmatpush1.bf16.msra.mxu1 %v25151_v63  ;;  %v25160_v63 = vld [vmem:[#allocation72_spill] sm:$0xff] }
 0x624   :  { %17756 = vmatprep.subr.bf16.mxu1 %v25153_v45  ;;  %17366 = vmatpush1.bf16.msra.mxu0 %v25154_v60  ;;  %v25162_v45 = vld [vmem:[#allocation175_spill] sm:$0xff] }
 0x625   :  { %v14441_v42 = vpop.f32.mrb[32].mxu1  ;;  %17368 = vmatprep.subr.bf16.mxu0 %v25156_v23 }
 0x626   :  { %v14442_v57 = vpop.f32.mrb[33].mxu1 }
 0x627   :  { %v14443_v44 = vadd.f32 %v14442_v57, %v14441_v42  ;;  %17758 = vmatpush1.bf16.msra.mxu1 %v25155_v33  ;;  %v25164_v57 = vld [vmem:[#allocation176_spill] sm:$0xff]  ;;  %v25165_v33 = vld [vmem:[#allocation146_spill] sm:$0xff] }
 0x628   :  { %17760 = vmatprep.subr.bf16.mxu1 %v25157_v61  ;;  %17370 = vmatpush1.bf16.msra.mxu0 %v25158_v55  ;;  %v25166_v61 = vld [vmem:[#allocation177_spill] sm:$0xff]  ;;  %v25168_v42 = vld [vmem:[#allocation82_spill] sm:$0xff] }
 0x629   :  { %v10530_v58 = vadd.f32 %v14443_v44, %v10392_v36  ;;  %17372 = vmatprep.subr.bf16.mxu0 %v25160_v63  ;;  %v25167_v36 = vld [vmem:[#allocation148_spill] sm:$0xff]  ;;  %v25171_v44 = vld [vmem:[#allocation13_spill] sm:$0xff] }
 0x62b   :  { %17762 = vmatpush1.bf16.msra.mxu1 %v25159_v40  ;;  %v25169_v40 = vld [vmem:[#allocation149_spill] sm:$0xff] }
 0x62c   :  { %17764 = vmatprep.subr.bf16.mxu1 %v25161_v0  ;;  %17374 = vmatpush1.bf16.msra.mxu0 %v25162_v45  ;;  %v25170_v0 = vld [vmem:[#allocation83_spill] sm:$0xff] }
 0x62d   :  { %17376 = vmatprep.subr.bf16.mxu0 %v25164_v57 }
 0x62f   :  { %17766 = vmatpush1.bf16.msra.mxu1 %v25163_v5  ;;  %v25172_v5 = vld [vmem:[#allocation208_spill] sm:$0xff] }
 0x630   :  { %17768 = vmatprep.subr.bf16.mxu1 %v25165_v33  ;;  %17378 = vmatpush1.bf16.msra.mxu0 %v25166_v61  ;;  %v25173_v33 = vld [vmem:[#allocation19_spill] sm:$0xff] }
 0x631   :  { %17380 = vmatprep.subr.bf16.mxu0 %v25168_v42 }
 0x632   :  { %11455 = vmatmul.mubr.f32.vlgmr.msra.gmra.mrb[40].mxu1 %v21742_v52 }
 0x633   :  { %17770 = vmatpush1.bf16.msra.mxu1 %v25167_v36  ;;  %11655 = vmatprep.mubr.f32.mxu1 %v21974_v8  ;;  %v25174_v36 = vld [vmem:[#allocation201_spill] sm:$0xff] }
 0x634   :  { %17772 = vmatprep.subr.bf16.mxu1 %v25169_v40  ;;  %17382 = vmatpush1.bf16.msra.mxu0 %v25170_v0  ;;  %v25175_v40 = vld [vmem:[#allocation203_spill] sm:$0xff] }
 0x635   :  { %17384 = vmatprep.subr.bf16.mxu0 %v24340_v51 }
 0x637   :  { %17774 = vmatpush1.bf16.msra.mxu1 %v25171_v44  ;;  %9908 = vmatmul.mubr.f32.vlgmr.msra.gmra.mrb[28].mxu0 %v24907_v6  ;;  %v25176_v44 = vld [vmem:[#allocation153_spill] sm:$0xff] }
 0x638   :  { %17776 = vmatprep.subr.bf16.mxu1 %v25172_v5  ;;  %17386 = vmatpush1.bf16.msra.mxu0 %v24342_v22 }
 0x639   :  { %17388 = vmatprep.subr.bf16.mxu0 %v24652_v19  ;;  %10043 = vmatprep.mubr.f32.mxu0 %v21742_v52 }
 0x63b   :  { %17778 = vmatpush1.bf16.msra.mxu1 %v25173_v33 }
 0x63c   :  { %17780 = vmatprep.subr.bf16.mxu1 %v25174_v36  ;;  %17390 = vmatpush1.bf16.msra.mxu0 %v24653_v17 }
 0x63d   :  { %17392 = vmatprep.subr.bf16.mxu0 %v25100_v46 }
 0x63f   :  { %17782 = vmatpush1.bf16.msra.mxu1 %v25175_v40  ;;  %v25187_v40 = vld [vmem:[#allocation127_spill] sm:$0xff] }
 0x640   :  { %17784 = vmatprep.subr.bf16.mxu1 %v25069_v31  ;;  %17394 = vmatpush1.bf16.msra.mxu0 %v25101_v26 }
 0x641   :  { %17396 = vmatprep.subr.bf16.mxu0 %v25102_v56 }
 0x643   :  { %17786 = vmatpush1.bf16.msra.mxu1 %v25176_v44  ;;  %v25188_v44 = vld [vmem:[#allocation11_spill] sm:$0xff] }
 0x644   :  { %17788 = vmatprep.subr.bf16.mxu1 %v25073_v20  ;;  %17398 = vmatpush1.bf16.msra.mxu0 %v25103_v7  ;;  %v25178_v20 = vld [vmem:[#allocation217_spill] sm:$0xff] }
 0x645   :  { %v14476_v5 = vpop.f32.mrb[34].mxu1  ;;  %17400 = vmatprep.subr.bf16.mxu0 %v25104_v1 }
 0x646   :  { %v14477_v33 = vpop.f32.mrb[35].mxu1 }
 0x647   :  { %v14478_v36 = vadd.f32 %v14477_v33, %v14476_v5  ;;  %17790 = vmatpush1.bf16.msra.mxu1 %v25075_v2  ;;  %v25182_v2 = vld [vmem:[#allocation74_spill] sm:$0xff]  ;;  %v25189_v5 = vld [vmem:[#allocation15_spill] sm:$0xff]  ;;  %v25190_v33 = vld [vmem:[#allocation20_spill] sm:$0xff] }
 0x648   :  { %17792 = vmatprep.subr.bf16.mxu1 %v25077_v62  ;;  %17402 = vmatpush1.bf16.msra.mxu0 %v25105_v27  ;;  %v25177_v62 = vld [vmem:[#allocation216_spill] sm:$0xff] }
 0x649   :  { %v10638_v31 = vadd.f32 %v14478_v36, %v10530_v58  ;;  %17404 = vmatprep.subr.bf16.mxu0 %v25106_v24  ;;  %v25186_v58 = vld [vmem:[#allocation113_spill] sm:$0xff] }
 0x64a   :  { %v25191_v36 = vld [vmem:[#allocation129_spill] sm:$0xff] }
 0x64b   :  { %17794 = vmatpush1.bf16.msra.mxu1 %v25078_v3 }
 0x64c   :  { %17796 = vmatprep.subr.bf16.mxu1 %v25079_v32  ;;  %17406 = vmatpush1.bf16.msra.mxu0 %v24354_v14  ;;  %v25181_v32 = vld [vmem:[#allocation220_spill] sm:$0xff] }
 0x64d   :  { %17408 = vmatprep.subr.bf16.mxu0 %v24355_v34 }
 0x64f   :  { %17798 = vmatpush1.bf16.msra.mxu1 %v25080_v10 }
 0x650   :  { %17800 = vmatprep.subr.bf16.mxu1 %v25081_v30  ;;  %17410 = vmatpush1.bf16.msra.mxu0 %v24555_v12  ;;  %v25183_v30 = vld [vmem:[#allocation221_spill] sm:$0xff] }
 0x651   :  { %17412 = vmatprep.subr.bf16.mxu0 %v24672_v15 }
 0x653   :  { %17802 = vmatpush1.bf16.msra.mxu1 %v25082_v38  ;;  %v25184_v38 = vld [vmem:[#allocation222_spill] sm:$0xff] }
 0x654   :  { %17804 = vmatprep.subr.bf16.mxu1 %v25083_v59  ;;  %17414 = vmatpush1.bf16.msra.mxu0 %v24674_v50  ;;  %v25185_v59 = vld [vmem:[#allocation223_spill] sm:$0xff] }
 0x655   :  { %17416 = vmatprep.subr.bf16.mxu0 %v24974_v21 }
 0x657   :  { %17806 = vmatpush1.bf16.msra.mxu1 %v25084_v9  ;;  %v25179_v9 = vld [vmem:[#allocation218_spill] sm:$0xff] }
 0x658   :  { %17808 = vmatprep.subr.bf16.mxu1 %v25085_v54  ;;  %17418 = vmatpush1.bf16.msra.mxu0 %v24976_v16  ;;  %v25180_v54 = vld [vmem:[#allocation219_spill] sm:$0xff] }
 0x659   :  { %17420 = vmatprep.subr.bf16.mxu0 %v24978_v43 }
 0x65b   :  { %17810 = vmatpush1.bf16.msra.mxu1 %v25087_v11 }
 0x65c   :  { %17812 = vmatprep.subr.bf16.mxu1 %v25088_v47  ;;  %17422 = vmatpush1.bf16.msra.mxu0 %v24980_v53 }
 0x65d   :  { %17424 = vmatprep.subr.bf16.mxu0 %v24569_v39 }
 0x65f   :  { %17814 = vmatpush1.bf16.msra.mxu1 %v25177_v62  ;;  %v25193_v62 = vld [vmem:[#allocation29_spill] sm:$0xff] }
 0x660   :  { %17816 = vmatprep.subr.bf16.mxu1 %v25178_v20  ;;  %17426 = vmatpush1.bf16.msra.mxu0 %v24571_v4  ;;  %v25194_v20 = vld [vmem:[#allocation32_spill] sm:$0xff] }
 0x661   :  { %17428 = vmatprep.subr.bf16.mxu0 %v24573_v48 }
 0x663   :  { %17818 = vmatpush1.bf16.msra.mxu1 %v25179_v9 }
 0x664   :  { %17820 = vmatprep.subr.bf16.mxu1 %v25180_v54  ;;  %17430 = vmatpush1.bf16.msra.mxu0 %v24575_v41 }
 0x665   :  { %v14511_v11 = vpop.f32.mrb[36].mxu1  ;;  %17432 = vmatprep.subr.bf16.mxu0 %v24577_v29 }
 0x666   :  { %v14512_v3 = vpop.f32.mrb[37].mxu1 }
 0x667   :  { %v14513_v47 = vadd.f32 %v14512_v3, %v14511_v11  ;;  %17822 = vmatpush1.bf16.msra.mxu1 %v25181_v32  ;;  %v25196_v11 = vld [vmem:[#allocation41_spill] sm:$0xff] }
 0x668   :  { %17824 = vmatprep.subr.bf16.mxu1 %v25182_v2  ;;  %17434 = vmatpush1.bf16.msra.mxu0 %v24369_v37  ;;  %v25199_v2 = vld [vmem:[#allocation49_spill] sm:$0xff] }
 0x669   :  { %v10806_v10 = vadd.f32 %v14513_v47, %v10638_v31  ;;  %17436 = vmatprep.subr.bf16.mxu0 %v24580_v25  ;;  %v25192_v31 = vld [vmem:[#allocation23_spill] sm:$0xff]  ;;  %v25197_v47 = vld [vmem:[#allocation45_spill] sm:$0xff] }
 0x66b   :  { %17826 = vmatpush1.bf16.msra.mxu1 %v25183_v30  ;;  %v25200_v30 = vld [vmem:[#allocation54_spill] sm:$0xff] }
 0x66c   :  { %17828 = vmatprep.subr.bf16.mxu1 %v25184_v38  ;;  %17438 = vmatpush1.bf16.msra.mxu0 %v24982_v35  ;;  %v25201_v38 = vld [vmem:[#allocation57_spill] sm:$0xff] }
 0x66d   :  { %17440 = vmatprep.subr.bf16.mxu0 %v24983_v28 }
 0x66f   :  { %17830 = vmatpush1.bf16.msra.mxu1 %v25185_v59  ;;  %v25202_v59 = vld [vmem:[#allocation62_spill] sm:$0xff] }
 0x670   :  { %17832 = vmatprep.subr.bf16.mxu1 %v24340_v51  ;;  %17442 = vmatpush1.bf16.msra.mxu0 %v24985_v13 }
 0x671   :  { %17444 = vmatprep.subr.bf16.mxu0 %v24986_v49 }
 0x672   :  { %11658 = vmatmul.mubr.f32.vlgmr.msra.gmra.mrb[40].mxu1 %v25186_v58 }
 0x673   :  { %17834 = vmatpush1.bf16.msra.mxu1 %v24342_v22  ;;  %11795 = vmatprep.mubr.f32.mxu1 %v25187_v40 }
 0x674   :  { %17836 = vmatprep.subr.bf16.mxu1 %v24652_v19  ;;  %17446 = vmatpush1.bf16.msra.mxu0 %v25108_v18 }
 0x675   :  { %18024 = vmatprep.subr.bf16.mxu0 %v25188_v44 }
 0x677   :  { %17838 = vmatpush1.bf16.msra.mxu1 %v24653_v17  ;;  %10045 = vmatmul.mubr.f32.vlgmr.msra.gmra.mrb[28].mxu0 %v24907_v6  ;;  %v25195_v6 = vld [vmem:[#allocation37_spill] sm:$0xff] }
 0x678   :  { %17840 = vmatprep.subr.bf16.mxu1 %v25100_v46  ;;  %18026 = vmatpush3.bf16.msra.mxu0 %v25189_v5 }
 0x679   :  { %18028 = vmatprep.subr.bf16.mxu0 %v25190_v33  ;;  %12308 = vmatprep.mubr.f32.mxu0 %v25191_v36  ;;  %v25203_v36 = vld [vmem:[#allocation65_spill] sm:$0xff] }
 0x67b   :  { %17842 = vmatpush1.bf16.msra.mxu1 %v25101_v26 }
 0x67c   :  { %17844 = vmatprep.subr.bf16.mxu1 %v25102_v56  ;;  %18030 = vmatpush3.bf16.msra.mxu0 %v25192_v31 }
 0x67d   :  { %18032 = vmatprep.subr.bf16.mxu0 %v25193_v62 }
 0x67f   :  { %17846 = vmatpush1.bf16.msra.mxu1 %v25103_v7 }
 0x680   :  { %17848 = vmatprep.subr.bf16.mxu1 %v25104_v1  ;;  %18034 = vmatpush3.bf16.msra.mxu0 %v25194_v20 }
 0x681   :  { %18036 = vmatprep.subr.bf16.mxu0 %v25195_v6 }
 0x683   :  { %17850 = vmatpush1.bf16.msra.mxu1 %v25105_v27 }
 0x684   :  { %17852 = vmatprep.subr.bf16.mxu1 %v25106_v24  ;;  %18038 = vmatpush3.bf16.msra.mxu0 %v25196_v11 }
 0x685   :  { %v14546_v9 = vpop.f32.mrb[38].mxu1  ;;  %18040 = vmatprep.subr.bf16.mxu0 %v25197_v47 }
 0x686   :  { %v14547_v54 = vpop.f32.mrb[39].mxu1 }
 0x687   :  { %v14548_v3 = vadd.f32 %v14547_v54, %v14546_v9  ;;  %17854 = vmatpush1.bf16.msra.mxu1 %v24354_v14  ;;  %v25205_v9 = vld [vmem:[#allocation71_spill] sm:$0xff]  ;;  %v25206_v54 = vld [vmem:[#allocation81_spill] sm:$0xff] }
 0x688   :  { %17856 = vmatprep.subr.bf16.mxu1 %v24355_v34  ;;  %18042 = vmatpush3.bf16.msra.mxu0 %v25199_v2 }
 0x689   :  { %v22229_v32 = vadd.f32 %v14548_v3, %v10806_v10  ;;  %18044 = vmatprep.subr.bf16.mxu0 %v25200_v30  ;;  %v25204_v10 = vld [vmem:[#allocation69_spill] sm:$0xff]  ;;  %v25207_v3 = vld [vmem:[#allocation116_spill] sm:$0xff] }
 0x68b   :  { %25198 = vst [vmem:[#allocation190_spill] sm:$0xff] %v22229_v32  ;;  %17858 = vmatpush1.bf16.msra.mxu1 %v24555_v12  ;;  %v25208_v32 = vld [vmem:[#allocation84_spill] sm:$0xff] }
 0x68c   :  { %17860 = vmatprep.subr.bf16.mxu1 %v24672_v15  ;;  %18046 = vmatpush3.bf16.msra.mxu0 %v25201_v38 }
 0x68d   :  { %18048 = vmatprep.subr.bf16.mxu0 %v25202_v59 }
 0x68f   :  { %17862 = vmatpush1.bf16.msra.mxu1 %v24674_v50 }
 0x690   :  { %17864 = vmatprep.subr.bf16.mxu1 %v24974_v21  ;;  %18050 = vmatpush3.bf16.msra.mxu0 %v25203_v36  ;;  %v25209_v21 = vld [vmem:[#allocation92_spill] sm:$0xff] }
 0x691   :  { %18052 = vmatprep.subr.bf16.mxu0 %v25204_v10 }
 0x693   :  { %17866 = vmatpush1.bf16.msra.mxu1 %v24976_v16  ;;  %v25210_v16 = vld [vmem:[#allocation122_spill] sm:$0xff] }
 0x694   :  { %17868 = vmatprep.subr.bf16.mxu1 %v24978_v43  ;;  %18054 = vmatpush3.bf16.msra.mxu0 %v25205_v9  ;;  %v25211_v43 = vld [vmem:[#allocation95_spill] sm:$0xff] }
 0x695   :  { %18056 = vmatprep.subr.bf16.mxu0 %v25206_v54  ;;  %v25213_v54 = vld [vmem:[#allocation104_spill] sm:$0xff] }
 0x697   :  { %17870 = vmatpush1.bf16.msra.mxu1 %v24980_v53  ;;  %12314 = vmatmul.mubr.f32.vlgmr.msra.gmra.mrb[30].mxu0 %v25207_v3  ;;  %v25212_v53 = vld [vmem:[#allocation99_spill] sm:$0xff] }
 0x698   :  { %17872 = vmatprep.subr.bf16.mxu1 %v24569_v39  ;;  %18058 = vmatpush3.bf16.msra.mxu0 %v25208_v32  ;;  %v25214_v32 = vld [vmem:[#allocation110_spill] sm:$0xff]  ;;  %v25216_v3 = vld [vmem:[#allocation123_spill] sm:$0xff] }
 0x699   :  { %18060 = vmatprep.subr.bf16.mxu0 %v25209_v21  ;;  %12544 = vmatprep.mubr.f32.mxu0 %v25210_v16  ;;  %v25215_v21 = vld [vmem:[#allocation117_spill] sm:$0xff] }
 0x69b   :  { %17874 = vmatpush1.bf16.msra.mxu1 %v24571_v4 }
 0x69c   :  { %17876 = vmatprep.subr.bf16.mxu1 %v24573_v48  ;;  %18062 = vmatpush3.bf16.msra.mxu0 %v25211_v43  ;;  %v25217_v43 = vld [vmem:[#allocation128_spill] sm:$0xff] }
 0x69d   :  { %18064 = vmatprep.subr.bf16.mxu0 %v25212_v53  ;;  %v25218_v53 = vld [vmem:[#allocation133_spill] sm:$0xff] }
 0x69f   :  { %17878 = vmatpush1.bf16.msra.mxu1 %v24575_v41 }
 0x6a0   :  { %17880 = vmatprep.subr.bf16.mxu1 %v24577_v29  ;;  %18066 = vmatpush3.bf16.msra.mxu0 %v25213_v54  ;;  %v25219_v54 = vld [vmem:[#allocation137_spill] sm:$0xff] }
 0x6a1   :  { %18068 = vmatprep.subr.bf16.mxu0 %v25214_v32  ;;  %v25220_v32 = vld [vmem:[#allocation141_spill] sm:$0xff] }
 0x6a3   :  { %17882 = vmatpush1.bf16.msra.mxu1 %v24369_v37 }
 0x6a4   :  { %17884 = vmatprep.subr.bf16.mxu1 %v24580_v25  ;;  %18070 = vmatpush3.bf16.msra.mxu0 %v25215_v21  ;;  %v25221_v21 = vld [vmem:[#allocation143_spill] sm:$0xff] }
 0x6a5   :  { %18072 = vmatprep.subr.bf16.mxu0 %v25216_v3  ;;  %v25223_v3 = vld [vmem:[#allocation145_spill] sm:$0xff] }
 0x6a7   :  { %17886 = vmatpush1.bf16.msra.mxu1 %v24982_v35  ;;  %v25222_v35 = vld [vmem:[#allocation115_spill] sm:$0xff] }
 0x6a8   :  { %17888 = vmatprep.subr.bf16.mxu1 %v24983_v28  ;;  %18074 = vmatpush3.bf16.msra.mxu0 %v25217_v43  ;;  %v25224_v28 = vld [vmem:[#allocation144_spill] sm:$0xff]  ;;  %v25225_v43 = vld [vmem:[#allocation151_spill] sm:$0xff] }
 0x6a9   :  { %18076 = vmatprep.subr.bf16.mxu0 %v25218_v53  ;;  %v25227_v53 = vld [vmem:[#allocation154_spill] sm:$0xff] }
 0x6ab   :  { %17890 = vmatpush1.bf16.msra.mxu1 %v24985_v13  ;;  %v25226_v13 = vld [vmem:[#allocation10_spill] sm:$0xff] }
 0x6ac   :  { %17892 = vmatprep.subr.bf16.mxu1 %v24986_v49  ;;  %18078 = vmatpush3.bf16.msra.mxu0 %v25219_v54  ;;  %v25228_v54 = vld [vmem:[#allocation12_spill] sm:$0xff] }
 0x6ad   :  { %18080 = vmatprep.subr.bf16.mxu0 %v25220_v32  ;;  %v25230_v32 = vld [vmem:[#allocation78_spill] sm:$0xff]  ;;  %v25240_v49 = vld [vmem:[#allocation224_spill] sm:$0xff] }
 0x6af   :  { %17894 = vmatpush1.bf16.msra.mxu1 %v25108_v18  ;;  %v25229_v18 = vld [vmem:[#allocation147_spill] sm:$0xff] }
 0x6b0   :  { %17896 = vmatprep.subr.bf16.mxu1 %v25221_v21  ;;  %18082 = vmatpush3.bf16.msra.mxu0 %v25223_v3  ;;  %v25231_v21 = vld [vmem:[#allocation150_spill] sm:$0xff]  ;;  %v25232_v3 = vld [vmem:[#allocation76_spill] sm:$0xff] }
 0x6b1   :  { %18084 = vmatprep.subr.bf16.mxu0 %v25225_v43  ;;  %v25234_v43 = vld [vmem:[#allocation55_spill] sm:$0xff] }
 0x6b2   :  { %11799 = vmatmul.mubr.f32.vlgmr.msra.gmra.mrb[40].mxu1 %v25222_v35 }
 0x6b3   :  { %17898 = vmatpush1.bf16.msra.mxu1 %v25224_v28  ;;  %12062 = vmatprep.mubr.f32.mxu1 %v25210_v16  ;;  %v25233_v28 = vld [vmem:[#allocation155_spill] sm:$0xff] }
 0x6b4   :  { %17900 = vmatprep.subr.bf16.mxu1 %v25226_v13  ;;  %18086 = vmatpush3.bf16.msra.mxu0 %v25227_v53  ;;  %v25235_v13 = vld [vmem:[#allocation157_spill] sm:$0xff]  ;;  %v25236_v53 = vld [vmem:[#allocation60_spill] sm:$0xff] }
 0x6b5   :  { %18088 = vmatprep.subr.bf16.mxu0 %v25229_v18  ;;  %v25238_v18 = vld [vmem:[#allocation114_spill] sm:$0xff] }
 0x6b7   :  { %17902 = vmatpush1.bf16.msra.mxu1 %v25228_v54  ;;  %12546 = vmatmul.mubr.f32.vlgmr.msra.gmra.mrb[32].mxu0 %v21742_v52  ;;  %v25237_v54 = vld [vmem:[#allocation17_spill] sm:$0xff] }
 0x6b8   :  { %17904 = vmatprep.subr.bf16.mxu1 %v25230_v32  ;;  %18090 = vmatpush3.bf16.msra.mxu0 %v25231_v21  ;;  %v25239_v32 = vld [vmem:[#allocation159_spill] sm:$0xff]  ;;  %v25241_v21 = vld [vmem:[#allocation25_spill] sm:$0xff] }
 0x6b9   :  { %18092 = vmatprep.subr.bf16.mxu0 %v25233_v28  ;;  %12681 = vmatprep.mubr.f32.mxu0 %v21974_v8  ;;  %v25243_v28 = vld [vmem:[#allocation27_spill] sm:$0xff] }
 0x6ba   :  { %v25245_v8 = vld [vmem:[#allocation31_spill] sm:$0xff] }
 0x6bb   :  { %17906 = vmatpush1.bf16.msra.mxu1 %v25232_v3  ;;  %v25242_v3 = vld [vmem:[#allocation36_spill] sm:$0xff] }
 0x6bc   :  { %17908 = vmatprep.subr.bf16.mxu1 %v25234_v43  ;;  %18094 = vmatpush3.bf16.msra.mxu0 %v25235_v13  ;;  %v25244_v43 = vld [vmem:[#allocation39_spill] sm:$0xff]  ;;  %v25246_v13 = vld [vmem:[#allocation42_spill] sm:$0xff] }
 0x6bd   :  { %18096 = vmatprep.subr.bf16.mxu0 %v25237_v54  ;;  %v25248_v54 = vld [vmem:[#allocation44_spill] sm:$0xff] }
 0x6bf   :  { %17910 = vmatpush1.bf16.msra.mxu1 %v25236_v53  ;;  %v25247_v53 = vld [vmem:[#allocation35_spill] sm:$0xff] }
 0x6c0   :  { %17912 = vmatprep.subr.bf16.mxu1 %v25238_v18  ;;  %18098 = vmatpush3.bf16.msra.mxu0 %v25239_v32  ;;  %v25249_v18 = vld [vmem:[#allocation40_spill] sm:$0xff]  ;;  %v25250_v32 = vld [vmem:[#allocation47_spill] sm:$0xff] }
 0x6c1   :  { %18100 = vmatprep.subr.bf16.mxu0 %v25241_v21  ;;  %v25252_v21 = vld [vmem:[#allocation48_spill] sm:$0xff] }
 0x6c3   :  { %17914 = vmatpush1.bf16.msra.mxu1 %v25240_v49  ;;  %v25251_v49 = vld [vmem:[#allocation163_spill] sm:$0xff] }
 0x6c4   :  { %17916 = vmatprep.subr.bf16.mxu1 %v25242_v3  ;;  %18102 = vmatpush3.bf16.msra.mxu0 %v25243_v28  ;;  %v25253_v3 = vld [vmem:[#allocation165_spill] sm:$0xff]  ;;  %v25254_v28 = vld [vmem:[#allocation50_spill] sm:$0xff] }
 0x6c5   :  { %18104 = vmatprep.subr.bf16.mxu0 %v25245_v8  ;;  %v25256_v8 = vld [vmem:[#allocation51_spill] sm:$0xff] }
 0x6c7   :  { %17918 = vmatpush1.bf16.msra.mxu1 %v25244_v43  ;;  %v25255_v43 = vld [vmem:[#allocation167_spill] sm:$0xff] }
 0x6c8   :  { %17920 = vmatprep.subr.bf16.mxu1 %v25246_v13  ;;  %18106 = vmatpush3.bf16.msra.mxu0 %v25247_v53  ;;  %v25257_v13 = vld [vmem:[#allocation169_spill] sm:$0xff] }
 0x6c9   :  { %18108 = vmatprep.subr.bf16.mxu0 %v25249_v18  ;;  %v25258_v53 = vld [vmem:[#allocation53_spill] sm:$0xff]  ;;  %v25260_v18 = vld [vmem:[#allocation56_spill] sm:$0xff] }
 0x6cb   :  { %17922 = vmatpush1.bf16.msra.mxu1 %v25248_v54  ;;  %v25259_v54 = vld [vmem:[#allocation171_spill] sm:$0xff] }
 0x6cc   :  { %17924 = vmatprep.subr.bf16.mxu1 %v25250_v32  ;;  %18110 = vmatpush3.bf16.msra.mxu0 %v25251_v49  ;;  %v25261_v32 = vld [vmem:[#allocation58_spill] sm:$0xff]  ;;  %v25262_v49 = vld [vmem:[#allocation59_spill] sm:$0xff] }
 0x6cd   :  { %18112 = vmatprep.subr.bf16.mxu0 %v25253_v3 }
 0x6cf   :  { %17926 = vmatpush1.bf16.msra.mxu1 %v25252_v21  ;;  %v25263_v21 = vld [vmem:[#allocation61_spill] sm:$0xff] }
 0x6d0   :  { %17928 = vmatprep.subr.bf16.mxu1 %v25254_v28  ;;  %18114 = vmatpush3.bf16.msra.mxu0 %v25255_v43  ;;  %v13077_v28 = vlaneseq }
 0x6d1   :  { %18116 = vmatprep.subr.bf16.mxu0 %v25257_v13 }
 0x6d3   :  { %17930 = vmatpush1.bf16.msra.mxu1 %v25256_v8  ;;  %v13078_v8 = vand.u32 127, %v13077_v28 }
 0x6d4   :  { %17932 = vmatprep.subr.bf16.mxu1 %v25258_v53  ;;  %18118 = vmatpush3.bf16.msra.mxu0 %v25259_v54  ;;  %v25290_v53 = vld [vmem:[#allocation105_spill] sm:$0xff] }
 0x6d5   :  { %18120 = vmatprep.subr.bf16.mxu0 %v25188_v44  ;;  %v13119_v54 = vmul.f32 %v25290_v53, %v25290_v53 }
 0x6d7   :  { %17934 = vmatpush1.bf16.msra.mxu1 %v25260_v18  ;;  %12684 = vmatmul.mubr.f32.vlgmr.msra.gmra.mrb[34].mxu0 %v25186_v58 }
 0x6d8   :  { %17936 = vmatprep.subr.bf16.mxu1 %v25261_v32  ;;  %18122 = vmatpush3.bf16.msra.mxu0 %v25189_v5  ;;  %v13098_v32 = vsel %vm13096_vm0, %v25290_v53, 0.0 }
 0x6d9   :  { %18124 = vmatprep.subr.bf16.mxu0 %v25190_v33  ;;  %12788 = vmatprep.mubr.f32.mxu0 %v25187_v40 }
 0x6db   :  { %17938 = vmatpush1.bf16.msra.mxu1 %v25262_v49  ;;  %v25291_v49 = vld [vmem:[#allocation93_spill] sm:$0xff] }
 0x6dc   :  { %17940 = vmatprep.subr.bf16.mxu1 %v25263_v21  ;;  %18126 = vmatpush3.bf16.msra.mxu0 %v25192_v31  ;;  %v13118_v21 = vmul.f32 %v25291_v49, %v25291_v49 }
 0x6dd   :  { %18128 = vmatprep.subr.bf16.mxu0 %v25193_v62 }
 0x6df   :  { %17942 = vmatpush1.bf16.msra.mxu1 %v25154_v60  ;;  %v25264_v60 = vld [vmem:[#allocation194_spill] sm:$0xff] }
 0x6e0   :  { %17944 = vmatprep.subr.bf16.mxu1 %v25156_v23  ;;  %18130 = vmatpush3.bf16.msra.mxu0 %v25194_v20  ;;  %v25279_v23 = vld [vmem:[#allocation77_spill] sm:$0xff] }
 0x6e1   :  { %18132 = vmatprep.subr.bf16.mxu0 %v25195_v6 }
 0x6e3   :  { %17946 = vmatpush1.bf16.msra.mxu1 %v25158_v55  ;;  %v25277_v55 = vld [vmem:[#allocation73_spill] sm:$0xff] }
 0x6e4   :  { %17948 = vmatprep.subr.bf16.mxu1 %v25160_v63  ;;  %18134 = vmatpush3.bf16.msra.mxu0 %v25196_v11  ;;  %v25281_v63 = vld [vmem:[#allocation80_spill] sm:$0xff] }
 0x6e5   :  { %18136 = vmatprep.subr.bf16.mxu0 %v25197_v47 }
 0x6e7   :  { %17950 = vmatpush1.bf16.msra.mxu1 %v25162_v45  ;;  %v25283_v45 = vld [vmem:[#allocation87_spill] sm:$0xff] }
 0x6e8   :  { %17952 = vmatprep.subr.bf16.mxu1 %v25164_v57  ;;  %18138 = vmatpush3.bf16.msra.mxu0 %v25199_v2 }
 0x6e9   :  { %18140 = vmatprep.subr.bf16.mxu0 %v25200_v30 }
 0x6eb   :  { %17954 = vmatpush1.bf16.msra.mxu1 %v25166_v61 }
 0x6ec   :  { %17956 = vmatprep.subr.bf16.mxu1 %v25168_v42  ;;  %18142 = vmatpush3.bf16.msra.mxu0 %v25201_v38 }
 0x6ed   :  { %18144 = vmatprep.subr.bf16.mxu0 %v25202_v59 }
 0x6ef   :  { %17958 = vmatpush1.bf16.msra.mxu1 %v25170_v0 }
 0x6f0   :  { %17960 = vmatprep.subr.bf16.mxu1 %v24340_v51  ;;  %18146 = vmatpush3.bf16.msra.mxu0 %v25203_v36  ;;  %v25265_v51 = vld [vmem:[#allocation196_spill] sm:$0xff] }
 0x6f1   :  { %18148 = vmatprep.subr.bf16.mxu0 %v25204_v10 }
 0x6f2   :  { %12064 = vmatmul.mubr.f32.vlgmr.msra.gmra.mrb[40].mxu1 %v21742_v52 }
 0x6f3   :  { %17962 = vmatpush1.bf16.msra.mxu1 %v24342_v22  ;;  %12199 = vmatprep.mubr.f32.mxu1 %v25210_v16  ;;  %v25266_v22 = vld [vmem:[#allocation198_spill] sm:$0xff] }
 0x6f4   :  { %17964 = vmatprep.subr.bf16.mxu1 %v24652_v19  ;;  %18150 = vmatpush3.bf16.msra.mxu0 %v25205_v9  ;;  %v25267_v19 = vld [vmem:[#allocation199_spill] sm:$0xff] }
 0x6f5   :  { %18152 = vmatprep.subr.bf16.mxu0 %v25264_v60 }
 0x6f7   :  { %17966 = vmatpush1.bf16.msra.mxu1 %v24653_v17  ;;  %12792 = vmatmul.mubr.f32.vlgmr.msra.gmra.mrb[36].mxu0 %v25222_v35  ;;  %v25268_v17 = vld [vmem:[#allocation200_spill] sm:$0xff]  ;;  %v25270_v35 = vld [vmem:[#allocation14_spill] sm:$0xff] }
 0x6f8   :  { %17968 = vmatprep.subr.bf16.mxu1 %v25100_v46  ;;  %18154 = vmatpush3.bf16.msra.mxu0 %v25265_v51  ;;  %v25269_v46 = vld [vmem:[#allocation204_spill] sm:$0xff]  ;;  %v25292_v51 = vld [vmem:[#allocation121_spill] sm:$0xff] }
 0x6f9   :  { %18156 = vmatprep.subr.bf16.mxu0 %v25266_v22  ;;  %12958 = vmatprep.mubr.f32.mxu0 %v25210_v16  ;;  %v13120_v22 = vmul.f32 %v25292_v51, %v25292_v51 }
 0x6fb   :  { %17970 = vmatpush1.bf16.msra.mxu1 %v25101_v26  ;;  %v25271_v26 = vld [vmem:[#allocation101_spill] sm:$0xff] }
 0x6fc   :  { %17972 = vmatprep.subr.bf16.mxu1 %v25102_v56  ;;  %18158 = vmatpush3.bf16.msra.mxu0 %v25267_v19  ;;  %v25272_v56 = vld [vmem:[#allocation75_spill] sm:$0xff]  ;;  %v13083_v19 = vadd.s32 640, %v13078_v8 }
 0x6fd   :  { %18160 = vmatprep.subr.bf16.mxu0 %v25268_v17  ;;  %v13097_v17 = vsel %vm13096_vm0, %v25291_v49, 0.0 }
 0x6fe   :  { %vm13089_vm1 = vcmp.lt.s32.totalorder %v13083_v19, 701 }
 0x6ff   :  { %17974 = vmatpush1.bf16.msra.mxu1 %v25103_v7  ;;  %v25273_v7 = vld [vmem:[#allocation22_spill] sm:$0xff] }
 0x700   :  { %17976 = vmatprep.subr.bf16.mxu1 %v25104_v1  ;;  %18162 = vmatpush3.bf16.msra.mxu0 %v25269_v46  ;;  %v25274_v1 = vld [vmem:[#allocation111_spill] sm:$0xff]  ;;  %v13100_v46 = vsel %vm13096_vm0, %v25292_v51, 0.0 }
 0x701   :  { %18164 = vmatprep.subr.bf16.mxu0 %v25270_v35 }
 0x703   :  { %17978 = vmatpush1.bf16.msra.mxu1 %v25105_v27  ;;  %v25275_v27 = vld [vmem:[#allocation112_spill] sm:$0xff] }
 0x704   :  { %17980 = vmatprep.subr.bf16.mxu1 %v25106_v24  ;;  %18166 = vmatpush3.bf16.msra.mxu0 %v25271_v26  ;;  %v25276_v24 = vld [vmem:[#allocation118_spill] sm:$0xff]  ;;  %v13099_v26 = vadd.f32 %v13098_v32, %v13097_v17  ;;  %v13168_v32 = vstv %s22812_s3 }
 0x705   :  { %18168 = vmatprep.subr.bf16.mxu0 %v25272_v56  ;;  %v25293_v56 = vld [vmem:[#allocation188_spill] sm:$0xff] }
 0x707   :  { %17982 = vmatpush1.bf16.msra.mxu1 %v24354_v14  ;;  %v25278_v14 = vld [vmem:[#allocation119_spill] sm:$0xff] }
 0x708   :  { %17984 = vmatprep.subr.bf16.mxu1 %v24355_v34  ;;  %18170 = vmatpush3.bf16.msra.mxu0 %v25273_v7  ;;  %v25280_v34 = vld [vmem:[#allocation125_spill] sm:$0xff]  ;;  %v13102_v7 = vsel %vm13096_vm0, %v25293_v56, 0.0 }
 0x709   :  { %18172 = vmatprep.subr.bf16.mxu0 %v25274_v1  ;;  %v13121_v1 = vmul.f32 %v25293_v56, %v25293_v56 }
 0x70b   :  { %17986 = vmatpush1.bf16.msra.mxu1 %v24555_v12  ;;  %v25282_v12 = vld [vmem:[#allocation126_spill] sm:$0xff] }
 0x70c   :  { %17988 = vmatprep.subr.bf16.mxu1 %v24672_v15  ;;  %18174 = vmatpush3.bf16.msra.mxu0 %v25275_v27  ;;  %v13125_v27 = vsel %vm13096_vm0, %v13119_v54, 0.0 }
 0x70d   :  { %18176 = vmatprep.subr.bf16.mxu0 %v25276_v24 }
 0x70f   :  { %17990 = vmatpush1.bf16.msra.mxu1 %v24674_v50  ;;  %v25285_v50 = vld [vmem:[#allocation131_spill] sm:$0xff] }
 0x710   :  { %17992 = vmatprep.subr.bf16.mxu1 %v25277_v55  ;;  %18178 = vmatpush3.bf16.msra.mxu0 %v25278_v14  ;;  %v13101_v55 = vadd.f32 %v13100_v46, %v13099_v26  ;;  %v13124_v14 = vsel %vm13096_vm0, %v13118_v21, 0.0 }
 0x711   :  { %18180 = vmatprep.subr.bf16.mxu0 %v25280_v34 }
 0x713   :  { %17994 = vmatpush1.bf16.msra.mxu1 %v25279_v23 }
 0x714   :  { %17996 = vmatprep.subr.bf16.mxu1 %v25281_v63  ;;  %18182 = vmatpush3.bf16.msra.mxu0 %v25282_v12  ;;  %v13127_v63 = vsel %vm13096_vm0, %v13120_v22, 0.0 }
 0x715   :  { %18184 = vmatprep.subr.bf16.mxu0 %v25188_v44 }
 0x717   :  { %17998 = vmatpush1.bf16.msra.mxu1 %v25283_v45  ;;  %12960 = vmatmul.mubr.f32.vlgmr.msra.gmra.mrb[38].mxu0 %v21742_v52  ;;  %v13103_v45 = vadd.f32 %v13102_v7, %v13101_v55 }
 0x718   :  { %18000 = vmatprep.subr.bf16.mxu1 %v24569_v39  ;;  %18186 = vmatpush3.bf16.msra.mxu0 %v25189_v5  ;;  %v25289_v39 = vld [vmem:[#allocation190_spill] sm:$0xff] }
 0x719   :  { %18188 = vmatprep.subr.bf16.mxu0 %v25190_v33  ;;  %13062 = vmatprep.mubr.f32.mxu0 %v25210_v16 }
 0x71b   :  { %18002 = vmatpush1.bf16.msra.mxu1 %v24571_v4  ;;  %v10918_v4 = vrot.slane %v25289_v39, 2 }
 0x71c   :  { %18004 = vmatprep.subr.bf16.mxu1 %v24573_v48  ;;  %18190 = vmatpush3.bf16.msra.mxu0 %v25192_v31  ;;  %v25284_v48 = vld [vmem:[#allocation124_spill] sm:$0xff] }
 0x71d   :  { %18192 = vmatprep.subr.bf16.mxu0 %v25193_v62 }
 0x71f   :  { %18006 = vmatpush1.bf16.msra.mxu1 %v24575_v41  ;;  %v25286_v41 = vld [vmem:[#allocation136_spill] sm:$0xff] }
 0x720   :  { %18008 = vmatprep.subr.bf16.mxu1 %v24577_v29  ;;  %18194 = vmatpush3.bf16.msra.mxu0 %v25194_v20  ;;  %v25287_v29 = vld [vmem:[#allocation140_spill] sm:$0xff] }
 0x721   :  { %18196 = vmatprep.subr.bf16.mxu0 %v25195_v6 }
 0x723   :  { %18010 = vmatpush1.bf16.msra.mxu1 %v24369_v37  ;;  %v25288_v37 = vld [vmem:[#allocation142_spill] sm:$0xff] }
 0x724   :  { %18012 = vmatprep.subr.bf16.mxu1 %v24580_v25  ;;  %18198 = vmatpush3.bf16.msra.mxu0 %v25196_v11 }
 0x725   :  { %18200 = vmatprep.subr.bf16.mxu0 %v25197_v47 }
 0x727   :  { %18014 = vmatpush1.bf16.msra.mxu1 %v25284_v48  ;;  %v13126_v48 = vadd.f32 %v13125_v27, %v13124_v14 }
 0x728   :  { %18016 = vmatprep.subr.bf16.mxu1 %v25285_v50  ;;  %18202 = vmatpush3.bf16.msra.mxu0 %v25199_v2  ;;  %v13129_v50 = vsel %vm13096_vm0, %v13121_v1, 0.0 }
 0x729   :  { %18204 = vmatprep.subr.bf16.mxu0 %v25200_v30 }
 0x72b   :  { %18018 = vmatpush1.bf16.msra.mxu1 %v25286_v41 }
 0x72c   :  { %18020 = vmatprep.subr.bf16.mxu1 %v25287_v29  ;;  %18206 = vmatpush3.bf16.msra.mxu0 %v25201_v38 }
 0x72d   :  { %18208 = vmatprep.subr.bf16.mxu0 %v25202_v59 }
 0x72f   :  { %18022 = vmatpush1.bf16.msra.mxu1 %v25288_v37  ;;  %v13128_v37 = vadd.f32 %v13127_v63, %v13126_v48 }
 0x730   :  { %18210 = vmatpush3.bf16.msra.mxu0 %v25203_v36 }
 0x731   :  { %18212 = vmatprep.subr.bf16.mxu0 %v25204_v10 }
 0x732   :  { %12201 = vmatmul.mubr.f32.vlgmr.msra.gmra.mrb[40].mxu1 %v21742_v52 }
 0x734   :  { %18214 = vmatpush3.bf16.msra.mxu0 %v25205_v9 }
 0x737   :  { %13064 = vmatmul.mubr.f32.vlgmr.msra.gmra.mrb[40].mxu0 %v21742_v52 }
 0x74a   :  { %v10046_v25 = vpop.f32.mrb[28].mxu0 }
 0x74b   :  { %v10048_v16 = vpop.f32.mrb[29].mxu0 }
 0x74c   :  { %v10914_v15 = vrot.slane %v10048_v16, 1 }
 0x74e   :  { %v10916_v57 = vadd.f32 %v10914_v15, %v10046_v25 }
 0x750   :  { %v22418_v61 = vadd.f32 %v10918_v4, %v10916_v57  ;;  %v13130_v4 = vadd.f32 %v13129_v50, %v13128_v37 }
 0x752   :  { %v13104_v23 = vsel %vm13096_vm0, %v22418_v61, 0.0  ;;  %v13122_v34 = vmul.f32 %v22418_v61, %v22418_v61 }
 0x753   :  { %v13105_v29 = vadd.f32 %v13104_v23, %v13103_v45 }
 0x754   :  { %v13131_v15 = vsel %vm13096_vm0, %v13122_v34, 0.0 }
 0x76a   :  { %v14581_v42 = vpop.f32.mrb[30].mxu0 }
 0x76b   :  { %v14582_v0 = vpop.f32.mrb[31].mxu0 }
 0x76c   :  { %v14583_v58 = vadd.f32 %v14582_v0, %v14581_v42  ;;  %v13132_v42 = vadd.f32 %v13131_v15, %v13130_v4 }
 0x78a   :  { %v14616_v40 = vpop.f32.mrb[32].mxu0 }
 0x78b   :  { %v14617_v44 = vpop.f32.mrb[33].mxu0 }
 0x78c   :  { %v14618_v5 = vadd.f32 %v14617_v44, %v14616_v40 }
 0x78e   :  { %v12548_v33 = vadd.f32 %v14618_v5, %v14583_v58 }
 0x7aa   :  { %v14651_v31 = vpop.f32.mrb[34].mxu0 }
 0x7ab   :  { %v14652_v62 = vpop.f32.mrb[35].mxu0 }
 0x7ac   :  { %v14653_v20 = vadd.f32 %v14652_v62, %v14651_v31 }
 0x7ae   :  { %v12686_v6 = vadd.f32 %v14653_v20, %v12548_v33 }
 0x7ca   :  { %v14686_v52 = vpop.f32.mrb[36].mxu0 }
 0x7cb   :  { %v14687_v11 = vpop.f32.mrb[37].mxu0 }
 0x7cc   :  { %v14688_v47 = vadd.f32 %v14687_v11, %v14686_v52 }
 0x7ce   :  { %v12794_v2 = vadd.f32 %v14688_v47, %v12686_v6 }
 0x7ea   :  { %v14721_v30 = vpop.f32.mrb[38].mxu0 }
 0x7eb   :  { %v14722_v38 = vpop.f32.mrb[39].mxu0 }
 0x7ec   :  { %v14723_v59 = vadd.f32 %v14722_v38, %v14721_v30 }
 0x7ee   :  { %v12962_v36 = vadd.f32 %v14723_v59, %v12794_v2 }
 0x805   :  { %v12202_v10 = vpop.f32.mrb[40].mxu1 }
 0x806   :  { %v12204_v9 = vpop.f32.mrb[41].mxu1 }
 0x807   :  { %v13070_v3 = vrot.slane %v12204_v9, 1 }
 0x809   :  { %v13072_v43 = vadd.f32 %v13070_v3, %v12202_v10 }
 0x80a   :  { %v14756_v13 = vpop.f32.mrb[40].mxu0 }
 0x80b   :  { %v14757_v18 = vpop.f32.mrb[41].mxu0 }
 0x80c   :  { %v14758_v60 = vadd.f32 %v14757_v18, %v14756_v13 }
 0x80e   :  { %v13066_v35 = vadd.f32 %v14758_v60, %v12962_v36 }
 0x810   :  { %v13074_v24 = vrot.slane %v13066_v35, 2 }
 0x812   :  { %v13076_v12 = vadd.f32 %v13074_v24, %v13072_v43  ;;  %v13153_v43 = vstv %s22811_s2 }
 0x814   :  { %v13095_v41 = vsel %vm13089_vm1, %v13076_v12, 0.0 }
 0x815   :  { %v13106_v25 = vsel %vm13096_vm0, %v13095_v41, 0.0  ;;  %v13123_v16 = vmul.f32 %v13095_v41, %v13095_v41 }
 0x816   :  { %v13107_v39 = vadd.f32 %v13106_v25, %v13105_v29 }
 0x817   :  { %v13133_v57 = vsel %vm13096_vm0, %v13123_v16, 0.0 }
 0x818   :  { %13108 = vadd.xlane.f32.xlu0 %v13107_v39  ;;  %v13134_v0 = vadd.f32 %v13133_v57, %v13132_v42 }
 0x81c   :  { %13135 = vadd.xlane.f32.xlu0 %v13134_v0 }
 0x8a5   :  { %v13109_v58 = vpop.xlane.xlu0 %13108 }
 0x8a6   :  { %v13110_v40 = vrot.slane %v13109_v58, 4 }
 0x8a8   :  { %v13111_v44 = vadd.f32 %v13110_v40, %v13109_v58 }
 0x8a9   :  { %v13136_v5 = vpop.xlane.xlu0 %13135 }
 0x8aa   :  { %v13112_v33 = vrot.slane %v13111_v44, 2  ;;  %v13137_v31 = vrot.slane %v13136_v5, 4 }
 0x8ac   :  { %v13138_v62 = vadd.f32 %v13137_v31, %v13136_v5  ;;  %v13113_v20 = vadd.f32 %v13112_v33, %v13111_v44 }
 0x8ae   :  { %v13139_v6 = vrot.slane %v13138_v62, 2  ;;  %v13114_v52 = vrot.slane %v13113_v20, 1 }
 0x8b0   :  { %v13115_v11 = vadd.f32 %v13114_v52, %v13113_v20  ;;  %v13140_v47 = vadd.f32 %v13139_v6, %v13138_v62 }
 0x8b2   :  { %18275 = vpush %v13115_v11  ;;  %v13141_v2 = vrot.slane %v13140_v47, 1 }
 0x8b4   :  { %v13142_v30 = vadd.f32 %v13141_v2, %v13140_v47 }
 0x8b6   :  { %18277 = vpush %v13142_v30 }
 0x8e3   :  { %s18276_s1 = spop %18275 }
 0x8e4   :  { %v13117_v38 = vstv %s18276_s1 }
 0x8e5   :  { %v13146_v59 = vmul.f32 0.0002377556, %v13117_v38 }
 0x8e7   :  { %s18278_s14 = spop %18277  ;;  %v13148_v9 = vmul.f32 %v13146_v59, %v13146_v59  ;;  %v13157_v54 = vsub.f32 %v25292_v51, %v13146_v59  ;;  %v13155_v18 = vsub.f32 %v25291_v49, %v13146_v59  ;;  %v13160_v21 = vsub.f32 %v13076_v12, %v13146_v59 }
 0x8e8   :  { %v13144_v36 = vstv %s18278_s14  ;;  %v13159_v60 = vsub.f32 %v22418_v61, %v13146_v59  ;;  %v13158_v48 = vsub.f32 %v25293_v56, %v13146_v59  ;;  %v13156_v50 = vsub.f32 %v25290_v53, %v13146_v59 }
 0x8e9   :  { %v13147_v10 = vmul.f32 0.0002377556, %v13144_v36 }
 0x8eb   :  { %v13149_v3 = vsub.f32 %v13147_v10, %v13148_v9 }
 0x8ed   :  { %v13150_v28 = vadd.f32 1e-05, %v13149_v3 }
 0x8ef   :  { %18284 = vrsqrt.f32 %v13150_v28 }
 0x8f9   :  { %v18285_v8 = vpop.eup %18284 }
 0x8fa   :  { %v13154_v13 = vmul.f32 %v18285_v8, %v13153_v43 }
 0x8fc   :  { %v13163_v22 = vmul.f32 %v13157_v54, %v13154_v13  ;;  %v13161_v19 = vmul.f32 %v13155_v18, %v13154_v13  ;;  %v13166_v17 = vmul.f32 %v13160_v21, %v13154_v13  ;;  %v13165_v46 = vmul.f32 %v13159_v60, %v13154_v13 }
 0x8fd   :  { %v13164_v41 = vmul.f32 %v13158_v48, %v13154_v13  ;;  %v13162_v29 = vmul.f32 %v13156_v50, %v13154_v13 }
 0x8fe   :  { %v13171_v35 = vadd.f32 %v13168_v32, %v13163_v22  ;;  %v13169_v26 = vadd.f32 %v13168_v32, %v13161_v19  ;;  %v13174_v7 = vadd.f32 %v13168_v32, %v13166_v17  ;;  %v13173_v1 = vadd.f32 %v13168_v32, %v13165_v46 }
 0x8ff   :  { %v13172_v37 = vadd.f32 %v13168_v32, %v13164_v41  ;;  %v13170_v25 = vadd.f32 %v13168_v32, %v13162_v29 }
 0x900   :  { %v13177_v27 = vsub.f32 0.0, %v13171_v35  ;;  %v13175_v24 = vsub.f32 0.0, %v13169_v26  ;;  %v13180_v5 = vsub.f32 0.0, %v13174_v7  ;;  %v13179_v33 = vsub.f32 0.0, %v13173_v1 }
 0x901   :  { %v13178_v16 = vsub.f32 0.0, %v13172_v37  ;;  %v13176_v15 = vsub.f32 0.0, %v13170_v25 }
 0x902   :  { %v13185_v51 = vmul.f32 1.442695, %v13177_v27  ;;  %v13181_v55 = vmul.f32 1.442695, %v13175_v24  ;;  %v13191_v31 = vmul.f32 1.442695, %v13180_v5 }
 0x903   :  { %v13187_v39 = vmul.f32 1.442695, %v13178_v16  ;;  %v13183_v4 = vmul.f32 1.442695, %v13176_v15  ;;  %v13189_v62 = vmul.f32 1.442695, %v13179_v33 }
 0x904   :  { %18286 = vpow2.f32 %v13185_v51 }
 0x905   :  { %18288 = vpow2.f32 %v13181_v55 }
 0x90e   :  { %v18287_v49 = vpop.eup %18286 }
 0x90f   :  { %v18289_v14 = vpop.eup %18288  ;;  %v13195_v23 = vadd.f32 1.0, %v18287_v49 }
 0x910   :  { %v13193_v34 = vadd.f32 1.0, %v18289_v14 }
 0x911   :  { %18290 = vrcp.f32 %v13195_v23 }
 0x912   :  { %18292 = vrcp.f32 %v13193_v34 }
 0x913   :  { %18294 = vpow2.f32 %v13187_v39 }
 0x914   :  { %18296 = vpow2.f32 %v13183_v4 }
 0x91b   :  { %v18291_v61 = vpop.eup %18290 }
 0x91c   :  { %v18293_v63 = vpop.eup %18292  ;;  %v13207_v12 = vmul.f32 %v18291_v61, %v13171_v35 }
 0x91d   :  { %v13205_v45 = vmul.f32 %v18293_v63, %v13169_v26  ;;  %v18295_v57 = vpop.eup %18294 }
 0x91e   :  { %13275 = vxpose.xlu0.b32.start.end [1/1] (short) %v13207_v12, 128  ;;  %v18297_v42 = vpop.eup %18296  ;;  %v13196_v0 = vadd.f32 1.0, %v18295_v57 }
 0x91f   :  { %13211 = vxpose.xlu1.b32.start.end [1/1] (short) %v13205_v45, 128  ;;  %v13194_v58 = vadd.f32 1.0, %v18297_v42 }
 0x920   :  { %18298 = vrcp.f32 %v13196_v0 }
 0x921   :  { %18300 = vrcp.f32 %v13194_v58 }
 0x922   :  { %18302 = vpow2.f32 %v13191_v31 }
 0x923   :  { %18304 = vpow2.f32 %v13189_v62 }
 0x92a   :  { %v18299_v40 = vpop.eup %18298 }
 0x92b   :  { %v18301_v56 = vpop.eup %18300  ;;  %v13208_v44 = vmul.f32 %v18299_v40, %v13172_v37 }
 0x92c   :  { %v13206_v53 = vmul.f32 %v18301_v56, %v13170_v25  ;;  %v18303_v20 = vpop.eup %18302 }
 0x92d   :  { %v18305_v6 = vpop.eup %18304  ;;  %v13198_v52 = vadd.f32 1.0, %v18303_v20 }
 0x92e   :  { %v13197_v11 = vadd.f32 1.0, %v18305_v6 }
 0x92f   :  { %18306 = vrcp.f32 %v13198_v52 }
 0x930   :  { %18308 = vrcp.f32 %v13197_v11 }
 0x939   :  { %v18307_v47 = vpop.eup %18306 }
 0x93a   :  { %v18309_v2 = vpop.eup %18308  ;;  %v13210_v30 = vmul.f32 %v18307_v47, %v13174_v7 }
 0x93b   :  { %v13209_v38 = vmul.f32 %v18309_v2, %v13173_v1 }
 0x95b   :  { %13307 = vxpose.xlu0.b32.start.end [1/1] (short) %v13208_v44, 128 }
 0x95c   :  { %13243 = vxpose.xlu1.b32.start.end [1/1] (short) %v13206_v53, 128 }
 0x998   :  { %13371 = vxpose.xlu0.b32.start.end [1/1] (short) (narrow) %v13210_v30, 64 }
 0x999   :  { %13339 = vxpose.xlu1.b32.start.end [1/1] (short) %v13209_v38, 128 }
 0x99e   :  { %v13291_v59 = vpop.trf.xlu0 }
 0x99f   :  { %v13227_v36 = vpop.trf.xlu1  ;;  %13436 = vst.msk [vmem:[%s22813_s4 + $0x100] sm:$0xff] %vm13403_vm2, %v13291_v59 }
 0x9a0   :  { %13404 = vst.msk [vmem:[%s22813_s4] sm:$0xff] %vm13403_vm2, %v13227_v36 }
 0x9a2   :  { %v13292_v10 = vpop.trf.xlu0 }
 0x9a3   :  { %v13228_v9 = vpop.trf.xlu1  ;;  %13437 = vst.msk [vmem:[%s22813_s4 + $0x108] sm:$0xff] %vm13403_vm2, %v13292_v10 }
 0x9a4   :  { %13405 = vst.msk [vmem:[%s22813_s4 + $0x8] sm:$0xff] %vm13403_vm2, %v13228_v9 }
 0x9a6   :  { %v13293_v3 = vpop.trf.xlu0 }
 0x9a7   :  { %v13229_v28 = vpop.trf.xlu1  ;;  %13438 = vst.msk [vmem:[%s22813_s4 + $0x110] sm:$0xff] %vm13403_vm2, %v13293_v3 }
 0x9a8   :  { %13406 = vst.msk [vmem:[%s22813_s4 + $0x10] sm:$0xff] %vm13403_vm2, %v13229_v28 }
 0x9aa   :  { %v13294_v43 = vpop.trf.xlu0 }
 0x9ab   :  { %v13230_v8 = vpop.trf.xlu1  ;;  %13439 = vst.msk [vmem:[%s22813_s4 + $0x118] sm:$0xff] %vm13403_vm2, %v13294_v43 }
 0x9ac   :  { %13407 = vst.msk [vmem:[%s22813_s4 + $0x18] sm:$0xff] %vm13403_vm2, %v13230_v8 }
 0x9ae   :  { %v13295_v13 = vpop.trf.xlu0 }
 0x9af   :  { %v13231_v54 = vpop.trf.xlu1  ;;  %13440 = vst.msk [vmem:[%s22813_s4 + $0x120] sm:$0xff] %vm13403_vm2, %v13295_v13 }
 0x9b0   :  { %13408 = vst.msk [vmem:[%s22813_s4 + $0x20] sm:$0xff] %vm13403_vm2, %v13231_v54 }
 0x9b2   :  { %v13296_v18 = vpop.trf.xlu0 }
 0x9b3   :  { %v13232_v32 = vpop.trf.xlu1  ;;  %13441 = vst.msk [vmem:[%s22813_s4 + $0x128] sm:$0xff] %vm13403_vm2, %v13296_v18 }
 0x9b4   :  { %13409 = vst.msk [vmem:[%s22813_s4 + $0x28] sm:$0xff] %vm13403_vm2, %v13232_v32 }
 0x9b6   :  { %v13297_v21 = vpop.trf.xlu0 }
 0x9b7   :  { %v13233_v60 = vpop.trf.xlu1  ;;  %13442 = vst.msk [vmem:[%s22813_s4 + $0x130] sm:$0xff] %vm13403_vm2, %v13297_v21 }
 0x9b8   :  { %13410 = vst.msk [vmem:[%s22813_s4 + $0x30] sm:$0xff] %vm13403_vm2, %v13233_v60 }
 0x9ba   :  { %v13298_v22 = vpop.trf.xlu0 }
 0x9bb   :  { %v13234_v19 = vpop.trf.xlu1  ;;  %13443 = vst.msk [vmem:[%s22813_s4 + $0x138] sm:$0xff] %vm13403_vm2, %v13298_v22 }
 0x9bc   :  { %13411 = vst.msk [vmem:[%s22813_s4 + $0x38] sm:$0xff] %vm13403_vm2, %v13234_v19 }
 0x9be   :  { %v13299_v17 = vpop.trf.xlu0 }
 0x9bf   :  { %v13235_v46 = vpop.trf.xlu1  ;;  %13444 = vst.msk [vmem:[%s22813_s4 + $0x140] sm:$0xff] %vm13403_vm2, %v13299_v17 }
 0x9c0   :  { %13412 = vst.msk [vmem:[%s22813_s4 + $0x40] sm:$0xff] %vm13403_vm2, %v13235_v46 }
 0x9c2   :  { %v13300_v35 = vpop.trf.xlu0 }
 0x9c3   :  { %v13236_v26 = vpop.trf.xlu1  ;;  %13445 = vst.msk [vmem:[%s22813_s4 + $0x148] sm:$0xff] %vm13403_vm2, %v13300_v35 }
 0x9c4   :  { %13413 = vst.msk [vmem:[%s22813_s4 + $0x48] sm:$0xff] %vm13403_vm2, %v13236_v26 }
 0x9c6   :  { %v13301_v7 = vpop.trf.xlu0 }
 0x9c7   :  { %v13237_v1 = vpop.trf.xlu1  ;;  %13446 = vst.msk [vmem:[%s22813_s4 + $0x150] sm:$0xff] %vm13403_vm2, %v13301_v7 }
 0x9c8   :  { %13414 = vst.msk [vmem:[%s22813_s4 + $0x50] sm:$0xff] %vm13403_vm2, %v13237_v1 }
 0x9ca   :  { %v13302_v27 = vpop.trf.xlu0 }
 0x9cb   :  { %v13238_v24 = vpop.trf.xlu1  ;;  %13447 = vst.msk [vmem:[%s22813_s4 + $0x158] sm:$0xff] %vm13403_vm2, %v13302_v27 }
 0x9cc   :  { %13415 = vst.msk [vmem:[%s22813_s4 + $0x58] sm:$0xff] %vm13403_vm2, %v13238_v24 }
 0x9ce   :  { %v13303_v51 = vpop.trf.xlu0 }
 0x9cf   :  { %v13239_v55 = vpop.trf.xlu1  ;;  %13448 = vst.msk [vmem:[%s22813_s4 + $0x160] sm:$0xff] %vm13403_vm2, %v13303_v51 }
 0x9d0   :  { %13416 = vst.msk [vmem:[%s22813_s4 + $0x60] sm:$0xff] %vm13403_vm2, %v13239_v55 }
 0x9d2   :  { %v13304_v49 = vpop.trf.xlu0 }
 0x9d3   :  { %v13240_v14 = vpop.trf.xlu1  ;;  %13449 = vst.msk [vmem:[%s22813_s4 + $0x168] sm:$0xff] %vm13403_vm2, %v13304_v49 }
 0x9d4   :  { %13417 = vst.msk [vmem:[%s22813_s4 + $0x68] sm:$0xff] %vm13403_vm2, %v13240_v14 }
 0x9d6   :  { %v13305_v23 = vpop.trf.xlu0 }
 0x9d7   :  { %v13241_v34 = vpop.trf.xlu1  ;;  %13450 = vst.msk [vmem:[%s22813_s4 + $0x170] sm:$0xff] %vm13403_vm2, %v13305_v23 }
 0x9d8   :  { %13418 = vst.msk [vmem:[%s22813_s4 + $0x70] sm:$0xff] %vm13403_vm2, %v13241_v34 }
 0x9da   :  { %v13306_v61 = vpop.trf.xlu0 }
 0x9db   :  { %v13242_v63 = vpop.trf.xlu1  ;;  %13451 = vst.msk [vmem:[%s22813_s4 + $0x178] sm:$0xff] %vm13403_vm2, %v13306_v61 }
 0x9dc   :  { %13419 = vst.msk [vmem:[%s22813_s4 + $0x78] sm:$0xff] %vm13403_vm2, %v13242_v63 }
 0x9de   :  { %v13323_v12 = vpop.trf.xlu0 }
 0x9df   :  { %v13259_v45 = vpop.trf.xlu1  ;;  %13452 = vst.msk [vmem:[%s22813_s4 + $0x180] sm:$0xff] %vm13403_vm2, %v13323_v12 }
 0x9e0   :  { %13420 = vst.msk [vmem:[%s22813_s4 + $0x80] sm:$0xff] %vm13403_vm2, %v13259_v45 }
 0x9e2   :  { %v13324_v48 = vpop.trf.xlu0 }
 0x9e3   :  { %v13260_v50 = vpop.trf.xlu1  ;;  %13453 = vst.msk [vmem:[%s22813_s4 + $0x188] sm:$0xff] %vm13403_vm2, %v13324_v48 }
 0x9e4   :  { %13421 = vst.msk [vmem:[%s22813_s4 + $0x88] sm:$0xff] %vm13403_vm2, %v13260_v50 }
 0x9e6   :  { %v13325_v41 = vpop.trf.xlu0 }
 0x9e7   :  { %v13261_v29 = vpop.trf.xlu1  ;;  %13454 = vst.msk [vmem:[%s22813_s4 + $0x190] sm:$0xff] %vm13403_vm2, %v13325_v41 }
 0x9e8   :  { %13422 = vst.msk [vmem:[%s22813_s4 + $0x90] sm:$0xff] %vm13403_vm2, %v13261_v29 }
 0x9ea   :  { %v13326_v37 = vpop.trf.xlu0 }
 0x9eb   :  { %v13262_v25 = vpop.trf.xlu1  ;;  %13455 = vst.msk [vmem:[%s22813_s4 + $0x198] sm:$0xff] %vm13403_vm2, %v13326_v37 }
 0x9ec   :  { %13423 = vst.msk [vmem:[%s22813_s4 + $0x98] sm:$0xff] %vm13403_vm2, %v13262_v25 }
 0x9ee   :  { %v13327_v16 = vpop.trf.xlu0 }
 0x9ef   :  { %v13263_v15 = vpop.trf.xlu1  ;;  %13456 = vst.msk [vmem:[%s22813_s4 + $0x1a0] sm:$0xff] %vm13403_vm2, %v13327_v16 }
 0x9f0   :  { %13424 = vst.msk [vmem:[%s22813_s4 + $0xa0] sm:$0xff] %vm13403_vm2, %v13263_v15 }
 0x9f2   :  { %v13328_v39 = vpop.trf.xlu0 }
 0x9f3   :  { %v13264_v4 = vpop.trf.xlu1  ;;  %13457 = vst.msk [vmem:[%s22813_s4 + $0x1a8] sm:$0xff] %vm13403_vm2, %v13328_v39 }
 0x9f4   :  { %13425 = vst.msk [vmem:[%s22813_s4 + $0xa8] sm:$0xff] %vm13403_vm2, %v13264_v4 }
 0x9f6   :  { %v13329_v57 = vpop.trf.xlu0 }
 0x9f7   :  { %v13265_v42 = vpop.trf.xlu1  ;;  %13458 = vst.msk [vmem:[%s22813_s4 + $0x1b0] sm:$0xff] %vm13403_vm2, %v13329_v57 }
 0x9f8   :  { %13426 = vst.msk [vmem:[%s22813_s4 + $0xb0] sm:$0xff] %vm13403_vm2, %v13265_v42 }
 0x9fa   :  { %v13330_v0 = vpop.trf.xlu0 }
 0x9fb   :  { %v13266_v58 = vpop.trf.xlu1  ;;  %13459 = vst.msk [vmem:[%s22813_s4 + $0x1b8] sm:$0xff] %vm13403_vm2, %v13330_v0 }
 0x9fc   :  { %13427 = vst.msk [vmem:[%s22813_s4 + $0xb8] sm:$0xff] %vm13403_vm2, %v13266_v58 }
 0x9fe   :  { %v13331_v40 = vpop.trf.xlu0 }
 0x9ff   :  { %v13267_v56 = vpop.trf.xlu1  ;;  %13460 = vst.msk [vmem:[%s22813_s4 + $0x1c0] sm:$0xff] %vm13403_vm2, %v13331_v40 }
 0xa00   :  { %13428 = vst.msk [vmem:[%s22813_s4 + $0xc0] sm:$0xff] %vm13403_vm2, %v13267_v56 }
 0xa02   :  { %v13332_v44 = vpop.trf.xlu0 }
 0xa03   :  { %v13268_v53 = vpop.trf.xlu1  ;;  %13461 = vst.msk [vmem:[%s22813_s4 + $0x1c8] sm:$0xff] %vm13403_vm2, %v13332_v44 }
 0xa04   :  { %13429 = vst.msk [vmem:[%s22813_s4 + $0xc8] sm:$0xff] %vm13403_vm2, %v13268_v53 }
 0xa06   :  { %v13333_v5 = vpop.trf.xlu0 }
 0xa07   :  { %v13269_v33 = vpop.trf.xlu1  ;;  %13462 = vst.msk [vmem:[%s22813_s4 + $0x1d0] sm:$0xff] %vm13403_vm2, %v13333_v5 }
 0xa08   :  { %13430 = vst.msk [vmem:[%s22813_s4 + $0xd0] sm:$0xff] %vm13403_vm2, %v13269_v33 }
 0xa0a   :  { %v13334_v31 = vpop.trf.xlu0 }
 0xa0b   :  { %v13270_v62 = vpop.trf.xlu1  ;;  %13463 = vst.msk [vmem:[%s22813_s4 + $0x1d8] sm:$0xff] %vm13403_vm2, %v13334_v31 }
 0xa0c   :  { %13431 = vst.msk [vmem:[%s22813_s4 + $0xd8] sm:$0xff] %vm13403_vm2, %v13270_v62 }
 0xa0e   :  { %v13335_v20 = vpop.trf.xlu0 }
 0xa0f   :  { %v13271_v6 = vpop.trf.xlu1  ;;  %13464 = vst.msk [vmem:[%s22813_s4 + $0x1e0] sm:$0xff] %vm13403_vm2, %v13335_v20 }
 0xa10   :  { %13432 = vst.msk [vmem:[%s22813_s4 + $0xe0] sm:$0xff] %vm13403_vm2, %v13271_v6 }
 0xa12   :  { %v13336_v52 = vpop.trf.xlu0 }
 0xa13   :  { %v13272_v11 = vpop.trf.xlu1  ;;  %13465 = vst.msk [vmem:[%s22813_s4 + $0x1e8] sm:$0xff] %vm13403_vm2, %v13336_v52 }
 0xa14   :  { %13433 = vst.msk [vmem:[%s22813_s4 + $0xe8] sm:$0xff] %vm13403_vm2, %v13272_v11 }
 0xa16   :  { %v13337_v47 = vpop.trf.xlu0 }
 0xa17   :  { %v13273_v2 = vpop.trf.xlu1  ;;  %13466 = vst.msk [vmem:[%s22813_s4 + $0x1f0] sm:$0xff] %vm13403_vm2, %v13337_v47 }
 0xa18   :  { %13434 = vst.msk [vmem:[%s22813_s4 + $0xf0] sm:$0xff] %vm13403_vm2, %v13273_v2 }
 0xa1a   :  { %v13338_v30 = vpop.trf.xlu0 }
 0xa1b   :  { %v13274_v38 = vpop.trf.xlu1  ;;  %13467 = vst.msk [vmem:[%s22813_s4 + $0x1f8] sm:$0xff] %vm13403_vm2, %v13338_v30 }
 0xa1c   :  { %13435 = vst.msk [vmem:[%s22813_s4 + $0xf8] sm:$0xff] %vm13403_vm2, %v13274_v38 }
 0xa1e   :  { %v13387_v59 = vpop.trf.xlu0 }
 0xa1f   :  { %v13355_v36 = vpop.trf.xlu1  ;;  %13484 = vst.msk [vmem:[%s22813_s4 + $0x280] sm:$0xff] %vm13403_vm2, %v13387_v59 }
 0xa20   :  { %13468 = vst.msk [vmem:[%s22813_s4 + $0x200] sm:$0xff] %vm13403_vm2, %v13355_v36 }
 0xa22   :  { %v13388_v10 = vpop.trf.xlu0 }
 0xa23   :  { %v13356_v9 = vpop.trf.xlu1  ;;  %13485 = vst.msk [vmem:[%s22813_s4 + $0x288] sm:$0xff] %vm13403_vm2, %v13388_v10 }
 0xa24   :  { %13469 = vst.msk [vmem:[%s22813_s4 + $0x208] sm:$0xff] %vm13403_vm2, %v13356_v9 }
 0xa26   :  { %v13389_v3 = vpop.trf.xlu0 }
 0xa27   :  { %v13357_v28 = vpop.trf.xlu1  ;;  %13486 = vst.msk [vmem:[%s22813_s4 + $0x290] sm:$0xff] %vm13403_vm2, %v13389_v3 }
 0xa28   :  { %13470 = vst.msk [vmem:[%s22813_s4 + $0x210] sm:$0xff] %vm13403_vm2, %v13357_v28 }
 0xa2a   :  { %v13390_v43 = vpop.trf.xlu0 }
 0xa2b   :  { %v13358_v8 = vpop.trf.xlu1  ;;  %13487 = vst.msk [vmem:[%s22813_s4 + $0x298] sm:$0xff] %vm13403_vm2, %v13390_v43 }
 0xa2c   :  { %13471 = vst.msk [vmem:[%s22813_s4 + $0x218] sm:$0xff] %vm13403_vm2, %v13358_v8 }
 0xa2e   :  { %v13391_v13 = vpop.trf.xlu0 }
 0xa2f   :  { %v13359_v54 = vpop.trf.xlu1  ;;  %13488 = vst.msk [vmem:[%s22813_s4 + $0x2a0] sm:$0xff] %vm13403_vm2, %v13391_v13 }
 0xa30   :  { %13472 = vst.msk [vmem:[%s22813_s4 + $0x220] sm:$0xff] %vm13403_vm2, %v13359_v54 }
 0xa32   :  { %v13392_v18 = vpop.trf.xlu0 }
 0xa33   :  { %v13360_v32 = vpop.trf.xlu1  ;;  %13489 = vst.msk [vmem:[%s22813_s4 + $0x2a8] sm:$0xff] %vm13403_vm2, %v13392_v18 }
 0xa34   :  { %13473 = vst.msk [vmem:[%s22813_s4 + $0x228] sm:$0xff] %vm13403_vm2, %v13360_v32 }
 0xa36   :  { %v13393_v21 = vpop.trf.xlu0 }
 0xa37   :  { %v13361_v60 = vpop.trf.xlu1  ;;  %13490 = vst.msk [vmem:[%s22813_s4 + $0x2b0] sm:$0xff] %vm13403_vm2, %v13393_v21 }
 0xa38   :  { %13474 = vst.msk [vmem:[%s22813_s4 + $0x230] sm:$0xff] %vm13403_vm2, %v13361_v60 }
 0xa3a   :  { %v13394_v22 = vpop.trf.xlu0 }
 0xa3b   :  { %v13362_v19 = vpop.trf.xlu1  ;;  %13492 = vst.msk [vmem:[%s22813_s4 + $0x2b8] sm:$0x1f] %vm13491_vm3, %v13394_v22 }
 0xa3c   :  { %13475 = vst.msk [vmem:[%s22813_s4 + $0x238] sm:$0xff] %vm13403_vm2, %v13362_v19 }
 0xa3f   :  { %v13363_v17 = vpop.trf.xlu1 }
 0xa40   :  { %13476 = vst.msk [vmem:[%s22813_s4 + $0x240] sm:$0xff] %vm13403_vm2, %v13363_v17 }
 0xa43   :  { %v13364_v46 = vpop.trf.xlu1 }
 0xa44   :  { %13477 = vst.msk [vmem:[%s22813_s4 + $0x248] sm:$0xff] %vm13403_vm2, %v13364_v46 }
 0xa47   :  { %v13365_v35 = vpop.trf.xlu1 }
 0xa48   :  { %13478 = vst.msk [vmem:[%s22813_s4 + $0x250] sm:$0xff] %vm13403_vm2, %v13365_v35 }
 0xa4b   :  { %v13366_v26 = vpop.trf.xlu1 }
 0xa4c   :  { %13479 = vst.msk [vmem:[%s22813_s4 + $0x258] sm:$0xff] %vm13403_vm2, %v13366_v26 }
 0xa4f   :  { %v13367_v7 = vpop.trf.xlu1 }
 0xa50   :  { %13480 = vst.msk [vmem:[%s22813_s4 + $0x260] sm:$0xff] %vm13403_vm2, %v13367_v7 }
 0xa53   :  { %v13368_v1 = vpop.trf.xlu1 }
 0xa54   :  { %13481 = vst.msk [vmem:[%s22813_s4 + $0x268] sm:$0xff] %vm13403_vm2, %v13368_v1 }
 0xa57   :  { %v13369_v27 = vpop.trf.xlu1 }
 0xa58   :  { %13482 = vst.msk [vmem:[%s22813_s4 + $0x270] sm:$0xff] %vm13403_vm2, %v13369_v27 }
 0xa5b   :  { %v13370_v24 = vpop.trf.xlu1 }
 0xa5c   :  { %13483 = vst.msk [vmem:[%s22813_s4 + $0x278] sm:$0xff] %vm13403_vm2, %v13370_v24 }
 0xa5d   :  { %13497 = vsyncpa [#allocation5], 1 }
 0xa5e   :  { %13498 = vsyncpa [#allocation7], 1 }

</bundles_post_ra>
